<compile_context>
chip_gen: v6e
topology: v6e:2x2x1
jax: 0.10.0
libtpu: 0.0.40
codegen_flags: <defaults>
</compile_context>

<pallas_src>
import jax
import jax.numpy as jnp
from jax.experimental import pallas as pl
from jax.experimental.pallas import tpu as pltpu


def _full_spec(shape):
    return pl.BlockSpec(shape, lambda: (0,) * len(shape))


# ------------------------------ fused Pallas kernel ------------------------------

def crnn_kernel(xph_ref, w1_ref, b1_ref, w2_ref, b2_ref, w3_ref, b3_ref,
                wih_ref, brnn_ref, whh_ref, wfc_ref, bfc_ref,
                o_ref, feat_ref):
    n_batch = xph_ref.shape[3]

    XPH = xph_ref[...]          # (3, 8, 25, N)  polyphase input: XPH[b,p,s,n]=x[8s+p]
    W1 = w1_ref[...]            # (3, 3, 32)     [branch, tap, cout]
    B1 = b1_ref[...]            # (3, 1, 32)
    W2 = w2_ref[...]            # (3, 3, 32, 32) [branch, tap, cin, cout]
    B2 = b2_ref[...]
    W3 = w3_ref[...]
    B3 = b3_ref[...]

    for b in range(3):
        w1b, b1b = W1[b], B1[b]            # (3,32), (1,32)
        w2b, b2b = W2[b], B2[b]            # (3,32,32), (1,32)
        w3b, b3b = W3[b], B3[b]

        def conv1(c0, c1, c2):
            # C_in = 1: each tap is a (rows,1)*(1,32) broadcast multiply on the VPU.
            return jnp.maximum(
                c0 * w1b[0:1, :] + c1 * w1b[1:2, :] + c2 * w1b[2:3, :] + b1b, 0.0)

        def conv_taps(u0, u1, u2, w, bias):
            acc = (jnp.dot(u0, w[0], preferred_element_type=jnp.float32)
                   + jnp.dot(u1, w[1], preferred_element_type=jnp.float32)
                   + jnp.dot(u2, w[2], preferred_element_type=jnp.float32))
            return jnp.maximum(acc + bias, 0.0)

        for n in range(n_batch):
            xp = [XPH[b, p, :, n:n + 1] for p in range(8)]     # each (25, 1)

            # conv_1 (1->32, k=3, s=2): y1[k] = relu(sum_t w1[t]*x[2k+t] + b1),
            # produced as 4 polyphase pieces  y1[4s+r].
            a0 = conv1(xp[0], xp[1], xp[2])                    # y1[4s],   s=0..24  (25,32)
            a1 = conv1(xp[2][0:24], xp[3][0:24], xp[4][0:24])  # y1[4s+1], s=0..23  (24,32)
            a2 = conv1(xp[4][0:24], xp[5][0:24], xp[6][0:24])  # y1[4s+2], s=0..23  (24,32)
            a3 = conv1(xp[6][0:24], xp[7][0:24], xp[0][1:25])  # y1[4s+3], s=0..23  (24,32)

            # conv_2 (32->32, k=3, s=2): even/odd output phases, q=0..23.
            y2e = conv_taps(a0[0:24], a1, a2, w2b, b2b)        # y2[2q]    (24,32)
            y2o = conv_taps(a2, a3, a0[1:25], w2b, b2b)        # y2[2q+1]  (24,32)

            # conv_3 (32->32, k=3, s=1): even/odd output phases, p=0..22.
            y3e = conv_taps(y2e[0:23], y2o[0:23], y2e[1:24], w3b, b3b)   # y3[2p]   (23,32)
            y3o = conv_taps(y2o[0:23], y2e[1:24], y2o[1:24], w3b, b3b)   # y3[2p+1] (23,32)

            # MaxPool1d(2): z[p] = max(y3[2p], y3[2p+1]); y3[46] is dropped (floor).
            pooled = jnp.maximum(y3e, y3o)                     # (23, 32)

            # Flatten (position-major; Wih columns were permuted in the wrapper to
            # match) into the (N, 2208) feature scratch.
            base = b * 23 * 32
            for p in range(23):
                feat_ref[n:n + 1, base + p * 32: base + (p + 1) * 32] = pooled[p:p + 1, :]

    # RNN input projection for all timesteps at once: (N,2208)@(2208,100) on the MXU.
    xproj = (jnp.dot(feat_ref[...], wih_ref[...], preferred_element_type=jnp.float32)
             + brnn_ref[...])                                   # (N, 100)

    whh_t = whh_ref[...]        # (100, 100)  = Whh.T
    wfc_t = wfc_ref[...]        # (100, 2)    = fc2.weight.T
    bfc = bfc_ref[...]          # (1, 2)

    # Seq-first RNN: seq_len = N, batch = 1, h0 = 0; hidden carries across rows.
    h = jnp.zeros((1, whh_t.shape[0]), jnp.float32)
    for t in range(n_batch):
        h = jnp.tanh(xproj[t:t + 1, :]
                     + jnp.dot(h, whh_t, preferred_element_type=jnp.float32))
        z = jnp.dot(h, wfc_t, preferred_element_type=jnp.float32) + bfc     # (1, 2)
        m = jnp.max(z, axis=1, keepdims=True)
        lse = m + jnp.log(jnp.sum(jnp.exp(z - m), axis=1, keepdims=True))
        o_ref[t:t + 1, :] = z - lse


# ---------------------------------- wrapper ----------------------------------

def crnn_forward(data, params):
    # data: (N, 3, 200) float32.  Conv_com implies L=200: 200 ->99 ->49 ->47 ->pool 23,
    # 32*23 = 736 per branch, 3*736 = 2208 = RNN input_size.
    convs, Wih, Whh, bih, bhh, Wfc, bfc = params
    N = data.shape[0]

    # Polyphase input: xph[b, p, s, n] = data[n, b, 8*s + p]  (total downsample = 8).
    xph = jnp.transpose(data.reshape(N, 3, 25, 8), (1, 3, 2, 0))      # (3, 8, 25, N)

    # Per-branch conv weights in per-tap (C_in, C_out) form (tiny, wrapper-side only).
    w1 = jnp.stack([jnp.transpose(c[0][:, 0, :], (1, 0)) for c in convs])   # (3,3,32)
    b1 = jnp.stack([c[1].reshape(1, -1) for c in convs])                    # (3,1,32)
    w2 = jnp.stack([jnp.transpose(c[2], (2, 1, 0)) for c in convs])         # (3,3,32,32)
    b2 = jnp.stack([c[3].reshape(1, -1) for c in convs])
    w3 = jnp.stack([jnp.transpose(c[4], (2, 1, 0)) for c in convs])
    b3 = jnp.stack([c[5].reshape(1, -1) for c in convs])

    # PyTorch feature order is (branch, channel, position); the kernel emits
    # (branch, position, channel).  Permute Wih columns once here (weights only).
    wih_t = jnp.transpose(Wih.reshape(100, 3, 32, 23),
                          (1, 3, 2, 0)).reshape(3 * 23 * 32, 100)           # (2208,100)
    brnn = (bih + bhh).reshape(1, 100)
    whh_t = Whh.T
    wfc_t = Wfc.T
    bfc2 = bfc.reshape(1, 2)

    args = (xph, w1, b1, w2, b2, w3, b3, wih_t, brnn, whh_t, wfc_t, bfc2)
    return pl.pallas_call(
        crnn_kernel,
        out_shape=jax.ShapeDtypeStruct((N, 2), jnp.float32),
        in_specs=[_full_spec(a.shape) for a in args],
        out_specs=_full_spec((N, 2)),
        scratch_shapes=[pltpu.VMEM((N, 3 * 23 * 32), jnp.float32)],
        compiler_params=pltpu.CompilerParams(vmem_limit_bytes=32 * 1024 * 1024),
    )(*args)


# ---------------------------- pure-JAX reference ----------------------------

def _conv1d_ref(x, w, b, stride):
    # x: (N, Cin, L), w: (Cout, Cin, K), b: (Cout,)
    K = w.shape[2]
    Lout = (x.shape[2] - K) // stride + 1
    y = jnp.zeros((x.shape[0], w.shape[0], Lout), jnp.float32) + b[None, :, None]
    for t in range(K):
        xt = x[:, :, t: t + stride * (Lout - 1) + 1: stride]        # (N, Cin, Lout)
        y = y + jnp.einsum('ncl,oc->nol', xt, w[:, :, t])
    return y


def _conv_com_ref(x, cp):
    w1, b1, w2, b2, w3, b3 = cp
    o = jax.nn.relu(_conv1d_ref(x, w1, b1, 2))
    o = jax.nn.relu(_conv1d_ref(o, w2, b2, 2))
    o = jax.nn.relu(_conv1d_ref(o, w3, b3, 1))
    n, c, l = o.shape
    o = o[:, :, :(l // 2) * 2].reshape(n, c, l // 2, 2).max(axis=3)
    return o.reshape(n, c * (l // 2))


def crnn_reference(data, params):
    convs, Wih, Whh, bih, bhh, Wfc, bfc = params
    feats = [_conv_com_ref(data[:, i:i + 1, :], convs[i]) for i in range(3)]
    feat = jnp.concatenate(feats, axis=1)                            # (N, 2208)
    n = feat.shape[0]
    h = jnp.zeros((100,), jnp.float32)
    hs = []
    for t in range(n):
        h = jnp.tanh(feat[t] @ Wih.T + bih + h @ Whh.T + bhh)
        hs.append(h)
    logits = jnp.stack(hs) @ Wfc.T + bfc
    return jax.nn.log_softmax(logits, axis=1)


# ----------------------------------- init -----------------------------------

def init_params(key):
    ks = list(jax.random.split(key, 24))
    it = iter(ks)

    def nrm(shape, s):
        return s * jax.random.normal(next(it), shape, jnp.float32)

    convs = []
    for _ in range(3):
        convs.append((nrm((32, 1, 3), 0.1), nrm((32,), 0.1),
                      nrm((32, 32, 3), 0.1), nrm((32,), 0.1),
                      nrm((32, 32, 3), 0.1), nrm((32,), 0.1)))
    Wih = nrm((100, 2208), 0.01)
    Whh = nrm((100, 100), 0.1)
    bih = nrm((100,), 0.1)
    bhh = nrm((100,), 0.1)
    Wfc = nrm((2, 100), 0.1)
    bfc = nrm((2,), 0.1)
    return (tuple(convs), Wih, Whh, bih, bhh, Wfc, bfc)


if __name__ == "__main__":
    key = jax.random.PRNGKey(0)
    k_data, k_params = jax.random.split(key)
    # Small batch N=2; length 200 is what the module's 2208 RNN input_size implies.
    data = jax.random.normal(k_data, (2, 3, 200), jnp.float32)
    params = init_params(k_params)

    out = jax.jit(crnn_forward)(data, params)
    out = jax.block_until_ready(out)
    assert out.shape == (2, 2)
    # log_softmax rows exponentiate-sum to ~1
    assert bool(jnp.all(jnp.abs(jnp.sum(jnp.exp(out), axis=1) - 1.0) < 1e-4))

    # Cross-check against a pure-JAX (XLA) reference of the PyTorch forward.
    ref = jax.block_until_ready(jax.jit(crnn_reference)(data, params))
    assert bool(jnp.all(jnp.abs(out - ref) < 5e-2))

    print("KERNEL_OK")
</pallas_src>

<mosaic_0001>
module attributes {stable_mosaic.version = 11 : i64} {
  func.func @crnn_kernel(%arg0: memref<3x8x25x2xf32, #tpu.memory_space<vmem>>, %arg1: memref<3x3x32xf32, #tpu.memory_space<vmem>>, %arg2: memref<3x1x32xf32, #tpu.memory_space<vmem>>, %arg3: memref<3x3x32x32xf32, #tpu.memory_space<vmem>>, %arg4: memref<3x1x32xf32, #tpu.memory_space<vmem>>, %arg5: memref<3x3x32x32xf32, #tpu.memory_space<vmem>>, %arg6: memref<3x1x32xf32, #tpu.memory_space<vmem>>, %arg7: memref<2208x100xf32, #tpu.memory_space<vmem>>, %arg8: memref<1x100xf32, #tpu.memory_space<vmem>>, %arg9: memref<100x100xf32, #tpu.memory_space<vmem>>, %arg10: memref<100x2xf32, #tpu.memory_space<vmem>>, %arg11: memref<1x2xf32, #tpu.memory_space<vmem>>, %arg12: memref<2x2xf32, #tpu.memory_space<vmem>>, %arg13: memref<2x2208xf32, #tpu.memory_space<vmem>>) attributes {dimension_semantics = [], scalar_prefetch = 0 : i64, scratch_operands = 1 : i64, tpu.core_type = #tpu.core_type<tc>} {
    %c0 = arith.constant 0 : index
    %c0_0 = arith.constant 0 : index
    %c0_1 = arith.constant 0 : index
    %c0_2 = arith.constant 0 : index
    %0 = vector.load %arg0[%c0, %c0_0, %c0_1, %c0_2] : memref<3x8x25x2xf32, #tpu.memory_space<vmem>>, vector<3x8x25x2xf32>
    %c0_3 = arith.constant 0 : index
    %c0_4 = arith.constant 0 : index
    %c0_5 = arith.constant 0 : index
    %1 = vector.load %arg1[%c0_3, %c0_4, %c0_5] : memref<3x3x32xf32, #tpu.memory_space<vmem>>, vector<3x3x32xf32>
    %c0_6 = arith.constant 0 : index
    %c0_7 = arith.constant 0 : index
    %c0_8 = arith.constant 0 : index
    %2 = vector.load %arg2[%c0_6, %c0_7, %c0_8] : memref<3x1x32xf32, #tpu.memory_space<vmem>>, vector<3x1x32xf32>
    %c0_9 = arith.constant 0 : index
    %c0_10 = arith.constant 0 : index
    %c0_11 = arith.constant 0 : index
    %c0_12 = arith.constant 0 : index
    %3 = vector.load %arg3[%c0_9, %c0_10, %c0_11, %c0_12] : memref<3x3x32x32xf32, #tpu.memory_space<vmem>>, vector<3x3x32x32xf32>
    %c0_13 = arith.constant 0 : index
    %c0_14 = arith.constant 0 : index
    %c0_15 = arith.constant 0 : index
    %4 = vector.load %arg4[%c0_13, %c0_14, %c0_15] : memref<3x1x32xf32, #tpu.memory_space<vmem>>, vector<3x1x32xf32>
    %c0_16 = arith.constant 0 : index
    %c0_17 = arith.constant 0 : index
    %c0_18 = arith.constant 0 : index
    %c0_19 = arith.constant 0 : index
    %5 = vector.load %arg5[%c0_16, %c0_17, %c0_18, %c0_19] : memref<3x3x32x32xf32, #tpu.memory_space<vmem>>, vector<3x3x32x32xf32>
    %c0_20 = arith.constant 0 : index
    %c0_21 = arith.constant 0 : index
    %c0_22 = arith.constant 0 : index
    %6 = vector.load %arg6[%c0_20, %c0_21, %c0_22] : memref<3x1x32xf32, #tpu.memory_space<vmem>>, vector<3x1x32xf32>
    %7 = vector.extract_strided_slice %1 {offsets = [0, 0, 0], sizes = [1, 3, 32], strides = [1, 1, 1]} : vector<3x3x32xf32> to vector<1x3x32xf32>
    %8 = vector.shape_cast %7 : vector<1x3x32xf32> to vector<3x32xf32>
    %9 = vector.extract_strided_slice %2 {offsets = [0, 0, 0], sizes = [1, 1, 32], strides = [1, 1, 1]} : vector<3x1x32xf32> to vector<1x1x32xf32>
    %10 = vector.shape_cast %9 : vector<1x1x32xf32> to vector<1x32xf32>
    %11 = vector.extract_strided_slice %3 {offsets = [0, 0, 0, 0], sizes = [1, 3, 32, 32], strides = [1, 1, 1, 1]} : vector<3x3x32x32xf32> to vector<1x3x32x32xf32>
    %12 = vector.shape_cast %11 : vector<1x3x32x32xf32> to vector<3x32x32xf32>
    %13 = vector.extract_strided_slice %4 {offsets = [0, 0, 0], sizes = [1, 1, 32], strides = [1, 1, 1]} : vector<3x1x32xf32> to vector<1x1x32xf32>
    %14 = vector.shape_cast %13 : vector<1x1x32xf32> to vector<1x32xf32>
    %15 = vector.extract_strided_slice %5 {offsets = [0, 0, 0, 0], sizes = [1, 3, 32, 32], strides = [1, 1, 1, 1]} : vector<3x3x32x32xf32> to vector<1x3x32x32xf32>
    %16 = vector.shape_cast %15 : vector<1x3x32x32xf32> to vector<3x32x32xf32>
    %17 = vector.extract_strided_slice %6 {offsets = [0, 0, 0], sizes = [1, 1, 32], strides = [1, 1, 1]} : vector<3x1x32xf32> to vector<1x1x32xf32>
    %18 = vector.shape_cast %17 : vector<1x1x32xf32> to vector<1x32xf32>
    %19 = vector.extract_strided_slice %0 {offsets = [0, 0, 0, 0], sizes = [1, 1, 25, 1], strides = [1, 1, 1, 1]} : vector<3x8x25x2xf32> to vector<1x1x25x1xf32>
    %20 = vector.shape_cast %19 : vector<1x1x25x1xf32> to vector<25x1xf32>
    %21 = vector.extract_strided_slice %0 {offsets = [0, 1, 0, 0], sizes = [1, 1, 25, 1], strides = [1, 1, 1, 1]} : vector<3x8x25x2xf32> to vector<1x1x25x1xf32>
    %22 = vector.shape_cast %21 : vector<1x1x25x1xf32> to vector<25x1xf32>
    %23 = vector.extract_strided_slice %0 {offsets = [0, 2, 0, 0], sizes = [1, 1, 25, 1], strides = [1, 1, 1, 1]} : vector<3x8x25x2xf32> to vector<1x1x25x1xf32>
    %24 = vector.shape_cast %23 : vector<1x1x25x1xf32> to vector<25x1xf32>
    %25 = vector.extract_strided_slice %0 {offsets = [0, 3, 0, 0], sizes = [1, 1, 25, 1], strides = [1, 1, 1, 1]} : vector<3x8x25x2xf32> to vector<1x1x25x1xf32>
    %26 = vector.shape_cast %25 : vector<1x1x25x1xf32> to vector<25x1xf32>
    %27 = vector.extract_strided_slice %0 {offsets = [0, 4, 0, 0], sizes = [1, 1, 25, 1], strides = [1, 1, 1, 1]} : vector<3x8x25x2xf32> to vector<1x1x25x1xf32>
    %28 = vector.shape_cast %27 : vector<1x1x25x1xf32> to vector<25x1xf32>
    %29 = vector.extract_strided_slice %0 {offsets = [0, 5, 0, 0], sizes = [1, 1, 25, 1], strides = [1, 1, 1, 1]} : vector<3x8x25x2xf32> to vector<1x1x25x1xf32>
    %30 = vector.shape_cast %29 : vector<1x1x25x1xf32> to vector<25x1xf32>
    %31 = vector.extract_strided_slice %0 {offsets = [0, 6, 0, 0], sizes = [1, 1, 25, 1], strides = [1, 1, 1, 1]} : vector<3x8x25x2xf32> to vector<1x1x25x1xf32>
    %32 = vector.shape_cast %31 : vector<1x1x25x1xf32> to vector<25x1xf32>
    %33 = vector.extract_strided_slice %0 {offsets = [0, 7, 0, 0], sizes = [1, 1, 25, 1], strides = [1, 1, 1, 1]} : vector<3x8x25x2xf32> to vector<1x1x25x1xf32>
    %34 = vector.shape_cast %33 : vector<1x1x25x1xf32> to vector<25x1xf32>
    %35 = vector.extract_strided_slice %8 {offsets = [0, 0], sizes = [1, 32], strides = [1, 1]} : vector<3x32xf32> to vector<1x32xf32>
    %36 = vector.broadcast %20 : vector<25x1xf32> to vector<25x32xf32>
    %37 = vector.broadcast %35 : vector<1x32xf32> to vector<25x32xf32>
    %38 = arith.mulf %36, %37 : vector<25x32xf32>
    %39 = vector.extract_strided_slice %8 {offsets = [1, 0], sizes = [1, 32], strides = [1, 1]} : vector<3x32xf32> to vector<1x32xf32>
    %40 = vector.broadcast %22 : vector<25x1xf32> to vector<25x32xf32>
    %41 = vector.broadcast %39 : vector<1x32xf32> to vector<25x32xf32>
    %42 = arith.mulf %40, %41 : vector<25x32xf32>
    %43 = arith.addf %38, %42 : vector<25x32xf32>
    %44 = vector.extract_strided_slice %8 {offsets = [2, 0], sizes = [1, 32], strides = [1, 1]} : vector<3x32xf32> to vector<1x32xf32>
    %45 = vector.broadcast %24 : vector<25x1xf32> to vector<25x32xf32>
    %46 = vector.broadcast %44 : vector<1x32xf32> to vector<25x32xf32>
    %47 = arith.mulf %45, %46 : vector<25x32xf32>
    %48 = arith.addf %43, %47 : vector<25x32xf32>
    %49 = vector.broadcast %10 : vector<1x32xf32> to vector<25x32xf32>
    %50 = arith.addf %48, %49 : vector<25x32xf32>
    %cst = arith.constant 0.000000e+00 : f32
    %51 = vector.broadcast %cst : f32 to vector<25x32xf32>
    %52 = arith.maximumf %50, %51 : vector<25x32xf32>
    %53 = vector.extract_strided_slice %24 {offsets = [0, 0], sizes = [24, 1], strides = [1, 1]} : vector<25x1xf32> to vector<24x1xf32>
    %54 = vector.extract_strided_slice %26 {offsets = [0, 0], sizes = [24, 1], strides = [1, 1]} : vector<25x1xf32> to vector<24x1xf32>
    %55 = vector.extract_strided_slice %28 {offsets = [0, 0], sizes = [24, 1], strides = [1, 1]} : vector<25x1xf32> to vector<24x1xf32>
    %56 = vector.extract_strided_slice %8 {offsets = [0, 0], sizes = [1, 32], strides = [1, 1]} : vector<3x32xf32> to vector<1x32xf32>
    %57 = vector.broadcast %53 : vector<24x1xf32> to vector<24x32xf32>
    %58 = vector.broadcast %56 : vector<1x32xf32> to vector<24x32xf32>
    %59 = arith.mulf %57, %58 : vector<24x32xf32>
    %60 = vector.extract_strided_slice %8 {offsets = [1, 0], sizes = [1, 32], strides = [1, 1]} : vector<3x32xf32> to vector<1x32xf32>
    %61 = vector.broadcast %54 : vector<24x1xf32> to vector<24x32xf32>
    %62 = vector.broadcast %60 : vector<1x32xf32> to vector<24x32xf32>
    %63 = arith.mulf %61, %62 : vector<24x32xf32>
    %64 = arith.addf %59, %63 : vector<24x32xf32>
    %65 = vector.extract_strided_slice %8 {offsets = [2, 0], sizes = [1, 32], strides = [1, 1]} : vector<3x32xf32> to vector<1x32xf32>
    %66 = vector.broadcast %55 : vector<24x1xf32> to vector<24x32xf32>
    %67 = vector.broadcast %65 : vector<1x32xf32> to vector<24x32xf32>
    %68 = arith.mulf %66, %67 : vector<24x32xf32>
    %69 = arith.addf %64, %68 : vector<24x32xf32>
    %70 = vector.broadcast %10 : vector<1x32xf32> to vector<24x32xf32>
    %71 = arith.addf %69, %70 : vector<24x32xf32>
    %cst_23 = arith.constant 0.000000e+00 : f32
    %72 = vector.broadcast %cst_23 : f32 to vector<24x32xf32>
    %73 = arith.maximumf %71, %72 : vector<24x32xf32>
    %74 = vector.extract_strided_slice %28 {offsets = [0, 0], sizes = [24, 1], strides = [1, 1]} : vector<25x1xf32> to vector<24x1xf32>
    %75 = vector.extract_strided_slice %30 {offsets = [0, 0], sizes = [24, 1], strides = [1, 1]} : vector<25x1xf32> to vector<24x1xf32>
    %76 = vector.extract_strided_slice %32 {offsets = [0, 0], sizes = [24, 1], strides = [1, 1]} : vector<25x1xf32> to vector<24x1xf32>
    %77 = vector.extract_strided_slice %8 {offsets = [0, 0], sizes = [1, 32], strides = [1, 1]} : vector<3x32xf32> to vector<1x32xf32>
    %78 = vector.broadcast %74 : vector<24x1xf32> to vector<24x32xf32>
    %79 = vector.broadcast %77 : vector<1x32xf32> to vector<24x32xf32>
    %80 = arith.mulf %78, %79 : vector<24x32xf32>
    %81 = vector.extract_strided_slice %8 {offsets = [1, 0], sizes = [1, 32], strides = [1, 1]} : vector<3x32xf32> to vector<1x32xf32>
    %82 = vector.broadcast %75 : vector<24x1xf32> to vector<24x32xf32>
    %83 = vector.broadcast %81 : vector<1x32xf32> to vector<24x32xf32>
    %84 = arith.mulf %82, %83 : vector<24x32xf32>
    %85 = arith.addf %80, %84 : vector<24x32xf32>
    %86 = vector.extract_strided_slice %8 {offsets = [2, 0], sizes = [1, 32], strides = [1, 1]} : vector<3x32xf32> to vector<1x32xf32>
    %87 = vector.broadcast %76 : vector<24x1xf32> to vector<24x32xf32>
    %88 = vector.broadcast %86 : vector<1x32xf32> to vector<24x32xf32>
    %89 = arith.mulf %87, %88 : vector<24x32xf32>
    %90 = arith.addf %85, %89 : vector<24x32xf32>
    %91 = vector.broadcast %10 : vector<1x32xf32> to vector<24x32xf32>
    %92 = arith.addf %90, %91 : vector<24x32xf32>
    %cst_24 = arith.constant 0.000000e+00 : f32
    %93 = vector.broadcast %cst_24 : f32 to vector<24x32xf32>
    %94 = arith.maximumf %92, %93 : vector<24x32xf32>
    %95 = vector.extract_strided_slice %32 {offsets = [0, 0], sizes = [24, 1], strides = [1, 1]} : vector<25x1xf32> to vector<24x1xf32>
    %96 = vector.extract_strided_slice %34 {offsets = [0, 0], sizes = [24, 1], strides = [1, 1]} : vector<25x1xf32> to vector<24x1xf32>
    %97 = vector.extract_strided_slice %20 {offsets = [1, 0], sizes = [24, 1], strides = [1, 1]} : vector<25x1xf32> to vector<24x1xf32>
    %98 = vector.extract_strided_slice %8 {offsets = [0, 0], sizes = [1, 32], strides = [1, 1]} : vector<3x32xf32> to vector<1x32xf32>
    %99 = vector.broadcast %95 : vector<24x1xf32> to vector<24x32xf32>
    %100 = vector.broadcast %98 : vector<1x32xf32> to vector<24x32xf32>
    %101 = arith.mulf %99, %100 : vector<24x32xf32>
    %102 = vector.extract_strided_slice %8 {offsets = [1, 0], sizes = [1, 32], strides = [1, 1]} : vector<3x32xf32> to vector<1x32xf32>
    %103 = vector.broadcast %96 : vector<24x1xf32> to vector<24x32xf32>
    %104 = vector.broadcast %102 : vector<1x32xf32> to vector<24x32xf32>
    %105 = arith.mulf %103, %104 : vector<24x32xf32>
    %106 = arith.addf %101, %105 : vector<24x32xf32>
    %107 = vector.extract_strided_slice %8 {offsets = [2, 0], sizes = [1, 32], strides = [1, 1]} : vector<3x32xf32> to vector<1x32xf32>
    %108 = vector.broadcast %97 : vector<24x1xf32> to vector<24x32xf32>
    %109 = vector.broadcast %107 : vector<1x32xf32> to vector<24x32xf32>
    %110 = arith.mulf %108, %109 : vector<24x32xf32>
    %111 = arith.addf %106, %110 : vector<24x32xf32>
    %112 = vector.broadcast %10 : vector<1x32xf32> to vector<24x32xf32>
    %113 = arith.addf %111, %112 : vector<24x32xf32>
    %cst_25 = arith.constant 0.000000e+00 : f32
    %114 = vector.broadcast %cst_25 : f32 to vector<24x32xf32>
    %115 = arith.maximumf %113, %114 : vector<24x32xf32>
    %116 = vector.extract_strided_slice %52 {offsets = [0, 0], sizes = [24, 32], strides = [1, 1]} : vector<25x32xf32> to vector<24x32xf32>
    %117 = vector.extract_strided_slice %12 {offsets = [0, 0, 0], sizes = [1, 32, 32], strides = [1, 1, 1]} : vector<3x32x32xf32> to vector<1x32x32xf32>
    %118 = vector.shape_cast %117 : vector<1x32x32xf32> to vector<32x32xf32>
    %cst_26 = arith.constant dense<0.000000e+00> : vector<24x32xf32>
    %119 = tpu.matmul %116, %118, %cst_26 {dimension_numbers = #tpu.dot_dimension_numbers<[1], [0], [0], [1], [0, 0, 1, 1], [], []>} : vector<24x32xf32>, vector<32x32xf32>, vector<24x32xf32> -> vector<24x32xf32>
    %120 = vector.extract_strided_slice %12 {offsets = [1, 0, 0], sizes = [1, 32, 32], strides = [1, 1, 1]} : vector<3x32x32xf32> to vector<1x32x32xf32>
    %121 = vector.shape_cast %120 : vector<1x32x32xf32> to vector<32x32xf32>
    %cst_27 = arith.constant dense<0.000000e+00> : vector<24x32xf32>
    %122 = tpu.matmul %73, %121, %cst_27 {dimension_numbers = #tpu.dot_dimension_numbers<[1], [0], [0], [1], [0, 0, 1, 1], [], []>} : vector<24x32xf32>, vector<32x32xf32>, vector<24x32xf32> -> vector<24x32xf32>
    %123 = arith.addf %119, %122 : vector<24x32xf32>
    %124 = vector.extract_strided_slice %12 {offsets = [2, 0, 0], sizes = [1, 32, 32], strides = [1, 1, 1]} : vector<3x32x32xf32> to vector<1x32x32xf32>
    %125 = vector.shape_cast %124 : vector<1x32x32xf32> to vector<32x32xf32>
    %cst_28 = arith.constant dense<0.000000e+00> : vector<24x32xf32>
    %126 = tpu.matmul %94, %125, %cst_28 {dimension_numbers = #tpu.dot_dimension_numbers<[1], [0], [0], [1], [0, 0, 1, 1], [], []>} : vector<24x32xf32>, vector<32x32xf32>, vector<24x32xf32> -> vector<24x32xf32>
    %127 = arith.addf %123, %126 : vector<24x32xf32>
    %128 = vector.broadcast %14 : vector<1x32xf32> to vector<24x32xf32>
    %129 = arith.addf %127, %128 : vector<24x32xf32>
    %cst_29 = arith.constant 0.000000e+00 : f32
    %130 = vector.broadcast %cst_29 : f32 to vector<24x32xf32>
    %131 = arith.maximumf %129, %130 : vector<24x32xf32>
    %132 = vector.extract_strided_slice %52 {offsets = [1, 0], sizes = [24, 32], strides = [1, 1]} : vector<25x32xf32> to vector<24x32xf32>
    %133 = vector.extract_strided_slice %12 {offsets = [0, 0, 0], sizes = [1, 32, 32], strides = [1, 1, 1]} : vector<3x32x32xf32> to vector<1x32x32xf32>
    %134 = vector.shape_cast %133 : vector<1x32x32xf32> to vector<32x32xf32>
    %cst_30 = arith.constant dense<0.000000e+00> : vector<24x32xf32>
    %135 = tpu.matmul %94, %134, %cst_30 {dimension_numbers = #tpu.dot_dimension_numbers<[1], [0], [0], [1], [0, 0, 1, 1], [], []>} : vector<24x32xf32>, vector<32x32xf32>, vector<24x32xf32> -> vector<24x32xf32>
    %136 = vector.extract_strided_slice %12 {offsets = [1, 0, 0], sizes = [1, 32, 32], strides = [1, 1, 1]} : vector<3x32x32xf32> to vector<1x32x32xf32>
    %137 = vector.shape_cast %136 : vector<1x32x32xf32> to vector<32x32xf32>
    %cst_31 = arith.constant dense<0.000000e+00> : vector<24x32xf32>
    %138 = tpu.matmul %115, %137, %cst_31 {dimension_numbers = #tpu.dot_dimension_numbers<[1], [0], [0], [1], [0, 0, 1, 1], [], []>} : vector<24x32xf32>, vector<32x32xf32>, vector<24x32xf32> -> vector<24x32xf32>
    %139 = arith.addf %135, %138 : vector<24x32xf32>
    %140 = vector.extract_strided_slice %12 {offsets = [2, 0, 0], sizes = [1, 32, 32], strides = [1, 1, 1]} : vector<3x32x32xf32> to vector<1x32x32xf32>
    %141 = vector.shape_cast %140 : vector<1x32x32xf32> to vector<32x32xf32>
    %cst_32 = arith.constant dense<0.000000e+00> : vector<24x32xf32>
    %142 = tpu.matmul %132, %141, %cst_32 {dimension_numbers = #tpu.dot_dimension_numbers<[1], [0], [0], [1], [0, 0, 1, 1], [], []>} : vector<24x32xf32>, vector<32x32xf32>, vector<24x32xf32> -> vector<24x32xf32>
    %143 = arith.addf %139, %142 : vector<24x32xf32>
    %144 = vector.broadcast %14 : vector<1x32xf32> to vector<24x32xf32>
    %145 = arith.addf %143, %144 : vector<24x32xf32>
    %cst_33 = arith.constant 0.000000e+00 : f32
    %146 = vector.broadcast %cst_33 : f32 to vector<24x32xf32>
    %147 = arith.maximumf %145, %146 : vector<24x32xf32>
    %148 = vector.extract_strided_slice %131 {offsets = [0, 0], sizes = [23, 32], strides = [1, 1]} : vector<24x32xf32> to vector<23x32xf32>
    %149 = vector.extract_strided_slice %147 {offsets = [0, 0], sizes = [23, 32], strides = [1, 1]} : vector<24x32xf32> to vector<23x32xf32>
    %150 = vector.extract_strided_slice %131 {offsets = [1, 0], sizes = [23, 32], strides = [1, 1]} : vector<24x32xf32> to vector<23x32xf32>
    %151 = vector.extract_strided_slice %16 {offsets = [0, 0, 0], sizes = [1, 32, 32], strides = [1, 1, 1]} : vector<3x32x32xf32> to vector<1x32x32xf32>
    %152 = vector.shape_cast %151 : vector<1x32x32xf32> to vector<32x32xf32>
    %cst_34 = arith.constant dense<0.000000e+00> : vector<23x32xf32>
    %153 = tpu.matmul %148, %152, %cst_34 {dimension_numbers = #tpu.dot_dimension_numbers<[1], [0], [0], [1], [0, 0, 1, 1], [], []>} : vector<23x32xf32>, vector<32x32xf32>, vector<23x32xf32> -> vector<23x32xf32>
    %154 = vector.extract_strided_slice %16 {offsets = [1, 0, 0], sizes = [1, 32, 32], strides = [1, 1, 1]} : vector<3x32x32xf32> to vector<1x32x32xf32>
    %155 = vector.shape_cast %154 : vector<1x32x32xf32> to vector<32x32xf32>
    %cst_35 = arith.constant dense<0.000000e+00> : vector<23x32xf32>
    %156 = tpu.matmul %149, %155, %cst_35 {dimension_numbers = #tpu.dot_dimension_numbers<[1], [0], [0], [1], [0, 0, 1, 1], [], []>} : vector<23x32xf32>, vector<32x32xf32>, vector<23x32xf32> -> vector<23x32xf32>
    %157 = arith.addf %153, %156 : vector<23x32xf32>
    %158 = vector.extract_strided_slice %16 {offsets = [2, 0, 0], sizes = [1, 32, 32], strides = [1, 1, 1]} : vector<3x32x32xf32> to vector<1x32x32xf32>
    %159 = vector.shape_cast %158 : vector<1x32x32xf32> to vector<32x32xf32>
    %cst_36 = arith.constant dense<0.000000e+00> : vector<23x32xf32>
    %160 = tpu.matmul %150, %159, %cst_36 {dimension_numbers = #tpu.dot_dimension_numbers<[1], [0], [0], [1], [0, 0, 1, 1], [], []>} : vector<23x32xf32>, vector<32x32xf32>, vector<23x32xf32> -> vector<23x32xf32>
    %161 = arith.addf %157, %160 : vector<23x32xf32>
    %162 = vector.broadcast %18 : vector<1x32xf32> to vector<23x32xf32>
    %163 = arith.addf %161, %162 : vector<23x32xf32>
    %cst_37 = arith.constant 0.000000e+00 : f32
    %164 = vector.broadcast %cst_37 : f32 to vector<23x32xf32>
    %165 = arith.maximumf %163, %164 : vector<23x32xf32>
    %166 = vector.extract_strided_slice %147 {offsets = [0, 0], sizes = [23, 32], strides = [1, 1]} : vector<24x32xf32> to vector<23x32xf32>
    %167 = vector.extract_strided_slice %131 {offsets = [1, 0], sizes = [23, 32], strides = [1, 1]} : vector<24x32xf32> to vector<23x32xf32>
    %168 = vector.extract_strided_slice %147 {offsets = [1, 0], sizes = [23, 32], strides = [1, 1]} : vector<24x32xf32> to vector<23x32xf32>
    %169 = vector.extract_strided_slice %16 {offsets = [0, 0, 0], sizes = [1, 32, 32], strides = [1, 1, 1]} : vector<3x32x32xf32> to vector<1x32x32xf32>
    %170 = vector.shape_cast %169 : vector<1x32x32xf32> to vector<32x32xf32>
    %cst_38 = arith.constant dense<0.000000e+00> : vector<23x32xf32>
    %171 = tpu.matmul %166, %170, %cst_38 {dimension_numbers = #tpu.dot_dimension_numbers<[1], [0], [0], [1], [0, 0, 1, 1], [], []>} : vector<23x32xf32>, vector<32x32xf32>, vector<23x32xf32> -> vector<23x32xf32>
    %172 = vector.extract_strided_slice %16 {offsets = [1, 0, 0], sizes = [1, 32, 32], strides = [1, 1, 1]} : vector<3x32x32xf32> to vector<1x32x32xf32>
    %173 = vector.shape_cast %172 : vector<1x32x32xf32> to vector<32x32xf32>
    %cst_39 = arith.constant dense<0.000000e+00> : vector<23x32xf32>
    %174 = tpu.matmul %167, %173, %cst_39 {dimension_numbers = #tpu.dot_dimension_numbers<[1], [0], [0], [1], [0, 0, 1, 1], [], []>} : vector<23x32xf32>, vector<32x32xf32>, vector<23x32xf32> -> vector<23x32xf32>
    %175 = arith.addf %171, %174 : vector<23x32xf32>
    %176 = vector.extract_strided_slice %16 {offsets = [2, 0, 0], sizes = [1, 32, 32], strides = [1, 1, 1]} : vector<3x32x32xf32> to vector<1x32x32xf32>
    %177 = vector.shape_cast %176 : vector<1x32x32xf32> to vector<32x32xf32>
    %cst_40 = arith.constant dense<0.000000e+00> : vector<23x32xf32>
    %178 = tpu.matmul %168, %177, %cst_40 {dimension_numbers = #tpu.dot_dimension_numbers<[1], [0], [0], [1], [0, 0, 1, 1], [], []>} : vector<23x32xf32>, vector<32x32xf32>, vector<23x32xf32> -> vector<23x32xf32>
    %179 = arith.addf %175, %178 : vector<23x32xf32>
    %180 = vector.broadcast %18 : vector<1x32xf32> to vector<23x32xf32>
    %181 = arith.addf %179, %180 : vector<23x32xf32>
    %cst_41 = arith.constant 0.000000e+00 : f32
    %182 = vector.broadcast %cst_41 : f32 to vector<23x32xf32>
    %183 = arith.maximumf %181, %182 : vector<23x32xf32>
    %184 = arith.maximumf %165, %183 : vector<23x32xf32>
    %185 = vector.extract_strided_slice %184 {offsets = [0, 0], sizes = [1, 32], strides = [1, 1]} : vector<23x32xf32> to vector<1x32xf32>
    %c0_42 = arith.constant 0 : index
    %c0_43 = arith.constant 0 : index
    %186 = vector.load %arg13[%c0_42, %c0_43] : memref<2x2208xf32, #tpu.memory_space<vmem>>, vector<1x32xf32>
    tpu.vector_store %arg13[%c0_42, %c0_43], %185 {strides = array<i32>} : memref<2x2208xf32, #tpu.memory_space<vmem>>, vector<1x32xf32>,
    %187 = vector.extract_strided_slice %184 {offsets = [1, 0], sizes = [1, 32], strides = [1, 1]} : vector<23x32xf32> to vector<1x32xf32>
    %c0_44 = arith.constant 0 : index
    %c32 = arith.constant 32 : index
    %188 = vector.load %arg13[%c0_44, %c32] : memref<2x2208xf32, #tpu.memory_space<vmem>>, vector<1x32xf32>
    tpu.vector_store %arg13[%c0_44, %c32], %187 {strides = array<i32>} : memref<2x2208xf32, #tpu.memory_space<vmem>>, vector<1x32xf32>,
    %189 = vector.extract_strided_slice %184 {offsets = [2, 0], sizes = [1, 32], strides = [1, 1]} : vector<23x32xf32> to vector<1x32xf32>
    %c0_45 = arith.constant 0 : index
    %c64 = arith.constant 64 : index
    %190 = vector.load %arg13[%c0_45, %c64] : memref<2x2208xf32, #tpu.memory_space<vmem>>, vector<1x32xf32>
    tpu.vector_store %arg13[%c0_45, %c64], %189 {strides = array<i32>} : memref<2x2208xf32, #tpu.memory_space<vmem>>, vector<1x32xf32>,
    %191 = vector.extract_strided_slice %184 {offsets = [3, 0], sizes = [1, 32], strides = [1, 1]} : vector<23x32xf32> to vector<1x32xf32>
    %c0_46 = arith.constant 0 : index
    %c96 = arith.constant 96 : index
    %192 = vector.load %arg13[%c0_46, %c96] : memref<2x2208xf32, #tpu.memory_space<vmem>>, vector<1x32xf32>
    tpu.vector_store %arg13[%c0_46, %c96], %191 {strides = array<i32>} : memref<2x2208xf32, #tpu.memory_space<vmem>>, vector<1x32xf32>,
    %193 = vector.extract_strided_slice %184 {offsets = [4, 0], sizes = [1, 32], strides = [1, 1]} : vector<23x32xf32> to vector<1x32xf32>
    %c0_47 = arith.constant 0 : index
    %c128 = arith.constant 128 : index
    %194 = vector.load %arg13[%c0_47, %c128] : memref<2x2208xf32, #tpu.memory_space<vmem>>, vector<1x32xf32>
    tpu.vector_store %arg13[%c0_47, %c128], %193 {strides = array<i32>} : memref<2x2208xf32, #tpu.memory_space<vmem>>, vector<1x32xf32>,
    %195 = vector.extract_strided_slice %184 {offsets = [5, 0], sizes = [1, 32], strides = [1, 1]} : vector<23x32xf32> to vector<1x32xf32>
    %c0_48 = arith.constant 0 : index
    %c160 = arith.constant 160 : index
    %196 = vector.load %arg13[%c0_48, %c160] : memref<2x2208xf32, #tpu.memory_space<vmem>>, vector<1x32xf32>
    tpu.vector_store %arg13[%c0_48, %c160], %195 {strides = array<i32>} : memref<2x2208xf32, #tpu.memory_space<vmem>>, vector<1x32xf32>,
    %197 = vector.extract_strided_slice %184 {offsets = [6, 0], sizes = [1, 32], strides = [1, 1]} : vector<23x32xf32> to vector<1x32xf32>
    %c0_49 = arith.constant 0 : index
    %c192 = arith.constant 192 : index
    %198 = vector.load %arg13[%c0_49, %c192] : memref<2x2208xf32, #tpu.memory_space<vmem>>, vector<1x32xf32>
    tpu.vector_store %arg13[%c0_49, %c192], %197 {strides = array<i32>} : memref<2x2208xf32, #tpu.memory_space<vmem>>, vector<1x32xf32>,
    %199 = vector.extract_strided_slice %184 {offsets = [7, 0], sizes = [1, 32], strides = [1, 1]} : vector<23x32xf32> to vector<1x32xf32>
    %c0_50 = arith.constant 0 : index
    %c224 = arith.constant 224 : index
    %200 = vector.load %arg13[%c0_50, %c224] : memref<2x2208xf32, #tpu.memory_space<vmem>>, vector<1x32xf32>
    tpu.vector_store %arg13[%c0_50, %c224], %199 {strides = array<i32>} : memref<2x2208xf32, #tpu.memory_space<vmem>>, vector<1x32xf32>,
    %201 = vector.extract_strided_slice %184 {offsets = [8, 0], sizes = [1, 32], strides = [1, 1]} : vector<23x32xf32> to vector<1x32xf32>
    %c0_51 = arith.constant 0 : index
    %c256 = arith.constant 256 : index
    %202 = vector.load %arg13[%c0_51, %c256] : memref<2x2208xf32, #tpu.memory_space<vmem>>, vector<1x32xf32>
    tpu.vector_store %arg13[%c0_51, %c256], %201 {strides = array<i32>} : memref<2x2208xf32, #tpu.memory_space<vmem>>, vector<1x32xf32>,
    %203 = vector.extract_strided_slice %184 {offsets = [9, 0], sizes = [1, 32], strides = [1, 1]} : vector<23x32xf32> to vector<1x32xf32>
    %c0_52 = arith.constant 0 : index
    %c288 = arith.constant 288 : index
    %204 = vector.load %arg13[%c0_52, %c288] : memref<2x2208xf32, #tpu.memory_space<vmem>>, vector<1x32xf32>
    tpu.vector_store %arg13[%c0_52, %c288], %203 {strides = array<i32>} : memref<2x2208xf32, #tpu.memory_space<vmem>>, vector<1x32xf32>,
    %205 = vector.extract_strided_slice %184 {offsets = [10, 0], sizes = [1, 32], strides = [1, 1]} : vector<23x32xf32> to vector<1x32xf32>
    %c0_53 = arith.constant 0 : index
    %c320 = arith.constant 320 : index
    %206 = vector.load %arg13[%c0_53, %c320] : memref<2x2208xf32, #tpu.memory_space<vmem>>, vector<1x32xf32>
    tpu.vector_store %arg13[%c0_53, %c320], %205 {strides = array<i32>} : memref<2x2208xf32, #tpu.memory_space<vmem>>, vector<1x32xf32>,
    %207 = vector.extract_strided_slice %184 {offsets = [11, 0], sizes = [1, 32], strides = [1, 1]} : vector<23x32xf32> to vector<1x32xf32>
    %c0_54 = arith.constant 0 : index
    %c352 = arith.constant 352 : index
    %208 = vector.load %arg13[%c0_54, %c352] : memref<2x2208xf32, #tpu.memory_space<vmem>>, vector<1x32xf32>
    tpu.vector_store %arg13[%c0_54, %c352], %207 {strides = array<i32>} : memref<2x2208xf32, #tpu.memory_space<vmem>>, vector<1x32xf32>,
    %209 = vector.extract_strided_slice %184 {offsets = [12, 0], sizes = [1, 32], strides = [1, 1]} : vector<23x32xf32> to vector<1x32xf32>
    %c0_55 = arith.constant 0 : index
    %c384 = arith.constant 384 : index
    %210 = vector.load %arg13[%c0_55, %c384] : memref<2x2208xf32, #tpu.memory_space<vmem>>, vector<1x32xf32>
    tpu.vector_store %arg13[%c0_55, %c384], %209 {strides = array<i32>} : memref<2x2208xf32, #tpu.memory_space<vmem>>, vector<1x32xf32>,
    %211 = vector.extract_strided_slice %184 {offsets = [13, 0], sizes = [1, 32], strides = [1, 1]} : vector<23x32xf32> to vector<1x32xf32>
    %c0_56 = arith.constant 0 : index
    %c416 = arith.constant 416 : index
    %212 = vector.load %arg13[%c0_56, %c416] : memref<2x2208xf32, #tpu.memory_space<vmem>>, vector<1x32xf32>
    tpu.vector_store %arg13[%c0_56, %c416], %211 {strides = array<i32>} : memref<2x2208xf32, #tpu.memory_space<vmem>>, vector<1x32xf32>,
    %213 = vector.extract_strided_slice %184 {offsets = [14, 0], sizes = [1, 32], strides = [1, 1]} : vector<23x32xf32> to vector<1x32xf32>
    %c0_57 = arith.constant 0 : index
    %c448 = arith.constant 448 : index
    %214 = vector.load %arg13[%c0_57, %c448] : memref<2x2208xf32, #tpu.memory_space<vmem>>, vector<1x32xf32>
    tpu.vector_store %arg13[%c0_57, %c448], %213 {strides = array<i32>} : memref<2x2208xf32, #tpu.memory_space<vmem>>, vector<1x32xf32>,
    %215 = vector.extract_strided_slice %184 {offsets = [15, 0], sizes = [1, 32], strides = [1, 1]} : vector<23x32xf32> to vector<1x32xf32>
    %c0_58 = arith.constant 0 : index
    %c480 = arith.constant 480 : index
    %216 = vector.load %arg13[%c0_58, %c480] : memref<2x2208xf32, #tpu.memory_space<vmem>>, vector<1x32xf32>
    tpu.vector_store %arg13[%c0_58, %c480], %215 {strides = array<i32>} : memref<2x2208xf32, #tpu.memory_space<vmem>>, vector<1x32xf32>,
    %217 = vector.extract_strided_slice %184 {offsets = [16, 0], sizes = [1, 32], strides = [1, 1]} : vector<23x32xf32> to vector<1x32xf32>
    %c0_59 = arith.constant 0 : index
    %c512 = arith.constant 512 : index
    %218 = vector.load %arg13[%c0_59, %c512] : memref<2x2208xf32, #tpu.memory_space<vmem>>, vector<1x32xf32>
    tpu.vector_store %arg13[%c0_59, %c512], %217 {strides = array<i32>} : memref<2x2208xf32, #tpu.memory_space<vmem>>, vector<1x32xf32>,
    %219 = vector.extract_strided_slice %184 {offsets = [17, 0], sizes = [1, 32], strides = [1, 1]} : vector<23x32xf32> to vector<1x32xf32>
    %c0_60 = arith.constant 0 : index
    %c544 = arith.constant 544 : index
    %220 = vector.load %arg13[%c0_60, %c544] : memref<2x2208xf32, #tpu.memory_space<vmem>>, vector<1x32xf32>
    tpu.vector_store %arg13[%c0_60, %c544], %219 {strides = array<i32>} : memref<2x2208xf32, #tpu.memory_space<vmem>>, vector<1x32xf32>,
    %221 = vector.extract_strided_slice %184 {offsets = [18, 0], sizes = [1, 32], strides = [1, 1]} : vector<23x32xf32> to vector<1x32xf32>
    %c0_61 = arith.constant 0 : index
    %c576 = arith.constant 576 : index
    %222 = vector.load %arg13[%c0_61, %c576] : memref<2x2208xf32, #tpu.memory_space<vmem>>, vector<1x32xf32>
    tpu.vector_store %arg13[%c0_61, %c576], %221 {strides = array<i32>} : memref<2x2208xf32, #tpu.memory_space<vmem>>, vector<1x32xf32>,
    %223 = vector.extract_strided_slice %184 {offsets = [19, 0], sizes = [1, 32], strides = [1, 1]} : vector<23x32xf32> to vector<1x32xf32>
    %c0_62 = arith.constant 0 : index
    %c608 = arith.constant 608 : index
    %224 = vector.load %arg13[%c0_62, %c608] : memref<2x2208xf32, #tpu.memory_space<vmem>>, vector<1x32xf32>
    tpu.vector_store %arg13[%c0_62, %c608], %223 {strides = array<i32>} : memref<2x2208xf32, #tpu.memory_space<vmem>>, vector<1x32xf32>,
    %225 = vector.extract_strided_slice %184 {offsets = [20, 0], sizes = [1, 32], strides = [1, 1]} : vector<23x32xf32> to vector<1x32xf32>
    %c0_63 = arith.constant 0 : index
    %c640 = arith.constant 640 : index
    %226 = vector.load %arg13[%c0_63, %c640] : memref<2x2208xf32, #tpu.memory_space<vmem>>, vector<1x32xf32>
    tpu.vector_store %arg13[%c0_63, %c640], %225 {strides = array<i32>} : memref<2x2208xf32, #tpu.memory_space<vmem>>, vector<1x32xf32>,
    %227 = vector.extract_strided_slice %184 {offsets = [21, 0], sizes = [1, 32], strides = [1, 1]} : vector<23x32xf32> to vector<1x32xf32>
    %c0_64 = arith.constant 0 : index
    %c672 = arith.constant 672 : index
    %228 = vector.load %arg13[%c0_64, %c672] : memref<2x2208xf32, #tpu.memory_space<vmem>>, vector<1x32xf32>
    tpu.vector_store %arg13[%c0_64, %c672], %227 {strides = array<i32>} : memref<2x2208xf32, #tpu.memory_space<vmem>>, vector<1x32xf32>,
    %229 = vector.extract_strided_slice %184 {offsets = [22, 0], sizes = [1, 32], strides = [1, 1]} : vector<23x32xf32> to vector<1x32xf32>
    %c0_65 = arith.constant 0 : index
    %c704 = arith.constant 704 : index
    %230 = vector.load %arg13[%c0_65, %c704] : memref<2x2208xf32, #tpu.memory_space<vmem>>, vector<1x32xf32>
    tpu.vector_store %arg13[%c0_65, %c704], %229 {strides = array<i32>} : memref<2x2208xf32, #tpu.memory_space<vmem>>, vector<1x32xf32>,
    %231 = vector.extract_strided_slice %0 {offsets = [0, 0, 0, 1], sizes = [1, 1, 25, 1], strides = [1, 1, 1, 1]} : vector<3x8x25x2xf32> to vector<1x1x25x1xf32>
    %232 = vector.shape_cast %231 : vector<1x1x25x1xf32> to vector<25x1xf32>
    %233 = vector.extract_strided_slice %0 {offsets = [0, 1, 0, 1], sizes = [1, 1, 25, 1], strides = [1, 1, 1, 1]} : vector<3x8x25x2xf32> to vector<1x1x25x1xf32>
    %234 = vector.shape_cast %233 : vector<1x1x25x1xf32> to vector<25x1xf32>
    %235 = vector.extract_strided_slice %0 {offsets = [0, 2, 0, 1], sizes = [1, 1, 25, 1], strides = [1, 1, 1, 1]} : vector<3x8x25x2xf32> to vector<1x1x25x1xf32>
    %236 = vector.shape_cast %235 : vector<1x1x25x1xf32> to vector<25x1xf32>
    %237 = vector.extract_strided_slice %0 {offsets = [0, 3, 0, 1], sizes = [1, 1, 25, 1], strides = [1, 1, 1, 1]} : vector<3x8x25x2xf32> to vector<1x1x25x1xf32>
    %238 = vector.shape_cast %237 : vector<1x1x25x1xf32> to vector<25x1xf32>
    %239 = vector.extract_strided_slice %0 {offsets = [0, 4, 0, 1], sizes = [1, 1, 25, 1], strides = [1, 1, 1, 1]} : vector<3x8x25x2xf32> to vector<1x1x25x1xf32>
    %240 = vector.shape_cast %239 : vector<1x1x25x1xf32> to vector<25x1xf32>
    %241 = vector.extract_strided_slice %0 {offsets = [0, 5, 0, 1], sizes = [1, 1, 25, 1], strides = [1, 1, 1, 1]} : vector<3x8x25x2xf32> to vector<1x1x25x1xf32>
    %242 = vector.shape_cast %241 : vector<1x1x25x1xf32> to vector<25x1xf32>
    %243 = vector.extract_strided_slice %0 {offsets = [0, 6, 0, 1], sizes = [1, 1, 25, 1], strides = [1, 1, 1, 1]} : vector<3x8x25x2xf32> to vector<1x1x25x1xf32>
    %244 = vector.shape_cast %243 : vector<1x1x25x1xf32> to vector<25x1xf32>
    %245 = vector.extract_strided_slice %0 {offsets = [0, 7, 0, 1], sizes = [1, 1, 25, 1], strides = [1, 1, 1, 1]} : vector<3x8x25x2xf32> to vector<1x1x25x1xf32>
    %246 = vector.shape_cast %245 : vector<1x1x25x1xf32> to vector<25x1xf32>
    %247 = vector.extract_strided_slice %8 {offsets = [0, 0], sizes = [1, 32], strides = [1, 1]} : vector<3x32xf32> to vector<1x32xf32>
    %248 = vector.broadcast %232 : vector<25x1xf32> to vector<25x32xf32>
    %249 = vector.broadcast %247 : vector<1x32xf32> to vector<25x32xf32>
    %250 = arith.mulf %248, %249 : vector<25x32xf32>
    %251 = vector.extract_strided_slice %8 {offsets = [1, 0], sizes = [1, 32], strides = [1, 1]} : vector<3x32xf32> to vector<1x32xf32>
    %252 = vector.broadcast %234 : vector<25x1xf32> to vector<25x32xf32>
    %253 = vector.broadcast %251 : vector<1x32xf32> to vector<25x32xf32>
    %254 = arith.mulf %252, %253 : vector<25x32xf32>
    %255 = arith.addf %250, %254 : vector<25x32xf32>
    %256 = vector.extract_strided_slice %8 {offsets = [2, 0], sizes = [1, 32], strides = [1, 1]} : vector<3x32xf32> to vector<1x32xf32>
    %257 = vector.broadcast %236 : vector<25x1xf32> to vector<25x32xf32>
    %258 = vector.broadcast %256 : vector<1x32xf32> to vector<25x32xf32>
    %259 = arith.mulf %257, %258 : vector<25x32xf32>
    %260 = arith.addf %255, %259 : vector<25x32xf32>
    %261 = vector.broadcast %10 : vector<1x32xf32> to vector<25x32xf32>
    %262 = arith.addf %260, %261 : vector<25x32xf32>
    %cst_66 = arith.constant 0.000000e+00 : f32
    %263 = vector.broadcast %cst_66 : f32 to vector<25x32xf32>
    %264 = arith.maximumf %262, %263 : vector<25x32xf32>
    %265 = vector.extract_strided_slice %236 {offsets = [0, 0], sizes = [24, 1], strides = [1, 1]} : vector<25x1xf32> to vector<24x1xf32>
    %266 = vector.extract_strided_slice %238 {offsets = [0, 0], sizes = [24, 1], strides = [1, 1]} : vector<25x1xf32> to vector<24x1xf32>
    %267 = vector.extract_strided_slice %240 {offsets = [0, 0], sizes = [24, 1], strides = [1, 1]} : vector<25x1xf32> to vector<24x1xf32>
    %268 = vector.extract_strided_slice %8 {offsets = [0, 0], sizes = [1, 32], strides = [1, 1]} : vector<3x32xf32> to vector<1x32xf32>
    %269 = vector.broadcast %265 : vector<24x1xf32> to vector<24x32xf32>
    %270 = vector.broadcast %268 : vector<1x32xf32> to vector<24x32xf32>
    %271 = arith.mulf %269, %270 : vector<24x32xf32>
    %272 = vector.extract_strided_slice %8 {offsets = [1, 0], sizes = [1, 32], strides = [1, 1]} : vector<3x32xf32> to vector<1x32xf32>
    %273 = vector.broadcast %266 : vector<24x1xf32> to vector<24x32xf32>
    %274 = vector.broadcast %272 : vector<1x32xf32> to vector<24x32xf32>
    %275 = arith.mulf %273, %274 : vector<24x32xf32>
    %276 = arith.addf %271, %275 : vector<24x32xf32>
    %277 = vector.extract_strided_slice %8 {offsets = [2, 0], sizes = [1, 32], strides = [1, 1]} : vector<3x32xf32> to vector<1x32xf32>
    %278 = vector.broadcast %267 : vector<24x1xf32> to vector<24x32xf32>
    %279 = vector.broadcast %277 : vector<1x32xf32> to vector<24x32xf32>
    %280 = arith.mulf %278, %279 : vector<24x32xf32>
    %281 = arith.addf %276, %280 : vector<24x32xf32>
    %282 = vector.broadcast %10 : vector<1x32xf32> to vector<24x32xf32>
    %283 = arith.addf %281, %282 : vector<24x32xf32>
    %cst_67 = arith.constant 0.000000e+00 : f32
    %284 = vector.broadcast %cst_67 : f32 to vector<24x32xf32>
    %285 = arith.maximumf %283, %284 : vector<24x32xf32>
    %286 = vector.extract_strided_slice %240 {offsets = [0, 0], sizes = [24, 1], strides = [1, 1]} : vector<25x1xf32> to vector<24x1xf32>
    %287 = vector.extract_strided_slice %242 {offsets = [0, 0], sizes = [24, 1], strides = [1, 1]} : vector<25x1xf32> to vector<24x1xf32>
    %288 = vector.extract_strided_slice %244 {offsets = [0, 0], sizes = [24, 1], strides = [1, 1]} : vector<25x1xf32> to vector<24x1xf32>
    %289 = vector.extract_strided_slice %8 {offsets = [0, 0], sizes = [1, 32], strides = [1, 1]} : vector<3x32xf32> to vector<1x32xf32>
    %290 = vector.broadcast %286 : vector<24x1xf32> to vector<24x32xf32>
    %291 = vector.broadcast %289 : vector<1x32xf32> to vector<24x32xf32>
    %292 = arith.mulf %290, %291 : vector<24x32xf32>
    %293 = vector.extract_strided_slice %8 {offsets = [1, 0], sizes = [1, 32], strides = [1, 1]} : vector<3x32xf32> to vector<1x32xf32>
    %294 = vector.broadcast %287 : vector<24x1xf32> to vector<24x32xf32>
    %295 = vector.broadcast %293 : vector<1x32xf32> to vector<24x32xf32>
    %296 = arith.mulf %294, %295 : vector<24x32xf32>
    %297 = arith.addf %292, %296 : vector<24x32xf32>
    %298 = vector.extract_strided_slice %8 {offsets = [2, 0], sizes = [1, 32], strides = [1, 1]} : vector<3x32xf32> to vector<1x32xf32>
    %299 = vector.broadcast %288 : vector<24x1xf32> to vector<24x32xf32>
    %300 = vector.broadcast %298 : vector<1x32xf32> to vector<24x32xf32>
    %301 = arith.mulf %299, %300 : vector<24x32xf32>
    %302 = arith.addf %297, %301 : vector<24x32xf32>
    %303 = vector.broadcast %10 : vector<1x32xf32> to vector<24x32xf32>
    %304 = arith.addf %302, %303 : vector<24x32xf32>
    %cst_68 = arith.constant 0.000000e+00 : f32
    %305 = vector.broadcast %cst_68 : f32 to vector<24x32xf32>
    %306 = arith.maximumf %304, %305 : vector<24x32xf32>
    %307 = vector.extract_strided_slice %244 {offsets = [0, 0], sizes = [24, 1], strides = [1, 1]} : vector<25x1xf32> to vector<24x1xf32>
    %308 = vector.extract_strided_slice %246 {offsets = [0, 0], sizes = [24, 1], strides = [1, 1]} : vector<25x1xf32> to vector<24x1xf32>
    %309 = vector.extract_strided_slice %232 {offsets = [1, 0], sizes = [24, 1], strides = [1, 1]} : vector<25x1xf32> to vector<24x1xf32>
    %310 = vector.extract_strided_slice %8 {offsets = [0, 0], sizes = [1, 32], strides = [1, 1]} : vector<3x32xf32> to vector<1x32xf32>
    %311 = vector.broadcast %307 : vector<24x1xf32> to vector<24x32xf32>
    %312 = vector.broadcast %310 : vector<1x32xf32> to vector<24x32xf32>
    %313 = arith.mulf %311, %312 : vector<24x32xf32>
    %314 = vector.extract_strided_slice %8 {offsets = [1, 0], sizes = [1, 32], strides = [1, 1]} : vector<3x32xf32> to vector<1x32xf32>
    %315 = vector.broadcast %308 : vector<24x1xf32> to vector<24x32xf32>
    %316 = vector.broadcast %314 : vector<1x32xf32> to vector<24x32xf32>
    %317 = arith.mulf %315, %316 : vector<24x32xf32>
    %318 = arith.addf %313, %317 : vector<24x32xf32>
    %319 = vector.extract_strided_slice %8 {offsets = [2, 0], sizes = [1, 32], strides = [1, 1]} : vector<3x32xf32> to vector<1x32xf32>
    %320 = vector.broadcast %309 : vector<24x1xf32> to vector<24x32xf32>
    %321 = vector.broadcast %319 : vector<1x32xf32> to vector<24x32xf32>
    %322 = arith.mulf %320, %321 : vector<24x32xf32>
    %323 = arith.addf %318, %322 : vector<24x32xf32>
    %324 = vector.broadcast %10 : vector<1x32xf32> to vector<24x32xf32>
    %325 = arith.addf %323, %324 : vector<24x32xf32>
    %cst_69 = arith.constant 0.000000e+00 : f32
    %326 = vector.broadcast %cst_69 : f32 to vector<24x32xf32>
    %327 = arith.maximumf %325, %326 : vector<24x32xf32>
    %328 = vector.extract_strided_slice %264 {offsets = [0, 0], sizes = [24, 32], strides = [1, 1]} : vector<25x32xf32> to vector<24x32xf32>
    %329 = vector.extract_strided_slice %12 {offsets = [0, 0, 0], sizes = [1, 32, 32], strides = [1, 1, 1]} : vector<3x32x32xf32> to vector<1x32x32xf32>
    %330 = vector.shape_cast %329 : vector<1x32x32xf32> to vector<32x32xf32>
    %cst_70 = arith.constant dense<0.000000e+00> : vector<24x32xf32>
    %331 = tpu.matmul %328, %330, %cst_70 {dimension_numbers = #tpu.dot_dimension_numbers<[1], [0], [0], [1], [0, 0, 1, 1], [], []>} : vector<24x32xf32>, vector<32x32xf32>, vector<24x32xf32> -> vector<24x32xf32>
    %332 = vector.extract_strided_slice %12 {offsets = [1, 0, 0], sizes = [1, 32, 32], strides = [1, 1, 1]} : vector<3x32x32xf32> to vector<1x32x32xf32>
    %333 = vector.shape_cast %332 : vector<1x32x32xf32> to vector<32x32xf32>
    %cst_71 = arith.constant dense<0.000000e+00> : vector<24x32xf32>
    %334 = tpu.matmul %285, %333, %cst_71 {dimension_numbers = #tpu.dot_dimension_numbers<[1], [0], [0], [1], [0, 0, 1, 1], [], []>} : vector<24x32xf32>, vector<32x32xf32>, vector<24x32xf32> -> vector<24x32xf32>
    %335 = arith.addf %331, %334 : vector<24x32xf32>
    %336 = vector.extract_strided_slice %12 {offsets = [2, 0, 0], sizes = [1, 32, 32], strides = [1, 1, 1]} : vector<3x32x32xf32> to vector<1x32x32xf32>
    %337 = vector.shape_cast %336 : vector<1x32x32xf32> to vector<32x32xf32>
    %cst_72 = arith.constant dense<0.000000e+00> : vector<24x32xf32>
    %338 = tpu.matmul %306, %337, %cst_72 {dimension_numbers = #tpu.dot_dimension_numbers<[1], [0], [0], [1], [0, 0, 1, 1], [], []>} : vector<24x32xf32>, vector<32x32xf32>, vector<24x32xf32> -> vector<24x32xf32>
    %339 = arith.addf %335, %338 : vector<24x32xf32>
    %340 = vector.broadcast %14 : vector<1x32xf32> to vector<24x32xf32>
    %341 = arith.addf %339, %340 : vector<24x32xf32>
    %cst_73 = arith.constant 0.000000e+00 : f32
    %342 = vector.broadcast %cst_73 : f32 to vector<24x32xf32>
    %343 = arith.maximumf %341, %342 : vector<24x32xf32>
    %344 = vector.extract_strided_slice %264 {offsets = [1, 0], sizes = [24, 32], strides = [1, 1]} : vector<25x32xf32> to vector<24x32xf32>
    %345 = vector.extract_strided_slice %12 {offsets = [0, 0, 0], sizes = [1, 32, 32], strides = [1, 1, 1]} : vector<3x32x32xf32> to vector<1x32x32xf32>
    %346 = vector.shape_cast %345 : vector<1x32x32xf32> to vector<32x32xf32>
    %cst_74 = arith.constant dense<0.000000e+00> : vector<24x32xf32>
    %347 = tpu.matmul %306, %346, %cst_74 {dimension_numbers = #tpu.dot_dimension_numbers<[1], [0], [0], [1], [0, 0, 1, 1], [], []>} : vector<24x32xf32>, vector<32x32xf32>, vector<24x32xf32> -> vector<24x32xf32>
    %348 = vector.extract_strided_slice %12 {offsets = [1, 0, 0], sizes = [1, 32, 32], strides = [1, 1, 1]} : vector<3x32x32xf32> to vector<1x32x32xf32>
    %349 = vector.shape_cast %348 : vector<1x32x32xf32> to vector<32x32xf32>
    %cst_75 = arith.constant dense<0.000000e+00> : vector<24x32xf32>
    %350 = tpu.matmul %327, %349, %cst_75 {dimension_numbers = #tpu.dot_dimension_numbers<[1], [0], [0], [1], [0, 0, 1, 1], [], []>} : vector<24x32xf32>, vector<32x32xf32>, vector<24x32xf32> -> vector<24x32xf32>
    %351 = arith.addf %347, %350 : vector<24x32xf32>
    %352 = vector.extract_strided_slice %12 {offsets = [2, 0, 0], sizes = [1, 32, 32], strides = [1, 1, 1]} : vector<3x32x32xf32> to vector<1x32x32xf32>
    %353 = vector.shape_cast %352 : vector<1x32x32xf32> to vector<32x32xf32>
    %cst_76 = arith.constant dense<0.000000e+00> : vector<24x32xf32>
    %354 = tpu.matmul %344, %353, %cst_76 {dimension_numbers = #tpu.dot_dimension_numbers<[1], [0], [0], [1], [0, 0, 1, 1], [], []>} : vector<24x32xf32>, vector<32x32xf32>, vector<24x32xf32> -> vector<24x32xf32>
    %355 = arith.addf %351, %354 : vector<24x32xf32>
    %356 = vector.broadcast %14 : vector<1x32xf32> to vector<24x32xf32>
    %357 = arith.addf %355, %356 : vector<24x32xf32>
    %cst_77 = arith.constant 0.000000e+00 : f32
    %358 = vector.broadcast %cst_77 : f32 to vector<24x32xf32>
    %359 = arith.maximumf %357, %358 : vector<24x32xf32>
    %360 = vector.extract_strided_slice %343 {offsets = [0, 0], sizes = [23, 32], strides = [1, 1]} : vector<24x32xf32> to vector<23x32xf32>
    %361 = vector.extract_strided_slice %359 {offsets = [0, 0], sizes = [23, 32], strides = [1, 1]} : vector<24x32xf32> to vector<23x32xf32>
    %362 = vector.extract_strided_slice %343 {offsets = [1, 0], sizes = [23, 32], strides = [1, 1]} : vector<24x32xf32> to vector<23x32xf32>
    %363 = vector.extract_strided_slice %16 {offsets = [0, 0, 0], sizes = [1, 32, 32], strides = [1, 1, 1]} : vector<3x32x32xf32> to vector<1x32x32xf32>
    %364 = vector.shape_cast %363 : vector<1x32x32xf32> to vector<32x32xf32>
    %cst_78 = arith.constant dense<0.000000e+00> : vector<23x32xf32>
    %365 = tpu.matmul %360, %364, %cst_78 {dimension_numbers = #tpu.dot_dimension_numbers<[1], [0], [0], [1], [0, 0, 1, 1], [], []>} : vector<23x32xf32>, vector<32x32xf32>, vector<23x32xf32> -> vector<23x32xf32>
    %366 = vector.extract_strided_slice %16 {offsets = [1, 0, 0], sizes = [1, 32, 32], strides = [1, 1, 1]} : vector<3x32x32xf32> to vector<1x32x32xf32>
    %367 = vector.shape_cast %366 : vector<1x32x32xf32> to vector<32x32xf32>
    %cst_79 = arith.constant dense<0.000000e+00> : vector<23x32xf32>
    %368 = tpu.matmul %361, %367, %cst_79 {dimension_numbers = #tpu.dot_dimension_numbers<[1], [0], [0], [1], [0, 0, 1, 1], [], []>} : vector<23x32xf32>, vector<32x32xf32>, vector<23x32xf32> -> vector<23x32xf32>
    %369 = arith.addf %365, %368 : vector<23x32xf32>
    %370 = vector.extract_strided_slice %16 {offsets = [2, 0, 0], sizes = [1, 32, 32], strides = [1, 1, 1]} : vector<3x32x32xf32> to vector<1x32x32xf32>
    %371 = vector.shape_cast %370 : vector<1x32x32xf32> to vector<32x32xf32>
    %cst_80 = arith.constant dense<0.000000e+00> : vector<23x32xf32>
    %372 = tpu.matmul %362, %371, %cst_80 {dimension_numbers = #tpu.dot_dimension_numbers<[1], [0], [0], [1], [0, 0, 1, 1], [], []>} : vector<23x32xf32>, vector<32x32xf32>, vector<23x32xf32> -> vector<23x32xf32>
    %373 = arith.addf %369, %372 : vector<23x32xf32>
    %374 = vector.broadcast %18 : vector<1x32xf32> to vector<23x32xf32>
    %375 = arith.addf %373, %374 : vector<23x32xf32>
    %cst_81 = arith.constant 0.000000e+00 : f32
    %376 = vector.broadcast %cst_81 : f32 to vector<23x32xf32>
    %377 = arith.maximumf %375, %376 : vector<23x32xf32>
    %378 = vector.extract_strided_slice %359 {offsets = [0, 0], sizes = [23, 32], strides = [1, 1]} : vector<24x32xf32> to vector<23x32xf32>
    %379 = vector.extract_strided_slice %343 {offsets = [1, 0], sizes = [23, 32], strides = [1, 1]} : vector<24x32xf32> to vector<23x32xf32>
    %380 = vector.extract_strided_slice %359 {offsets = [1, 0], sizes = [23, 32], strides = [1, 1]} : vector<24x32xf32> to vector<23x32xf32>
    %381 = vector.extract_strided_slice %16 {offsets = [0, 0, 0], sizes = [1, 32, 32], strides = [1, 1, 1]} : vector<3x32x32xf32> to vector<1x32x32xf32>
    %382 = vector.shape_cast %381 : vector<1x32x32xf32> to vector<32x32xf32>
    %cst_82 = arith.constant dense<0.000000e+00> : vector<23x32xf32>
    %383 = tpu.matmul %378, %382, %cst_82 {dimension_numbers = #tpu.dot_dimension_numbers<[1], [0], [0], [1], [0, 0, 1, 1], [], []>} : vector<23x32xf32>, vector<32x32xf32>, vector<23x32xf32> -> vector<23x32xf32>
    %384 = vector.extract_strided_slice %16 {offsets = [1, 0, 0], sizes = [1, 32, 32], strides = [1, 1, 1]} : vector<3x32x32xf32> to vector<1x32x32xf32>
    %385 = vector.shape_cast %384 : vector<1x32x32xf32> to vector<32x32xf32>
    %cst_83 = arith.constant dense<0.000000e+00> : vector<23x32xf32>
    %386 = tpu.matmul %379, %385, %cst_83 {dimension_numbers = #tpu.dot_dimension_numbers<[1], [0], [0], [1], [0, 0, 1, 1], [], []>} : vector<23x32xf32>, vector<32x32xf32>, vector<23x32xf32> -> vector<23x32xf32>
    %387 = arith.addf %383, %386 : vector<23x32xf32>
    %388 = vector.extract_strided_slice %16 {offsets = [2, 0, 0], sizes = [1, 32, 32], strides = [1, 1, 1]} : vector<3x32x32xf32> to vector<1x32x32xf32>
    %389 = vector.shape_cast %388 : vector<1x32x32xf32> to vector<32x32xf32>
    %cst_84 = arith.constant dense<0.000000e+00> : vector<23x32xf32>
    %390 = tpu.matmul %380, %389, %cst_84 {dimension_numbers = #tpu.dot_dimension_numbers<[1], [0], [0], [1], [0, 0, 1, 1], [], []>} : vector<23x32xf32>, vector<32x32xf32>, vector<23x32xf32> -> vector<23x32xf32>
    %391 = arith.addf %387, %390 : vector<23x32xf32>
    %392 = vector.broadcast %18 : vector<1x32xf32> to vector<23x32xf32>
    %393 = arith.addf %391, %392 : vector<23x32xf32>
    %cst_85 = arith.constant 0.000000e+00 : f32
    %394 = vector.broadcast %cst_85 : f32 to vector<23x32xf32>
    %395 = arith.maximumf %393, %394 : vector<23x32xf32>
    %396 = arith.maximumf %377, %395 : vector<23x32xf32>
    %397 = vector.extract_strided_slice %396 {offsets = [0, 0], sizes = [1, 32], strides = [1, 1]} : vector<23x32xf32> to vector<1x32xf32>
    %c1 = arith.constant 1 : index
    %c0_86 = arith.constant 0 : index
    %398 = vector.load %arg13[%c1, %c0_86] : memref<2x2208xf32, #tpu.memory_space<vmem>>, vector<1x32xf32>
    tpu.vector_store %arg13[%c1, %c0_86], %397 {strides = array<i32>} : memref<2x2208xf32, #tpu.memory_space<vmem>>, vector<1x32xf32>,
    %399 = vector.extract_strided_slice %396 {offsets = [1, 0], sizes = [1, 32], strides = [1, 1]} : vector<23x32xf32> to vector<1x32xf32>
    %c1_87 = arith.constant 1 : index
    %c32_88 = arith.constant 32 : index
    %400 = vector.load %arg13[%c1_87, %c32_88] : memref<2x2208xf32, #tpu.memory_space<vmem>>, vector<1x32xf32>
    tpu.vector_store %arg13[%c1_87, %c32_88], %399 {strides = array<i32>} : memref<2x2208xf32, #tpu.memory_space<vmem>>, vector<1x32xf32>,
    %401 = vector.extract_strided_slice %396 {offsets = [2, 0], sizes = [1, 32], strides = [1, 1]} : vector<23x32xf32> to vector<1x32xf32>
    %c1_89 = arith.constant 1 : index
    %c64_90 = arith.constant 64 : index
    %402 = vector.load %arg13[%c1_89, %c64_90] : memref<2x2208xf32, #tpu.memory_space<vmem>>, vector<1x32xf32>
    tpu.vector_store %arg13[%c1_89, %c64_90], %401 {strides = array<i32>} : memref<2x2208xf32, #tpu.memory_space<vmem>>, vector<1x32xf32>,
    %403 = vector.extract_strided_slice %396 {offsets = [3, 0], sizes = [1, 32], strides = [1, 1]} : vector<23x32xf32> to vector<1x32xf32>
    %c1_91 = arith.constant 1 : index
    %c96_92 = arith.constant 96 : index
    %404 = vector.load %arg13[%c1_91, %c96_92] : memref<2x2208xf32, #tpu.memory_space<vmem>>, vector<1x32xf32>
    tpu.vector_store %arg13[%c1_91, %c96_92], %403 {strides = array<i32>} : memref<2x2208xf32, #tpu.memory_space<vmem>>, vector<1x32xf32>,
    %405 = vector.extract_strided_slice %396 {offsets = [4, 0], sizes = [1, 32], strides = [1, 1]} : vector<23x32xf32> to vector<1x32xf32>
    %c1_93 = arith.constant 1 : index
    %c128_94 = arith.constant 128 : index
    %406 = vector.load %arg13[%c1_93, %c128_94] : memref<2x2208xf32, #tpu.memory_space<vmem>>, vector<1x32xf32>
    tpu.vector_store %arg13[%c1_93, %c128_94], %405 {strides = array<i32>} : memref<2x2208xf32, #tpu.memory_space<vmem>>, vector<1x32xf32>,
    %407 = vector.extract_strided_slice %396 {offsets = [5, 0], sizes = [1, 32], strides = [1, 1]} : vector<23x32xf32> to vector<1x32xf32>
    %c1_95 = arith.constant 1 : index
    %c160_96 = arith.constant 160 : index
    %408 = vector.load %arg13[%c1_95, %c160_96] : memref<2x2208xf32, #tpu.memory_space<vmem>>, vector<1x32xf32>
    tpu.vector_store %arg13[%c1_95, %c160_96], %407 {strides = array<i32>} : memref<2x2208xf32, #tpu.memory_space<vmem>>, vector<1x32xf32>,
    %409 = vector.extract_strided_slice %396 {offsets = [6, 0], sizes = [1, 32], strides = [1, 1]} : vector<23x32xf32> to vector<1x32xf32>
    %c1_97 = arith.constant 1 : index
    %c192_98 = arith.constant 192 : index
    %410 = vector.load %arg13[%c1_97, %c192_98] : memref<2x2208xf32, #tpu.memory_space<vmem>>, vector<1x32xf32>
    tpu.vector_store %arg13[%c1_97, %c192_98], %409 {strides = array<i32>} : memref<2x2208xf32, #tpu.memory_space<vmem>>, vector<1x32xf32>,
    %411 = vector.extract_strided_slice %396 {offsets = [7, 0], sizes = [1, 32], strides = [1, 1]} : vector<23x32xf32> to vector<1x32xf32>
    %c1_99 = arith.constant 1 : index
    %c224_100 = arith.constant 224 : index
    %412 = vector.load %arg13[%c1_99, %c224_100] : memref<2x2208xf32, #tpu.memory_space<vmem>>, vector<1x32xf32>
    tpu.vector_store %arg13[%c1_99, %c224_100], %411 {strides = array<i32>} : memref<2x2208xf32, #tpu.memory_space<vmem>>, vector<1x32xf32>,
    %413 = vector.extract_strided_slice %396 {offsets = [8, 0], sizes = [1, 32], strides = [1, 1]} : vector<23x32xf32> to vector<1x32xf32>
    %c1_101 = arith.constant 1 : index
    %c256_102 = arith.constant 256 : index
    %414 = vector.load %arg13[%c1_101, %c256_102] : memref<2x2208xf32, #tpu.memory_space<vmem>>, vector<1x32xf32>
    tpu.vector_store %arg13[%c1_101, %c256_102], %413 {strides = array<i32>} : memref<2x2208xf32, #tpu.memory_space<vmem>>, vector<1x32xf32>,
    %415 = vector.extract_strided_slice %396 {offsets = [9, 0], sizes = [1, 32], strides = [1, 1]} : vector<23x32xf32> to vector<1x32xf32>
    %c1_103 = arith.constant 1 : index
    %c288_104 = arith.constant 288 : index
    %416 = vector.load %arg13[%c1_103, %c288_104] : memref<2x2208xf32, #tpu.memory_space<vmem>>, vector<1x32xf32>
    tpu.vector_store %arg13[%c1_103, %c288_104], %415 {strides = array<i32>} : memref<2x2208xf32, #tpu.memory_space<vmem>>, vector<1x32xf32>,
    %417 = vector.extract_strided_slice %396 {offsets = [10, 0], sizes = [1, 32], strides = [1, 1]} : vector<23x32xf32> to vector<1x32xf32>
    %c1_105 = arith.constant 1 : index
    %c320_106 = arith.constant 320 : index
    %418 = vector.load %arg13[%c1_105, %c320_106] : memref<2x2208xf32, #tpu.memory_space<vmem>>, vector<1x32xf32>
    tpu.vector_store %arg13[%c1_105, %c320_106], %417 {strides = array<i32>} : memref<2x2208xf32, #tpu.memory_space<vmem>>, vector<1x32xf32>,
    %419 = vector.extract_strided_slice %396 {offsets = [11, 0], sizes = [1, 32], strides = [1, 1]} : vector<23x32xf32> to vector<1x32xf32>
    %c1_107 = arith.constant 1 : index
    %c352_108 = arith.constant 352 : index
    %420 = vector.load %arg13[%c1_107, %c352_108] : memref<2x2208xf32, #tpu.memory_space<vmem>>, vector<1x32xf32>
    tpu.vector_store %arg13[%c1_107, %c352_108], %419 {strides = array<i32>} : memref<2x2208xf32, #tpu.memory_space<vmem>>, vector<1x32xf32>,
    %421 = vector.extract_strided_slice %396 {offsets = [12, 0], sizes = [1, 32], strides = [1, 1]} : vector<23x32xf32> to vector<1x32xf32>
    %c1_109 = arith.constant 1 : index
    %c384_110 = arith.constant 384 : index
    %422 = vector.load %arg13[%c1_109, %c384_110] : memref<2x2208xf32, #tpu.memory_space<vmem>>, vector<1x32xf32>
    tpu.vector_store %arg13[%c1_109, %c384_110], %421 {strides = array<i32>} : memref<2x2208xf32, #tpu.memory_space<vmem>>, vector<1x32xf32>,
    %423 = vector.extract_strided_slice %396 {offsets = [13, 0], sizes = [1, 32], strides = [1, 1]} : vector<23x32xf32> to vector<1x32xf32>
    %c1_111 = arith.constant 1 : index
    %c416_112 = arith.constant 416 : index
    %424 = vector.load %arg13[%c1_111, %c416_112] : memref<2x2208xf32, #tpu.memory_space<vmem>>, vector<1x32xf32>
    tpu.vector_store %arg13[%c1_111, %c416_112], %423 {strides = array<i32>} : memref<2x2208xf32, #tpu.memory_space<vmem>>, vector<1x32xf32>,
    %425 = vector.extract_strided_slice %396 {offsets = [14, 0], sizes = [1, 32], strides = [1, 1]} : vector<23x32xf32> to vector<1x32xf32>
    %c1_113 = arith.constant 1 : index
    %c448_114 = arith.constant 448 : index
    %426 = vector.load %arg13[%c1_113, %c448_114] : memref<2x2208xf32, #tpu.memory_space<vmem>>, vector<1x32xf32>
    tpu.vector_store %arg13[%c1_113, %c448_114], %425 {strides = array<i32>} : memref<2x2208xf32, #tpu.memory_space<vmem>>, vector<1x32xf32>,
    %427 = vector.extract_strided_slice %396 {offsets = [15, 0], sizes = [1, 32], strides = [1, 1]} : vector<23x32xf32> to vector<1x32xf32>
    %c1_115 = arith.constant 1 : index
    %c480_116 = arith.constant 480 : index
    %428 = vector.load %arg13[%c1_115, %c480_116] : memref<2x2208xf32, #tpu.memory_space<vmem>>, vector<1x32xf32>
    tpu.vector_store %arg13[%c1_115, %c480_116], %427 {strides = array<i32>} : memref<2x2208xf32, #tpu.memory_space<vmem>>, vector<1x32xf32>,
    %429 = vector.extract_strided_slice %396 {offsets = [16, 0], sizes = [1, 32], strides = [1, 1]} : vector<23x32xf32> to vector<1x32xf32>
    %c1_117 = arith.constant 1 : index
    %c512_118 = arith.constant 512 : index
    %430 = vector.load %arg13[%c1_117, %c512_118] : memref<2x2208xf32, #tpu.memory_space<vmem>>, vector<1x32xf32>
    tpu.vector_store %arg13[%c1_117, %c512_118], %429 {strides = array<i32>} : memref<2x2208xf32, #tpu.memory_space<vmem>>, vector<1x32xf32>,
    %431 = vector.extract_strided_slice %396 {offsets = [17, 0], sizes = [1, 32], strides = [1, 1]} : vector<23x32xf32> to vector<1x32xf32>
    %c1_119 = arith.constant 1 : index
    %c544_120 = arith.constant 544 : index
    %432 = vector.load %arg13[%c1_119, %c544_120] : memref<2x2208xf32, #tpu.memory_space<vmem>>, vector<1x32xf32>
    tpu.vector_store %arg13[%c1_119, %c544_120], %431 {strides = array<i32>} : memref<2x2208xf32, #tpu.memory_space<vmem>>, vector<1x32xf32>,
    %433 = vector.extract_strided_slice %396 {offsets = [18, 0], sizes = [1, 32], strides = [1, 1]} : vector<23x32xf32> to vector<1x32xf32>
    %c1_121 = arith.constant 1 : index
    %c576_122 = arith.constant 576 : index
    %434 = vector.load %arg13[%c1_121, %c576_122] : memref<2x2208xf32, #tpu.memory_space<vmem>>, vector<1x32xf32>
    tpu.vector_store %arg13[%c1_121, %c576_122], %433 {strides = array<i32>} : memref<2x2208xf32, #tpu.memory_space<vmem>>, vector<1x32xf32>,
    %435 = vector.extract_strided_slice %396 {offsets = [19, 0], sizes = [1, 32], strides = [1, 1]} : vector<23x32xf32> to vector<1x32xf32>
    %c1_123 = arith.constant 1 : index
    %c608_124 = arith.constant 608 : index
    %436 = vector.load %arg13[%c1_123, %c608_124] : memref<2x2208xf32, #tpu.memory_space<vmem>>, vector<1x32xf32>
    tpu.vector_store %arg13[%c1_123, %c608_124], %435 {strides = array<i32>} : memref<2x2208xf32, #tpu.memory_space<vmem>>, vector<1x32xf32>,
    %437 = vector.extract_strided_slice %396 {offsets = [20, 0], sizes = [1, 32], strides = [1, 1]} : vector<23x32xf32> to vector<1x32xf32>
    %c1_125 = arith.constant 1 : index
    %c640_126 = arith.constant 640 : index
    %438 = vector.load %arg13[%c1_125, %c640_126] : memref<2x2208xf32, #tpu.memory_space<vmem>>, vector<1x32xf32>
    tpu.vector_store %arg13[%c1_125, %c640_126], %437 {strides = array<i32>} : memref<2x2208xf32, #tpu.memory_space<vmem>>, vector<1x32xf32>,
    %439 = vector.extract_strided_slice %396 {offsets = [21, 0], sizes = [1, 32], strides = [1, 1]} : vector<23x32xf32> to vector<1x32xf32>
    %c1_127 = arith.constant 1 : index
    %c672_128 = arith.constant 672 : index
    %440 = vector.load %arg13[%c1_127, %c672_128] : memref<2x2208xf32, #tpu.memory_space<vmem>>, vector<1x32xf32>
    tpu.vector_store %arg13[%c1_127, %c672_128], %439 {strides = array<i32>} : memref<2x2208xf32, #tpu.memory_space<vmem>>, vector<1x32xf32>,
    %441 = vector.extract_strided_slice %396 {offsets = [22, 0], sizes = [1, 32], strides = [1, 1]} : vector<23x32xf32> to vector<1x32xf32>
    %c1_129 = arith.constant 1 : index
    %c704_130 = arith.constant 704 : index
    %442 = vector.load %arg13[%c1_129, %c704_130] : memref<2x2208xf32, #tpu.memory_space<vmem>>, vector<1x32xf32>
    tpu.vector_store %arg13[%c1_129, %c704_130], %441 {strides = array<i32>} : memref<2x2208xf32, #tpu.memory_space<vmem>>, vector<1x32xf32>,
    %443 = vector.extract_strided_slice %1 {offsets = [1, 0, 0], sizes = [1, 3, 32], strides = [1, 1, 1]} : vector<3x3x32xf32> to vector<1x3x32xf32>
    %444 = vector.shape_cast %443 : vector<1x3x32xf32> to vector<3x32xf32>
    %445 = vector.extract_strided_slice %2 {offsets = [1, 0, 0], sizes = [1, 1, 32], strides = [1, 1, 1]} : vector<3x1x32xf32> to vector<1x1x32xf32>
    %446 = vector.shape_cast %445 : vector<1x1x32xf32> to vector<1x32xf32>
    %447 = vector.extract_strided_slice %3 {offsets = [1, 0, 0, 0], sizes = [1, 3, 32, 32], strides = [1, 1, 1, 1]} : vector<3x3x32x32xf32> to vector<1x3x32x32xf32>
    %448 = vector.shape_cast %447 : vector<1x3x32x32xf32> to vector<3x32x32xf32>
    %449 = vector.extract_strided_slice %4 {offsets = [1, 0, 0], sizes = [1, 1, 32], strides = [1, 1, 1]} : vector<3x1x32xf32> to vector<1x1x32xf32>
    %450 = vector.shape_cast %449 : vector<1x1x32xf32> to vector<1x32xf32>
    %451 = vector.extract_strided_slice %5 {offsets = [1, 0, 0, 0], sizes = [1, 3, 32, 32], strides = [1, 1, 1, 1]} : vector<3x3x32x32xf32> to vector<1x3x32x32xf32>
    %452 = vector.shape_cast %451 : vector<1x3x32x32xf32> to vector<3x32x32xf32>
    %453 = vector.extract_strided_slice %6 {offsets = [1, 0, 0], sizes = [1, 1, 32], strides = [1, 1, 1]} : vector<3x1x32xf32> to vector<1x1x32xf32>
    %454 = vector.shape_cast %453 : vector<1x1x32xf32> to vector<1x32xf32>
    %455 = vector.extract_strided_slice %0 {offsets = [1, 0, 0, 0], sizes = [1, 1, 25, 1], strides = [1, 1, 1, 1]} : vector<3x8x25x2xf32> to vector<1x1x25x1xf32>
    %456 = vector.shape_cast %455 : vector<1x1x25x1xf32> to vector<25x1xf32>
    %457 = vector.extract_strided_slice %0 {offsets = [1, 1, 0, 0], sizes = [1, 1, 25, 1], strides = [1, 1, 1, 1]} : vector<3x8x25x2xf32> to vector<1x1x25x1xf32>
    %458 = vector.shape_cast %457 : vector<1x1x25x1xf32> to vector<25x1xf32>
    %459 = vector.extract_strided_slice %0 {offsets = [1, 2, 0, 0], sizes = [1, 1, 25, 1], strides = [1, 1, 1, 1]} : vector<3x8x25x2xf32> to vector<1x1x25x1xf32>
    %460 = vector.shape_cast %459 : vector<1x1x25x1xf32> to vector<25x1xf32>
    %461 = vector.extract_strided_slice %0 {offsets = [1, 3, 0, 0], sizes = [1, 1, 25, 1], strides = [1, 1, 1, 1]} : vector<3x8x25x2xf32> to vector<1x1x25x1xf32>
    %462 = vector.shape_cast %461 : vector<1x1x25x1xf32> to vector<25x1xf32>
    %463 = vector.extract_strided_slice %0 {offsets = [1, 4, 0, 0], sizes = [1, 1, 25, 1], strides = [1, 1, 1, 1]} : vector<3x8x25x2xf32> to vector<1x1x25x1xf32>
    %464 = vector.shape_cast %463 : vector<1x1x25x1xf32> to vector<25x1xf32>
    %465 = vector.extract_strided_slice %0 {offsets = [1, 5, 0, 0], sizes = [1, 1, 25, 1], strides = [1, 1, 1, 1]} : vector<3x8x25x2xf32> to vector<1x1x25x1xf32>
    %466 = vector.shape_cast %465 : vector<1x1x25x1xf32> to vector<25x1xf32>
    %467 = vector.extract_strided_slice %0 {offsets = [1, 6, 0, 0], sizes = [1, 1, 25, 1], strides = [1, 1, 1, 1]} : vector<3x8x25x2xf32> to vector<1x1x25x1xf32>
    %468 = vector.shape_cast %467 : vector<1x1x25x1xf32> to vector<25x1xf32>
    %469 = vector.extract_strided_slice %0 {offsets = [1, 7, 0, 0], sizes = [1, 1, 25, 1], strides = [1, 1, 1, 1]} : vector<3x8x25x2xf32> to vector<1x1x25x1xf32>
    %470 = vector.shape_cast %469 : vector<1x1x25x1xf32> to vector<25x1xf32>
    %471 = vector.extract_strided_slice %444 {offsets = [0, 0], sizes = [1, 32], strides = [1, 1]} : vector<3x32xf32> to vector<1x32xf32>
    %472 = vector.broadcast %456 : vector<25x1xf32> to vector<25x32xf32>
    %473 = vector.broadcast %471 : vector<1x32xf32> to vector<25x32xf32>
    %474 = arith.mulf %472, %473 : vector<25x32xf32>
    %475 = vector.extract_strided_slice %444 {offsets = [1, 0], sizes = [1, 32], strides = [1, 1]} : vector<3x32xf32> to vector<1x32xf32>
    %476 = vector.broadcast %458 : vector<25x1xf32> to vector<25x32xf32>
    %477 = vector.broadcast %475 : vector<1x32xf32> to vector<25x32xf32>
    %478 = arith.mulf %476, %477 : vector<25x32xf32>
    %479 = arith.addf %474, %478 : vector<25x32xf32>
    %480 = vector.extract_strided_slice %444 {offsets = [2, 0], sizes = [1, 32], strides = [1, 1]} : vector<3x32xf32> to vector<1x32xf32>
    %481 = vector.broadcast %460 : vector<25x1xf32> to vector<25x32xf32>
    %482 = vector.broadcast %480 : vector<1x32xf32> to vector<25x32xf32>
    %483 = arith.mulf %481, %482 : vector<25x32xf32>
    %484 = arith.addf %479, %483 : vector<25x32xf32>
    %485 = vector.broadcast %446 : vector<1x32xf32> to vector<25x32xf32>
    %486 = arith.addf %484, %485 : vector<25x32xf32>
    %cst_131 = arith.constant 0.000000e+00 : f32
    %487 = vector.broadcast %cst_131 : f32 to vector<25x32xf32>
    %488 = arith.maximumf %486, %487 : vector<25x32xf32>
    %489 = vector.extract_strided_slice %460 {offsets = [0, 0], sizes = [24, 1], strides = [1, 1]} : vector<25x1xf32> to vector<24x1xf32>
    %490 = vector.extract_strided_slice %462 {offsets = [0, 0], sizes = [24, 1], strides = [1, 1]} : vector<25x1xf32> to vector<24x1xf32>
    %491 = vector.extract_strided_slice %464 {offsets = [0, 0], sizes = [24, 1], strides = [1, 1]} : vector<25x1xf32> to vector<24x1xf32>
    %492 = vector.extract_strided_slice %444 {offsets = [0, 0], sizes = [1, 32], strides = [1, 1]} : vector<3x32xf32> to vector<1x32xf32>
    %493 = vector.broadcast %489 : vector<24x1xf32> to vector<24x32xf32>
    %494 = vector.broadcast %492 : vector<1x32xf32> to vector<24x32xf32>
    %495 = arith.mulf %493, %494 : vector<24x32xf32>
    %496 = vector.extract_strided_slice %444 {offsets = [1, 0], sizes = [1, 32], strides = [1, 1]} : vector<3x32xf32> to vector<1x32xf32>
    %497 = vector.broadcast %490 : vector<24x1xf32> to vector<24x32xf32>
    %498 = vector.broadcast %496 : vector<1x32xf32> to vector<24x32xf32>
    %499 = arith.mulf %497, %498 : vector<24x32xf32>
    %500 = arith.addf %495, %499 : vector<24x32xf32>
    %501 = vector.extract_strided_slice %444 {offsets = [2, 0], sizes = [1, 32], strides = [1, 1]} : vector<3x32xf32> to vector<1x32xf32>
    %502 = vector.broadcast %491 : vector<24x1xf32> to vector<24x32xf32>
    %503 = vector.broadcast %501 : vector<1x32xf32> to vector<24x32xf32>
    %504 = arith.mulf %502, %503 : vector<24x32xf32>
    %505 = arith.addf %500, %504 : vector<24x32xf32>
    %506 = vector.broadcast %446 : vector<1x32xf32> to vector<24x32xf32>
    %507 = arith.addf %505, %506 : vector<24x32xf32>
    %cst_132 = arith.constant 0.000000e+00 : f32
    %508 = vector.broadcast %cst_132 : f32 to vector<24x32xf32>
    %509 = arith.maximumf %507, %508 : vector<24x32xf32>
    %510 = vector.extract_strided_slice %464 {offsets = [0, 0], sizes = [24, 1], strides = [1, 1]} : vector<25x1xf32> to vector<24x1xf32>
    %511 = vector.extract_strided_slice %466 {offsets = [0, 0], sizes = [24, 1], strides = [1, 1]} : vector<25x1xf32> to vector<24x1xf32>
    %512 = vector.extract_strided_slice %468 {offsets = [0, 0], sizes = [24, 1], strides = [1, 1]} : vector<25x1xf32> to vector<24x1xf32>
    %513 = vector.extract_strided_slice %444 {offsets = [0, 0], sizes = [1, 32], strides = [1, 1]} : vector<3x32xf32> to vector<1x32xf32>
    %514 = vector.broadcast %510 : vector<24x1xf32> to vector<24x32xf32>
    %515 = vector.broadcast %513 : vector<1x32xf32> to vector<24x32xf32>
    %516 = arith.mulf %514, %515 : vector<24x32xf32>
    %517 = vector.extract_strided_slice %444 {offsets = [1, 0], sizes = [1, 32], strides = [1, 1]} : vector<3x32xf32> to vector<1x32xf32>
    %518 = vector.broadcast %511 : vector<24x1xf32> to vector<24x32xf32>
    %519 = vector.broadcast %517 : vector<1x32xf32> to vector<24x32xf32>
    %520 = arith.mulf %518, %519 : vector<24x32xf32>
    %521 = arith.addf %516, %520 : vector<24x32xf32>
    %522 = vector.extract_strided_slice %444 {offsets = [2, 0], sizes = [1, 32], strides = [1, 1]} : vector<3x32xf32> to vector<1x32xf32>
    %523 = vector.broadcast %512 : vector<24x1xf32> to vector<24x32xf32>
    %524 = vector.broadcast %522 : vector<1x32xf32> to vector<24x32xf32>
    %525 = arith.mulf %523, %524 : vector<24x32xf32>
    %526 = arith.addf %521, %525 : vector<24x32xf32>
    %527 = vector.broadcast %446 : vector<1x32xf32> to vector<24x32xf32>
    %528 = arith.addf %526, %527 : vector<24x32xf32>
    %cst_133 = arith.constant 0.000000e+00 : f32
    %529 = vector.broadcast %cst_133 : f32 to vector<24x32xf32>
    %530 = arith.maximumf %528, %529 : vector<24x32xf32>
    %531 = vector.extract_strided_slice %468 {offsets = [0, 0], sizes = [24, 1], strides = [1, 1]} : vector<25x1xf32> to vector<24x1xf32>
    %532 = vector.extract_strided_slice %470 {offsets = [0, 0], sizes = [24, 1], strides = [1, 1]} : vector<25x1xf32> to vector<24x1xf32>
    %533 = vector.extract_strided_slice %456 {offsets = [1, 0], sizes = [24, 1], strides = [1, 1]} : vector<25x1xf32> to vector<24x1xf32>
    %534 = vector.extract_strided_slice %444 {offsets = [0, 0], sizes = [1, 32], strides = [1, 1]} : vector<3x32xf32> to vector<1x32xf32>
    %535 = vector.broadcast %531 : vector<24x1xf32> to vector<24x32xf32>
    %536 = vector.broadcast %534 : vector<1x32xf32> to vector<24x32xf32>
    %537 = arith.mulf %535, %536 : vector<24x32xf32>
    %538 = vector.extract_strided_slice %444 {offsets = [1, 0], sizes = [1, 32], strides = [1, 1]} : vector<3x32xf32> to vector<1x32xf32>
    %539 = vector.broadcast %532 : vector<24x1xf32> to vector<24x32xf32>
    %540 = vector.broadcast %538 : vector<1x32xf32> to vector<24x32xf32>
    %541 = arith.mulf %539, %540 : vector<24x32xf32>
    %542 = arith.addf %537, %541 : vector<24x32xf32>
    %543 = vector.extract_strided_slice %444 {offsets = [2, 0], sizes = [1, 32], strides = [1, 1]} : vector<3x32xf32> to vector<1x32xf32>
    %544 = vector.broadcast %533 : vector<24x1xf32> to vector<24x32xf32>
    %545 = vector.broadcast %543 : vector<1x32xf32> to vector<24x32xf32>
    %546 = arith.mulf %544, %545 : vector<24x32xf32>
    %547 = arith.addf %542, %546 : vector<24x32xf32>
    %548 = vector.broadcast %446 : vector<1x32xf32> to vector<24x32xf32>
    %549 = arith.addf %547, %548 : vector<24x32xf32>
    %cst_134 = arith.constant 0.000000e+00 : f32
    %550 = vector.broadcast %cst_134 : f32 to vector<24x32xf32>
    %551 = arith.maximumf %549, %550 : vector<24x32xf32>
    %552 = vector.extract_strided_slice %488 {offsets = [0, 0], sizes = [24, 32], strides = [1, 1]} : vector<25x32xf32> to vector<24x32xf32>
    %553 = vector.extract_strided_slice %448 {offsets = [0, 0, 0], sizes = [1, 32, 32], strides = [1, 1, 1]} : vector<3x32x32xf32> to vector<1x32x32xf32>
    %554 = vector.shape_cast %553 : vector<1x32x32xf32> to vector<32x32xf32>
    %cst_135 = arith.constant dense<0.000000e+00> : vector<24x32xf32>
    %555 = tpu.matmul %552, %554, %cst_135 {dimension_numbers = #tpu.dot_dimension_numbers<[1], [0], [0], [1], [0, 0, 1, 1], [], []>} : vector<24x32xf32>, vector<32x32xf32>, vector<24x32xf32> -> vector<24x32xf32>
    %556 = vector.extract_strided_slice %448 {offsets = [1, 0, 0], sizes = [1, 32, 32], strides = [1, 1, 1]} : vector<3x32x32xf32> to vector<1x32x32xf32>
    %557 = vector.shape_cast %556 : vector<1x32x32xf32> to vector<32x32xf32>
    %cst_136 = arith.constant dense<0.000000e+00> : vector<24x32xf32>
    %558 = tpu.matmul %509, %557, %cst_136 {dimension_numbers = #tpu.dot_dimension_numbers<[1], [0], [0], [1], [0, 0, 1, 1], [], []>} : vector<24x32xf32>, vector<32x32xf32>, vector<24x32xf32> -> vector<24x32xf32>
    %559 = arith.addf %555, %558 : vector<24x32xf32>
    %560 = vector.extract_strided_slice %448 {offsets = [2, 0, 0], sizes = [1, 32, 32], strides = [1, 1, 1]} : vector<3x32x32xf32> to vector<1x32x32xf32>
    %561 = vector.shape_cast %560 : vector<1x32x32xf32> to vector<32x32xf32>
    %cst_137 = arith.constant dense<0.000000e+00> : vector<24x32xf32>
    %562 = tpu.matmul %530, %561, %cst_137 {dimension_numbers = #tpu.dot_dimension_numbers<[1], [0], [0], [1], [0, 0, 1, 1], [], []>} : vector<24x32xf32>, vector<32x32xf32>, vector<24x32xf32> -> vector<24x32xf32>
    %563 = arith.addf %559, %562 : vector<24x32xf32>
    %564 = vector.broadcast %450 : vector<1x32xf32> to vector<24x32xf32>
    %565 = arith.addf %563, %564 : vector<24x32xf32>
    %cst_138 = arith.constant 0.000000e+00 : f32
    %566 = vector.broadcast %cst_138 : f32 to vector<24x32xf32>
    %567 = arith.maximumf %565, %566 : vector<24x32xf32>
    %568 = vector.extract_strided_slice %488 {offsets = [1, 0], sizes = [24, 32], strides = [1, 1]} : vector<25x32xf32> to vector<24x32xf32>
    %569 = vector.extract_strided_slice %448 {offsets = [0, 0, 0], sizes = [1, 32, 32], strides = [1, 1, 1]} : vector<3x32x32xf32> to vector<1x32x32xf32>
    %570 = vector.shape_cast %569 : vector<1x32x32xf32> to vector<32x32xf32>
    %cst_139 = arith.constant dense<0.000000e+00> : vector<24x32xf32>
    %571 = tpu.matmul %530, %570, %cst_139 {dimension_numbers = #tpu.dot_dimension_numbers<[1], [0], [0], [1], [0, 0, 1, 1], [], []>} : vector<24x32xf32>, vector<32x32xf32>, vector<24x32xf32> -> vector<24x32xf32>
    %572 = vector.extract_strided_slice %448 {offsets = [1, 0, 0], sizes = [1, 32, 32], strides = [1, 1, 1]} : vector<3x32x32xf32> to vector<1x32x32xf32>
    %573 = vector.shape_cast %572 : vector<1x32x32xf32> to vector<32x32xf32>
    %cst_140 = arith.constant dense<0.000000e+00> : vector<24x32xf32>
    %574 = tpu.matmul %551, %573, %cst_140 {dimension_numbers = #tpu.dot_dimension_numbers<[1], [0], [0], [1], [0, 0, 1, 1], [], []>} : vector<24x32xf32>, vector<32x32xf32>, vector<24x32xf32> -> vector<24x32xf32>
    %575 = arith.addf %571, %574 : vector<24x32xf32>
    %576 = vector.extract_strided_slice %448 {offsets = [2, 0, 0], sizes = [1, 32, 32], strides = [1, 1, 1]} : vector<3x32x32xf32> to vector<1x32x32xf32>
    %577 = vector.shape_cast %576 : vector<1x32x32xf32> to vector<32x32xf32>
    %cst_141 = arith.constant dense<0.000000e+00> : vector<24x32xf32>
    %578 = tpu.matmul %568, %577, %cst_141 {dimension_numbers = #tpu.dot_dimension_numbers<[1], [0], [0], [1], [0, 0, 1, 1], [], []>} : vector<24x32xf32>, vector<32x32xf32>, vector<24x32xf32> -> vector<24x32xf32>
    %579 = arith.addf %575, %578 : vector<24x32xf32>
    %580 = vector.broadcast %450 : vector<1x32xf32> to vector<24x32xf32>
    %581 = arith.addf %579, %580 : vector<24x32xf32>
    %cst_142 = arith.constant 0.000000e+00 : f32
    %582 = vector.broadcast %cst_142 : f32 to vector<24x32xf32>
    %583 = arith.maximumf %581, %582 : vector<24x32xf32>
    %584 = vector.extract_strided_slice %567 {offsets = [0, 0], sizes = [23, 32], strides = [1, 1]} : vector<24x32xf32> to vector<23x32xf32>
    %585 = vector.extract_strided_slice %583 {offsets = [0, 0], sizes = [23, 32], strides = [1, 1]} : vector<24x32xf32> to vector<23x32xf32>
    %586 = vector.extract_strided_slice %567 {offsets = [1, 0], sizes = [23, 32], strides = [1, 1]} : vector<24x32xf32> to vector<23x32xf32>
    %587 = vector.extract_strided_slice %452 {offsets = [0, 0, 0], sizes = [1, 32, 32], strides = [1, 1, 1]} : vector<3x32x32xf32> to vector<1x32x32xf32>
    %588 = vector.shape_cast %587 : vector<1x32x32xf32> to vector<32x32xf32>
    %cst_143 = arith.constant dense<0.000000e+00> : vector<23x32xf32>
    %589 = tpu.matmul %584, %588, %cst_143 {dimension_numbers = #tpu.dot_dimension_numbers<[1], [0], [0], [1], [0, 0, 1, 1], [], []>} : vector<23x32xf32>, vector<32x32xf32>, vector<23x32xf32> -> vector<23x32xf32>
    %590 = vector.extract_strided_slice %452 {offsets = [1, 0, 0], sizes = [1, 32, 32], strides = [1, 1, 1]} : vector<3x32x32xf32> to vector<1x32x32xf32>
    %591 = vector.shape_cast %590 : vector<1x32x32xf32> to vector<32x32xf32>
    %cst_144 = arith.constant dense<0.000000e+00> : vector<23x32xf32>
    %592 = tpu.matmul %585, %591, %cst_144 {dimension_numbers = #tpu.dot_dimension_numbers<[1], [0], [0], [1], [0, 0, 1, 1], [], []>} : vector<23x32xf32>, vector<32x32xf32>, vector<23x32xf32> -> vector<23x32xf32>
    %593 = arith.addf %589, %592 : vector<23x32xf32>
    %594 = vector.extract_strided_slice %452 {offsets = [2, 0, 0], sizes = [1, 32, 32], strides = [1, 1, 1]} : vector<3x32x32xf32> to vector<1x32x32xf32>
    %595 = vector.shape_cast %594 : vector<1x32x32xf32> to vector<32x32xf32>
    %cst_145 = arith.constant dense<0.000000e+00> : vector<23x32xf32>
    %596 = tpu.matmul %586, %595, %cst_145 {dimension_numbers = #tpu.dot_dimension_numbers<[1], [0], [0], [1], [0, 0, 1, 1], [], []>} : vector<23x32xf32>, vector<32x32xf32>, vector<23x32xf32> -> vector<23x32xf32>
    %597 = arith.addf %593, %596 : vector<23x32xf32>
    %598 = vector.broadcast %454 : vector<1x32xf32> to vector<23x32xf32>
    %599 = arith.addf %597, %598 : vector<23x32xf32>
    %cst_146 = arith.constant 0.000000e+00 : f32
    %600 = vector.broadcast %cst_146 : f32 to vector<23x32xf32>
    %601 = arith.maximumf %599, %600 : vector<23x32xf32>
    %602 = vector.extract_strided_slice %583 {offsets = [0, 0], sizes = [23, 32], strides = [1, 1]} : vector<24x32xf32> to vector<23x32xf32>
    %603 = vector.extract_strided_slice %567 {offsets = [1, 0], sizes = [23, 32], strides = [1, 1]} : vector<24x32xf32> to vector<23x32xf32>
    %604 = vector.extract_strided_slice %583 {offsets = [1, 0], sizes = [23, 32], strides = [1, 1]} : vector<24x32xf32> to vector<23x32xf32>
    %605 = vector.extract_strided_slice %452 {offsets = [0, 0, 0], sizes = [1, 32, 32], strides = [1, 1, 1]} : vector<3x32x32xf32> to vector<1x32x32xf32>
    %606 = vector.shape_cast %605 : vector<1x32x32xf32> to vector<32x32xf32>
    %cst_147 = arith.constant dense<0.000000e+00> : vector<23x32xf32>
    %607 = tpu.matmul %602, %606, %cst_147 {dimension_numbers = #tpu.dot_dimension_numbers<[1], [0], [0], [1], [0, 0, 1, 1], [], []>} : vector<23x32xf32>, vector<32x32xf32>, vector<23x32xf32> -> vector<23x32xf32>
    %608 = vector.extract_strided_slice %452 {offsets = [1, 0, 0], sizes = [1, 32, 32], strides = [1, 1, 1]} : vector<3x32x32xf32> to vector<1x32x32xf32>
    %609 = vector.shape_cast %608 : vector<1x32x32xf32> to vector<32x32xf32>
    %cst_148 = arith.constant dense<0.000000e+00> : vector<23x32xf32>
    %610 = tpu.matmul %603, %609, %cst_148 {dimension_numbers = #tpu.dot_dimension_numbers<[1], [0], [0], [1], [0, 0, 1, 1], [], []>} : vector<23x32xf32>, vector<32x32xf32>, vector<23x32xf32> -> vector<23x32xf32>
    %611 = arith.addf %607, %610 : vector<23x32xf32>
    %612 = vector.extract_strided_slice %452 {offsets = [2, 0, 0], sizes = [1, 32, 32], strides = [1, 1, 1]} : vector<3x32x32xf32> to vector<1x32x32xf32>
    %613 = vector.shape_cast %612 : vector<1x32x32xf32> to vector<32x32xf32>
    %cst_149 = arith.constant dense<0.000000e+00> : vector<23x32xf32>
    %614 = tpu.matmul %604, %613, %cst_149 {dimension_numbers = #tpu.dot_dimension_numbers<[1], [0], [0], [1], [0, 0, 1, 1], [], []>} : vector<23x32xf32>, vector<32x32xf32>, vector<23x32xf32> -> vector<23x32xf32>
    %615 = arith.addf %611, %614 : vector<23x32xf32>
    %616 = vector.broadcast %454 : vector<1x32xf32> to vector<23x32xf32>
    %617 = arith.addf %615, %616 : vector<23x32xf32>
    %cst_150 = arith.constant 0.000000e+00 : f32
    %618 = vector.broadcast %cst_150 : f32 to vector<23x32xf32>
    %619 = arith.maximumf %617, %618 : vector<23x32xf32>
    %620 = arith.maximumf %601, %619 : vector<23x32xf32>
    %621 = vector.extract_strided_slice %620 {offsets = [0, 0], sizes = [1, 32], strides = [1, 1]} : vector<23x32xf32> to vector<1x32xf32>
    %c0_151 = arith.constant 0 : index
    %c736 = arith.constant 736 : index
    %622 = vector.load %arg13[%c0_151, %c736] : memref<2x2208xf32, #tpu.memory_space<vmem>>, vector<1x32xf32>
    tpu.vector_store %arg13[%c0_151, %c736], %621 {strides = array<i32>} : memref<2x2208xf32, #tpu.memory_space<vmem>>, vector<1x32xf32>,
    %623 = vector.extract_strided_slice %620 {offsets = [1, 0], sizes = [1, 32], strides = [1, 1]} : vector<23x32xf32> to vector<1x32xf32>
    %c0_152 = arith.constant 0 : index
    %c768 = arith.constant 768 : index
    %624 = vector.load %arg13[%c0_152, %c768] : memref<2x2208xf32, #tpu.memory_space<vmem>>, vector<1x32xf32>
    tpu.vector_store %arg13[%c0_152, %c768], %623 {strides = array<i32>} : memref<2x2208xf32, #tpu.memory_space<vmem>>, vector<1x32xf32>,
    %625 = vector.extract_strided_slice %620 {offsets = [2, 0], sizes = [1, 32], strides = [1, 1]} : vector<23x32xf32> to vector<1x32xf32>
    %c0_153 = arith.constant 0 : index
    %c800 = arith.constant 800 : index
    %626 = vector.load %arg13[%c0_153, %c800] : memref<2x2208xf32, #tpu.memory_space<vmem>>, vector<1x32xf32>
    tpu.vector_store %arg13[%c0_153, %c800], %625 {strides = array<i32>} : memref<2x2208xf32, #tpu.memory_space<vmem>>, vector<1x32xf32>,
    %627 = vector.extract_strided_slice %620 {offsets = [3, 0], sizes = [1, 32], strides = [1, 1]} : vector<23x32xf32> to vector<1x32xf32>
    %c0_154 = arith.constant 0 : index
    %c832 = arith.constant 832 : index
    %628 = vector.load %arg13[%c0_154, %c832] : memref<2x2208xf32, #tpu.memory_space<vmem>>, vector<1x32xf32>
    tpu.vector_store %arg13[%c0_154, %c832], %627 {strides = array<i32>} : memref<2x2208xf32, #tpu.memory_space<vmem>>, vector<1x32xf32>,
    %629 = vector.extract_strided_slice %620 {offsets = [4, 0], sizes = [1, 32], strides = [1, 1]} : vector<23x32xf32> to vector<1x32xf32>
    %c0_155 = arith.constant 0 : index
    %c864 = arith.constant 864 : index
    %630 = vector.load %arg13[%c0_155, %c864] : memref<2x2208xf32, #tpu.memory_space<vmem>>, vector<1x32xf32>
    tpu.vector_store %arg13[%c0_155, %c864], %629 {strides = array<i32>} : memref<2x2208xf32, #tpu.memory_space<vmem>>, vector<1x32xf32>,
    %631 = vector.extract_strided_slice %620 {offsets = [5, 0], sizes = [1, 32], strides = [1, 1]} : vector<23x32xf32> to vector<1x32xf32>
    %c0_156 = arith.constant 0 : index
    %c896 = arith.constant 896 : index
    %632 = vector.load %arg13[%c0_156, %c896] : memref<2x2208xf32, #tpu.memory_space<vmem>>, vector<1x32xf32>
    tpu.vector_store %arg13[%c0_156, %c896], %631 {strides = array<i32>} : memref<2x2208xf32, #tpu.memory_space<vmem>>, vector<1x32xf32>,
    %633 = vector.extract_strided_slice %620 {offsets = [6, 0], sizes = [1, 32], strides = [1, 1]} : vector<23x32xf32> to vector<1x32xf32>
    %c0_157 = arith.constant 0 : index
    %c928 = arith.constant 928 : index
    %634 = vector.load %arg13[%c0_157, %c928] : memref<2x2208xf32, #tpu.memory_space<vmem>>, vector<1x32xf32>
    tpu.vector_store %arg13[%c0_157, %c928], %633 {strides = array<i32>} : memref<2x2208xf32, #tpu.memory_space<vmem>>, vector<1x32xf32>,
    %635 = vector.extract_strided_slice %620 {offsets = [7, 0], sizes = [1, 32], strides = [1, 1]} : vector<23x32xf32> to vector<1x32xf32>
    %c0_158 = arith.constant 0 : index
    %c960 = arith.constant 960 : index
    %636 = vector.load %arg13[%c0_158, %c960] : memref<2x2208xf32, #tpu.memory_space<vmem>>, vector<1x32xf32>
    tpu.vector_store %arg13[%c0_158, %c960], %635 {strides = array<i32>} : memref<2x2208xf32, #tpu.memory_space<vmem>>, vector<1x32xf32>,
    %637 = vector.extract_strided_slice %620 {offsets = [8, 0], sizes = [1, 32], strides = [1, 1]} : vector<23x32xf32> to vector<1x32xf32>
    %c0_159 = arith.constant 0 : index
    %c992 = arith.constant 992 : index
    %638 = vector.load %arg13[%c0_159, %c992] : memref<2x2208xf32, #tpu.memory_space<vmem>>, vector<1x32xf32>
    tpu.vector_store %arg13[%c0_159, %c992], %637 {strides = array<i32>} : memref<2x2208xf32, #tpu.memory_space<vmem>>, vector<1x32xf32>,
    %639 = vector.extract_strided_slice %620 {offsets = [9, 0], sizes = [1, 32], strides = [1, 1]} : vector<23x32xf32> to vector<1x32xf32>
    %c0_160 = arith.constant 0 : index
    %c1024 = arith.constant 1024 : index
    %640 = vector.load %arg13[%c0_160, %c1024] : memref<2x2208xf32, #tpu.memory_space<vmem>>, vector<1x32xf32>
    tpu.vector_store %arg13[%c0_160, %c1024], %639 {strides = array<i32>} : memref<2x2208xf32, #tpu.memory_space<vmem>>, vector<1x32xf32>,
    %641 = vector.extract_strided_slice %620 {offsets = [10, 0], sizes = [1, 32], strides = [1, 1]} : vector<23x32xf32> to vector<1x32xf32>
    %c0_161 = arith.constant 0 : index
    %c1056 = arith.constant 1056 : index
    %642 = vector.load %arg13[%c0_161, %c1056] : memref<2x2208xf32, #tpu.memory_space<vmem>>, vector<1x32xf32>
    tpu.vector_store %arg13[%c0_161, %c1056], %641 {strides = array<i32>} : memref<2x2208xf32, #tpu.memory_space<vmem>>, vector<1x32xf32>,
    %643 = vector.extract_strided_slice %620 {offsets = [11, 0], sizes = [1, 32], strides = [1, 1]} : vector<23x32xf32> to vector<1x32xf32>
    %c0_162 = arith.constant 0 : index
    %c1088 = arith.constant 1088 : index
    %644 = vector.load %arg13[%c0_162, %c1088] : memref<2x2208xf32, #tpu.memory_space<vmem>>, vector<1x32xf32>
    tpu.vector_store %arg13[%c0_162, %c1088], %643 {strides = array<i32>} : memref<2x2208xf32, #tpu.memory_space<vmem>>, vector<1x32xf32>,
    %645 = vector.extract_strided_slice %620 {offsets = [12, 0], sizes = [1, 32], strides = [1, 1]} : vector<23x32xf32> to vector<1x32xf32>
    %c0_163 = arith.constant 0 : index
    %c1120 = arith.constant 1120 : index
    %646 = vector.load %arg13[%c0_163, %c1120] : memref<2x2208xf32, #tpu.memory_space<vmem>>, vector<1x32xf32>
    tpu.vector_store %arg13[%c0_163, %c1120], %645 {strides = array<i32>} : memref<2x2208xf32, #tpu.memory_space<vmem>>, vector<1x32xf32>,
    %647 = vector.extract_strided_slice %620 {offsets = [13, 0], sizes = [1, 32], strides = [1, 1]} : vector<23x32xf32> to vector<1x32xf32>
    %c0_164 = arith.constant 0 : index
    %c1152 = arith.constant 1152 : index
    %648 = vector.load %arg13[%c0_164, %c1152] : memref<2x2208xf32, #tpu.memory_space<vmem>>, vector<1x32xf32>
    tpu.vector_store %arg13[%c0_164, %c1152], %647 {strides = array<i32>} : memref<2x2208xf32, #tpu.memory_space<vmem>>, vector<1x32xf32>,
    %649 = vector.extract_strided_slice %620 {offsets = [14, 0], sizes = [1, 32], strides = [1, 1]} : vector<23x32xf32> to vector<1x32xf32>
    %c0_165 = arith.constant 0 : index
    %c1184 = arith.constant 1184 : index
    %650 = vector.load %arg13[%c0_165, %c1184] : memref<2x2208xf32, #tpu.memory_space<vmem>>, vector<1x32xf32>
    tpu.vector_store %arg13[%c0_165, %c1184], %649 {strides = array<i32>} : memref<2x2208xf32, #tpu.memory_space<vmem>>, vector<1x32xf32>,
    %651 = vector.extract_strided_slice %620 {offsets = [15, 0], sizes = [1, 32], strides = [1, 1]} : vector<23x32xf32> to vector<1x32xf32>
    %c0_166 = arith.constant 0 : index
    %c1216 = arith.constant 1216 : index
    %652 = vector.load %arg13[%c0_166, %c1216] : memref<2x2208xf32, #tpu.memory_space<vmem>>, vector<1x32xf32>
    tpu.vector_store %arg13[%c0_166, %c1216], %651 {strides = array<i32>} : memref<2x2208xf32, #tpu.memory_space<vmem>>, vector<1x32xf32>,
    %653 = vector.extract_strided_slice %620 {offsets = [16, 0], sizes = [1, 32], strides = [1, 1]} : vector<23x32xf32> to vector<1x32xf32>
    %c0_167 = arith.constant 0 : index
    %c1248 = arith.constant 1248 : index
    %654 = vector.load %arg13[%c0_167, %c1248] : memref<2x2208xf32, #tpu.memory_space<vmem>>, vector<1x32xf32>
    tpu.vector_store %arg13[%c0_167, %c1248], %653 {strides = array<i32>} : memref<2x2208xf32, #tpu.memory_space<vmem>>, vector<1x32xf32>,
    %655 = vector.extract_strided_slice %620 {offsets = [17, 0], sizes = [1, 32], strides = [1, 1]} : vector<23x32xf32> to vector<1x32xf32>
    %c0_168 = arith.constant 0 : index
    %c1280 = arith.constant 1280 : index
    %656 = vector.load %arg13[%c0_168, %c1280] : memref<2x2208xf32, #tpu.memory_space<vmem>>, vector<1x32xf32>
    tpu.vector_store %arg13[%c0_168, %c1280], %655 {strides = array<i32>} : memref<2x2208xf32, #tpu.memory_space<vmem>>, vector<1x32xf32>,
    %657 = vector.extract_strided_slice %620 {offsets = [18, 0], sizes = [1, 32], strides = [1, 1]} : vector<23x32xf32> to vector<1x32xf32>
    %c0_169 = arith.constant 0 : index
    %c1312 = arith.constant 1312 : index
    %658 = vector.load %arg13[%c0_169, %c1312] : memref<2x2208xf32, #tpu.memory_space<vmem>>, vector<1x32xf32>
    tpu.vector_store %arg13[%c0_169, %c1312], %657 {strides = array<i32>} : memref<2x2208xf32, #tpu.memory_space<vmem>>, vector<1x32xf32>,
    %659 = vector.extract_strided_slice %620 {offsets = [19, 0], sizes = [1, 32], strides = [1, 1]} : vector<23x32xf32> to vector<1x32xf32>
    %c0_170 = arith.constant 0 : index
    %c1344 = arith.constant 1344 : index
    %660 = vector.load %arg13[%c0_170, %c1344] : memref<2x2208xf32, #tpu.memory_space<vmem>>, vector<1x32xf32>
    tpu.vector_store %arg13[%c0_170, %c1344], %659 {strides = array<i32>} : memref<2x2208xf32, #tpu.memory_space<vmem>>, vector<1x32xf32>,
    %661 = vector.extract_strided_slice %620 {offsets = [20, 0], sizes = [1, 32], strides = [1, 1]} : vector<23x32xf32> to vector<1x32xf32>
    %c0_171 = arith.constant 0 : index
    %c1376 = arith.constant 1376 : index
    %662 = vector.load %arg13[%c0_171, %c1376] : memref<2x2208xf32, #tpu.memory_space<vmem>>, vector<1x32xf32>
    tpu.vector_store %arg13[%c0_171, %c1376], %661 {strides = array<i32>} : memref<2x2208xf32, #tpu.memory_space<vmem>>, vector<1x32xf32>,
    %663 = vector.extract_strided_slice %620 {offsets = [21, 0], sizes = [1, 32], strides = [1, 1]} : vector<23x32xf32> to vector<1x32xf32>
    %c0_172 = arith.constant 0 : index
    %c1408 = arith.constant 1408 : index
    %664 = vector.load %arg13[%c0_172, %c1408] : memref<2x2208xf32, #tpu.memory_space<vmem>>, vector<1x32xf32>
    tpu.vector_store %arg13[%c0_172, %c1408], %663 {strides = array<i32>} : memref<2x2208xf32, #tpu.memory_space<vmem>>, vector<1x32xf32>,
    %665 = vector.extract_strided_slice %620 {offsets = [22, 0], sizes = [1, 32], strides = [1, 1]} : vector<23x32xf32> to vector<1x32xf32>
    %c0_173 = arith.constant 0 : index
    %c1440 = arith.constant 1440 : index
    %666 = vector.load %arg13[%c0_173, %c1440] : memref<2x2208xf32, #tpu.memory_space<vmem>>, vector<1x32xf32>
    tpu.vector_store %arg13[%c0_173, %c1440], %665 {strides = array<i32>} : memref<2x2208xf32, #tpu.memory_space<vmem>>, vector<1x32xf32>,
    %667 = vector.extract_strided_slice %0 {offsets = [1, 0, 0, 1], sizes = [1, 1, 25, 1], strides = [1, 1, 1, 1]} : vector<3x8x25x2xf32> to vector<1x1x25x1xf32>
    %668 = vector.shape_cast %667 : vector<1x1x25x1xf32> to vector<25x1xf32>
    %669 = vector.extract_strided_slice %0 {offsets = [1, 1, 0, 1], sizes = [1, 1, 25, 1], strides = [1, 1, 1, 1]} : vector<3x8x25x2xf32> to vector<1x1x25x1xf32>
    %670 = vector.shape_cast %669 : vector<1x1x25x1xf32> to vector<25x1xf32>
    %671 = vector.extract_strided_slice %0 {offsets = [1, 2, 0, 1], sizes = [1, 1, 25, 1], strides = [1, 1, 1, 1]} : vector<3x8x25x2xf32> to vector<1x1x25x1xf32>
    %672 = vector.shape_cast %671 : vector<1x1x25x1xf32> to vector<25x1xf32>
    %673 = vector.extract_strided_slice %0 {offsets = [1, 3, 0, 1], sizes = [1, 1, 25, 1], strides = [1, 1, 1, 1]} : vector<3x8x25x2xf32> to vector<1x1x25x1xf32>
    %674 = vector.shape_cast %673 : vector<1x1x25x1xf32> to vector<25x1xf32>
    %675 = vector.extract_strided_slice %0 {offsets = [1, 4, 0, 1], sizes = [1, 1, 25, 1], strides = [1, 1, 1, 1]} : vector<3x8x25x2xf32> to vector<1x1x25x1xf32>
    %676 = vector.shape_cast %675 : vector<1x1x25x1xf32> to vector<25x1xf32>
    %677 = vector.extract_strided_slice %0 {offsets = [1, 5, 0, 1], sizes = [1, 1, 25, 1], strides = [1, 1, 1, 1]} : vector<3x8x25x2xf32> to vector<1x1x25x1xf32>
    %678 = vector.shape_cast %677 : vector<1x1x25x1xf32> to vector<25x1xf32>
    %679 = vector.extract_strided_slice %0 {offsets = [1, 6, 0, 1], sizes = [1, 1, 25, 1], strides = [1, 1, 1, 1]} : vector<3x8x25x2xf32> to vector<1x1x25x1xf32>
    %680 = vector.shape_cast %679 : vector<1x1x25x1xf32> to vector<25x1xf32>
    %681 = vector.extract_strided_slice %0 {offsets = [1, 7, 0, 1], sizes = [1, 1, 25, 1], strides = [1, 1, 1, 1]} : vector<3x8x25x2xf32> to vector<1x1x25x1xf32>
    %682 = vector.shape_cast %681 : vector<1x1x25x1xf32> to vector<25x1xf32>
    %683 = vector.extract_strided_slice %444 {offsets = [0, 0], sizes = [1, 32], strides = [1, 1]} : vector<3x32xf32> to vector<1x32xf32>
    %684 = vector.broadcast %668 : vector<25x1xf32> to vector<25x32xf32>
    %685 = vector.broadcast %683 : vector<1x32xf32> to vector<25x32xf32>
    %686 = arith.mulf %684, %685 : vector<25x32xf32>
    %687 = vector.extract_strided_slice %444 {offsets = [1, 0], sizes = [1, 32], strides = [1, 1]} : vector<3x32xf32> to vector<1x32xf32>
    %688 = vector.broadcast %670 : vector<25x1xf32> to vector<25x32xf32>
    %689 = vector.broadcast %687 : vector<1x32xf32> to vector<25x32xf32>
    %690 = arith.mulf %688, %689 : vector<25x32xf32>
    %691 = arith.addf %686, %690 : vector<25x32xf32>
    %692 = vector.extract_strided_slice %444 {offsets = [2, 0], sizes = [1, 32], strides = [1, 1]} : vector<3x32xf32> to vector<1x32xf32>
    %693 = vector.broadcast %672 : vector<25x1xf32> to vector<25x32xf32>
    %694 = vector.broadcast %692 : vector<1x32xf32> to vector<25x32xf32>
    %695 = arith.mulf %693, %694 : vector<25x32xf32>
    %696 = arith.addf %691, %695 : vector<25x32xf32>
    %697 = vector.broadcast %446 : vector<1x32xf32> to vector<25x32xf32>
    %698 = arith.addf %696, %697 : vector<25x32xf32>
    %cst_174 = arith.constant 0.000000e+00 : f32
    %699 = vector.broadcast %cst_174 : f32 to vector<25x32xf32>
    %700 = arith.maximumf %698, %699 : vector<25x32xf32>
    %701 = vector.extract_strided_slice %672 {offsets = [0, 0], sizes = [24, 1], strides = [1, 1]} : vector<25x1xf32> to vector<24x1xf32>
    %702 = vector.extract_strided_slice %674 {offsets = [0, 0], sizes = [24, 1], strides = [1, 1]} : vector<25x1xf32> to vector<24x1xf32>
    %703 = vector.extract_strided_slice %676 {offsets = [0, 0], sizes = [24, 1], strides = [1, 1]} : vector<25x1xf32> to vector<24x1xf32>
    %704 = vector.extract_strided_slice %444 {offsets = [0, 0], sizes = [1, 32], strides = [1, 1]} : vector<3x32xf32> to vector<1x32xf32>
    %705 = vector.broadcast %701 : vector<24x1xf32> to vector<24x32xf32>
    %706 = vector.broadcast %704 : vector<1x32xf32> to vector<24x32xf32>
    %707 = arith.mulf %705, %706 : vector<24x32xf32>
    %708 = vector.extract_strided_slice %444 {offsets = [1, 0], sizes = [1, 32], strides = [1, 1]} : vector<3x32xf32> to vector<1x32xf32>
    %709 = vector.broadcast %702 : vector<24x1xf32> to vector<24x32xf32>
    %710 = vector.broadcast %708 : vector<1x32xf32> to vector<24x32xf32>
    %711 = arith.mulf %709, %710 : vector<24x32xf32>
    %712 = arith.addf %707, %711 : vector<24x32xf32>
    %713 = vector.extract_strided_slice %444 {offsets = [2, 0], sizes = [1, 32], strides = [1, 1]} : vector<3x32xf32> to vector<1x32xf32>
    %714 = vector.broadcast %703 : vector<24x1xf32> to vector<24x32xf32>
    %715 = vector.broadcast %713 : vector<1x32xf32> to vector<24x32xf32>
    %716 = arith.mulf %714, %715 : vector<24x32xf32>
    %717 = arith.addf %712, %716 : vector<24x32xf32>
    %718 = vector.broadcast %446 : vector<1x32xf32> to vector<24x32xf32>
    %719 = arith.addf %717, %718 : vector<24x32xf32>
    %cst_175 = arith.constant 0.000000e+00 : f32
    %720 = vector.broadcast %cst_175 : f32 to vector<24x32xf32>
    %721 = arith.maximumf %719, %720 : vector<24x32xf32>
    %722 = vector.extract_strided_slice %676 {offsets = [0, 0], sizes = [24, 1], strides = [1, 1]} : vector<25x1xf32> to vector<24x1xf32>
    %723 = vector.extract_strided_slice %678 {offsets = [0, 0], sizes = [24, 1], strides = [1, 1]} : vector<25x1xf32> to vector<24x1xf32>
    %724 = vector.extract_strided_slice %680 {offsets = [0, 0], sizes = [24, 1], strides = [1, 1]} : vector<25x1xf32> to vector<24x1xf32>
    %725 = vector.extract_strided_slice %444 {offsets = [0, 0], sizes = [1, 32], strides = [1, 1]} : vector<3x32xf32> to vector<1x32xf32>
    %726 = vector.broadcast %722 : vector<24x1xf32> to vector<24x32xf32>
    %727 = vector.broadcast %725 : vector<1x32xf32> to vector<24x32xf32>
    %728 = arith.mulf %726, %727 : vector<24x32xf32>
    %729 = vector.extract_strided_slice %444 {offsets = [1, 0], sizes = [1, 32], strides = [1, 1]} : vector<3x32xf32> to vector<1x32xf32>
    %730 = vector.broadcast %723 : vector<24x1xf32> to vector<24x32xf32>
    %731 = vector.broadcast %729 : vector<1x32xf32> to vector<24x32xf32>
    %732 = arith.mulf %730, %731 : vector<24x32xf32>
    %733 = arith.addf %728, %732 : vector<24x32xf32>
    %734 = vector.extract_strided_slice %444 {offsets = [2, 0], sizes = [1, 32], strides = [1, 1]} : vector<3x32xf32> to vector<1x32xf32>
    %735 = vector.broadcast %724 : vector<24x1xf32> to vector<24x32xf32>
    %736 = vector.broadcast %734 : vector<1x32xf32> to vector<24x32xf32>
    %737 = arith.mulf %735, %736 : vector<24x32xf32>
    %738 = arith.addf %733, %737 : vector<24x32xf32>
    %739 = vector.broadcast %446 : vector<1x32xf32> to vector<24x32xf32>
    %740 = arith.addf %738, %739 : vector<24x32xf32>
    %cst_176 = arith.constant 0.000000e+00 : f32
    %741 = vector.broadcast %cst_176 : f32 to vector<24x32xf32>
    %742 = arith.maximumf %740, %741 : vector<24x32xf32>
    %743 = vector.extract_strided_slice %680 {offsets = [0, 0], sizes = [24, 1], strides = [1, 1]} : vector<25x1xf32> to vector<24x1xf32>
    %744 = vector.extract_strided_slice %682 {offsets = [0, 0], sizes = [24, 1], strides = [1, 1]} : vector<25x1xf32> to vector<24x1xf32>
    %745 = vector.extract_strided_slice %668 {offsets = [1, 0], sizes = [24, 1], strides = [1, 1]} : vector<25x1xf32> to vector<24x1xf32>
    %746 = vector.extract_strided_slice %444 {offsets = [0, 0], sizes = [1, 32], strides = [1, 1]} : vector<3x32xf32> to vector<1x32xf32>
    %747 = vector.broadcast %743 : vector<24x1xf32> to vector<24x32xf32>
    %748 = vector.broadcast %746 : vector<1x32xf32> to vector<24x32xf32>
    %749 = arith.mulf %747, %748 : vector<24x32xf32>
    %750 = vector.extract_strided_slice %444 {offsets = [1, 0], sizes = [1, 32], strides = [1, 1]} : vector<3x32xf32> to vector<1x32xf32>
    %751 = vector.broadcast %744 : vector<24x1xf32> to vector<24x32xf32>
    %752 = vector.broadcast %750 : vector<1x32xf32> to vector<24x32xf32>
    %753 = arith.mulf %751, %752 : vector<24x32xf32>
    %754 = arith.addf %749, %753 : vector<24x32xf32>
    %755 = vector.extract_strided_slice %444 {offsets = [2, 0], sizes = [1, 32], strides = [1, 1]} : vector<3x32xf32> to vector<1x32xf32>
    %756 = vector.broadcast %745 : vector<24x1xf32> to vector<24x32xf32>
    %757 = vector.broadcast %755 : vector<1x32xf32> to vector<24x32xf32>
    %758 = arith.mulf %756, %757 : vector<24x32xf32>
    %759 = arith.addf %754, %758 : vector<24x32xf32>
    %760 = vector.broadcast %446 : vector<1x32xf32> to vector<24x32xf32>
    %761 = arith.addf %759, %760 : vector<24x32xf32>
    %cst_177 = arith.constant 0.000000e+00 : f32
    %762 = vector.broadcast %cst_177 : f32 to vector<24x32xf32>
    %763 = arith.maximumf %761, %762 : vector<24x32xf32>
    %764 = vector.extract_strided_slice %700 {offsets = [0, 0], sizes = [24, 32], strides = [1, 1]} : vector<25x32xf32> to vector<24x32xf32>
    %765 = vector.extract_strided_slice %448 {offsets = [0, 0, 0], sizes = [1, 32, 32], strides = [1, 1, 1]} : vector<3x32x32xf32> to vector<1x32x32xf32>
    %766 = vector.shape_cast %765 : vector<1x32x32xf32> to vector<32x32xf32>
    %cst_178 = arith.constant dense<0.000000e+00> : vector<24x32xf32>
    %767 = tpu.matmul %764, %766, %cst_178 {dimension_numbers = #tpu.dot_dimension_numbers<[1], [0], [0], [1], [0, 0, 1, 1], [], []>} : vector<24x32xf32>, vector<32x32xf32>, vector<24x32xf32> -> vector<24x32xf32>
    %768 = vector.extract_strided_slice %448 {offsets = [1, 0, 0], sizes = [1, 32, 32], strides = [1, 1, 1]} : vector<3x32x32xf32> to vector<1x32x32xf32>
    %769 = vector.shape_cast %768 : vector<1x32x32xf32> to vector<32x32xf32>
    %cst_179 = arith.constant dense<0.000000e+00> : vector<24x32xf32>
    %770 = tpu.matmul %721, %769, %cst_179 {dimension_numbers = #tpu.dot_dimension_numbers<[1], [0], [0], [1], [0, 0, 1, 1], [], []>} : vector<24x32xf32>, vector<32x32xf32>, vector<24x32xf32> -> vector<24x32xf32>
    %771 = arith.addf %767, %770 : vector<24x32xf32>
    %772 = vector.extract_strided_slice %448 {offsets = [2, 0, 0], sizes = [1, 32, 32], strides = [1, 1, 1]} : vector<3x32x32xf32> to vector<1x32x32xf32>
    %773 = vector.shape_cast %772 : vector<1x32x32xf32> to vector<32x32xf32>
    %cst_180 = arith.constant dense<0.000000e+00> : vector<24x32xf32>
    %774 = tpu.matmul %742, %773, %cst_180 {dimension_numbers = #tpu.dot_dimension_numbers<[1], [0], [0], [1], [0, 0, 1, 1], [], []>} : vector<24x32xf32>, vector<32x32xf32>, vector<24x32xf32> -> vector<24x32xf32>
    %775 = arith.addf %771, %774 : vector<24x32xf32>
    %776 = vector.broadcast %450 : vector<1x32xf32> to vector<24x32xf32>
    %777 = arith.addf %775, %776 : vector<24x32xf32>
    %cst_181 = arith.constant 0.000000e+00 : f32
    %778 = vector.broadcast %cst_181 : f32 to vector<24x32xf32>
    %779 = arith.maximumf %777, %778 : vector<24x32xf32>
    %780 = vector.extract_strided_slice %700 {offsets = [1, 0], sizes = [24, 32], strides = [1, 1]} : vector<25x32xf32> to vector<24x32xf32>
    %781 = vector.extract_strided_slice %448 {offsets = [0, 0, 0], sizes = [1, 32, 32], strides = [1, 1, 1]} : vector<3x32x32xf32> to vector<1x32x32xf32>
    %782 = vector.shape_cast %781 : vector<1x32x32xf32> to vector<32x32xf32>
    %cst_182 = arith.constant dense<0.000000e+00> : vector<24x32xf32>
    %783 = tpu.matmul %742, %782, %cst_182 {dimension_numbers = #tpu.dot_dimension_numbers<[1], [0], [0], [1], [0, 0, 1, 1], [], []>} : vector<24x32xf32>, vector<32x32xf32>, vector<24x32xf32> -> vector<24x32xf32>
    %784 = vector.extract_strided_slice %448 {offsets = [1, 0, 0], sizes = [1, 32, 32], strides = [1, 1, 1]} : vector<3x32x32xf32> to vector<1x32x32xf32>
    %785 = vector.shape_cast %784 : vector<1x32x32xf32> to vector<32x32xf32>
    %cst_183 = arith.constant dense<0.000000e+00> : vector<24x32xf32>
    %786 = tpu.matmul %763, %785, %cst_183 {dimension_numbers = #tpu.dot_dimension_numbers<[1], [0], [0], [1], [0, 0, 1, 1], [], []>} : vector<24x32xf32>, vector<32x32xf32>, vector<24x32xf32> -> vector<24x32xf32>
    %787 = arith.addf %783, %786 : vector<24x32xf32>
    %788 = vector.extract_strided_slice %448 {offsets = [2, 0, 0], sizes = [1, 32, 32], strides = [1, 1, 1]} : vector<3x32x32xf32> to vector<1x32x32xf32>
    %789 = vector.shape_cast %788 : vector<1x32x32xf32> to vector<32x32xf32>
    %cst_184 = arith.constant dense<0.000000e+00> : vector<24x32xf32>
    %790 = tpu.matmul %780, %789, %cst_184 {dimension_numbers = #tpu.dot_dimension_numbers<[1], [0], [0], [1], [0, 0, 1, 1], [], []>} : vector<24x32xf32>, vector<32x32xf32>, vector<24x32xf32> -> vector<24x32xf32>
    %791 = arith.addf %787, %790 : vector<24x32xf32>
    %792 = vector.broadcast %450 : vector<1x32xf32> to vector<24x32xf32>
    %793 = arith.addf %791, %792 : vector<24x32xf32>
    %cst_185 = arith.constant 0.000000e+00 : f32
    %794 = vector.broadcast %cst_185 : f32 to vector<24x32xf32>
    %795 = arith.maximumf %793, %794 : vector<24x32xf32>
    %796 = vector.extract_strided_slice %779 {offsets = [0, 0], sizes = [23, 32], strides = [1, 1]} : vector<24x32xf32> to vector<23x32xf32>
    %797 = vector.extract_strided_slice %795 {offsets = [0, 0], sizes = [23, 32], strides = [1, 1]} : vector<24x32xf32> to vector<23x32xf32>
    %798 = vector.extract_strided_slice %779 {offsets = [1, 0], sizes = [23, 32], strides = [1, 1]} : vector<24x32xf32> to vector<23x32xf32>
    %799 = vector.extract_strided_slice %452 {offsets = [0, 0, 0], sizes = [1, 32, 32], strides = [1, 1, 1]} : vector<3x32x32xf32> to vector<1x32x32xf32>
    %800 = vector.shape_cast %799 : vector<1x32x32xf32> to vector<32x32xf32>
    %cst_186 = arith.constant dense<0.000000e+00> : vector<23x32xf32>
    %801 = tpu.matmul %796, %800, %cst_186 {dimension_numbers = #tpu.dot_dimension_numbers<[1], [0], [0], [1], [0, 0, 1, 1], [], []>} : vector<23x32xf32>, vector<32x32xf32>, vector<23x32xf32> -> vector<23x32xf32>
    %802 = vector.extract_strided_slice %452 {offsets = [1, 0, 0], sizes = [1, 32, 32], strides = [1, 1, 1]} : vector<3x32x32xf32> to vector<1x32x32xf32>
    %803 = vector.shape_cast %802 : vector<1x32x32xf32> to vector<32x32xf32>
    %cst_187 = arith.constant dense<0.000000e+00> : vector<23x32xf32>
    %804 = tpu.matmul %797, %803, %cst_187 {dimension_numbers = #tpu.dot_dimension_numbers<[1], [0], [0], [1], [0, 0, 1, 1], [], []>} : vector<23x32xf32>, vector<32x32xf32>, vector<23x32xf32> -> vector<23x32xf32>
    %805 = arith.addf %801, %804 : vector<23x32xf32>
    %806 = vector.extract_strided_slice %452 {offsets = [2, 0, 0], sizes = [1, 32, 32], strides = [1, 1, 1]} : vector<3x32x32xf32> to vector<1x32x32xf32>
    %807 = vector.shape_cast %806 : vector<1x32x32xf32> to vector<32x32xf32>
    %cst_188 = arith.constant dense<0.000000e+00> : vector<23x32xf32>
    %808 = tpu.matmul %798, %807, %cst_188 {dimension_numbers = #tpu.dot_dimension_numbers<[1], [0], [0], [1], [0, 0, 1, 1], [], []>} : vector<23x32xf32>, vector<32x32xf32>, vector<23x32xf32> -> vector<23x32xf32>
    %809 = arith.addf %805, %808 : vector<23x32xf32>
    %810 = vector.broadcast %454 : vector<1x32xf32> to vector<23x32xf32>
    %811 = arith.addf %809, %810 : vector<23x32xf32>
    %cst_189 = arith.constant 0.000000e+00 : f32
    %812 = vector.broadcast %cst_189 : f32 to vector<23x32xf32>
    %813 = arith.maximumf %811, %812 : vector<23x32xf32>
    %814 = vector.extract_strided_slice %795 {offsets = [0, 0], sizes = [23, 32], strides = [1, 1]} : vector<24x32xf32> to vector<23x32xf32>
    %815 = vector.extract_strided_slice %779 {offsets = [1, 0], sizes = [23, 32], strides = [1, 1]} : vector<24x32xf32> to vector<23x32xf32>
    %816 = vector.extract_strided_slice %795 {offsets = [1, 0], sizes = [23, 32], strides = [1, 1]} : vector<24x32xf32> to vector<23x32xf32>
    %817 = vector.extract_strided_slice %452 {offsets = [0, 0, 0], sizes = [1, 32, 32], strides = [1, 1, 1]} : vector<3x32x32xf32> to vector<1x32x32xf32>
    %818 = vector.shape_cast %817 : vector<1x32x32xf32> to vector<32x32xf32>
    %cst_190 = arith.constant dense<0.000000e+00> : vector<23x32xf32>
    %819 = tpu.matmul %814, %818, %cst_190 {dimension_numbers = #tpu.dot_dimension_numbers<[1], [0], [0], [1], [0, 0, 1, 1], [], []>} : vector<23x32xf32>, vector<32x32xf32>, vector<23x32xf32> -> vector<23x32xf32>
    %820 = vector.extract_strided_slice %452 {offsets = [1, 0, 0], sizes = [1, 32, 32], strides = [1, 1, 1]} : vector<3x32x32xf32> to vector<1x32x32xf32>
    %821 = vector.shape_cast %820 : vector<1x32x32xf32> to vector<32x32xf32>
    %cst_191 = arith.constant dense<0.000000e+00> : vector<23x32xf32>
    %822 = tpu.matmul %815, %821, %cst_191 {dimension_numbers = #tpu.dot_dimension_numbers<[1], [0], [0], [1], [0, 0, 1, 1], [], []>} : vector<23x32xf32>, vector<32x32xf32>, vector<23x32xf32> -> vector<23x32xf32>
    %823 = arith.addf %819, %822 : vector<23x32xf32>
    %824 = vector.extract_strided_slice %452 {offsets = [2, 0, 0], sizes = [1, 32, 32], strides = [1, 1, 1]} : vector<3x32x32xf32> to vector<1x32x32xf32>
    %825 = vector.shape_cast %824 : vector<1x32x32xf32> to vector<32x32xf32>
    %cst_192 = arith.constant dense<0.000000e+00> : vector<23x32xf32>
    %826 = tpu.matmul %816, %825, %cst_192 {dimension_numbers = #tpu.dot_dimension_numbers<[1], [0], [0], [1], [0, 0, 1, 1], [], []>} : vector<23x32xf32>, vector<32x32xf32>, vector<23x32xf32> -> vector<23x32xf32>
    %827 = arith.addf %823, %826 : vector<23x32xf32>
    %828 = vector.broadcast %454 : vector<1x32xf32> to vector<23x32xf32>
    %829 = arith.addf %827, %828 : vector<23x32xf32>
    %cst_193 = arith.constant 0.000000e+00 : f32
    %830 = vector.broadcast %cst_193 : f32 to vector<23x32xf32>
    %831 = arith.maximumf %829, %830 : vector<23x32xf32>
    %832 = arith.maximumf %813, %831 : vector<23x32xf32>
    %833 = vector.extract_strided_slice %832 {offsets = [0, 0], sizes = [1, 32], strides = [1, 1]} : vector<23x32xf32> to vector<1x32xf32>
    %c1_194 = arith.constant 1 : index
    %c736_195 = arith.constant 736 : index
    %834 = vector.load %arg13[%c1_194, %c736_195] : memref<2x2208xf32, #tpu.memory_space<vmem>>, vector<1x32xf32>
    tpu.vector_store %arg13[%c1_194, %c736_195], %833 {strides = array<i32>} : memref<2x2208xf32, #tpu.memory_space<vmem>>, vector<1x32xf32>,
    %835 = vector.extract_strided_slice %832 {offsets = [1, 0], sizes = [1, 32], strides = [1, 1]} : vector<23x32xf32> to vector<1x32xf32>
    %c1_196 = arith.constant 1 : index
    %c768_197 = arith.constant 768 : index
    %836 = vector.load %arg13[%c1_196, %c768_197] : memref<2x2208xf32, #tpu.memory_space<vmem>>, vector<1x32xf32>
    tpu.vector_store %arg13[%c1_196, %c768_197], %835 {strides = array<i32>} : memref<2x2208xf32, #tpu.memory_space<vmem>>, vector<1x32xf32>,
    %837 = vector.extract_strided_slice %832 {offsets = [2, 0], sizes = [1, 32], strides = [1, 1]} : vector<23x32xf32> to vector<1x32xf32>
    %c1_198 = arith.constant 1 : index
    %c800_199 = arith.constant 800 : index
    %838 = vector.load %arg13[%c1_198, %c800_199] : memref<2x2208xf32, #tpu.memory_space<vmem>>, vector<1x32xf32>
    tpu.vector_store %arg13[%c1_198, %c800_199], %837 {strides = array<i32>} : memref<2x2208xf32, #tpu.memory_space<vmem>>, vector<1x32xf32>,
    %839 = vector.extract_strided_slice %832 {offsets = [3, 0], sizes = [1, 32], strides = [1, 1]} : vector<23x32xf32> to vector<1x32xf32>
    %c1_200 = arith.constant 1 : index
    %c832_201 = arith.constant 832 : index
    %840 = vector.load %arg13[%c1_200, %c832_201] : memref<2x2208xf32, #tpu.memory_space<vmem>>, vector<1x32xf32>
    tpu.vector_store %arg13[%c1_200, %c832_201], %839 {strides = array<i32>} : memref<2x2208xf32, #tpu.memory_space<vmem>>, vector<1x32xf32>,
    %841 = vector.extract_strided_slice %832 {offsets = [4, 0], sizes = [1, 32], strides = [1, 1]} : vector<23x32xf32> to vector<1x32xf32>
    %c1_202 = arith.constant 1 : index
    %c864_203 = arith.constant 864 : index
    %842 = vector.load %arg13[%c1_202, %c864_203] : memref<2x2208xf32, #tpu.memory_space<vmem>>, vector<1x32xf32>
    tpu.vector_store %arg13[%c1_202, %c864_203], %841 {strides = array<i32>} : memref<2x2208xf32, #tpu.memory_space<vmem>>, vector<1x32xf32>,
    %843 = vector.extract_strided_slice %832 {offsets = [5, 0], sizes = [1, 32], strides = [1, 1]} : vector<23x32xf32> to vector<1x32xf32>
    %c1_204 = arith.constant 1 : index
    %c896_205 = arith.constant 896 : index
    %844 = vector.load %arg13[%c1_204, %c896_205] : memref<2x2208xf32, #tpu.memory_space<vmem>>, vector<1x32xf32>
    tpu.vector_store %arg13[%c1_204, %c896_205], %843 {strides = array<i32>} : memref<2x2208xf32, #tpu.memory_space<vmem>>, vector<1x32xf32>,
    %845 = vector.extract_strided_slice %832 {offsets = [6, 0], sizes = [1, 32], strides = [1, 1]} : vector<23x32xf32> to vector<1x32xf32>
    %c1_206 = arith.constant 1 : index
    %c928_207 = arith.constant 928 : index
    %846 = vector.load %arg13[%c1_206, %c928_207] : memref<2x2208xf32, #tpu.memory_space<vmem>>, vector<1x32xf32>
    tpu.vector_store %arg13[%c1_206, %c928_207], %845 {strides = array<i32>} : memref<2x2208xf32, #tpu.memory_space<vmem>>, vector<1x32xf32>,
    %847 = vector.extract_strided_slice %832 {offsets = [7, 0], sizes = [1, 32], strides = [1, 1]} : vector<23x32xf32> to vector<1x32xf32>
    %c1_208 = arith.constant 1 : index
    %c960_209 = arith.constant 960 : index
    %848 = vector.load %arg13[%c1_208, %c960_209] : memref<2x2208xf32, #tpu.memory_space<vmem>>, vector<1x32xf32>
    tpu.vector_store %arg13[%c1_208, %c960_209], %847 {strides = array<i32>} : memref<2x2208xf32, #tpu.memory_space<vmem>>, vector<1x32xf32>,
    %849 = vector.extract_strided_slice %832 {offsets = [8, 0], sizes = [1, 32], strides = [1, 1]} : vector<23x32xf32> to vector<1x32xf32>
    %c1_210 = arith.constant 1 : index
    %c992_211 = arith.constant 992 : index
    %850 = vector.load %arg13[%c1_210, %c992_211] : memref<2x2208xf32, #tpu.memory_space<vmem>>, vector<1x32xf32>
    tpu.vector_store %arg13[%c1_210, %c992_211], %849 {strides = array<i32>} : memref<2x2208xf32, #tpu.memory_space<vmem>>, vector<1x32xf32>,
    %851 = vector.extract_strided_slice %832 {offsets = [9, 0], sizes = [1, 32], strides = [1, 1]} : vector<23x32xf32> to vector<1x32xf32>
    %c1_212 = arith.constant 1 : index
    %c1024_213 = arith.constant 1024 : index
    %852 = vector.load %arg13[%c1_212, %c1024_213] : memref<2x2208xf32, #tpu.memory_space<vmem>>, vector<1x32xf32>
    tpu.vector_store %arg13[%c1_212, %c1024_213], %851 {strides = array<i32>} : memref<2x2208xf32, #tpu.memory_space<vmem>>, vector<1x32xf32>,
    %853 = vector.extract_strided_slice %832 {offsets = [10, 0], sizes = [1, 32], strides = [1, 1]} : vector<23x32xf32> to vector<1x32xf32>
    %c1_214 = arith.constant 1 : index
    %c1056_215 = arith.constant 1056 : index
    %854 = vector.load %arg13[%c1_214, %c1056_215] : memref<2x2208xf32, #tpu.memory_space<vmem>>, vector<1x32xf32>
    tpu.vector_store %arg13[%c1_214, %c1056_215], %853 {strides = array<i32>} : memref<2x2208xf32, #tpu.memory_space<vmem>>, vector<1x32xf32>,
    %855 = vector.extract_strided_slice %832 {offsets = [11, 0], sizes = [1, 32], strides = [1, 1]} : vector<23x32xf32> to vector<1x32xf32>
    %c1_216 = arith.constant 1 : index
    %c1088_217 = arith.constant 1088 : index
    %856 = vector.load %arg13[%c1_216, %c1088_217] : memref<2x2208xf32, #tpu.memory_space<vmem>>, vector<1x32xf32>
    tpu.vector_store %arg13[%c1_216, %c1088_217], %855 {strides = array<i32>} : memref<2x2208xf32, #tpu.memory_space<vmem>>, vector<1x32xf32>,
    %857 = vector.extract_strided_slice %832 {offsets = [12, 0], sizes = [1, 32], strides = [1, 1]} : vector<23x32xf32> to vector<1x32xf32>
    %c1_218 = arith.constant 1 : index
    %c1120_219 = arith.constant 1120 : index
    %858 = vector.load %arg13[%c1_218, %c1120_219] : memref<2x2208xf32, #tpu.memory_space<vmem>>, vector<1x32xf32>
    tpu.vector_store %arg13[%c1_218, %c1120_219], %857 {strides = array<i32>} : memref<2x2208xf32, #tpu.memory_space<vmem>>, vector<1x32xf32>,
    %859 = vector.extract_strided_slice %832 {offsets = [13, 0], sizes = [1, 32], strides = [1, 1]} : vector<23x32xf32> to vector<1x32xf32>
    %c1_220 = arith.constant 1 : index
    %c1152_221 = arith.constant 1152 : index
    %860 = vector.load %arg13[%c1_220, %c1152_221] : memref<2x2208xf32, #tpu.memory_space<vmem>>, vector<1x32xf32>
    tpu.vector_store %arg13[%c1_220, %c1152_221], %859 {strides = array<i32>} : memref<2x2208xf32, #tpu.memory_space<vmem>>, vector<1x32xf32>,
    %861 = vector.extract_strided_slice %832 {offsets = [14, 0], sizes = [1, 32], strides = [1, 1]} : vector<23x32xf32> to vector<1x32xf32>
    %c1_222 = arith.constant 1 : index
    %c1184_223 = arith.constant 1184 : index
    %862 = vector.load %arg13[%c1_222, %c1184_223] : memref<2x2208xf32, #tpu.memory_space<vmem>>, vector<1x32xf32>
    tpu.vector_store %arg13[%c1_222, %c1184_223], %861 {strides = array<i32>} : memref<2x2208xf32, #tpu.memory_space<vmem>>, vector<1x32xf32>,
    %863 = vector.extract_strided_slice %832 {offsets = [15, 0], sizes = [1, 32], strides = [1, 1]} : vector<23x32xf32> to vector<1x32xf32>
    %c1_224 = arith.constant 1 : index
    %c1216_225 = arith.constant 1216 : index
    %864 = vector.load %arg13[%c1_224, %c1216_225] : memref<2x2208xf32, #tpu.memory_space<vmem>>, vector<1x32xf32>
    tpu.vector_store %arg13[%c1_224, %c1216_225], %863 {strides = array<i32>} : memref<2x2208xf32, #tpu.memory_space<vmem>>, vector<1x32xf32>,
    %865 = vector.extract_strided_slice %832 {offsets = [16, 0], sizes = [1, 32], strides = [1, 1]} : vector<23x32xf32> to vector<1x32xf32>
    %c1_226 = arith.constant 1 : index
    %c1248_227 = arith.constant 1248 : index
    %866 = vector.load %arg13[%c1_226, %c1248_227] : memref<2x2208xf32, #tpu.memory_space<vmem>>, vector<1x32xf32>
    tpu.vector_store %arg13[%c1_226, %c1248_227], %865 {strides = array<i32>} : memref<2x2208xf32, #tpu.memory_space<vmem>>, vector<1x32xf32>,
    %867 = vector.extract_strided_slice %832 {offsets = [17, 0], sizes = [1, 32], strides = [1, 1]} : vector<23x32xf32> to vector<1x32xf32>
    %c1_228 = arith.constant 1 : index
    %c1280_229 = arith.constant 1280 : index
    %868 = vector.load %arg13[%c1_228, %c1280_229] : memref<2x2208xf32, #tpu.memory_space<vmem>>, vector<1x32xf32>
    tpu.vector_store %arg13[%c1_228, %c1280_229], %867 {strides = array<i32>} : memref<2x2208xf32, #tpu.memory_space<vmem>>, vector<1x32xf32>,
    %869 = vector.extract_strided_slice %832 {offsets = [18, 0], sizes = [1, 32], strides = [1, 1]} : vector<23x32xf32> to vector<1x32xf32>
    %c1_230 = arith.constant 1 : index
    %c1312_231 = arith.constant 1312 : index
    %870 = vector.load %arg13[%c1_230, %c1312_231] : memref<2x2208xf32, #tpu.memory_space<vmem>>, vector<1x32xf32>
    tpu.vector_store %arg13[%c1_230, %c1312_231], %869 {strides = array<i32>} : memref<2x2208xf32, #tpu.memory_space<vmem>>, vector<1x32xf32>,
    %871 = vector.extract_strided_slice %832 {offsets = [19, 0], sizes = [1, 32], strides = [1, 1]} : vector<23x32xf32> to vector<1x32xf32>
    %c1_232 = arith.constant 1 : index
    %c1344_233 = arith.constant 1344 : index
    %872 = vector.load %arg13[%c1_232, %c1344_233] : memref<2x2208xf32, #tpu.memory_space<vmem>>, vector<1x32xf32>
    tpu.vector_store %arg13[%c1_232, %c1344_233], %871 {strides = array<i32>} : memref<2x2208xf32, #tpu.memory_space<vmem>>, vector<1x32xf32>,
    %873 = vector.extract_strided_slice %832 {offsets = [20, 0], sizes = [1, 32], strides = [1, 1]} : vector<23x32xf32> to vector<1x32xf32>
    %c1_234 = arith.constant 1 : index
    %c1376_235 = arith.constant 1376 : index
    %874 = vector.load %arg13[%c1_234, %c1376_235] : memref<2x2208xf32, #tpu.memory_space<vmem>>, vector<1x32xf32>
    tpu.vector_store %arg13[%c1_234, %c1376_235], %873 {strides = array<i32>} : memref<2x2208xf32, #tpu.memory_space<vmem>>, vector<1x32xf32>,
    %875 = vector.extract_strided_slice %832 {offsets = [21, 0], sizes = [1, 32], strides = [1, 1]} : vector<23x32xf32> to vector<1x32xf32>
    %c1_236 = arith.constant 1 : index
    %c1408_237 = arith.constant 1408 : index
    %876 = vector.load %arg13[%c1_236, %c1408_237] : memref<2x2208xf32, #tpu.memory_space<vmem>>, vector<1x32xf32>
    tpu.vector_store %arg13[%c1_236, %c1408_237], %875 {strides = array<i32>} : memref<2x2208xf32, #tpu.memory_space<vmem>>, vector<1x32xf32>,
    %877 = vector.extract_strided_slice %832 {offsets = [22, 0], sizes = [1, 32], strides = [1, 1]} : vector<23x32xf32> to vector<1x32xf32>
    %c1_238 = arith.constant 1 : index
    %c1440_239 = arith.constant 1440 : index
    %878 = vector.load %arg13[%c1_238, %c1440_239] : memref<2x2208xf32, #tpu.memory_space<vmem>>, vector<1x32xf32>
    tpu.vector_store %arg13[%c1_238, %c1440_239], %877 {strides = array<i32>} : memref<2x2208xf32, #tpu.memory_space<vmem>>, vector<1x32xf32>,
    %879 = vector.extract_strided_slice %1 {offsets = [2, 0, 0], sizes = [1, 3, 32], strides = [1, 1, 1]} : vector<3x3x32xf32> to vector<1x3x32xf32>
    %880 = vector.shape_cast %879 : vector<1x3x32xf32> to vector<3x32xf32>
    %881 = vector.extract_strided_slice %2 {offsets = [2, 0, 0], sizes = [1, 1, 32], strides = [1, 1, 1]} : vector<3x1x32xf32> to vector<1x1x32xf32>
    %882 = vector.shape_cast %881 : vector<1x1x32xf32> to vector<1x32xf32>
    %883 = vector.extract_strided_slice %3 {offsets = [2, 0, 0, 0], sizes = [1, 3, 32, 32], strides = [1, 1, 1, 1]} : vector<3x3x32x32xf32> to vector<1x3x32x32xf32>
    %884 = vector.shape_cast %883 : vector<1x3x32x32xf32> to vector<3x32x32xf32>
    %885 = vector.extract_strided_slice %4 {offsets = [2, 0, 0], sizes = [1, 1, 32], strides = [1, 1, 1]} : vector<3x1x32xf32> to vector<1x1x32xf32>
    %886 = vector.shape_cast %885 : vector<1x1x32xf32> to vector<1x32xf32>
    %887 = vector.extract_strided_slice %5 {offsets = [2, 0, 0, 0], sizes = [1, 3, 32, 32], strides = [1, 1, 1, 1]} : vector<3x3x32x32xf32> to vector<1x3x32x32xf32>
    %888 = vector.shape_cast %887 : vector<1x3x32x32xf32> to vector<3x32x32xf32>
    %889 = vector.extract_strided_slice %6 {offsets = [2, 0, 0], sizes = [1, 1, 32], strides = [1, 1, 1]} : vector<3x1x32xf32> to vector<1x1x32xf32>
    %890 = vector.shape_cast %889 : vector<1x1x32xf32> to vector<1x32xf32>
    %891 = vector.extract_strided_slice %0 {offsets = [2, 0, 0, 0], sizes = [1, 1, 25, 1], strides = [1, 1, 1, 1]} : vector<3x8x25x2xf32> to vector<1x1x25x1xf32>
    %892 = vector.shape_cast %891 : vector<1x1x25x1xf32> to vector<25x1xf32>
    %893 = vector.extract_strided_slice %0 {offsets = [2, 1, 0, 0], sizes = [1, 1, 25, 1], strides = [1, 1, 1, 1]} : vector<3x8x25x2xf32> to vector<1x1x25x1xf32>
    %894 = vector.shape_cast %893 : vector<1x1x25x1xf32> to vector<25x1xf32>
    %895 = vector.extract_strided_slice %0 {offsets = [2, 2, 0, 0], sizes = [1, 1, 25, 1], strides = [1, 1, 1, 1]} : vector<3x8x25x2xf32> to vector<1x1x25x1xf32>
    %896 = vector.shape_cast %895 : vector<1x1x25x1xf32> to vector<25x1xf32>
    %897 = vector.extract_strided_slice %0 {offsets = [2, 3, 0, 0], sizes = [1, 1, 25, 1], strides = [1, 1, 1, 1]} : vector<3x8x25x2xf32> to vector<1x1x25x1xf32>
    %898 = vector.shape_cast %897 : vector<1x1x25x1xf32> to vector<25x1xf32>
    %899 = vector.extract_strided_slice %0 {offsets = [2, 4, 0, 0], sizes = [1, 1, 25, 1], strides = [1, 1, 1, 1]} : vector<3x8x25x2xf32> to vector<1x1x25x1xf32>
    %900 = vector.shape_cast %899 : vector<1x1x25x1xf32> to vector<25x1xf32>
    %901 = vector.extract_strided_slice %0 {offsets = [2, 5, 0, 0], sizes = [1, 1, 25, 1], strides = [1, 1, 1, 1]} : vector<3x8x25x2xf32> to vector<1x1x25x1xf32>
    %902 = vector.shape_cast %901 : vector<1x1x25x1xf32> to vector<25x1xf32>
    %903 = vector.extract_strided_slice %0 {offsets = [2, 6, 0, 0], sizes = [1, 1, 25, 1], strides = [1, 1, 1, 1]} : vector<3x8x25x2xf32> to vector<1x1x25x1xf32>
    %904 = vector.shape_cast %903 : vector<1x1x25x1xf32> to vector<25x1xf32>
    %905 = vector.extract_strided_slice %0 {offsets = [2, 7, 0, 0], sizes = [1, 1, 25, 1], strides = [1, 1, 1, 1]} : vector<3x8x25x2xf32> to vector<1x1x25x1xf32>
    %906 = vector.shape_cast %905 : vector<1x1x25x1xf32> to vector<25x1xf32>
    %907 = vector.extract_strided_slice %880 {offsets = [0, 0], sizes = [1, 32], strides = [1, 1]} : vector<3x32xf32> to vector<1x32xf32>
    %908 = vector.broadcast %892 : vector<25x1xf32> to vector<25x32xf32>
    %909 = vector.broadcast %907 : vector<1x32xf32> to vector<25x32xf32>
    %910 = arith.mulf %908, %909 : vector<25x32xf32>
    %911 = vector.extract_strided_slice %880 {offsets = [1, 0], sizes = [1, 32], strides = [1, 1]} : vector<3x32xf32> to vector<1x32xf32>
    %912 = vector.broadcast %894 : vector<25x1xf32> to vector<25x32xf32>
    %913 = vector.broadcast %911 : vector<1x32xf32> to vector<25x32xf32>
    %914 = arith.mulf %912, %913 : vector<25x32xf32>
    %915 = arith.addf %910, %914 : vector<25x32xf32>
    %916 = vector.extract_strided_slice %880 {offsets = [2, 0], sizes = [1, 32], strides = [1, 1]} : vector<3x32xf32> to vector<1x32xf32>
    %917 = vector.broadcast %896 : vector<25x1xf32> to vector<25x32xf32>
    %918 = vector.broadcast %916 : vector<1x32xf32> to vector<25x32xf32>
    %919 = arith.mulf %917, %918 : vector<25x32xf32>
    %920 = arith.addf %915, %919 : vector<25x32xf32>
    %921 = vector.broadcast %882 : vector<1x32xf32> to vector<25x32xf32>
    %922 = arith.addf %920, %921 : vector<25x32xf32>
    %cst_240 = arith.constant 0.000000e+00 : f32
    %923 = vector.broadcast %cst_240 : f32 to vector<25x32xf32>
    %924 = arith.maximumf %922, %923 : vector<25x32xf32>
    %925 = vector.extract_strided_slice %896 {offsets = [0, 0], sizes = [24, 1], strides = [1, 1]} : vector<25x1xf32> to vector<24x1xf32>
    %926 = vector.extract_strided_slice %898 {offsets = [0, 0], sizes = [24, 1], strides = [1, 1]} : vector<25x1xf32> to vector<24x1xf32>
    %927 = vector.extract_strided_slice %900 {offsets = [0, 0], sizes = [24, 1], strides = [1, 1]} : vector<25x1xf32> to vector<24x1xf32>
    %928 = vector.extract_strided_slice %880 {offsets = [0, 0], sizes = [1, 32], strides = [1, 1]} : vector<3x32xf32> to vector<1x32xf32>
    %929 = vector.broadcast %925 : vector<24x1xf32> to vector<24x32xf32>
    %930 = vector.broadcast %928 : vector<1x32xf32> to vector<24x32xf32>
    %931 = arith.mulf %929, %930 : vector<24x32xf32>
    %932 = vector.extract_strided_slice %880 {offsets = [1, 0], sizes = [1, 32], strides = [1, 1]} : vector<3x32xf32> to vector<1x32xf32>
    %933 = vector.broadcast %926 : vector<24x1xf32> to vector<24x32xf32>
    %934 = vector.broadcast %932 : vector<1x32xf32> to vector<24x32xf32>
    %935 = arith.mulf %933, %934 : vector<24x32xf32>
    %936 = arith.addf %931, %935 : vector<24x32xf32>
    %937 = vector.extract_strided_slice %880 {offsets = [2, 0], sizes = [1, 32], strides = [1, 1]} : vector<3x32xf32> to vector<1x32xf32>
    %938 = vector.broadcast %927 : vector<24x1xf32> to vector<24x32xf32>
    %939 = vector.broadcast %937 : vector<1x32xf32> to vector<24x32xf32>
    %940 = arith.mulf %938, %939 : vector<24x32xf32>
    %941 = arith.addf %936, %940 : vector<24x32xf32>
    %942 = vector.broadcast %882 : vector<1x32xf32> to vector<24x32xf32>
    %943 = arith.addf %941, %942 : vector<24x32xf32>
    %cst_241 = arith.constant 0.000000e+00 : f32
    %944 = vector.broadcast %cst_241 : f32 to vector<24x32xf32>
    %945 = arith.maximumf %943, %944 : vector<24x32xf32>
    %946 = vector.extract_strided_slice %900 {offsets = [0, 0], sizes = [24, 1], strides = [1, 1]} : vector<25x1xf32> to vector<24x1xf32>
    %947 = vector.extract_strided_slice %902 {offsets = [0, 0], sizes = [24, 1], strides = [1, 1]} : vector<25x1xf32> to vector<24x1xf32>
    %948 = vector.extract_strided_slice %904 {offsets = [0, 0], sizes = [24, 1], strides = [1, 1]} : vector<25x1xf32> to vector<24x1xf32>
    %949 = vector.extract_strided_slice %880 {offsets = [0, 0], sizes = [1, 32], strides = [1, 1]} : vector<3x32xf32> to vector<1x32xf32>
    %950 = vector.broadcast %946 : vector<24x1xf32> to vector<24x32xf32>
    %951 = vector.broadcast %949 : vector<1x32xf32> to vector<24x32xf32>
    %952 = arith.mulf %950, %951 : vector<24x32xf32>
    %953 = vector.extract_strided_slice %880 {offsets = [1, 0], sizes = [1, 32], strides = [1, 1]} : vector<3x32xf32> to vector<1x32xf32>
    %954 = vector.broadcast %947 : vector<24x1xf32> to vector<24x32xf32>
    %955 = vector.broadcast %953 : vector<1x32xf32> to vector<24x32xf32>
    %956 = arith.mulf %954, %955 : vector<24x32xf32>
    %957 = arith.addf %952, %956 : vector<24x32xf32>
    %958 = vector.extract_strided_slice %880 {offsets = [2, 0], sizes = [1, 32], strides = [1, 1]} : vector<3x32xf32> to vector<1x32xf32>
    %959 = vector.broadcast %948 : vector<24x1xf32> to vector<24x32xf32>
    %960 = vector.broadcast %958 : vector<1x32xf32> to vector<24x32xf32>
    %961 = arith.mulf %959, %960 : vector<24x32xf32>
    %962 = arith.addf %957, %961 : vector<24x32xf32>
    %963 = vector.broadcast %882 : vector<1x32xf32> to vector<24x32xf32>
    %964 = arith.addf %962, %963 : vector<24x32xf32>
    %cst_242 = arith.constant 0.000000e+00 : f32
    %965 = vector.broadcast %cst_242 : f32 to vector<24x32xf32>
    %966 = arith.maximumf %964, %965 : vector<24x32xf32>
    %967 = vector.extract_strided_slice %904 {offsets = [0, 0], sizes = [24, 1], strides = [1, 1]} : vector<25x1xf32> to vector<24x1xf32>
    %968 = vector.extract_strided_slice %906 {offsets = [0, 0], sizes = [24, 1], strides = [1, 1]} : vector<25x1xf32> to vector<24x1xf32>
    %969 = vector.extract_strided_slice %892 {offsets = [1, 0], sizes = [24, 1], strides = [1, 1]} : vector<25x1xf32> to vector<24x1xf32>
    %970 = vector.extract_strided_slice %880 {offsets = [0, 0], sizes = [1, 32], strides = [1, 1]} : vector<3x32xf32> to vector<1x32xf32>
    %971 = vector.broadcast %967 : vector<24x1xf32> to vector<24x32xf32>
    %972 = vector.broadcast %970 : vector<1x32xf32> to vector<24x32xf32>
    %973 = arith.mulf %971, %972 : vector<24x32xf32>
    %974 = vector.extract_strided_slice %880 {offsets = [1, 0], sizes = [1, 32], strides = [1, 1]} : vector<3x32xf32> to vector<1x32xf32>
    %975 = vector.broadcast %968 : vector<24x1xf32> to vector<24x32xf32>
    %976 = vector.broadcast %974 : vector<1x32xf32> to vector<24x32xf32>
    %977 = arith.mulf %975, %976 : vector<24x32xf32>
    %978 = arith.addf %973, %977 : vector<24x32xf32>
    %979 = vector.extract_strided_slice %880 {offsets = [2, 0], sizes = [1, 32], strides = [1, 1]} : vector<3x32xf32> to vector<1x32xf32>
    %980 = vector.broadcast %969 : vector<24x1xf32> to vector<24x32xf32>
    %981 = vector.broadcast %979 : vector<1x32xf32> to vector<24x32xf32>
    %982 = arith.mulf %980, %981 : vector<24x32xf32>
    %983 = arith.addf %978, %982 : vector<24x32xf32>
    %984 = vector.broadcast %882 : vector<1x32xf32> to vector<24x32xf32>
    %985 = arith.addf %983, %984 : vector<24x32xf32>
    %cst_243 = arith.constant 0.000000e+00 : f32
    %986 = vector.broadcast %cst_243 : f32 to vector<24x32xf32>
    %987 = arith.maximumf %985, %986 : vector<24x32xf32>
    %988 = vector.extract_strided_slice %924 {offsets = [0, 0], sizes = [24, 32], strides = [1, 1]} : vector<25x32xf32> to vector<24x32xf32>
    %989 = vector.extract_strided_slice %884 {offsets = [0, 0, 0], sizes = [1, 32, 32], strides = [1, 1, 1]} : vector<3x32x32xf32> to vector<1x32x32xf32>
    %990 = vector.shape_cast %989 : vector<1x32x32xf32> to vector<32x32xf32>
    %cst_244 = arith.constant dense<0.000000e+00> : vector<24x32xf32>
    %991 = tpu.matmul %988, %990, %cst_244 {dimension_numbers = #tpu.dot_dimension_numbers<[1], [0], [0], [1], [0, 0, 1, 1], [], []>} : vector<24x32xf32>, vector<32x32xf32>, vector<24x32xf32> -> vector<24x32xf32>
    %992 = vector.extract_strided_slice %884 {offsets = [1, 0, 0], sizes = [1, 32, 32], strides = [1, 1, 1]} : vector<3x32x32xf32> to vector<1x32x32xf32>
    %993 = vector.shape_cast %992 : vector<1x32x32xf32> to vector<32x32xf32>
    %cst_245 = arith.constant dense<0.000000e+00> : vector<24x32xf32>
    %994 = tpu.matmul %945, %993, %cst_245 {dimension_numbers = #tpu.dot_dimension_numbers<[1], [0], [0], [1], [0, 0, 1, 1], [], []>} : vector<24x32xf32>, vector<32x32xf32>, vector<24x32xf32> -> vector<24x32xf32>
    %995 = arith.addf %991, %994 : vector<24x32xf32>
    %996 = vector.extract_strided_slice %884 {offsets = [2, 0, 0], sizes = [1, 32, 32], strides = [1, 1, 1]} : vector<3x32x32xf32> to vector<1x32x32xf32>
    %997 = vector.shape_cast %996 : vector<1x32x32xf32> to vector<32x32xf32>
    %cst_246 = arith.constant dense<0.000000e+00> : vector<24x32xf32>
    %998 = tpu.matmul %966, %997, %cst_246 {dimension_numbers = #tpu.dot_dimension_numbers<[1], [0], [0], [1], [0, 0, 1, 1], [], []>} : vector<24x32xf32>, vector<32x32xf32>, vector<24x32xf32> -> vector<24x32xf32>
    %999 = arith.addf %995, %998 : vector<24x32xf32>
    %1000 = vector.broadcast %886 : vector<1x32xf32> to vector<24x32xf32>
    %1001 = arith.addf %999, %1000 : vector<24x32xf32>
    %cst_247 = arith.constant 0.000000e+00 : f32
    %1002 = vector.broadcast %cst_247 : f32 to vector<24x32xf32>
    %1003 = arith.maximumf %1001, %1002 : vector<24x32xf32>
    %1004 = vector.extract_strided_slice %924 {offsets = [1, 0], sizes = [24, 32], strides = [1, 1]} : vector<25x32xf32> to vector<24x32xf32>
    %1005 = vector.extract_strided_slice %884 {offsets = [0, 0, 0], sizes = [1, 32, 32], strides = [1, 1, 1]} : vector<3x32x32xf32> to vector<1x32x32xf32>
    %1006 = vector.shape_cast %1005 : vector<1x32x32xf32> to vector<32x32xf32>
    %cst_248 = arith.constant dense<0.000000e+00> : vector<24x32xf32>
    %1007 = tpu.matmul %966, %1006, %cst_248 {dimension_numbers = #tpu.dot_dimension_numbers<[1], [0], [0], [1], [0, 0, 1, 1], [], []>} : vector<24x32xf32>, vector<32x32xf32>, vector<24x32xf32> -> vector<24x32xf32>
    %1008 = vector.extract_strided_slice %884 {offsets = [1, 0, 0], sizes = [1, 32, 32], strides = [1, 1, 1]} : vector<3x32x32xf32> to vector<1x32x32xf32>
    %1009 = vector.shape_cast %1008 : vector<1x32x32xf32> to vector<32x32xf32>
    %cst_249 = arith.constant dense<0.000000e+00> : vector<24x32xf32>
    %1010 = tpu.matmul %987, %1009, %cst_249 {dimension_numbers = #tpu.dot_dimension_numbers<[1], [0], [0], [1], [0, 0, 1, 1], [], []>} : vector<24x32xf32>, vector<32x32xf32>, vector<24x32xf32> -> vector<24x32xf32>
    %1011 = arith.addf %1007, %1010 : vector<24x32xf32>
    %1012 = vector.extract_strided_slice %884 {offsets = [2, 0, 0], sizes = [1, 32, 32], strides = [1, 1, 1]} : vector<3x32x32xf32> to vector<1x32x32xf32>
    %1013 = vector.shape_cast %1012 : vector<1x32x32xf32> to vector<32x32xf32>
    %cst_250 = arith.constant dense<0.000000e+00> : vector<24x32xf32>
    %1014 = tpu.matmul %1004, %1013, %cst_250 {dimension_numbers = #tpu.dot_dimension_numbers<[1], [0], [0], [1], [0, 0, 1, 1], [], []>} : vector<24x32xf32>, vector<32x32xf32>, vector<24x32xf32> -> vector<24x32xf32>
    %1015 = arith.addf %1011, %1014 : vector<24x32xf32>
    %1016 = vector.broadcast %886 : vector<1x32xf32> to vector<24x32xf32>
    %1017 = arith.addf %1015, %1016 : vector<24x32xf32>
    %cst_251 = arith.constant 0.000000e+00 : f32
    %1018 = vector.broadcast %cst_251 : f32 to vector<24x32xf32>
    %1019 = arith.maximumf %1017, %1018 : vector<24x32xf32>
    %1020 = vector.extract_strided_slice %1003 {offsets = [0, 0], sizes = [23, 32], strides = [1, 1]} : vector<24x32xf32> to vector<23x32xf32>
    %1021 = vector.extract_strided_slice %1019 {offsets = [0, 0], sizes = [23, 32], strides = [1, 1]} : vector<24x32xf32> to vector<23x32xf32>
    %1022 = vector.extract_strided_slice %1003 {offsets = [1, 0], sizes = [23, 32], strides = [1, 1]} : vector<24x32xf32> to vector<23x32xf32>
    %1023 = vector.extract_strided_slice %888 {offsets = [0, 0, 0], sizes = [1, 32, 32], strides = [1, 1, 1]} : vector<3x32x32xf32> to vector<1x32x32xf32>
    %1024 = vector.shape_cast %1023 : vector<1x32x32xf32> to vector<32x32xf32>
    %cst_252 = arith.constant dense<0.000000e+00> : vector<23x32xf32>
    %1025 = tpu.matmul %1020, %1024, %cst_252 {dimension_numbers = #tpu.dot_dimension_numbers<[1], [0], [0], [1], [0, 0, 1, 1], [], []>} : vector<23x32xf32>, vector<32x32xf32>, vector<23x32xf32> -> vector<23x32xf32>
    %1026 = vector.extract_strided_slice %888 {offsets = [1, 0, 0], sizes = [1, 32, 32], strides = [1, 1, 1]} : vector<3x32x32xf32> to vector<1x32x32xf32>
    %1027 = vector.shape_cast %1026 : vector<1x32x32xf32> to vector<32x32xf32>
    %cst_253 = arith.constant dense<0.000000e+00> : vector<23x32xf32>
    %1028 = tpu.matmul %1021, %1027, %cst_253 {dimension_numbers = #tpu.dot_dimension_numbers<[1], [0], [0], [1], [0, 0, 1, 1], [], []>} : vector<23x32xf32>, vector<32x32xf32>, vector<23x32xf32> -> vector<23x32xf32>
    %1029 = arith.addf %1025, %1028 : vector<23x32xf32>
    %1030 = vector.extract_strided_slice %888 {offsets = [2, 0, 0], sizes = [1, 32, 32], strides = [1, 1, 1]} : vector<3x32x32xf32> to vector<1x32x32xf32>
    %1031 = vector.shape_cast %1030 : vector<1x32x32xf32> to vector<32x32xf32>
    %cst_254 = arith.constant dense<0.000000e+00> : vector<23x32xf32>
    %1032 = tpu.matmul %1022, %1031, %cst_254 {dimension_numbers = #tpu.dot_dimension_numbers<[1], [0], [0], [1], [0, 0, 1, 1], [], []>} : vector<23x32xf32>, vector<32x32xf32>, vector<23x32xf32> -> vector<23x32xf32>
    %1033 = arith.addf %1029, %1032 : vector<23x32xf32>
    %1034 = vector.broadcast %890 : vector<1x32xf32> to vector<23x32xf32>
    %1035 = arith.addf %1033, %1034 : vector<23x32xf32>
    %cst_255 = arith.constant 0.000000e+00 : f32
    %1036 = vector.broadcast %cst_255 : f32 to vector<23x32xf32>
    %1037 = arith.maximumf %1035, %1036 : vector<23x32xf32>
    %1038 = vector.extract_strided_slice %1019 {offsets = [0, 0], sizes = [23, 32], strides = [1, 1]} : vector<24x32xf32> to vector<23x32xf32>
    %1039 = vector.extract_strided_slice %1003 {offsets = [1, 0], sizes = [23, 32], strides = [1, 1]} : vector<24x32xf32> to vector<23x32xf32>
    %1040 = vector.extract_strided_slice %1019 {offsets = [1, 0], sizes = [23, 32], strides = [1, 1]} : vector<24x32xf32> to vector<23x32xf32>
    %1041 = vector.extract_strided_slice %888 {offsets = [0, 0, 0], sizes = [1, 32, 32], strides = [1, 1, 1]} : vector<3x32x32xf32> to vector<1x32x32xf32>
    %1042 = vector.shape_cast %1041 : vector<1x32x32xf32> to vector<32x32xf32>
    %cst_256 = arith.constant dense<0.000000e+00> : vector<23x32xf32>
    %1043 = tpu.matmul %1038, %1042, %cst_256 {dimension_numbers = #tpu.dot_dimension_numbers<[1], [0], [0], [1], [0, 0, 1, 1], [], []>} : vector<23x32xf32>, vector<32x32xf32>, vector<23x32xf32> -> vector<23x32xf32>
    %1044 = vector.extract_strided_slice %888 {offsets = [1, 0, 0], sizes = [1, 32, 32], strides = [1, 1, 1]} : vector<3x32x32xf32> to vector<1x32x32xf32>
    %1045 = vector.shape_cast %1044 : vector<1x32x32xf32> to vector<32x32xf32>
    %cst_257 = arith.constant dense<0.000000e+00> : vector<23x32xf32>
    %1046 = tpu.matmul %1039, %1045, %cst_257 {dimension_numbers = #tpu.dot_dimension_numbers<[1], [0], [0], [1], [0, 0, 1, 1], [], []>} : vector<23x32xf32>, vector<32x32xf32>, vector<23x32xf32> -> vector<23x32xf32>
    %1047 = arith.addf %1043, %1046 : vector<23x32xf32>
    %1048 = vector.extract_strided_slice %888 {offsets = [2, 0, 0], sizes = [1, 32, 32], strides = [1, 1, 1]} : vector<3x32x32xf32> to vector<1x32x32xf32>
    %1049 = vector.shape_cast %1048 : vector<1x32x32xf32> to vector<32x32xf32>
    %cst_258 = arith.constant dense<0.000000e+00> : vector<23x32xf32>
    %1050 = tpu.matmul %1040, %1049, %cst_258 {dimension_numbers = #tpu.dot_dimension_numbers<[1], [0], [0], [1], [0, 0, 1, 1], [], []>} : vector<23x32xf32>, vector<32x32xf32>, vector<23x32xf32> -> vector<23x32xf32>
    %1051 = arith.addf %1047, %1050 : vector<23x32xf32>
    %1052 = vector.broadcast %890 : vector<1x32xf32> to vector<23x32xf32>
    %1053 = arith.addf %1051, %1052 : vector<23x32xf32>
    %cst_259 = arith.constant 0.000000e+00 : f32
    %1054 = vector.broadcast %cst_259 : f32 to vector<23x32xf32>
    %1055 = arith.maximumf %1053, %1054 : vector<23x32xf32>
    %1056 = arith.maximumf %1037, %1055 : vector<23x32xf32>
    %1057 = vector.extract_strided_slice %1056 {offsets = [0, 0], sizes = [1, 32], strides = [1, 1]} : vector<23x32xf32> to vector<1x32xf32>
    %c0_260 = arith.constant 0 : index
    %c1472 = arith.constant 1472 : index
    %1058 = vector.load %arg13[%c0_260, %c1472] : memref<2x2208xf32, #tpu.memory_space<vmem>>, vector<1x32xf32>
    tpu.vector_store %arg13[%c0_260, %c1472], %1057 {strides = array<i32>} : memref<2x2208xf32, #tpu.memory_space<vmem>>, vector<1x32xf32>,
    %1059 = vector.extract_strided_slice %1056 {offsets = [1, 0], sizes = [1, 32], strides = [1, 1]} : vector<23x32xf32> to vector<1x32xf32>
    %c0_261 = arith.constant 0 : index
    %c1504 = arith.constant 1504 : index
    %1060 = vector.load %arg13[%c0_261, %c1504] : memref<2x2208xf32, #tpu.memory_space<vmem>>, vector<1x32xf32>
    tpu.vector_store %arg13[%c0_261, %c1504], %1059 {strides = array<i32>} : memref<2x2208xf32, #tpu.memory_space<vmem>>, vector<1x32xf32>,
    %1061 = vector.extract_strided_slice %1056 {offsets = [2, 0], sizes = [1, 32], strides = [1, 1]} : vector<23x32xf32> to vector<1x32xf32>
    %c0_262 = arith.constant 0 : index
    %c1536 = arith.constant 1536 : index
    %1062 = vector.load %arg13[%c0_262, %c1536] : memref<2x2208xf32, #tpu.memory_space<vmem>>, vector<1x32xf32>
    tpu.vector_store %arg13[%c0_262, %c1536], %1061 {strides = array<i32>} : memref<2x2208xf32, #tpu.memory_space<vmem>>, vector<1x32xf32>,
    %1063 = vector.extract_strided_slice %1056 {offsets = [3, 0], sizes = [1, 32], strides = [1, 1]} : vector<23x32xf32> to vector<1x32xf32>
    %c0_263 = arith.constant 0 : index
    %c1568 = arith.constant 1568 : index
    %1064 = vector.load %arg13[%c0_263, %c1568] : memref<2x2208xf32, #tpu.memory_space<vmem>>, vector<1x32xf32>
    tpu.vector_store %arg13[%c0_263, %c1568], %1063 {strides = array<i32>} : memref<2x2208xf32, #tpu.memory_space<vmem>>, vector<1x32xf32>,
    %1065 = vector.extract_strided_slice %1056 {offsets = [4, 0], sizes = [1, 32], strides = [1, 1]} : vector<23x32xf32> to vector<1x32xf32>
    %c0_264 = arith.constant 0 : index
    %c1600 = arith.constant 1600 : index
    %1066 = vector.load %arg13[%c0_264, %c1600] : memref<2x2208xf32, #tpu.memory_space<vmem>>, vector<1x32xf32>
    tpu.vector_store %arg13[%c0_264, %c1600], %1065 {strides = array<i32>} : memref<2x2208xf32, #tpu.memory_space<vmem>>, vector<1x32xf32>,
    %1067 = vector.extract_strided_slice %1056 {offsets = [5, 0], sizes = [1, 32], strides = [1, 1]} : vector<23x32xf32> to vector<1x32xf32>
    %c0_265 = arith.constant 0 : index
    %c1632 = arith.constant 1632 : index
    %1068 = vector.load %arg13[%c0_265, %c1632] : memref<2x2208xf32, #tpu.memory_space<vmem>>, vector<1x32xf32>
    tpu.vector_store %arg13[%c0_265, %c1632], %1067 {strides = array<i32>} : memref<2x2208xf32, #tpu.memory_space<vmem>>, vector<1x32xf32>,
    %1069 = vector.extract_strided_slice %1056 {offsets = [6, 0], sizes = [1, 32], strides = [1, 1]} : vector<23x32xf32> to vector<1x32xf32>
    %c0_266 = arith.constant 0 : index
    %c1664 = arith.constant 1664 : index
    %1070 = vector.load %arg13[%c0_266, %c1664] : memref<2x2208xf32, #tpu.memory_space<vmem>>, vector<1x32xf32>
    tpu.vector_store %arg13[%c0_266, %c1664], %1069 {strides = array<i32>} : memref<2x2208xf32, #tpu.memory_space<vmem>>, vector<1x32xf32>,
    %1071 = vector.extract_strided_slice %1056 {offsets = [7, 0], sizes = [1, 32], strides = [1, 1]} : vector<23x32xf32> to vector<1x32xf32>
    %c0_267 = arith.constant 0 : index
    %c1696 = arith.constant 1696 : index
    %1072 = vector.load %arg13[%c0_267, %c1696] : memref<2x2208xf32, #tpu.memory_space<vmem>>, vector<1x32xf32>
    tpu.vector_store %arg13[%c0_267, %c1696], %1071 {strides = array<i32>} : memref<2x2208xf32, #tpu.memory_space<vmem>>, vector<1x32xf32>,
    %1073 = vector.extract_strided_slice %1056 {offsets = [8, 0], sizes = [1, 32], strides = [1, 1]} : vector<23x32xf32> to vector<1x32xf32>
    %c0_268 = arith.constant 0 : index
    %c1728 = arith.constant 1728 : index
    %1074 = vector.load %arg13[%c0_268, %c1728] : memref<2x2208xf32, #tpu.memory_space<vmem>>, vector<1x32xf32>
    tpu.vector_store %arg13[%c0_268, %c1728], %1073 {strides = array<i32>} : memref<2x2208xf32, #tpu.memory_space<vmem>>, vector<1x32xf32>,
    %1075 = vector.extract_strided_slice %1056 {offsets = [9, 0], sizes = [1, 32], strides = [1, 1]} : vector<23x32xf32> to vector<1x32xf32>
    %c0_269 = arith.constant 0 : index
    %c1760 = arith.constant 1760 : index
    %1076 = vector.load %arg13[%c0_269, %c1760] : memref<2x2208xf32, #tpu.memory_space<vmem>>, vector<1x32xf32>
    tpu.vector_store %arg13[%c0_269, %c1760], %1075 {strides = array<i32>} : memref<2x2208xf32, #tpu.memory_space<vmem>>, vector<1x32xf32>,
    %1077 = vector.extract_strided_slice %1056 {offsets = [10, 0], sizes = [1, 32], strides = [1, 1]} : vector<23x32xf32> to vector<1x32xf32>
    %c0_270 = arith.constant 0 : index
    %c1792 = arith.constant 1792 : index
    %1078 = vector.load %arg13[%c0_270, %c1792] : memref<2x2208xf32, #tpu.memory_space<vmem>>, vector<1x32xf32>
    tpu.vector_store %arg13[%c0_270, %c1792], %1077 {strides = array<i32>} : memref<2x2208xf32, #tpu.memory_space<vmem>>, vector<1x32xf32>,
    %1079 = vector.extract_strided_slice %1056 {offsets = [11, 0], sizes = [1, 32], strides = [1, 1]} : vector<23x32xf32> to vector<1x32xf32>
    %c0_271 = arith.constant 0 : index
    %c1824 = arith.constant 1824 : index
    %1080 = vector.load %arg13[%c0_271, %c1824] : memref<2x2208xf32, #tpu.memory_space<vmem>>, vector<1x32xf32>
    tpu.vector_store %arg13[%c0_271, %c1824], %1079 {strides = array<i32>} : memref<2x2208xf32, #tpu.memory_space<vmem>>, vector<1x32xf32>,
    %1081 = vector.extract_strided_slice %1056 {offsets = [12, 0], sizes = [1, 32], strides = [1, 1]} : vector<23x32xf32> to vector<1x32xf32>
    %c0_272 = arith.constant 0 : index
    %c1856 = arith.constant 1856 : index
    %1082 = vector.load %arg13[%c0_272, %c1856] : memref<2x2208xf32, #tpu.memory_space<vmem>>, vector<1x32xf32>
    tpu.vector_store %arg13[%c0_272, %c1856], %1081 {strides = array<i32>} : memref<2x2208xf32, #tpu.memory_space<vmem>>, vector<1x32xf32>,
    %1083 = vector.extract_strided_slice %1056 {offsets = [13, 0], sizes = [1, 32], strides = [1, 1]} : vector<23x32xf32> to vector<1x32xf32>
    %c0_273 = arith.constant 0 : index
    %c1888 = arith.constant 1888 : index
    %1084 = vector.load %arg13[%c0_273, %c1888] : memref<2x2208xf32, #tpu.memory_space<vmem>>, vector<1x32xf32>
    tpu.vector_store %arg13[%c0_273, %c1888], %1083 {strides = array<i32>} : memref<2x2208xf32, #tpu.memory_space<vmem>>, vector<1x32xf32>,
    %1085 = vector.extract_strided_slice %1056 {offsets = [14, 0], sizes = [1, 32], strides = [1, 1]} : vector<23x32xf32> to vector<1x32xf32>
    %c0_274 = arith.constant 0 : index
    %c1920 = arith.constant 1920 : index
    %1086 = vector.load %arg13[%c0_274, %c1920] : memref<2x2208xf32, #tpu.memory_space<vmem>>, vector<1x32xf32>
    tpu.vector_store %arg13[%c0_274, %c1920], %1085 {strides = array<i32>} : memref<2x2208xf32, #tpu.memory_space<vmem>>, vector<1x32xf32>,
    %1087 = vector.extract_strided_slice %1056 {offsets = [15, 0], sizes = [1, 32], strides = [1, 1]} : vector<23x32xf32> to vector<1x32xf32>
    %c0_275 = arith.constant 0 : index
    %c1952 = arith.constant 1952 : index
    %1088 = vector.load %arg13[%c0_275, %c1952] : memref<2x2208xf32, #tpu.memory_space<vmem>>, vector<1x32xf32>
    tpu.vector_store %arg13[%c0_275, %c1952], %1087 {strides = array<i32>} : memref<2x2208xf32, #tpu.memory_space<vmem>>, vector<1x32xf32>,
    %1089 = vector.extract_strided_slice %1056 {offsets = [16, 0], sizes = [1, 32], strides = [1, 1]} : vector<23x32xf32> to vector<1x32xf32>
    %c0_276 = arith.constant 0 : index
    %c1984 = arith.constant 1984 : index
    %1090 = vector.load %arg13[%c0_276, %c1984] : memref<2x2208xf32, #tpu.memory_space<vmem>>, vector<1x32xf32>
    tpu.vector_store %arg13[%c0_276, %c1984], %1089 {strides = array<i32>} : memref<2x2208xf32, #tpu.memory_space<vmem>>, vector<1x32xf32>,
    %1091 = vector.extract_strided_slice %1056 {offsets = [17, 0], sizes = [1, 32], strides = [1, 1]} : vector<23x32xf32> to vector<1x32xf32>
    %c0_277 = arith.constant 0 : index
    %c2016 = arith.constant 2016 : index
    %1092 = vector.load %arg13[%c0_277, %c2016] : memref<2x2208xf32, #tpu.memory_space<vmem>>, vector<1x32xf32>
    tpu.vector_store %arg13[%c0_277, %c2016], %1091 {strides = array<i32>} : memref<2x2208xf32, #tpu.memory_space<vmem>>, vector<1x32xf32>,
    %1093 = vector.extract_strided_slice %1056 {offsets = [18, 0], sizes = [1, 32], strides = [1, 1]} : vector<23x32xf32> to vector<1x32xf32>
    %c0_278 = arith.constant 0 : index
    %c2048 = arith.constant 2048 : index
    %1094 = vector.load %arg13[%c0_278, %c2048] : memref<2x2208xf32, #tpu.memory_space<vmem>>, vector<1x32xf32>
    tpu.vector_store %arg13[%c0_278, %c2048], %1093 {strides = array<i32>} : memref<2x2208xf32, #tpu.memory_space<vmem>>, vector<1x32xf32>,
    %1095 = vector.extract_strided_slice %1056 {offsets = [19, 0], sizes = [1, 32], strides = [1, 1]} : vector<23x32xf32> to vector<1x32xf32>
    %c0_279 = arith.constant 0 : index
    %c2080 = arith.constant 2080 : index
    %1096 = vector.load %arg13[%c0_279, %c2080] : memref<2x2208xf32, #tpu.memory_space<vmem>>, vector<1x32xf32>
    tpu.vector_store %arg13[%c0_279, %c2080], %1095 {strides = array<i32>} : memref<2x2208xf32, #tpu.memory_space<vmem>>, vector<1x32xf32>,
    %1097 = vector.extract_strided_slice %1056 {offsets = [20, 0], sizes = [1, 32], strides = [1, 1]} : vector<23x32xf32> to vector<1x32xf32>
    %c0_280 = arith.constant 0 : index
    %c2112 = arith.constant 2112 : index
    %1098 = vector.load %arg13[%c0_280, %c2112] : memref<2x2208xf32, #tpu.memory_space<vmem>>, vector<1x32xf32>
    tpu.vector_store %arg13[%c0_280, %c2112], %1097 {strides = array<i32>} : memref<2x2208xf32, #tpu.memory_space<vmem>>, vector<1x32xf32>,
    %1099 = vector.extract_strided_slice %1056 {offsets = [21, 0], sizes = [1, 32], strides = [1, 1]} : vector<23x32xf32> to vector<1x32xf32>
    %c0_281 = arith.constant 0 : index
    %c2144 = arith.constant 2144 : index
    %1100 = vector.load %arg13[%c0_281, %c2144] : memref<2x2208xf32, #tpu.memory_space<vmem>>, vector<1x32xf32>
    tpu.vector_store %arg13[%c0_281, %c2144], %1099 {strides = array<i32>} : memref<2x2208xf32, #tpu.memory_space<vmem>>, vector<1x32xf32>,
    %1101 = vector.extract_strided_slice %1056 {offsets = [22, 0], sizes = [1, 32], strides = [1, 1]} : vector<23x32xf32> to vector<1x32xf32>
    %c0_282 = arith.constant 0 : index
    %c2176 = arith.constant 2176 : index
    %1102 = vector.load %arg13[%c0_282, %c2176] : memref<2x2208xf32, #tpu.memory_space<vmem>>, vector<1x32xf32>
    tpu.vector_store %arg13[%c0_282, %c2176], %1101 {strides = array<i32>} : memref<2x2208xf32, #tpu.memory_space<vmem>>, vector<1x32xf32>,
    %1103 = vector.extract_strided_slice %0 {offsets = [2, 0, 0, 1], sizes = [1, 1, 25, 1], strides = [1, 1, 1, 1]} : vector<3x8x25x2xf32> to vector<1x1x25x1xf32>
    %1104 = vector.shape_cast %1103 : vector<1x1x25x1xf32> to vector<25x1xf32>
    %1105 = vector.extract_strided_slice %0 {offsets = [2, 1, 0, 1], sizes = [1, 1, 25, 1], strides = [1, 1, 1, 1]} : vector<3x8x25x2xf32> to vector<1x1x25x1xf32>
    %1106 = vector.shape_cast %1105 : vector<1x1x25x1xf32> to vector<25x1xf32>
    %1107 = vector.extract_strided_slice %0 {offsets = [2, 2, 0, 1], sizes = [1, 1, 25, 1], strides = [1, 1, 1, 1]} : vector<3x8x25x2xf32> to vector<1x1x25x1xf32>
    %1108 = vector.shape_cast %1107 : vector<1x1x25x1xf32> to vector<25x1xf32>
    %1109 = vector.extract_strided_slice %0 {offsets = [2, 3, 0, 1], sizes = [1, 1, 25, 1], strides = [1, 1, 1, 1]} : vector<3x8x25x2xf32> to vector<1x1x25x1xf32>
    %1110 = vector.shape_cast %1109 : vector<1x1x25x1xf32> to vector<25x1xf32>
    %1111 = vector.extract_strided_slice %0 {offsets = [2, 4, 0, 1], sizes = [1, 1, 25, 1], strides = [1, 1, 1, 1]} : vector<3x8x25x2xf32> to vector<1x1x25x1xf32>
    %1112 = vector.shape_cast %1111 : vector<1x1x25x1xf32> to vector<25x1xf32>
    %1113 = vector.extract_strided_slice %0 {offsets = [2, 5, 0, 1], sizes = [1, 1, 25, 1], strides = [1, 1, 1, 1]} : vector<3x8x25x2xf32> to vector<1x1x25x1xf32>
    %1114 = vector.shape_cast %1113 : vector<1x1x25x1xf32> to vector<25x1xf32>
    %1115 = vector.extract_strided_slice %0 {offsets = [2, 6, 0, 1], sizes = [1, 1, 25, 1], strides = [1, 1, 1, 1]} : vector<3x8x25x2xf32> to vector<1x1x25x1xf32>
    %1116 = vector.shape_cast %1115 : vector<1x1x25x1xf32> to vector<25x1xf32>
    %1117 = vector.extract_strided_slice %0 {offsets = [2, 7, 0, 1], sizes = [1, 1, 25, 1], strides = [1, 1, 1, 1]} : vector<3x8x25x2xf32> to vector<1x1x25x1xf32>
    %1118 = vector.shape_cast %1117 : vector<1x1x25x1xf32> to vector<25x1xf32>
    %1119 = vector.extract_strided_slice %880 {offsets = [0, 0], sizes = [1, 32], strides = [1, 1]} : vector<3x32xf32> to vector<1x32xf32>
    %1120 = vector.broadcast %1104 : vector<25x1xf32> to vector<25x32xf32>
    %1121 = vector.broadcast %1119 : vector<1x32xf32> to vector<25x32xf32>
    %1122 = arith.mulf %1120, %1121 : vector<25x32xf32>
    %1123 = vector.extract_strided_slice %880 {offsets = [1, 0], sizes = [1, 32], strides = [1, 1]} : vector<3x32xf32> to vector<1x32xf32>
    %1124 = vector.broadcast %1106 : vector<25x1xf32> to vector<25x32xf32>
    %1125 = vector.broadcast %1123 : vector<1x32xf32> to vector<25x32xf32>
    %1126 = arith.mulf %1124, %1125 : vector<25x32xf32>
    %1127 = arith.addf %1122, %1126 : vector<25x32xf32>
    %1128 = vector.extract_strided_slice %880 {offsets = [2, 0], sizes = [1, 32], strides = [1, 1]} : vector<3x32xf32> to vector<1x32xf32>
    %1129 = vector.broadcast %1108 : vector<25x1xf32> to vector<25x32xf32>
    %1130 = vector.broadcast %1128 : vector<1x32xf32> to vector<25x32xf32>
    %1131 = arith.mulf %1129, %1130 : vector<25x32xf32>
    %1132 = arith.addf %1127, %1131 : vector<25x32xf32>
    %1133 = vector.broadcast %882 : vector<1x32xf32> to vector<25x32xf32>
    %1134 = arith.addf %1132, %1133 : vector<25x32xf32>
    %cst_283 = arith.constant 0.000000e+00 : f32
    %1135 = vector.broadcast %cst_283 : f32 to vector<25x32xf32>
    %1136 = arith.maximumf %1134, %1135 : vector<25x32xf32>
    %1137 = vector.extract_strided_slice %1108 {offsets = [0, 0], sizes = [24, 1], strides = [1, 1]} : vector<25x1xf32> to vector<24x1xf32>
    %1138 = vector.extract_strided_slice %1110 {offsets = [0, 0], sizes = [24, 1], strides = [1, 1]} : vector<25x1xf32> to vector<24x1xf32>
    %1139 = vector.extract_strided_slice %1112 {offsets = [0, 0], sizes = [24, 1], strides = [1, 1]} : vector<25x1xf32> to vector<24x1xf32>
    %1140 = vector.extract_strided_slice %880 {offsets = [0, 0], sizes = [1, 32], strides = [1, 1]} : vector<3x32xf32> to vector<1x32xf32>
    %1141 = vector.broadcast %1137 : vector<24x1xf32> to vector<24x32xf32>
    %1142 = vector.broadcast %1140 : vector<1x32xf32> to vector<24x32xf32>
    %1143 = arith.mulf %1141, %1142 : vector<24x32xf32>
    %1144 = vector.extract_strided_slice %880 {offsets = [1, 0], sizes = [1, 32], strides = [1, 1]} : vector<3x32xf32> to vector<1x32xf32>
    %1145 = vector.broadcast %1138 : vector<24x1xf32> to vector<24x32xf32>
    %1146 = vector.broadcast %1144 : vector<1x32xf32> to vector<24x32xf32>
    %1147 = arith.mulf %1145, %1146 : vector<24x32xf32>
    %1148 = arith.addf %1143, %1147 : vector<24x32xf32>
    %1149 = vector.extract_strided_slice %880 {offsets = [2, 0], sizes = [1, 32], strides = [1, 1]} : vector<3x32xf32> to vector<1x32xf32>
    %1150 = vector.broadcast %1139 : vector<24x1xf32> to vector<24x32xf32>
    %1151 = vector.broadcast %1149 : vector<1x32xf32> to vector<24x32xf32>
    %1152 = arith.mulf %1150, %1151 : vector<24x32xf32>
    %1153 = arith.addf %1148, %1152 : vector<24x32xf32>
    %1154 = vector.broadcast %882 : vector<1x32xf32> to vector<24x32xf32>
    %1155 = arith.addf %1153, %1154 : vector<24x32xf32>
    %cst_284 = arith.constant 0.000000e+00 : f32
    %1156 = vector.broadcast %cst_284 : f32 to vector<24x32xf32>
    %1157 = arith.maximumf %1155, %1156 : vector<24x32xf32>
    %1158 = vector.extract_strided_slice %1112 {offsets = [0, 0], sizes = [24, 1], strides = [1, 1]} : vector<25x1xf32> to vector<24x1xf32>
    %1159 = vector.extract_strided_slice %1114 {offsets = [0, 0], sizes = [24, 1], strides = [1, 1]} : vector<25x1xf32> to vector<24x1xf32>
    %1160 = vector.extract_strided_slice %1116 {offsets = [0, 0], sizes = [24, 1], strides = [1, 1]} : vector<25x1xf32> to vector<24x1xf32>
    %1161 = vector.extract_strided_slice %880 {offsets = [0, 0], sizes = [1, 32], strides = [1, 1]} : vector<3x32xf32> to vector<1x32xf32>
    %1162 = vector.broadcast %1158 : vector<24x1xf32> to vector<24x32xf32>
    %1163 = vector.broadcast %1161 : vector<1x32xf32> to vector<24x32xf32>
    %1164 = arith.mulf %1162, %1163 : vector<24x32xf32>
    %1165 = vector.extract_strided_slice %880 {offsets = [1, 0], sizes = [1, 32], strides = [1, 1]} : vector<3x32xf32> to vector<1x32xf32>
    %1166 = vector.broadcast %1159 : vector<24x1xf32> to vector<24x32xf32>
    %1167 = vector.broadcast %1165 : vector<1x32xf32> to vector<24x32xf32>
    %1168 = arith.mulf %1166, %1167 : vector<24x32xf32>
    %1169 = arith.addf %1164, %1168 : vector<24x32xf32>
    %1170 = vector.extract_strided_slice %880 {offsets = [2, 0], sizes = [1, 32], strides = [1, 1]} : vector<3x32xf32> to vector<1x32xf32>
    %1171 = vector.broadcast %1160 : vector<24x1xf32> to vector<24x32xf32>
    %1172 = vector.broadcast %1170 : vector<1x32xf32> to vector<24x32xf32>
    %1173 = arith.mulf %1171, %1172 : vector<24x32xf32>
    %1174 = arith.addf %1169, %1173 : vector<24x32xf32>
    %1175 = vector.broadcast %882 : vector<1x32xf32> to vector<24x32xf32>
    %1176 = arith.addf %1174, %1175 : vector<24x32xf32>
    %cst_285 = arith.constant 0.000000e+00 : f32
    %1177 = vector.broadcast %cst_285 : f32 to vector<24x32xf32>
    %1178 = arith.maximumf %1176, %1177 : vector<24x32xf32>
    %1179 = vector.extract_strided_slice %1116 {offsets = [0, 0], sizes = [24, 1], strides = [1, 1]} : vector<25x1xf32> to vector<24x1xf32>
    %1180 = vector.extract_strided_slice %1118 {offsets = [0, 0], sizes = [24, 1], strides = [1, 1]} : vector<25x1xf32> to vector<24x1xf32>
    %1181 = vector.extract_strided_slice %1104 {offsets = [1, 0], sizes = [24, 1], strides = [1, 1]} : vector<25x1xf32> to vector<24x1xf32>
    %1182 = vector.extract_strided_slice %880 {offsets = [0, 0], sizes = [1, 32], strides = [1, 1]} : vector<3x32xf32> to vector<1x32xf32>
    %1183 = vector.broadcast %1179 : vector<24x1xf32> to vector<24x32xf32>
    %1184 = vector.broadcast %1182 : vector<1x32xf32> to vector<24x32xf32>
    %1185 = arith.mulf %1183, %1184 : vector<24x32xf32>
    %1186 = vector.extract_strided_slice %880 {offsets = [1, 0], sizes = [1, 32], strides = [1, 1]} : vector<3x32xf32> to vector<1x32xf32>
    %1187 = vector.broadcast %1180 : vector<24x1xf32> to vector<24x32xf32>
    %1188 = vector.broadcast %1186 : vector<1x32xf32> to vector<24x32xf32>
    %1189 = arith.mulf %1187, %1188 : vector<24x32xf32>
    %1190 = arith.addf %1185, %1189 : vector<24x32xf32>
    %1191 = vector.extract_strided_slice %880 {offsets = [2, 0], sizes = [1, 32], strides = [1, 1]} : vector<3x32xf32> to vector<1x32xf32>
    %1192 = vector.broadcast %1181 : vector<24x1xf32> to vector<24x32xf32>
    %1193 = vector.broadcast %1191 : vector<1x32xf32> to vector<24x32xf32>
    %1194 = arith.mulf %1192, %1193 : vector<24x32xf32>
    %1195 = arith.addf %1190, %1194 : vector<24x32xf32>
    %1196 = vector.broadcast %882 : vector<1x32xf32> to vector<24x32xf32>
    %1197 = arith.addf %1195, %1196 : vector<24x32xf32>
    %cst_286 = arith.constant 0.000000e+00 : f32
    %1198 = vector.broadcast %cst_286 : f32 to vector<24x32xf32>
    %1199 = arith.maximumf %1197, %1198 : vector<24x32xf32>
    %1200 = vector.extract_strided_slice %1136 {offsets = [0, 0], sizes = [24, 32], strides = [1, 1]} : vector<25x32xf32> to vector<24x32xf32>
    %1201 = vector.extract_strided_slice %884 {offsets = [0, 0, 0], sizes = [1, 32, 32], strides = [1, 1, 1]} : vector<3x32x32xf32> to vector<1x32x32xf32>
    %1202 = vector.shape_cast %1201 : vector<1x32x32xf32> to vector<32x32xf32>
    %cst_287 = arith.constant dense<0.000000e+00> : vector<24x32xf32>
    %1203 = tpu.matmul %1200, %1202, %cst_287 {dimension_numbers = #tpu.dot_dimension_numbers<[1], [0], [0], [1], [0, 0, 1, 1], [], []>} : vector<24x32xf32>, vector<32x32xf32>, vector<24x32xf32> -> vector<24x32xf32>
    %1204 = vector.extract_strided_slice %884 {offsets = [1, 0, 0], sizes = [1, 32, 32], strides = [1, 1, 1]} : vector<3x32x32xf32> to vector<1x32x32xf32>
    %1205 = vector.shape_cast %1204 : vector<1x32x32xf32> to vector<32x32xf32>
    %cst_288 = arith.constant dense<0.000000e+00> : vector<24x32xf32>
    %1206 = tpu.matmul %1157, %1205, %cst_288 {dimension_numbers = #tpu.dot_dimension_numbers<[1], [0], [0], [1], [0, 0, 1, 1], [], []>} : vector<24x32xf32>, vector<32x32xf32>, vector<24x32xf32> -> vector<24x32xf32>
    %1207 = arith.addf %1203, %1206 : vector<24x32xf32>
    %1208 = vector.extract_strided_slice %884 {offsets = [2, 0, 0], sizes = [1, 32, 32], strides = [1, 1, 1]} : vector<3x32x32xf32> to vector<1x32x32xf32>
    %1209 = vector.shape_cast %1208 : vector<1x32x32xf32> to vector<32x32xf32>
    %cst_289 = arith.constant dense<0.000000e+00> : vector<24x32xf32>
    %1210 = tpu.matmul %1178, %1209, %cst_289 {dimension_numbers = #tpu.dot_dimension_numbers<[1], [0], [0], [1], [0, 0, 1, 1], [], []>} : vector<24x32xf32>, vector<32x32xf32>, vector<24x32xf32> -> vector<24x32xf32>
    %1211 = arith.addf %1207, %1210 : vector<24x32xf32>
    %1212 = vector.broadcast %886 : vector<1x32xf32> to vector<24x32xf32>
    %1213 = arith.addf %1211, %1212 : vector<24x32xf32>
    %cst_290 = arith.constant 0.000000e+00 : f32
    %1214 = vector.broadcast %cst_290 : f32 to vector<24x32xf32>
    %1215 = arith.maximumf %1213, %1214 : vector<24x32xf32>
    %1216 = vector.extract_strided_slice %1136 {offsets = [1, 0], sizes = [24, 32], strides = [1, 1]} : vector<25x32xf32> to vector<24x32xf32>
    %1217 = vector.extract_strided_slice %884 {offsets = [0, 0, 0], sizes = [1, 32, 32], strides = [1, 1, 1]} : vector<3x32x32xf32> to vector<1x32x32xf32>
    %1218 = vector.shape_cast %1217 : vector<1x32x32xf32> to vector<32x32xf32>
    %cst_291 = arith.constant dense<0.000000e+00> : vector<24x32xf32>
    %1219 = tpu.matmul %1178, %1218, %cst_291 {dimension_numbers = #tpu.dot_dimension_numbers<[1], [0], [0], [1], [0, 0, 1, 1], [], []>} : vector<24x32xf32>, vector<32x32xf32>, vector<24x32xf32> -> vector<24x32xf32>
    %1220 = vector.extract_strided_slice %884 {offsets = [1, 0, 0], sizes = [1, 32, 32], strides = [1, 1, 1]} : vector<3x32x32xf32> to vector<1x32x32xf32>
    %1221 = vector.shape_cast %1220 : vector<1x32x32xf32> to vector<32x32xf32>
    %cst_292 = arith.constant dense<0.000000e+00> : vector<24x32xf32>
    %1222 = tpu.matmul %1199, %1221, %cst_292 {dimension_numbers = #tpu.dot_dimension_numbers<[1], [0], [0], [1], [0, 0, 1, 1], [], []>} : vector<24x32xf32>, vector<32x32xf32>, vector<24x32xf32> -> vector<24x32xf32>
    %1223 = arith.addf %1219, %1222 : vector<24x32xf32>
    %1224 = vector.extract_strided_slice %884 {offsets = [2, 0, 0], sizes = [1, 32, 32], strides = [1, 1, 1]} : vector<3x32x32xf32> to vector<1x32x32xf32>
    %1225 = vector.shape_cast %1224 : vector<1x32x32xf32> to vector<32x32xf32>
    %cst_293 = arith.constant dense<0.000000e+00> : vector<24x32xf32>
    %1226 = tpu.matmul %1216, %1225, %cst_293 {dimension_numbers = #tpu.dot_dimension_numbers<[1], [0], [0], [1], [0, 0, 1, 1], [], []>} : vector<24x32xf32>, vector<32x32xf32>, vector<24x32xf32> -> vector<24x32xf32>
    %1227 = arith.addf %1223, %1226 : vector<24x32xf32>
    %1228 = vector.broadcast %886 : vector<1x32xf32> to vector<24x32xf32>
    %1229 = arith.addf %1227, %1228 : vector<24x32xf32>
    %cst_294 = arith.constant 0.000000e+00 : f32
    %1230 = vector.broadcast %cst_294 : f32 to vector<24x32xf32>
    %1231 = arith.maximumf %1229, %1230 : vector<24x32xf32>
    %1232 = vector.extract_strided_slice %1215 {offsets = [0, 0], sizes = [23, 32], strides = [1, 1]} : vector<24x32xf32> to vector<23x32xf32>
    %1233 = vector.extract_strided_slice %1231 {offsets = [0, 0], sizes = [23, 32], strides = [1, 1]} : vector<24x32xf32> to vector<23x32xf32>
    %1234 = vector.extract_strided_slice %1215 {offsets = [1, 0], sizes = [23, 32], strides = [1, 1]} : vector<24x32xf32> to vector<23x32xf32>
    %1235 = vector.extract_strided_slice %888 {offsets = [0, 0, 0], sizes = [1, 32, 32], strides = [1, 1, 1]} : vector<3x32x32xf32> to vector<1x32x32xf32>
    %1236 = vector.shape_cast %1235 : vector<1x32x32xf32> to vector<32x32xf32>
    %cst_295 = arith.constant dense<0.000000e+00> : vector<23x32xf32>
    %1237 = tpu.matmul %1232, %1236, %cst_295 {dimension_numbers = #tpu.dot_dimension_numbers<[1], [0], [0], [1], [0, 0, 1, 1], [], []>} : vector<23x32xf32>, vector<32x32xf32>, vector<23x32xf32> -> vector<23x32xf32>
    %1238 = vector.extract_strided_slice %888 {offsets = [1, 0, 0], sizes = [1, 32, 32], strides = [1, 1, 1]} : vector<3x32x32xf32> to vector<1x32x32xf32>
    %1239 = vector.shape_cast %1238 : vector<1x32x32xf32> to vector<32x32xf32>
    %cst_296 = arith.constant dense<0.000000e+00> : vector<23x32xf32>
    %1240 = tpu.matmul %1233, %1239, %cst_296 {dimension_numbers = #tpu.dot_dimension_numbers<[1], [0], [0], [1], [0, 0, 1, 1], [], []>} : vector<23x32xf32>, vector<32x32xf32>, vector<23x32xf32> -> vector<23x32xf32>
    %1241 = arith.addf %1237, %1240 : vector<23x32xf32>
    %1242 = vector.extract_strided_slice %888 {offsets = [2, 0, 0], sizes = [1, 32, 32], strides = [1, 1, 1]} : vector<3x32x32xf32> to vector<1x32x32xf32>
    %1243 = vector.shape_cast %1242 : vector<1x32x32xf32> to vector<32x32xf32>
    %cst_297 = arith.constant dense<0.000000e+00> : vector<23x32xf32>
    %1244 = tpu.matmul %1234, %1243, %cst_297 {dimension_numbers = #tpu.dot_dimension_numbers<[1], [0], [0], [1], [0, 0, 1, 1], [], []>} : vector<23x32xf32>, vector<32x32xf32>, vector<23x32xf32> -> vector<23x32xf32>
    %1245 = arith.addf %1241, %1244 : vector<23x32xf32>
    %1246 = vector.broadcast %890 : vector<1x32xf32> to vector<23x32xf32>
    %1247 = arith.addf %1245, %1246 : vector<23x32xf32>
    %cst_298 = arith.constant 0.000000e+00 : f32
    %1248 = vector.broadcast %cst_298 : f32 to vector<23x32xf32>
    %1249 = arith.maximumf %1247, %1248 : vector<23x32xf32>
    %1250 = vector.extract_strided_slice %1231 {offsets = [0, 0], sizes = [23, 32], strides = [1, 1]} : vector<24x32xf32> to vector<23x32xf32>
    %1251 = vector.extract_strided_slice %1215 {offsets = [1, 0], sizes = [23, 32], strides = [1, 1]} : vector<24x32xf32> to vector<23x32xf32>
    %1252 = vector.extract_strided_slice %1231 {offsets = [1, 0], sizes = [23, 32], strides = [1, 1]} : vector<24x32xf32> to vector<23x32xf32>
    %1253 = vector.extract_strided_slice %888 {offsets = [0, 0, 0], sizes = [1, 32, 32], strides = [1, 1, 1]} : vector<3x32x32xf32> to vector<1x32x32xf32>
    %1254 = vector.shape_cast %1253 : vector<1x32x32xf32> to vector<32x32xf32>
    %cst_299 = arith.constant dense<0.000000e+00> : vector<23x32xf32>
    %1255 = tpu.matmul %1250, %1254, %cst_299 {dimension_numbers = #tpu.dot_dimension_numbers<[1], [0], [0], [1], [0, 0, 1, 1], [], []>} : vector<23x32xf32>, vector<32x32xf32>, vector<23x32xf32> -> vector<23x32xf32>
    %1256 = vector.extract_strided_slice %888 {offsets = [1, 0, 0], sizes = [1, 32, 32], strides = [1, 1, 1]} : vector<3x32x32xf32> to vector<1x32x32xf32>
    %1257 = vector.shape_cast %1256 : vector<1x32x32xf32> to vector<32x32xf32>
    %cst_300 = arith.constant dense<0.000000e+00> : vector<23x32xf32>
    %1258 = tpu.matmul %1251, %1257, %cst_300 {dimension_numbers = #tpu.dot_dimension_numbers<[1], [0], [0], [1], [0, 0, 1, 1], [], []>} : vector<23x32xf32>, vector<32x32xf32>, vector<23x32xf32> -> vector<23x32xf32>
    %1259 = arith.addf %1255, %1258 : vector<23x32xf32>
    %1260 = vector.extract_strided_slice %888 {offsets = [2, 0, 0], sizes = [1, 32, 32], strides = [1, 1, 1]} : vector<3x32x32xf32> to vector<1x32x32xf32>
    %1261 = vector.shape_cast %1260 : vector<1x32x32xf32> to vector<32x32xf32>
    %cst_301 = arith.constant dense<0.000000e+00> : vector<23x32xf32>
    %1262 = tpu.matmul %1252, %1261, %cst_301 {dimension_numbers = #tpu.dot_dimension_numbers<[1], [0], [0], [1], [0, 0, 1, 1], [], []>} : vector<23x32xf32>, vector<32x32xf32>, vector<23x32xf32> -> vector<23x32xf32>
    %1263 = arith.addf %1259, %1262 : vector<23x32xf32>
    %1264 = vector.broadcast %890 : vector<1x32xf32> to vector<23x32xf32>
    %1265 = arith.addf %1263, %1264 : vector<23x32xf32>
    %cst_302 = arith.constant 0.000000e+00 : f32
    %1266 = vector.broadcast %cst_302 : f32 to vector<23x32xf32>
    %1267 = arith.maximumf %1265, %1266 : vector<23x32xf32>
    %1268 = arith.maximumf %1249, %1267 : vector<23x32xf32>
    %1269 = vector.extract_strided_slice %1268 {offsets = [0, 0], sizes = [1, 32], strides = [1, 1]} : vector<23x32xf32> to vector<1x32xf32>
    %c1_303 = arith.constant 1 : index
    %c1472_304 = arith.constant 1472 : index
    %1270 = vector.load %arg13[%c1_303, %c1472_304] : memref<2x2208xf32, #tpu.memory_space<vmem>>, vector<1x32xf32>
    tpu.vector_store %arg13[%c1_303, %c1472_304], %1269 {strides = array<i32>} : memref<2x2208xf32, #tpu.memory_space<vmem>>, vector<1x32xf32>,
    %1271 = vector.extract_strided_slice %1268 {offsets = [1, 0], sizes = [1, 32], strides = [1, 1]} : vector<23x32xf32> to vector<1x32xf32>
    %c1_305 = arith.constant 1 : index
    %c1504_306 = arith.constant 1504 : index
    %1272 = vector.load %arg13[%c1_305, %c1504_306] : memref<2x2208xf32, #tpu.memory_space<vmem>>, vector<1x32xf32>
    tpu.vector_store %arg13[%c1_305, %c1504_306], %1271 {strides = array<i32>} : memref<2x2208xf32, #tpu.memory_space<vmem>>, vector<1x32xf32>,
    %1273 = vector.extract_strided_slice %1268 {offsets = [2, 0], sizes = [1, 32], strides = [1, 1]} : vector<23x32xf32> to vector<1x32xf32>
    %c1_307 = arith.constant 1 : index
    %c1536_308 = arith.constant 1536 : index
    %1274 = vector.load %arg13[%c1_307, %c1536_308] : memref<2x2208xf32, #tpu.memory_space<vmem>>, vector<1x32xf32>
    tpu.vector_store %arg13[%c1_307, %c1536_308], %1273 {strides = array<i32>} : memref<2x2208xf32, #tpu.memory_space<vmem>>, vector<1x32xf32>,
    %1275 = vector.extract_strided_slice %1268 {offsets = [3, 0], sizes = [1, 32], strides = [1, 1]} : vector<23x32xf32> to vector<1x32xf32>
    %c1_309 = arith.constant 1 : index
    %c1568_310 = arith.constant 1568 : index
    %1276 = vector.load %arg13[%c1_309, %c1568_310] : memref<2x2208xf32, #tpu.memory_space<vmem>>, vector<1x32xf32>
    tpu.vector_store %arg13[%c1_309, %c1568_310], %1275 {strides = array<i32>} : memref<2x2208xf32, #tpu.memory_space<vmem>>, vector<1x32xf32>,
    %1277 = vector.extract_strided_slice %1268 {offsets = [4, 0], sizes = [1, 32], strides = [1, 1]} : vector<23x32xf32> to vector<1x32xf32>
    %c1_311 = arith.constant 1 : index
    %c1600_312 = arith.constant 1600 : index
    %1278 = vector.load %arg13[%c1_311, %c1600_312] : memref<2x2208xf32, #tpu.memory_space<vmem>>, vector<1x32xf32>
    tpu.vector_store %arg13[%c1_311, %c1600_312], %1277 {strides = array<i32>} : memref<2x2208xf32, #tpu.memory_space<vmem>>, vector<1x32xf32>,
    %1279 = vector.extract_strided_slice %1268 {offsets = [5, 0], sizes = [1, 32], strides = [1, 1]} : vector<23x32xf32> to vector<1x32xf32>
    %c1_313 = arith.constant 1 : index
    %c1632_314 = arith.constant 1632 : index
    %1280 = vector.load %arg13[%c1_313, %c1632_314] : memref<2x2208xf32, #tpu.memory_space<vmem>>, vector<1x32xf32>
    tpu.vector_store %arg13[%c1_313, %c1632_314], %1279 {strides = array<i32>} : memref<2x2208xf32, #tpu.memory_space<vmem>>, vector<1x32xf32>,
    %1281 = vector.extract_strided_slice %1268 {offsets = [6, 0], sizes = [1, 32], strides = [1, 1]} : vector<23x32xf32> to vector<1x32xf32>
    %c1_315 = arith.constant 1 : index
    %c1664_316 = arith.constant 1664 : index
    %1282 = vector.load %arg13[%c1_315, %c1664_316] : memref<2x2208xf32, #tpu.memory_space<vmem>>, vector<1x32xf32>
    tpu.vector_store %arg13[%c1_315, %c1664_316], %1281 {strides = array<i32>} : memref<2x2208xf32, #tpu.memory_space<vmem>>, vector<1x32xf32>,
    %1283 = vector.extract_strided_slice %1268 {offsets = [7, 0], sizes = [1, 32], strides = [1, 1]} : vector<23x32xf32> to vector<1x32xf32>
    %c1_317 = arith.constant 1 : index
    %c1696_318 = arith.constant 1696 : index
    %1284 = vector.load %arg13[%c1_317, %c1696_318] : memref<2x2208xf32, #tpu.memory_space<vmem>>, vector<1x32xf32>
    tpu.vector_store %arg13[%c1_317, %c1696_318], %1283 {strides = array<i32>} : memref<2x2208xf32, #tpu.memory_space<vmem>>, vector<1x32xf32>,
    %1285 = vector.extract_strided_slice %1268 {offsets = [8, 0], sizes = [1, 32], strides = [1, 1]} : vector<23x32xf32> to vector<1x32xf32>
    %c1_319 = arith.constant 1 : index
    %c1728_320 = arith.constant 1728 : index
    %1286 = vector.load %arg13[%c1_319, %c1728_320] : memref<2x2208xf32, #tpu.memory_space<vmem>>, vector<1x32xf32>
    tpu.vector_store %arg13[%c1_319, %c1728_320], %1285 {strides = array<i32>} : memref<2x2208xf32, #tpu.memory_space<vmem>>, vector<1x32xf32>,
    %1287 = vector.extract_strided_slice %1268 {offsets = [9, 0], sizes = [1, 32], strides = [1, 1]} : vector<23x32xf32> to vector<1x32xf32>
    %c1_321 = arith.constant 1 : index
    %c1760_322 = arith.constant 1760 : index
    %1288 = vector.load %arg13[%c1_321, %c1760_322] : memref<2x2208xf32, #tpu.memory_space<vmem>>, vector<1x32xf32>
    tpu.vector_store %arg13[%c1_321, %c1760_322], %1287 {strides = array<i32>} : memref<2x2208xf32, #tpu.memory_space<vmem>>, vector<1x32xf32>,
    %1289 = vector.extract_strided_slice %1268 {offsets = [10, 0], sizes = [1, 32], strides = [1, 1]} : vector<23x32xf32> to vector<1x32xf32>
    %c1_323 = arith.constant 1 : index
    %c1792_324 = arith.constant 1792 : index
    %1290 = vector.load %arg13[%c1_323, %c1792_324] : memref<2x2208xf32, #tpu.memory_space<vmem>>, vector<1x32xf32>
    tpu.vector_store %arg13[%c1_323, %c1792_324], %1289 {strides = array<i32>} : memref<2x2208xf32, #tpu.memory_space<vmem>>, vector<1x32xf32>,
    %1291 = vector.extract_strided_slice %1268 {offsets = [11, 0], sizes = [1, 32], strides = [1, 1]} : vector<23x32xf32> to vector<1x32xf32>
    %c1_325 = arith.constant 1 : index
    %c1824_326 = arith.constant 1824 : index
    %1292 = vector.load %arg13[%c1_325, %c1824_326] : memref<2x2208xf32, #tpu.memory_space<vmem>>, vector<1x32xf32>
    tpu.vector_store %arg13[%c1_325, %c1824_326], %1291 {strides = array<i32>} : memref<2x2208xf32, #tpu.memory_space<vmem>>, vector<1x32xf32>,
    %1293 = vector.extract_strided_slice %1268 {offsets = [12, 0], sizes = [1, 32], strides = [1, 1]} : vector<23x32xf32> to vector<1x32xf32>
    %c1_327 = arith.constant 1 : index
    %c1856_328 = arith.constant 1856 : index
    %1294 = vector.load %arg13[%c1_327, %c1856_328] : memref<2x2208xf32, #tpu.memory_space<vmem>>, vector<1x32xf32>
    tpu.vector_store %arg13[%c1_327, %c1856_328], %1293 {strides = array<i32>} : memref<2x2208xf32, #tpu.memory_space<vmem>>, vector<1x32xf32>,
    %1295 = vector.extract_strided_slice %1268 {offsets = [13, 0], sizes = [1, 32], strides = [1, 1]} : vector<23x32xf32> to vector<1x32xf32>
    %c1_329 = arith.constant 1 : index
    %c1888_330 = arith.constant 1888 : index
    %1296 = vector.load %arg13[%c1_329, %c1888_330] : memref<2x2208xf32, #tpu.memory_space<vmem>>, vector<1x32xf32>
    tpu.vector_store %arg13[%c1_329, %c1888_330], %1295 {strides = array<i32>} : memref<2x2208xf32, #tpu.memory_space<vmem>>, vector<1x32xf32>,
    %1297 = vector.extract_strided_slice %1268 {offsets = [14, 0], sizes = [1, 32], strides = [1, 1]} : vector<23x32xf32> to vector<1x32xf32>
    %c1_331 = arith.constant 1 : index
    %c1920_332 = arith.constant 1920 : index
    %1298 = vector.load %arg13[%c1_331, %c1920_332] : memref<2x2208xf32, #tpu.memory_space<vmem>>, vector<1x32xf32>
    tpu.vector_store %arg13[%c1_331, %c1920_332], %1297 {strides = array<i32>} : memref<2x2208xf32, #tpu.memory_space<vmem>>, vector<1x32xf32>,
    %1299 = vector.extract_strided_slice %1268 {offsets = [15, 0], sizes = [1, 32], strides = [1, 1]} : vector<23x32xf32> to vector<1x32xf32>
    %c1_333 = arith.constant 1 : index
    %c1952_334 = arith.constant 1952 : index
    %1300 = vector.load %arg13[%c1_333, %c1952_334] : memref<2x2208xf32, #tpu.memory_space<vmem>>, vector<1x32xf32>
    tpu.vector_store %arg13[%c1_333, %c1952_334], %1299 {strides = array<i32>} : memref<2x2208xf32, #tpu.memory_space<vmem>>, vector<1x32xf32>,
    %1301 = vector.extract_strided_slice %1268 {offsets = [16, 0], sizes = [1, 32], strides = [1, 1]} : vector<23x32xf32> to vector<1x32xf32>
    %c1_335 = arith.constant 1 : index
    %c1984_336 = arith.constant 1984 : index
    %1302 = vector.load %arg13[%c1_335, %c1984_336] : memref<2x2208xf32, #tpu.memory_space<vmem>>, vector<1x32xf32>
    tpu.vector_store %arg13[%c1_335, %c1984_336], %1301 {strides = array<i32>} : memref<2x2208xf32, #tpu.memory_space<vmem>>, vector<1x32xf32>,
    %1303 = vector.extract_strided_slice %1268 {offsets = [17, 0], sizes = [1, 32], strides = [1, 1]} : vector<23x32xf32> to vector<1x32xf32>
    %c1_337 = arith.constant 1 : index
    %c2016_338 = arith.constant 2016 : index
    %1304 = vector.load %arg13[%c1_337, %c2016_338] : memref<2x2208xf32, #tpu.memory_space<vmem>>, vector<1x32xf32>
    tpu.vector_store %arg13[%c1_337, %c2016_338], %1303 {strides = array<i32>} : memref<2x2208xf32, #tpu.memory_space<vmem>>, vector<1x32xf32>,
    %1305 = vector.extract_strided_slice %1268 {offsets = [18, 0], sizes = [1, 32], strides = [1, 1]} : vector<23x32xf32> to vector<1x32xf32>
    %c1_339 = arith.constant 1 : index
    %c2048_340 = arith.constant 2048 : index
    %1306 = vector.load %arg13[%c1_339, %c2048_340] : memref<2x2208xf32, #tpu.memory_space<vmem>>, vector<1x32xf32>
    tpu.vector_store %arg13[%c1_339, %c2048_340], %1305 {strides = array<i32>} : memref<2x2208xf32, #tpu.memory_space<vmem>>, vector<1x32xf32>,
    %1307 = vector.extract_strided_slice %1268 {offsets = [19, 0], sizes = [1, 32], strides = [1, 1]} : vector<23x32xf32> to vector<1x32xf32>
    %c1_341 = arith.constant 1 : index
    %c2080_342 = arith.constant 2080 : index
    %1308 = vector.load %arg13[%c1_341, %c2080_342] : memref<2x2208xf32, #tpu.memory_space<vmem>>, vector<1x32xf32>
    tpu.vector_store %arg13[%c1_341, %c2080_342], %1307 {strides = array<i32>} : memref<2x2208xf32, #tpu.memory_space<vmem>>, vector<1x32xf32>,
    %1309 = vector.extract_strided_slice %1268 {offsets = [20, 0], sizes = [1, 32], strides = [1, 1]} : vector<23x32xf32> to vector<1x32xf32>
    %c1_343 = arith.constant 1 : index
    %c2112_344 = arith.constant 2112 : index
    %1310 = vector.load %arg13[%c1_343, %c2112_344] : memref<2x2208xf32, #tpu.memory_space<vmem>>, vector<1x32xf32>
    tpu.vector_store %arg13[%c1_343, %c2112_344], %1309 {strides = array<i32>} : memref<2x2208xf32, #tpu.memory_space<vmem>>, vector<1x32xf32>,
    %1311 = vector.extract_strided_slice %1268 {offsets = [21, 0], sizes = [1, 32], strides = [1, 1]} : vector<23x32xf32> to vector<1x32xf32>
    %c1_345 = arith.constant 1 : index
    %c2144_346 = arith.constant 2144 : index
    %1312 = vector.load %arg13[%c1_345, %c2144_346] : memref<2x2208xf32, #tpu.memory_space<vmem>>, vector<1x32xf32>
    tpu.vector_store %arg13[%c1_345, %c2144_346], %1311 {strides = array<i32>} : memref<2x2208xf32, #tpu.memory_space<vmem>>, vector<1x32xf32>,
    %1313 = vector.extract_strided_slice %1268 {offsets = [22, 0], sizes = [1, 32], strides = [1, 1]} : vector<23x32xf32> to vector<1x32xf32>
    %c1_347 = arith.constant 1 : index
    %c2176_348 = arith.constant 2176 : index
    %1314 = vector.load %arg13[%c1_347, %c2176_348] : memref<2x2208xf32, #tpu.memory_space<vmem>>, vector<1x32xf32>
    tpu.vector_store %arg13[%c1_347, %c2176_348], %1313 {strides = array<i32>} : memref<2x2208xf32, #tpu.memory_space<vmem>>, vector<1x32xf32>,
    %c0_349 = arith.constant 0 : index
    %c0_350 = arith.constant 0 : index
    %1315 = vector.load %arg13[%c0_349, %c0_350] : memref<2x2208xf32, #tpu.memory_space<vmem>>, vector<2x2208xf32>
    %c0_351 = arith.constant 0 : index
    %c0_352 = arith.constant 0 : index
    %1316 = vector.load %arg7[%c0_351, %c0_352] : memref<2208x100xf32, #tpu.memory_space<vmem>>, vector<2208x100xf32>
    %cst_353 = arith.constant dense<0.000000e+00> : vector<2x100xf32>
    %1317 = tpu.matmul %1315, %1316, %cst_353 {dimension_numbers = #tpu.dot_dimension_numbers<[1], [0], [0], [1], [0, 0, 1, 1], [], []>} : vector<2x2208xf32>, vector<2208x100xf32>, vector<2x100xf32> -> vector<2x100xf32>
    %c0_354 = arith.constant 0 : index
    %c0_355 = arith.constant 0 : index
    %1318 = vector.load %arg8[%c0_354, %c0_355] : memref<1x100xf32, #tpu.memory_space<vmem>>, vector<1x100xf32>
    %1319 = vector.broadcast %1318 : vector<1x100xf32> to vector<2x100xf32>
    %1320 = arith.addf %1317, %1319 : vector<2x100xf32>
    %c0_356 = arith.constant 0 : index
    %c0_357 = arith.constant 0 : index
    %1321 = vector.load %arg9[%c0_356, %c0_357] : memref<100x100xf32, #tpu.memory_space<vmem>>, vector<100x100xf32>
    %c0_358 = arith.constant 0 : index
    %c0_359 = arith.constant 0 : index
    %1322 = vector.load %arg10[%c0_358, %c0_359] : memref<100x2xf32, #tpu.memory_space<vmem>>, vector<100x2xf32>
    %c0_360 = arith.constant 0 : index
    %c0_361 = arith.constant 0 : index
    %1323 = vector.load %arg11[%c0_360, %c0_361] : memref<1x2xf32, #tpu.memory_space<vmem>>, vector<1x2xf32>
    %cst_362 = arith.constant 0.000000e+00 : f32
    %1324 = vector.broadcast %cst_362 : f32 to vector<1x100xf32>
    %1325 = vector.extract_strided_slice %1320 {offsets = [0, 0], sizes = [1, 100], strides = [1, 1]} : vector<2x100xf32> to vector<1x100xf32>
    %cst_363 = arith.constant dense<0.000000e+00> : vector<1x100xf32>
    %1326 = tpu.matmul %1324, %1321, %cst_363 {dimension_numbers = #tpu.dot_dimension_numbers<[1], [0], [0], [1], [0, 0, 1, 1], [], []>} : vector<1x100xf32>, vector<100x100xf32>, vector<1x100xf32> -> vector<1x100xf32>
    %1327 = arith.addf %1325, %1326 : vector<1x100xf32>
    %1328 = math.tanh %1327 : vector<1x100xf32>
    %cst_364 = arith.constant dense<0.000000e+00> : vector<1x2xf32>
    %1329 = tpu.matmul %1328, %1322, %cst_364 {dimension_numbers = #tpu.dot_dimension_numbers<[1], [0], [0], [1], [0, 0, 1, 1], [], []>} : vector<1x100xf32>, vector<100x2xf32>, vector<1x2xf32> -> vector<1x2xf32>
    %1330 = arith.addf %1329, %1323 : vector<1x2xf32>
    %cst_365 = arith.constant dense<0xFF800000> : vector<1xf32>
    %1331 = vector.multi_reduction <maximumf>, %1330, %cst_365 [1] : vector<1x2xf32> to vector<1xf32>
    %1332 = vector.shape_cast %1331 : vector<1xf32> to vector<1x1xf32>
    %1333 = vector.broadcast %1332 : vector<1x1xf32> to vector<1x2xf32>
    %1334 = arith.subf %1330, %1333 : vector<1x2xf32>
    %1335 = math.exp %1334 : vector<1x2xf32>
    %cst_366 = arith.constant dense<0.000000e+00> : vector<1xf32>
    %1336 = vector.multi_reduction <add>, %1335, %cst_366 [1] : vector<1x2xf32> to vector<1xf32>
    %1337 = vector.shape_cast %1336 : vector<1xf32> to vector<1x1xf32>
    %1338 = math.log %1337 : vector<1x1xf32>
    %1339 = arith.addf %1332, %1338 : vector<1x1xf32>
    %1340 = vector.broadcast %1339 : vector<1x1xf32> to vector<1x2xf32>
    %1341 = arith.subf %1330, %1340 : vector<1x2xf32>
    %c0_367 = arith.constant 0 : index
    %c0_368 = arith.constant 0 : index
    %1342 = vector.load %arg12[%c0_367, %c0_368] : memref<2x2xf32, #tpu.memory_space<vmem>>, vector<1x2xf32>
    tpu.vector_store %arg12[%c0_367, %c0_368], %1341 {strides = array<i32>} : memref<2x2xf32, #tpu.memory_space<vmem>>, vector<1x2xf32>,
    %1343 = vector.extract_strided_slice %1320 {offsets = [1, 0], sizes = [1, 100], strides = [1, 1]} : vector<2x100xf32> to vector<1x100xf32>
    %cst_369 = arith.constant dense<0.000000e+00> : vector<1x100xf32>
    %1344 = tpu.matmul %1328, %1321, %cst_369 {dimension_numbers = #tpu.dot_dimension_numbers<[1], [0], [0], [1], [0, 0, 1, 1], [], []>} : vector<1x100xf32>, vector<100x100xf32>, vector<1x100xf32> -> vector<1x100xf32>
    %1345 = arith.addf %1343, %1344 : vector<1x100xf32>
    %1346 = math.tanh %1345 : vector<1x100xf32>
    %cst_370 = arith.constant dense<0.000000e+00> : vector<1x2xf32>
    %1347 = tpu.matmul %1346, %1322, %cst_370 {dimension_numbers = #tpu.dot_dimension_numbers<[1], [0], [0], [1], [0, 0, 1, 1], [], []>} : vector<1x100xf32>, vector<100x2xf32>, vector<1x2xf32> -> vector<1x2xf32>
    %1348 = arith.addf %1347, %1323 : vector<1x2xf32>
    %cst_371 = arith.constant dense<0xFF800000> : vector<1xf32>
    %1349 = vector.multi_reduction <maximumf>, %1348, %cst_371 [1] : vector<1x2xf32> to vector<1xf32>
    %1350 = vector.shape_cast %1349 : vector<1xf32> to vector<1x1xf32>
    %1351 = vector.broadcast %1350 : vector<1x1xf32> to vector<1x2xf32>
    %1352 = arith.subf %1348, %1351 : vector<1x2xf32>
    %1353 = math.exp %1352 : vector<1x2xf32>
    %cst_372 = arith.constant dense<0.000000e+00> : vector<1xf32>
    %1354 = vector.multi_reduction <add>, %1353, %cst_372 [1] : vector<1x2xf32> to vector<1xf32>
    %1355 = vector.shape_cast %1354 : vector<1xf32> to vector<1x1xf32>
    %1356 = math.log %1355 : vector<1x1xf32>
    %1357 = arith.addf %1350, %1356 : vector<1x1xf32>
    %1358 = vector.broadcast %1357 : vector<1x1xf32> to vector<1x2xf32>
    %1359 = arith.subf %1348, %1358 : vector<1x2xf32>
    %c1_373 = arith.constant 1 : index
    %c0_374 = arith.constant 0 : index
    %1360 = vector.load %arg12[%c1_373, %c0_374] : memref<2x2xf32, #tpu.memory_space<vmem>>, vector<1x2xf32>
    tpu.vector_store %arg12[%c1_373, %c0_374], %1359 {strides = array<i32>} : memref<2x2xf32, #tpu.memory_space<vmem>>, vector<1x2xf32>,
    return
  }
}

</mosaic_0001>

<bundles_post_ra>
// kernel: crnn_forward.1
= control target key start
LH: loop header
LB: loop body
LE: loop exit
PB: predicated region body
PF: predicated region fallthrough
CT: control target
= control target key end

     0   :  { %v13144_v2 = vmov 0   ;;  %v18214_v5 = vmov 0.0   ;;  %vm13146_vm0 = vmmov 0   ;;  %s18199_s0 = inlined_call_operand.vmem [shape: f32[3,8,25,2], index: 0, kind: input, shape index: {}]   ;;  %s18200_s1 = inlined_call_operand.vmem [shape: f32[3,3,32], index: 1, kind: input, shape index: {}]   ;;  %s18201_s2 = inlined_call_operand.vmem [shape: f32[3,1,32], index: 2, kind: input, shape index: {}]   ;;  %s18202_s3 = inlined_call_operand.vmem [shape: f32[3,3,32,32], index: 3, kind: input, shape index: {}]   ;;  %s18203_s4 = inlined_call_operand.vmem [shape: f32[3,1,32], index: 4, kind: input, shape index: {}]   ;;  %s18204_s5 = inlined_call_operand.vmem [shape: f32[3,3,32,32], index: 5, kind: input, shape index: {}]   ;;  %s18205_s6 = inlined_call_operand.vmem [shape: f32[3,1,32], index: 6, kind: input, shape index: {}]   ;;  %s18206_s7 = inlined_call_operand.vmem [shape: f32[2208,100], index: 7, kind: input, shape index: {}]   ;;  %s18207_s8 = inlined_call_operand.vmem [shape: f32[1,100], index: 8, kind: input, shape index: {}]   ;;  %s18208_s9 = inlined_call_operand.vmem [shape: f32[100,100], index: 9, kind: input, shape index: {}]   ;;  %s18209_s10 = inlined_call_operand.vmem [shape: f32[100,2], index: 10, kind: input, shape index: {}]   ;;  %s18210_s11 = inlined_call_operand.vmem [shape: f32[1,2], index: 11, kind: input, shape index: {}]   ;;  %s18211_s12 = inlined_call_operand.hbm [shape: f32[2,2], index: 12, kind: output, shape index: {}]  }
   0x1   :  { %v13221_v0 = vld [vmem:[%s18199_s0 + $0x80] sm:$0xff]  ;;  %13024 = vset.pattern.permute.xlu1 %v13144_v2  ;;  %13023 = vset.pattern.permute.xlu0 %v13144_v2  ;;  %v13235_v3 = vld [vmem:[%s18199_s0 + $0x48] sm:$0xff]  ;;  %v13259_v8 = vld [vmem:[%s18202_s3 + $0x38] sm:$0xff] }
   0x2   :  { %v13226_v1 = vld [vmem:[%s18199_s0 + $0x40] sm:$0xff]  ;;  %339 = vperm.xlu1 %13024, %v13221_v0   ;;  %11666 = vmatprep.subr.mxu0 %v18214_v5  ;;  %v13249_v6 = vld [vmem:[%s18199_s0 + $0x88] sm:$0xff]  ;;  %v13266_v9 = vld [vmem:[%s18202_s3 + $0x30] sm:$0xff] }
   0x3   :  { %269 = vperm.xlu0 %13023, %v13226_v1   ;;  %v13240_v4 = vld [vmem:[%s18199_s0 + $0x60] sm:$0xff]  ;;  %13006 = vmatprep.subr.mxu1 %v18214_v5  ;;  %v13254_v7 = vld [vmem:[%s18199_s0 + $0x68] sm:$0xff]  ;;  %v13271_v10 = vld [vmem:[%s18199_s0 + $0x70] sm:$0xff] }
   0x4   :  { %v13276_v11 = vld [vmem:[%s18199_s0 + $0x50] sm:$0xff]  ;;  %11667 = vmatpush3.msra.mxu0 %v13259_v8  ;;  %11674 = vmatprep.mubr.msk.f32.mxu0 %vm13146_vm0, %v18214_v5 }
   0x6   :  { %274 = vperm.xlu1 %13024, %v13235_v3  }
   0x7   :  { %318 = vperm.xlu0 %13023, %v13240_v4  }
   0xa   :  { %344 = vperm.xlu1 %13024, %v13249_v6  }
   0xb   :  { %323 = vperm.xlu0 %13023, %v13254_v7  }
   0xc   :  { %17 = vsyncpa [#allocation4], 0  ;;  %11668 = vmatprep.subr.mxu0 %v18214_v5  ;;  %11694 = vmatprep.mubr.msk.f32.mxu1 %vm13146_vm0, %v18214_v5  ;;  %v13288_v12 = vld [vmem:[%s18202_s3 + $0x28] sm:$0xff]  ;;  %v13295_v13 = vld [vmem:[%s18199_s0 + $0x90] sm:$0xff]  ;;  %v18212_v37 = vmov 1   ;;  %v227_v38 = vlaneseq  ;;  %vm467_vm1 = vcmask 261120  }
   0xd   :  { %11669 = vmatpush3.msra.mxu0 %v13266_v9  ;;  %v42_v14 = vld [vmem:[%s18199_s0] sm:$0xff]  ;;  %v43_v17 = vld [vmem:[%s18199_s0 + $0x8] sm:$0xff]  ;;  %v13320_v18 = vld [vmem:[%s18202_s3 + $0x18] sm:$0xff]  ;;  %vm447_vm2 = vcmask 1046528   ;;  %vm1569_vm3 = vcmask 253952   ;;  %s13149_s18 = smov 32  }
   0xe   :  { %328 = vperm.xlu1 %13024, %v13271_v10   ;;  %11670 = vmatprep.subr.mxu0 %v18214_v5  ;;  %v13305_v15 = vld [vmem:[%s18202_s3 + $0x20] sm:$0xff]  ;;  %v47_v19 = vld [vmem:[%s18199_s0 + $0x28] sm:$0xff]  ;;  %v44_v20 = vld [vmem:[%s18199_s0 + $0x10] sm:$0xff]  ;;  %v13401_v39 = vshrl.u32 %v227_v38, 7  ;;  %s13150_s19 = smov 64   ;;  %s13151_s20 = smov 96  }
   0xf   :  { %279 = vperm.xlu0 %13023, %v13276_v11   ;;  %11671 = vmatpush3.msra.mxu0 %v13288_v12  ;;  %v46_v16 = vld [vmem:[%s18199_s0 + $0x20] sm:$0xff]  ;;  %v13332_v21 = vld [vmem:[%s18202_s3 + $0x10] sm:$0xff]  ;;  %v13345_v24 = vld [vmem:[%s18202_s3 + $0x8] sm:$0xff]  ;;  %vm1584_vm4 = vcmask 516352   ;;  %vm1590_vm5 = vcmask 778752   ;;  %vm1597_vm6 = vcmask 1041152  }
  0x10   :  { %11672 = vmatprep.subr.mxu0 %v18214_v5  ;;  %13010 = vmatpush3.msra.mxu1 %v13320_v18  ;;  %v48_v22 = vld [vmem:[%s18199_s0 + $0x30] sm:$0xff]  ;;  %v60_v23 = vld [vmem:[%s18199_s0 + $0xa0] sm:$0xff]  ;;  %v61_v28 = vld [vmem:[%s18199_s0 + $0xa8] sm:$0xff]  ;;  %v13404_v40 = vsub.s32 0, %v13401_v39  ;;  %v13407_v41 = vsub.s32 1, %v13401_v39  ;;  %v13419_v46 = vsub.s32 2, %v13401_v39 }
  0x11   :  { %11673 = vmatpush3.msra.mxu0 %v13305_v15  ;;  %13007 = vmatprep.subr.mxu1 %v18214_v5  ;;  %v13353_v25 = vld [vmem:[%s18202_s3] sm:$0xff]  ;;  %v64_v29 = vld [vmem:[%s18199_s0 + $0xc8] sm:$0xff]  ;;  %v62_v31 = vld [vmem:[%s18199_s0 + $0xb0] sm:$0xff]  ;;  %vm10181_vm7 = vcmask 1043456   ;;  %vm10177_vm8 = vcmask 818176   ;;  %vm10333_vm9 = vcmask 8192  }
  0x12   :  { %209 = vperm.xlu1 %13024, %v42_v14   ;;  %11683 = vmatprep.subr.mxu0 %v18214_v5  ;;  %v63_v26 = vld [vmem:[%s18199_s0 + $0xc0] sm:$0xff]  ;;  %v67_v30 = vld [vmem:[%s18199_s0 + $0xe8] sm:$0xff]  ;;  %v45_v32 = vld [vmem:[%s18199_s0 + $0x18] sm:$0x1] }
  0x13   :  { %349 = vperm.xlu0 %13023, %v13295_v13   ;;  %13011 = vmatpush3.msra.mxu1 %v13332_v21  ;;  %v66_v27 = vld [vmem:[%s18199_s0 + $0xe0] sm:$0xff]  ;;  %v65_v33 = vld [vmem:[%s18199_s0 + $0xd0] sm:$0xff]  ;;  %v49_v35 = vld [vmem:[%s18199_s0 + $0x38] sm:$0x1] }
  0x14   :  { %13008 = vmatprep.subr.mxu1 %v18214_v5  ;;  %v68_v34 = vld [vmem:[%s18199_s0 + $0xf0] sm:$0xff]  ;;  %v53_v36 = vld [vmem:[%s18199_s0 + $0x58] sm:$0x1]  ;;  %v123_v42 = vld [vmem:[%s18200_s1] sm:$0x7] }
  0x15   :  { %13012 = vmatpush3.msra.mxu1 %v13345_v24  ;;  %v13416_v45 = vrot.slane %v123_v42, %v13404_v40  ;;  %v13422_v47 = vrot.slane %v123_v42, %v13407_v41  ;;  %v13426_v50 = vrot.slane %v123_v42, %v13419_v46  ;;  %v13435_v55 = vld [vmem:[%s18201_s2] ss:$0 sm:$0xff] }
  0x16   :  { %214 = vperm.xlu1 %13024, %v43_v17   ;;  %13009 = vmatprep.subr.mxu1 %v18214_v5 }
  0x17   :  { %237 = vperm.xlu0 %13023, %v46_v16   ;;  %13013 = vmatpush3.msra.mxu1 %v13353_v25 }
  0x18   :  { %11717 = vmatprep.subr.mxu1 %v18214_v5 }
  0x1a   :  { %219 = vperm.xlu1 %13024, %v44_v20  }
  0x1b   :  { %242 = vperm.xlu0 %13023, %v47_v19  }
  0x1e   :  { %369 = vperm.xlu1 %13024, %v60_v23  }
  0x1f   :  { %247 = vperm.xlu0 %13023, %v48_v22  }
  0x22   :  { %420 = vperm.xlu1 %13024, %v66_v27  }
  0x23   :  { %390 = vperm.xlu0 %13023, %v63_v26  }
  0x26   :  { %395 = vperm.xlu1 %13024, %v64_v29  }
  0x27   :  { %374 = vperm.xlu0 %13023, %v61_v28  }
  0x2a   :  { %379 = vperm.xlu1 %13024, %v62_v31  }
  0x2b   :  { %425 = vperm.xlu0 %13023, %v67_v30  }
  0x2e   :  { %400 = vperm.xlu1 %13024, %v65_v33  }
  0x2f   :  { %224 = vperm.xlu0 %13023, %v45_v32  }
  0x32   :  { %252 = vperm.xlu1 %13024, %v49_v35  }
  0x33   :  { %430 = vperm.xlu0 %13023, %v68_v34  }
  0x36   :  { %13025 = vset.pattern.permute.xlu1 %v18212_v37 }
  0x37   :  { %284 = vperm.xlu0 %13023, %v53_v36   ;;  %1771 = vperm.xlu1 %13025, %v13226_v1  }
  0x3b   :  { %13026 = vset.pattern.permute.xlu0 %v18212_v37  ;;  %1727 = vperm.xlu1 %13025, %v42_v14  }
  0x3c   :  { %1806 = vperm.xlu0 %13026, %v13240_v4  }
  0x3f   :  { %1747 = vperm.xlu1 %13025, %v46_v16  }
  0x40   :  { %1824 = vperm.xlu0 %13026, %v13221_v0  }
  0x43   :  { %1775 = vperm.xlu1 %13025, %v13235_v3  }
  0x44   :  { %1810 = vperm.xlu0 %13026, %v13254_v7  }
  0x47   :  { %1731 = vperm.xlu1 %13025, %v43_v17  }
  0x48   :  { %1751 = vperm.xlu0 %13026, %v47_v19  }
  0x4b   :  { %1828 = vperm.xlu1 %13025, %v13249_v6  }
  0x4c   :  { %1779 = vperm.xlu0 %13026, %v13276_v11  }
  0x4f   :  { %1814 = vperm.xlu1 %13025, %v13271_v10  }
  0x50   :  { %1735 = vperm.xlu0 %13026, %v44_v20  }
  0x53   :  { %1755 = vperm.xlu1 %13025, %v48_v22  }
  0x54   :  { %1832 = vperm.xlu0 %13026, %v13295_v13  }
  0x57   :  { %1851 = vperm.xlu1 %13025, %v60_v23  }
  0x58   :  { %1869 = vperm.xlu0 %13026, %v63_v26  }
  0x5b   :  { %1896 = vperm.xlu1 %13025, %v66_v27  }
  0x5c   :  { %1855 = vperm.xlu0 %13026, %v61_v28  }
  0x5f   :  { %1873 = vperm.xlu1 %13025, %v64_v29  }
  0x60   :  { %1900 = vperm.xlu0 %13026, %v67_v30  }
  0x63   :  { %1859 = vperm.xlu1 %13025, %v62_v31  }
  0x64   :  { %1739 = vperm.xlu0 %13026, %v45_v32  }
  0x67   :  { %1877 = vperm.xlu1 %13025, %v65_v33  }
  0x68   :  { %1904 = vperm.xlu0 %13026, %v68_v34  }
  0x6b   :  { %1759 = vperm.xlu1 %13025, %v49_v35  }
  0x6c   :  { %1783 = vperm.xlu0 %13026, %v53_v36  }
  0x6f   :  { %13027 = vset.pattern.permute.xlu1 %v13144_v2 }
  0x70   :  { %13028 = vset.pattern.permute.xlu0 %v13144_v2 }
  0x7d   :  { %v13413_v43 = vpop.permute.xlu1 %339 }
  0x7e   :  { %v270_v44 = vpop.permute.xlu0 %269  ;;  %v352_v53 = vmul.f32 %v13413_v43, %v13426_v50 }
  0x7f   :  { %v313_v51 = vmul.f32 %v270_v44, %v13416_v45  ;;  %v291_v28 = vmul.f32 %v13426_v50, %v270_v44 }
  0x81   :  { %v275_v48 = vpop.permute.xlu1 %274 }
  0x82   :  { %v319_v49 = vpop.permute.xlu0 %318  ;;  %v314_v58 = vmul.f32 %v275_v48, %v13416_v45  ;;  %v292_v36 = vmul.f32 %v13426_v50, %v275_v48 }
  0x83   :  { %v331_v52 = vmul.f32 %v319_v49, %v13422_v47 }
  0x85   :  { %v334_v54 = vadd.f32 %v331_v52, %v313_v51  ;;  %v13437_v56 = vpop.permute.xlu1 %344 }
  0x86   :  { %v324_v57 = vpop.permute.xlu0 %323  ;;  %v353_v62 = vmul.f32 %v13437_v56, %v13426_v50 }
  0x87   :  { %v355_v59 = vadd.f32 %v352_v53, %v334_v54  ;;  %v332_v60 = vmul.f32 %v324_v57, %v13422_v47 }
  0x89   :  { %v358_v61 = vadd.f32 %v13435_v55, %v355_v59  ;;  %v335_v63 = vadd.f32 %v332_v60, %v314_v58  ;;  %v329_v0 = vpop.permute.xlu1 %328  ;;  %v13488_v58 = vld [vmem:[%s18202_s3 + $0x58] sm:$0xff]  ;;  %v364_v59 = vmul.f32 %v13413_v43, %v13416_v45 }
  0x8a   :  { %v280_v1 = vpop.permute.xlu0 %279  ;;  %v333_v4 = vmul.f32 %v329_v0, %v13422_v47  ;;  %v13503_v0 = vld [vmem:[%s18202_s3 + $0x50] sm:$0xff] }
  0x8b   :  { %v356_v3 = vadd.f32 %v353_v62, %v335_v63  ;;  %v315_v6 = vmul.f32 %v280_v1, %v13416_v45  ;;  %v361_v7 = vmax.f32 %v358_v61, 0.0  ;;  %v293_v61 = vmul.f32 %v13426_v50, %v280_v1 }
  0x8d   :  { %v359_v10 = vadd.f32 %v13435_v55, %v356_v3  ;;  %11675 = vmatmul.mubr.msk.f32.vlgmr.msra.gmra.mxu0 %vm467_vm1, %v361_v7  ;;  %v210_v13 = vpop.permute.xlu1 %209  ;;  %v336_v14 = vadd.f32 %v333_v4, %v315_v6 }
  0x8e   :  { %v13448_v11 = vpop.permute.xlu0 %349  ;;  %11677 = vmatprep.mubr.msk.f32.mxu0 %vm13146_vm0, %v18214_v5  ;;  %11684 = vmatpush3.msra.mxu0 %v13320_v18  ;;  %v231_v26 = vmul.f32 %v13416_v45, %v210_v13  ;;  %v439_v60 = vmul.f32 %v13426_v50, %v210_v13 }
  0x8f   :  { %v354_v16 = vmul.f32 %v13448_v11, %v13426_v50  ;;  %v362_v17 = vmax.f32 %v359_v10, 0.0  ;;  %11685 = vmatprep.subr.mxu0 %v18214_v5 }
  0x90   :  { %11686 = vmatpush3.msra.mxu0 %v13332_v21 }
  0x91   :  { %v357_v19 = vadd.f32 %v354_v16, %v336_v14  ;;  %11678 = vmatmul.mubr.msk.f32.gmra.mxu0 %vm467_vm1, %v362_v17  ;;  %v215_v22 = vpop.permute.xlu1 %214  ;;  %11687 = vmatprep.subr.mxu0 %v18214_v5  ;;  %v13516_v14 = vld [vmem:[%s18202_s3 + $0x48] sm:$0xff]  ;;  %v448_v16 = vrot.slane %v439_v60, 1 }
  0x92   :  { %v238_v20 = vpop.permute.xlu0 %237  ;;  %11680 = vmatprep.mubr.msk.f32.mxu0 %vm13146_vm0, %v18214_v5  ;;  %11688 = vmatpush3.msra.mxu0 %v13345_v24  ;;  %v232_v34 = vmul.f32 %v13416_v45, %v215_v22  ;;  %v13478_v44 = vmul.f32 %v13426_v50, %v215_v22 }
  0x93   :  { %v360_v23 = vadd.f32 %v13435_v55, %v357_v19  ;;  %v259_v27 = vmul.f32 %v13422_v47, %v238_v20  ;;  %11689 = vmatprep.subr.mxu0 %v18214_v5 }
  0x94   :  { %11690 = vmatpush3.msra.mxu0 %v13353_v25  ;;  %v449_v3 = vrot.slane %v13478_v44, 1 }
  0x95   :  { %v263_v29 = vadd.f32 %v259_v27, %v231_v26  ;;  %v363_v30 = vmax.f32 %v360_v23, 0.0  ;;  %v220_v32 = vpop.permute.xlu1 %219  ;;  %11700 = vmatprep.subr.mxu0 %v18214_v5 }
  0x96   :  { %v243_v31 = vpop.permute.xlu0 %242  ;;  %v233_v49 = vmul.f32 %v13416_v45, %v220_v32  ;;  %v13525_v23 = vmul.f32 %v13426_v50, %v220_v32  ;;  %v450_v26 = vsel %vm447_vm2, %v448_v16, %v449_v3 }
  0x97   :  { %v295_v33 = vadd.f32 %v291_v28, %v263_v29  ;;  %v260_v35 = vmul.f32 %v13422_v47, %v243_v31  ;;  %11681 = vmatmul.mubr.msk.f32.gmra.mxu0 %vm467_vm1, %v363_v30  ;;  %v365_v29 = vmul.f32 %v13437_v56, %v13416_v45 }
  0x98   :  { %11691 = vmatprep.mubr.msk.f32.mxu0 %vm13146_vm0, %v18214_v5 }
  0x99   :  { %v13474_v38 = vadd.f32 %v13435_v55, %v295_v33  ;;  %v264_v42 = vadd.f32 %v260_v35, %v232_v34  ;;  %v370_v52 = vpop.permute.xlu1 %369  ;;  %v13546_v34 = vld [vmem:[%s18202_s3 + $0x40] sm:$0xff] }
  0x9a   :  { %v248_v51 = vpop.permute.xlu0 %247  ;;  %v382_v57 = vmul.f32 %v370_v52, %v13422_v47 }
  0x9b   :  { %v309_v53 = vmax.f32 %v13474_v38, 0.0  ;;  %v296_v54 = vadd.f32 %v292_v36, %v264_v42  ;;  %v261_v48 = vmul.f32 %v13422_v47, %v248_v51 }
  0x9c   :  { %v385_v43 = vadd.f32 %v382_v57, %v364_v59  ;;  %v366_v57 = vmul.f32 %v13448_v11, %v13416_v45 }
  0x9d   :  { %v13495_v62 = vadd.f32 %v13435_v55, %v296_v54  ;;  %v265_v63 = vadd.f32 %v261_v48, %v233_v49  ;;  %11692 = vmatmul.mubr.msk.f32.vlgmr.msra.gmra.mxu0 %vm467_vm1, %v309_v53  ;;  %v421_v6 = vpop.permute.xlu1 %420 }
  0x9e   :  { %v391_v4 = vpop.permute.xlu0 %390  ;;  %11701 = vmatpush3.msra.mxu0 %v13488_v58  ;;  %11708 = vmatprep.mubr.msk.f32.mxu0 %vm13146_vm0, %v18214_v5  ;;  %v433_v13 = vmul.f32 %v421_v6, %v13422_v47 }
  0x9f   :  { %v297_v1 = vadd.f32 %v293_v61, %v265_v63  ;;  %v403_v7 = vmul.f32 %v391_v4, %v13426_v50  ;;  %v415_v10 = vmul.f32 %v391_v4, %v13416_v45  ;;  %11702 = vmatprep.subr.mxu0 %v18214_v5  ;;  %v310_v17 = vmax.f32 %v13495_v62, 0.0 }
  0xa0   :  { %11703 = vmatpush3.msra.mxu0 %v13503_v0 }
  0xa1   :  { %v13521_v19 = vadd.f32 %v13435_v55, %v297_v1  ;;  %v406_v20 = vadd.f32 %v403_v7, %v385_v43  ;;  %v436_v22 = vadd.f32 %v433_v13, %v415_v10  ;;  %11704 = vmatprep.subr.mxu0 %v18214_v5  ;;  %11695 = vmatmul.mubr.msk.f32.vlgmr.msra.gmra.mxu1 %vm467_vm1, %v310_v17  ;;  %v396_v28 = vpop.permute.xlu1 %395 }
  0xa2   :  { %v375_v27 = vpop.permute.xlu0 %374  ;;  %11705 = vmatpush3.msra.mxu0 %v13516_v14  ;;  %11718 = vmatpush3.msra.mxu1 %v13259_v8  ;;  %v404_v42 = vmul.f32 %v396_v28, %v13426_v50  ;;  %v451_v8 = vrot.slane %v13525_v23, 1  ;;  %v416_v44 = vmul.f32 %v396_v28, %v13416_v45 }
  0xa3   :  { %v13535_v30 = vadd.f32 %v13435_v55, %v406_v20  ;;  %v458_v31 = vadd.f32 %v450_v26, %v436_v22  ;;  %v383_v32 = vmul.f32 %v375_v27, %v13422_v47  ;;  %11719 = vmatprep.subr.mxu1 %v18214_v5  ;;  %11697 = vmatprep.mubr.msk.f32.mxu1 %vm13146_vm0, %v18214_v5  ;;  %v311_v33 = vmax.f32 %v13521_v19, 0.0 }
  0xa4   :  { %11720 = vmatpush3.msra.mxu1 %v13266_v9  ;;  %11706 = vmatprep.subr.mxu0 %v18214_v5 }
  0xa5   :  { %v412_v56 = vmax.f32 %v13535_v30, 0.0  ;;  %v461_v35 = vadd.f32 %v13435_v55, %v458_v31  ;;  %v386_v36 = vadd.f32 %v383_v32, %v365_v29  ;;  %11698 = vmatmul.mubr.msk.f32.gmra.mxu1 %vm467_vm1, %v311_v33  ;;  %11721 = vmatprep.subr.mxu1 %v18214_v5  ;;  %v380_v51 = vpop.permute.xlu1 %379  ;;  %v923_v30 = vrot.slane %v311_v33, 1  ;;  %v13656_v33 = vld [vmem:[%s18204_s5 + $0x18] sm:$0xff] }
  0xa6   :  { %v426_v49 = vpop.permute.xlu0 %425  ;;  %11707 = vmatpush3.msra.mxu0 %v13546_v34  ;;  %11722 = vmatpush3.msra.mxu1 %v13288_v12  ;;  %v384_v9 = vmul.f32 %v380_v51, %v13422_v47  ;;  %v452_v12 = vsel %vm447_vm2, %v449_v3, %v451_v8  ;;  %v13704_v51 = vld [vmem:[%s18204_s5 + $0x20] sm:$0xff] }
  0xa7   :  { %v464_v52 = vmax.f32 %v461_v35, 0.0  ;;  %v407_v54 = vadd.f32 %v404_v42, %v386_v36  ;;  %v434_v48 = vmul.f32 %v426_v49, %v13422_v47  ;;  %11709 = vmatmul.mubr.msk.f32.vlgmr.msra.gmra.mxu0 %vm467_vm1, %v412_v56  ;;  %11723 = vmatprep.subr.mxu1 %v18214_v5  ;;  %v13677_v42 = vld [vmem:[%s18204_s5] sm:$0xff]  ;;  %v13697_v49 = vld [vmem:[%s18204_s5 + $0x28] sm:$0xff] }
  0xa8   :  { %11724 = vmatpush3.msra.mxu1 %v13305_v15  ;;  %11725 = vmatprep.mubr.msk.f32.mxu1 %vm13146_vm0, %v18214_v5  ;;  %v387_v11 = vadd.f32 %v384_v9, %v366_v57  ;;  %v78_v9 = vld [vmem:[%s18199_s0 + $0x148] sm:$0xff] }
  0xa9   :  { %v13570_v59 = vadd.f32 %v13435_v55, %v407_v54  ;;  %v437_v60 = vadd.f32 %v434_v48, %v416_v44  ;;  %11726 = vmatmul.mubr.msk.f32.vlgmr.msra.gmra.mxu1 %vm467_vm1, %v464_v52  ;;  %v401_v63 = vpop.permute.xlu1 %400  ;;  %11711 = vmatprep.mubr.msk.f32.mxu0 %vm13146_vm0, %v18214_v5  ;;  %v13690_v44 = vld [vmem:[%s18204_s5 + $0x30] sm:$0xff]  ;;  %v77_v52 = vld [vmem:[%s18199_s0 + $0x140] sm:$0xff]  ;;  %v70_v57 = vld [vmem:[%s18199_s0 + $0x108] sm:$0xff] }
  0xaa   :  { %v225_v61 = vpop.permute.xlu0 %224  ;;  %v405_v6 = vmul.f32 %v401_v63, %v13426_v50  ;;  %11734 = vmatprep.subr.mxu0 %v18214_v5  ;;  %11728 = vmatprep.mubr.msk.f32.mxu1 %vm13146_vm0, %v18214_v5  ;;  %v69_v54 = vld [vmem:[%s18199_s0 + $0x100] sm:$0xff] }
  0xab   :  { %v459_v43 = vadd.f32 %v452_v12, %v437_v60  ;;  %v442_v4 = vmul.f32 %v13426_v50, %v225_v61  ;;  %v413_v15 = vmax.f32 %v13570_v59, 0.0  ;;  %11735 = vmatpush3.msra.mxu0 %v13320_v18  ;;  %11751 = vmatprep.subr.mxu1 %v18214_v5  ;;  %v417_v18 = vmul.f32 %v401_v63, %v13416_v45  ;;  %v73_v48 = vld [vmem:[%s18199_s0 + $0x120] sm:$0xff]  ;;  %v85_v60 = vld [vmem:[%s18199_s0 + $0x188] sm:$0xff] }
  0xac   :  { %v408_v1 = vadd.f32 %v405_v6, %v387_v11  ;;  %11736 = vmatprep.subr.mxu0 %v18214_v5  ;;  %11752 = vmatpush3.msra.mxu1 %v13488_v58  ;;  %v234_v26 = vmul.f32 %v13416_v45, %v225_v61  ;;  %v81_v59 = vld [vmem:[%s18199_s0 + $0x160] sm:$0xff]  ;;  %v83_v61 = vld [vmem:[%s18199_s0 + $0x170] sm:$0xff]  ;;  %v82_v63 = vld [vmem:[%s18199_s0 + $0x168] sm:$0xff] }
  0xad   :  { %v462_v3 = vadd.f32 %v13435_v55, %v459_v43  ;;  %v453_v7 = vrot.slane %v442_v4, 1  ;;  %11712 = vmatmul.mubr.msk.f32.gmra.mxu0 %vm467_vm1, %v413_v15  ;;  %v253_v13 = vpop.permute.xlu1 %252  ;;  %11753 = vmatprep.subr.mxu1 %v18214_v5  ;;  %v84_v12 = vld [vmem:[%s18199_s0 + $0x180] sm:$0xff]  ;;  %v75_v43 = vld [vmem:[%s18199_s0 + $0x130] sm:$0xff]  ;;  %v74_v11 = vld [vmem:[%s18199_s0 + $0x128] sm:$0xff] }
  0xae   :  { %v431_v10 = vpop.permute.xlu0 %430  ;;  %v411_v16 = vadd.f32 %v13435_v55, %v408_v1  ;;  %v262_v22 = vmul.f32 %v13422_v47, %v253_v13  ;;  %11714 = vmatprep.mubr.msk.f32.mxu0 %vm13146_vm0, %v18214_v5  ;;  %11737 = vmatpush3.msra.mxu0 %v13332_v21  ;;  %v87_v4 = vld [vmem:[%s18199_s0 + $0x1a0] sm:$0xff]  ;;  %v79_v6 = vld [vmem:[%s18199_s0 + $0x150] sm:$0xff]  ;;  %v91_v1 = vld [vmem:[%s18199_s0 + $0x1c8] sm:$0xff] }
  0xaf   :  { %v435_v20 = vmul.f32 %v431_v10, %v13422_v47  ;;  %v465_v23 = vmax.f32 %v462_v3, 0.0  ;;  %11738 = vmatprep.subr.mxu0 %v18214_v5  ;;  %11754 = vmatpush3.msra.mxu1 %v13503_v0  ;;  %v454_v28 = vsel %vm447_vm2, %v451_v8, %v453_v7  ;;  %v13684_v8 = vld [vmem:[%s18204_s5 + $0x38] sm:$0xff]  ;;  %v71_v3 = vld [vmem:[%s18199_s0 + $0x110] sm:$0xff]  ;;  %v90_v13 = vld [vmem:[%s18199_s0 + $0x1c0] sm:$0xff] }
  0xb0   :  { %v414_v58 = vmax.f32 %v411_v16, 0.0  ;;  %11739 = vmatpush3.msra.mxu0 %v13345_v24  ;;  %v266_v32 = vadd.f32 %v262_v22, %v234_v26  ;;  %11755 = vmatprep.subr.mxu1 %v18214_v5  ;;  %v86_v7 = vld [vmem:[%s18199_s0 + $0x190] sm:$0xff]  ;;  %v13793_v22 = vld [vmem:[%s18199_s0 + $0x1e8] sm:$0xff]  ;;  %v13802_v26 = vld [vmem:[%s18199_s0 + $0x118] sm:$0x1] }
  0xb1   :  { %v438_v27 = vadd.f32 %v435_v20, %v417_v18  ;;  %11729 = vmatmul.mubr.msk.f32.gmra.mxu1 %vm467_vm1, %v465_v23  ;;  %11740 = vmatprep.subr.mxu0 %v18214_v5  ;;  %v13766_v10 = vld [vmem:[%s18199_s0 + $0x1b0] sm:$0xff]  ;;  %v13781_v18 = vld [vmem:[%s18199_s0 + $0x1a8] sm:$0xff]  ;;  %v13787_v20 = vld [vmem:[%s18199_s0 + $0x138] sm:$0x1] }
  0xb2   :  { %v285_v29 = vpop.permute.xlu0 %284  ;;  %11715 = vmatmul.mubr.msk.f32.gmra.mxu0 %vm467_vm1, %v414_v58  ;;  %11731 = vmatprep.mubr.msk.f32.mxu1 %vm13146_vm0, %v18214_v5  ;;  %v13775_v16 = vld [vmem:[%s18199_s0 + $0x1d0] sm:$0xff]  ;;  %v13796_v23 = vpop.permute.xlu1 %1771 }
  0xb3   :  { %v460_v31 = vadd.f32 %v454_v28, %v438_v27  ;;  %v294_v21 = vmul.f32 %v13426_v50, %v285_v29  ;;  %11741 = vmatpush3.msra.mxu0 %v13353_v25  ;;  %11742 = vmatprep.mubr.msk.f32.mxu0 %vm13146_vm0, %v18214_v5  ;;  %v921_v25 = vrot.slane %v310_v17, 1  ;;  %v13816_v28 = vld [vmem:[%s18199_s0 + $0x158] sm:$0x1] }
  0xb4   :  { %11756 = vmatpush3.msra.mxu1 %v13516_v14  ;;  %11768 = vmatprep.subr.mxu0 %v18214_v5  ;;  %v920_v14 = vrot.slane %v309_v53, 1 }
  0xb5   :  { %v463_v0 = vadd.f32 %v13435_v55, %v460_v31  ;;  %v298_v35 = vadd.f32 %v294_v21, %v266_v32  ;;  %11757 = vmatprep.subr.mxu1 %v18214_v5  ;;  %v924_v53 = vsel %vm447_vm2, %v921_v25, %v923_v30  ;;  %3244 = vperm.xlu1 %13027, %v77_v52  }
  0xb6   :  { %11743 = vmatmul.mubr.msk.f32.vlgmr.msra.gmra.mxu0 %vm467_vm1, %v412_v56  ;;  %11758 = vmatpush3.msra.mxu1 %v13546_v34  ;;  %v922_v17 = vsel %vm447_vm2, %v920_v14, %v921_v25  ;;  %v13663_v34 = vld [vmem:[%s18204_s5 + $0x10] sm:$0xff]  ;;  %v13670_v56 = vld [vmem:[%s18204_s5 + $0x8] sm:$0xff]  ;;  %v13805_v27 = vpop.permute.xlu1 %1727 }
  0xb7   :  { %v466_v24 = vmax.f32 %v463_v0, 0.0  ;;  %v308_v36 = vadd.f32 %v13435_v55, %v298_v35  ;;  %11745 = vmatprep.mubr.msk.f32.mxu0 %vm13146_vm0, %v18214_v5  ;;  %11785 = vmatprep.subr.mxu1 %v18214_v5 }
  0xb8   :  { %11769 = vmatpush3.msra.mxu0 %v13684_v8  ;;  %3293 = vperm.xlu0 %13028, %v81_v59  }
  0xb9   :  { %11732 = vmatmul.mubr.msk.f32.gmra.mxu1 %vm467_vm1, %v466_v24  ;;  %v312_v62 = vmax.f32 %v308_v36, 0.0  ;;  %11770 = vmatprep.subr.mxu0 %v18214_v5  ;;  %v13826_v36 = vpop.permute.xlu0 %1806 }
  0xba   :  { %11759 = vmatprep.mubr.msk.f32.mxu1 %vm13146_vm0, %v18214_v5  ;;  %11746 = vmatmul.mubr.msk.f32.gmra.mxu0 %vm467_vm1, %v413_v15  ;;  %v93_v15 = vld [vmem:[%s18199_s0 + $0x1e0] sm:$0xff]  ;;  %v13819_v29 = vpop.permute.xlu1 %1747 }
  0xbb   :  { %11748 = vmatprep.mubr.msk.f32.mxu0 %vm13146_vm0, %v18214_v5  ;;  %v925_v38 = vrot.slane %v312_v62, 1  ;;  %11771 = vmatpush3.msra.mxu0 %v13690_v44 }
  0xbc   :  { %11772 = vmatprep.subr.mxu0 %v18214_v5  ;;  %3184 = vperm.xlu1 %13027, %v69_v54  }
  0xbd   :  { %11760 = vmatmul.mubr.msk.f32.vlgmr.msra.gmra.mxu1 %vm467_vm1, %v922_v17  ;;  %v926_v19 = vsel %vm447_vm2, %v923_v30, %v925_v38  ;;  %11773 = vmatpush3.msra.mxu0 %v13697_v49  ;;  %v13830_v30 = vpop.permute.xlu0 %1824 }
  0xbe   :  { %11762 = vmatprep.mubr.msk.f32.mxu1 %vm13146_vm0, %v18214_v5  ;;  %11749 = vmatmul.mubr.msk.f32.gmra.mxu0 %vm467_vm1, %v414_v58  ;;  %v13810_v58 = vld [vmem:[%s18199_s0 + $0x1f0] sm:$0xff]  ;;  %v13822_v32 = vpop.permute.xlu1 %1775 }
  0xbf   :  { %11776 = vmatprep.mubr.msk.f32.mxu0 %vm13146_vm0, %v18214_v5  ;;  %11786 = vmatpush3.msra.mxu1 %v13656_v33 }
  0xc0   :  { %11787 = vmatprep.subr.mxu1 %v18214_v5  ;;  %11774 = vmatprep.subr.mxu0 %v18214_v5 }
  0xc1   :  { %11763 = vmatmul.mubr.msk.f32.gmra.mxu1 %vm467_vm1, %v924_v53  ;;  %11775 = vmatpush3.msra.mxu0 %v13704_v51 }
  0xc2   :  { %11765 = vmatprep.mubr.msk.f32.mxu1 %vm13146_vm0, %v18214_v5  ;;  %11788 = vmatpush3.msra.mxu1 %v13663_v34  ;;  %v13824_v24 = vpop.permute.xlu1 %1731 }
  0xc3   :  { %11789 = vmatprep.subr.mxu1 %v18214_v5  ;;  %11802 = vmatprep.subr.mxu0 %v18214_v5 }
  0xc4   :  { %11790 = vmatpush3.msra.mxu1 %v13670_v56  ;;  %3212 = vperm.xlu1 %13027, %v73_v48  }
  0xc5   :  { %11766 = vmatmul.mubr.msk.f32.gmra.mxu1 %vm467_vm1, %v926_v19  ;;  %11791 = vmatprep.subr.mxu1 %v18214_v5 }
  0xc6   :  { %11793 = vmatprep.mubr.msk.f32.mxu1 %vm13146_vm0, %v18214_v5  ;;  %11792 = vmatpush3.msra.mxu1 %v13677_v42  ;;  %v13828_v62 = vpop.permute.xlu1 %1828 }
  0xc7   :  { %11819 = vmatprep.subr.mxu1 %v18214_v5  ;;  %3314 = vperm.xlu0 %13028, %v84_v12  }
  0xc8   :  { %3249 = vperm.xlu1 %13027, %v78_v9  }
  0xca   :  { %v13832_v53 = vpop.permute.xlu1 %1814 }
  0xcb   :  { %3298 = vperm.xlu0 %13028, %v82_v63  }
  0xcc   :  { %3189 = vperm.xlu1 %13027, %v70_v57  }
  0xcf   :  { %3217 = vperm.xlu0 %13028, %v74_v11  }
  0xd0   :  { %3319 = vperm.xlu1 %13027, %v85_v60  }
  0xd3   :  { %3254 = vperm.xlu0 %13028, %v79_v6  }
  0xd4   :  { %3303 = vperm.xlu1 %13027, %v83_v61  }
  0xd7   :  { %3194 = vperm.xlu0 %13028, %v71_v3  }
  0xd8   :  { %3222 = vperm.xlu1 %13027, %v75_v43  }
  0xdb   :  { %3324 = vperm.xlu0 %13028, %v86_v7  }
  0xdc   :  { %3344 = vperm.xlu1 %13027, %v87_v4  }
  0xdf   :  { %3365 = vperm.xlu0 %13028, %v90_v13  }
  0xe0   :  { %3395 = vperm.xlu1 %13027, %v93_v15  }
  0xe3   :  { %3349 = vperm.xlu0 %13028, %v13781_v18  }
  0xe4   :  { %3370 = vperm.xlu1 %13027, %v91_v1  }
  0xe7   :  { %3400 = vperm.xlu0 %13028, %v13793_v22  }
  0xe8   :  { %3354 = vperm.xlu1 %13027, %v13766_v10  }
  0xeb   :  { %3199 = vperm.xlu0 %13028, %v13802_v26  }
  0xec   :  { %3375 = vperm.xlu1 %13027, %v13775_v16  }
  0xef   :  { %3405 = vperm.xlu0 %13028, %v13810_v58  }
  0xf0   :  { %3227 = vperm.xlu1 %13027, %v13787_v20  }
  0xf3   :  { %3259 = vperm.xlu0 %13028, %v13816_v28  }
  0xf4   :  { %13029 = vset.pattern.permute.xlu1 %v18212_v37 }
  0xf5   :  { %4743 = vperm.xlu1 %13029, %v77_v52  }
  0xf7   :  { %13030 = vset.pattern.permute.xlu0 %v18212_v37 }
  0xf8   :  { %4778 = vperm.xlu0 %13030, %v81_v59  }
  0xf9   :  { %4699 = vperm.xlu1 %13029, %v69_v54   ;;  %v13834_v54 = vpop.permute.xlu0 %1810 }
  0xfc   :  { %4796 = vperm.xlu0 %13030, %v84_v12  }
  0xfd   :  { %4719 = vperm.xlu1 %13029, %v73_v48  }
 0x100   :  { %4782 = vperm.xlu0 %13030, %v82_v63  }
 0x101   :  { %4747 = vperm.xlu1 %13029, %v78_v9   ;;  %v13836_v9 = vpop.permute.xlu1 %1755 }
 0x104   :  { %4723 = vperm.xlu0 %13030, %v74_v11   ;;  %v13844_v11 = vpop.permute.xlu0 %1751 }
 0x105   :  { %4703 = vperm.xlu1 %13029, %v70_v57  }
 0x108   :  { %4751 = vperm.xlu0 %13030, %v79_v6  }
 0x109   :  { %4800 = vperm.xlu1 %13029, %v85_v60   ;;  %v13841_v60 = vld [vmem:[%s18203_s4] ss:$0 sm:$0xff] }
 0x10c   :  { %4707 = vperm.xlu0 %13030, %v71_v3  }
 0x10d   :  { %4786 = vperm.xlu1 %13029, %v83_v61  }
 0x110   :  { %4804 = vperm.xlu0 %13030, %v86_v7  }
 0x111   :  { %4727 = vperm.xlu1 %13029, %v75_v43  }
 0x114   :  { %4841 = vperm.xlu0 %13030, %v90_v13  }
 0x115   :  { %4823 = vperm.xlu1 %13029, %v87_v4  }
 0x118   :  { %4827 = vperm.xlu0 %13030, %v13781_v18  }
 0x119   :  { %4868 = vperm.xlu1 %13029, %v93_v15   ;;  %v13847_v15 = vpop.permute.xlu1 %1851 }
 0x11c   :  { %4872 = vperm.xlu0 %13030, %v13793_v22  }
 0x11d   :  { %4845 = vperm.xlu1 %13029, %v91_v1  }
 0x120   :  { %4711 = vperm.xlu0 %13030, %v13802_v26  }
 0x121   :  { %4831 = vperm.xlu1 %13029, %v13766_v10   ;;  %v13855_v10 = vpop.permute.xlu0 %1779 }
 0x124   :  { %4876 = vperm.xlu0 %13030, %v13810_v58   ;;  %v178_v58 = vld [vmem:[%s18204_s5 + $0x50] sm:$0xff] }
 0x125   :  { %4849 = vperm.xlu1 %13029, %v13775_v16   ;;  %v13860_v16 = vpop.permute.xlu1 %1896 }
 0x128   :  { %4755 = vperm.xlu0 %13030, %v13816_v28  }
 0x129   :  { %4731 = vperm.xlu1 %13029, %v13787_v20  }
 0x12c   :  { %13032 = vset.pattern.permute.xlu0 %v13144_v2 }
 0x12d   :  { %13031 = vset.pattern.permute.xlu1 %v13144_v2  ;;  %v14015_v2 = vld [vmem:[%s18202_s3 + $0x18] sm:$0xff] }
 0x14d   :  { %v543_v31 = vpop.f32.mrf.mxu0 }
 0x14f   :  { %v11676_v21 = vpop.f32.mrf.mxu0 }
 0x151   :  { %v548_v0 = vpop.f32.mrf.mxu0 }
 0x153   :  { %v11679_v35 = vpop.f32.mrf.mxu0 }
 0x157   :  { %v553_v25 = vpop.f32.mrf.mxu0 }
 0x159   :  { %v11682_v14 = vpop.f32.mrf.mxu0 }
 0x15d   :  { %v632_v17 = vpop.f32.mrf.mxu0 }
 0x15e   :  { %v633_v57 = vadd.f32 %v632_v17, %v543_v31 }
 0x15f   :  { %v11693_v38 = vpop.f32.mrf.mxu0 }
 0x161   :  { %v637_v19 = vpop.f32.mrf.mxu1 }
 0x162   :  { %v638_v3 = vadd.f32 %v637_v19, %v548_v0 }
 0x163   :  { %v11696_v52 = vpop.f32.mrf.mxu1 }
 0x164   :  { %v13881_v52 = vpop.permute.xlu1 %1873 }
 0x165   :  { %v642_v48 = vpop.f32.mrf.mxu1 }
 0x166   :  { %v643_v18 = vadd.f32 %v642_v48, %v553_v25 }
 0x167   :  { %v11699_v59 = vpop.f32.mrf.mxu1  ;;  %v721_v12 = vpop.f32.mrf.mxu0 }
 0x168   :  { %v735_v61 = vadd.f32 %v721_v12, %v633_v57  ;;  %v13889_v59 = vld [vmem:[%s18199_s0 + $0x200] sm:$0xff] }
 0x169   :  { %v11710_v63 = vpop.f32.mrf.mxu0  ;;  %v825_v43 = vpop.f32.mrf.mxu1 }
 0x16a   :  { %v744_v4 = vadd.f32 %v13841_v60, %v735_v61 }
 0x16b   :  { %v11727_v6 = vpop.f32.mrf.mxu1 }
 0x16c   :  { %v747_v1 = vmax.f32 %v744_v4, 0.0  ;;  %v179_v4 = vld [vmem:[%s18204_s5 + $0x58] sm:$0xff] }
 0x16d   :  { %v726_v7 = vpop.f32.mrf.mxu0 }
 0x16e   :  { %v736_v13 = vadd.f32 %v726_v7, %v638_v3  ;;  %11794 = vmatmul.mubr.msk.f32.vlgmr.msra.gmra.mxu1 %vm467_vm1, %v747_v1  ;;  %v1200_v26 = vrot.slane %v747_v1, 1 }
 0x16f   :  { %v11713_v31 = vpop.f32.mrf.mxu0  ;;  %11796 = vmatprep.mubr.msk.f32.mxu1 %vm13146_vm0, %v18214_v5  ;;  %11820 = vmatpush3.msra.mxu1 %v13684_v8 }
 0x170   :  { %v745_v21 = vadd.f32 %v13841_v60, %v736_v13  ;;  %11821 = vmatprep.subr.mxu1 %v18214_v5  ;;  %v13905_v31 = vpop.permute.xlu1 %1859 }
 0x171   :  { %v830_v0 = vpop.f32.mrf.mxu1  ;;  %11822 = vmatpush3.msra.mxu1 %v13690_v44  ;;  %v13875_v44 = vld [vmem:[%s18199_s0 + $0x240] sm:$0xff] }
 0x172   :  { %v748_v35 = vmax.f32 %v745_v21, 0.0  ;;  %v731_v14 = vpop.f32.mrf.mxu0  ;;  %11823 = vmatprep.subr.mxu1 %v18214_v5  ;;  %6219 = vperm.xlu1 %13031, %v13875_v44  }
 0x173   :  { %v737_v17 = vadd.f32 %v731_v14, %v643_v18  ;;  %v11730_v38 = vpop.f32.mrf.mxu1  ;;  %11824 = vmatpush3.msra.mxu1 %v13697_v49  ;;  %v13879_v49 = vpop.permute.xlu0 %1735 }
 0x174   :  { %11797 = vmatmul.mubr.msk.f32.gmra.mxu1 %vm467_vm1, %v748_v35  ;;  %v11716_v19 = vpop.f32.mrf.mxu0  ;;  %11825 = vmatprep.subr.mxu1 %v18214_v5  ;;  %v1201_v48 = vrot.slane %v748_v35, 1  ;;  %v177_v38 = vld [vmem:[%s18204_s5 + $0x48] sm:$0xff] }
 0x175   :  { %v746_v22 = vadd.f32 %v13841_v60, %v737_v17  ;;  %11799 = vmatprep.mubr.msk.f32.mxu1 %vm13146_vm0, %v18214_v5  ;;  %11826 = vmatpush3.msra.mxu1 %v13704_v51 }
 0x176   :  { %v905_v20 = vpop.f32.mrf.mxu0  ;;  %11853 = vmatprep.subr.mxu1 %v18214_v5  ;;  %v13900_v13 = vsel %vm447_vm2, %v1200_v26, %v1201_v48  ;;  %6159 = vperm.xlu1 %13031, %v13889_v59  }
 0x177   :  { %v749_v25 = vmax.f32 %v746_v22, 0.0  ;;  %v906_v63 = vadd.f32 %v905_v20, %v825_v43  ;;  %v13903_v1 = vpop.permute.xlu0 %1832  ;;  %v13915_v43 = vld [vmem:[%s18199_s0 + $0x220] sm:$0xff] }
 0x178   :  { %v11744_v51 = vpop.f32.mrf.mxu0 }
 0x179   :  { %v835_v57 = vpop.f32.mrf.mxu1  ;;  %11800 = vmatmul.mubr.msk.f32.gmra.mxu1 %vm467_vm1, %v749_v25  ;;  %v13897_v6 = vrot.slane %v749_v25, 1 }
 0x17a   :  { %v910_v61 = vpop.f32.mrf.mxu0  ;;  %11827 = vmatprep.mubr.msk.f32.mxu1 %vm13146_vm0, %v18214_v5  ;;  %6187 = vperm.xlu1 %13031, %v13915_v43  }
 0x17b   :  { %v11733_v12 = vpop.f32.mrf.mxu1  ;;  %v911_v14 = vadd.f32 %v910_v61, %v830_v0  ;;  %v13927_v20 = vsel %vm447_vm2, %v1201_v48, %v13897_v6  ;;  %v13937_v28 = vpop.permute.xlu0 %1869 }
 0x17c   :  { %v11747_v3 = vpop.f32.mrf.mxu0  ;;  %v176_v12 = vld [vmem:[%s18204_s5 + $0x40] sm:$0xff]  ;;  %v13946_v61 = vpop.permute.xlu1 %1877 }
 0x17d   :  { %v999_v7 = vpop.f32.mrf.mxu1  ;;  %11828 = vmatmul.mubr.msk.f32.vlgmr.msra.gmra.mxu1 %vm467_vm1, %v13900_v13 }
 0x17e   :  { %v1013_v21 = vadd.f32 %v999_v7, %v906_v63  ;;  %v915_v18 = vpop.f32.mrf.mxu0  ;;  %11830 = vmatprep.mubr.msk.f32.mxu1 %vm13146_vm0, %v18214_v5  ;;  %11854 = vmatpush3.msra.mxu1 %v179_v4  ;;  %v1742_v7 = vmul.f32 %v13805_v27, %v13416_v45 }
 0x17f   :  { %v11761_v35 = vpop.f32.mrf.mxu1  ;;  %11855 = vmatprep.subr.mxu1 %v18214_v5  ;;  %v916_v48 = vadd.f32 %v915_v18, %v835_v57 }
 0x180   :  { %v1016_v17 = vadd.f32 %v13841_v60, %v1013_v21  ;;  %v11750_v19 = vpop.f32.mrf.mxu0  ;;  %11856 = vmatpush3.msra.mxu1 %v178_v58  ;;  %v1762_v21 = vmul.f32 %v13819_v29, %v13422_v47  ;;  %v1786_v29 = vmul.f32 %v13796_v23, %v13426_v50 }
 0x181   :  { %v1004_v22 = vpop.f32.mrf.mxu1  ;;  %11831 = vmatmul.mubr.msk.f32.gmra.mxu1 %vm467_vm1, %v13927_v20  ;;  %11857 = vmatprep.subr.mxu1 %v18214_v5  ;;  %v1743_v19 = vmul.f32 %v13824_v24, %v13416_v45 }
 0x182   :  { %v13930_v0 = vmax.f32 %v1016_v17, 0.0  ;;  %v1014_v25 = vadd.f32 %v1004_v22, %v911_v14  ;;  %11833 = vmatprep.mubr.msk.f32.mxu1 %vm13146_vm0, %v18214_v5  ;;  %11858 = vmatpush3.msra.mxu1 %v177_v38  ;;  %v13979_v22 = vpop.permute.xlu0 %1855 }
 0x183   :  { %v11764_v51 = vpop.f32.mrf.mxu1  ;;  %11859 = vmatprep.subr.mxu1 %v18214_v5 }
 0x184   :  { %v1017_v26 = vadd.f32 %v13841_v60, %v1014_v25  ;;  %11777 = vmatmul.mubr.msk.f32.vlgmr.msra.gmra.mxu0 %vm467_vm1, %v13930_v0  ;;  %11860 = vmatpush3.msra.mxu1 %v176_v12  ;;  %v13981_v25 = vpop.permute.xlu1 %1759 }
 0x185   :  { %11803 = vmatpush3.msra.mxu0 %v179_v4  ;;  %v1009_v63 = vpop.f32.mrf.mxu1  ;;  %11779 = vmatprep.mubr.msk.f32.mxu0 %vm13146_vm0, %v18214_v5  ;;  %v1466_v4 = vrot.slane %v13930_v0, 1 }
 0x186   :  { %v13950_v3 = vmax.f32 %v1017_v26, 0.0  ;;  %v1015_v57 = vadd.f32 %v1009_v63, %v916_v48  ;;  %11804 = vmatprep.subr.mxu0 %v18214_v5  ;;  %11834 = vmatmul.mubr.msk.f32.gmra.mxu1 %vm467_vm1, %v13897_v6  ;;  %v13992_v48 = vld [vmem:[%s18199_s0 + $0x260] sm:$0xff] }
 0x187   :  { %v11767_v18 = vpop.f32.mrf.mxu1  ;;  %11805 = vmatpush3.msra.mxu0 %v178_v58  ;;  %11861 = vmatprep.mubr.msk.f32.mxu1 %vm13146_vm0, %v18214_v5 }
 0x188   :  { %v1467_v35 = vrot.slane %v13950_v3, 1  ;;  %v1018_v14 = vadd.f32 %v13841_v60, %v1015_v57  ;;  %11780 = vmatmul.mubr.msk.f32.gmra.mxu0 %vm467_vm1, %v13950_v3  ;;  %11806 = vmatprep.subr.mxu0 %v18214_v5  ;;  %v1766_v60 = vadd.f32 %v1762_v21, %v1742_v7  ;;  %v14004_v57 = vpop.permute.xlu1 %3244  ;;  %v1744_v7 = vmul.f32 %v13879_v49, %v13416_v45  ;;  %v1901_v18 = vpop.permute.xlu0 %1900 }
 0x189   :  { %11807 = vmatpush3.msra.mxu0 %v177_v38  ;;  %11782 = vmatprep.mubr.msk.f32.mxu0 %vm13146_vm0, %v18214_v5  ;;  %v1763_v38 = vmul.f32 %v13844_v11, %v13422_v47  ;;  %v1764_v21 = vmul.f32 %v13836_v9, %v13422_v47  ;;  %v14024_v9 = vmul.f32 %v13824_v24, %v13426_v50 }
 0x18a   :  { %v13969_v58 = vmax.f32 %v1018_v14, 0.0  ;;  %v1468_v17 = vsel %vm447_vm2, %v1466_v4, %v1467_v35  ;;  %11808 = vmatprep.subr.mxu0 %v18214_v5  ;;  %11887 = vmatprep.subr.mxu1 %v18214_v5  ;;  %v1790_v26 = vadd.f32 %v1786_v29, %v1766_v60  ;;  %v1913_v4 = vmul.f32 %v13805_v27, %v13426_v50  ;;  %v14035_v14 = vld [vmem:[%s18202_s3 + $0x10] sm:$0xff] }
 0x18b   :  { %11862 = vmatmul.mubr.msk.f32.vlgmr.msra.gmra.mxu1 %vm467_vm1, %v1468_v17  ;;  %11809 = vmatpush3.msra.mxu0 %v176_v12  ;;  %v1787_v12 = vmul.f32 %v13822_v32, %v13426_v50  ;;  %v1767_v63 = vadd.f32 %v1763_v38, %v1743_v19  ;;  %v1788_v27 = vmul.f32 %v13855_v10, %v13426_v50  ;;  %v1922_v38 = vrot.slane %v14024_v9, 1 }
 0x18c   :  { %v1469_v51 = vrot.slane %v13969_v58, 1  ;;  %11783 = vmatmul.mubr.msk.f32.gmra.mxu0 %vm467_vm1, %v13969_v58  ;;  %11864 = vmatprep.mubr.msk.f32.mxu1 %vm13146_vm0, %v18214_v5  ;;  %v1768_v24 = vadd.f32 %v1764_v21, %v1744_v7  ;;  %v1892_v29 = vmul.f32 %v13937_v28, %v13416_v45  ;;  %v1907_v17 = vmul.f32 %v13860_v16, %v13422_v47  ;;  %v14051_v60 = vpop.permute.xlu1 %3184  ;;  %v14080_v7 = vld [vmem:[%s18202_s3] sm:$0xff] }
 0x18d   :  { %11810 = vmatprep.mubr.msk.f32.mxu0 %vm13146_vm0, %v18214_v5  ;;  %11836 = vmatprep.subr.mxu0 %v18214_v5  ;;  %v1921_v19 = vrot.slane %v1913_v4, 1  ;;  %v1802_v16 = vmul.f32 %v13796_v23, %v13416_v45 }
 0x18e   :  { %v1470_v11 = vsel %vm447_vm2, %v1467_v35, %v1469_v51  ;;  %6268 = vperm.xlu0 %13032, %v13992_v48   ;;  %11888 = vmatpush3.msra.mxu1 %v14015_v2  ;;  %v1791_v35 = vadd.f32 %v1787_v12, %v1767_v63  ;;  %v14073_v12 = vpop.permute.xlu0 %1739  ;;  %v1792_v63 = vadd.f32 %v1788_v27, %v1768_v24 }
 0x18f   :  { %11865 = vmatmul.mubr.msk.f32.gmra.mxu1 %vm467_vm1, %v1470_v11  ;;  %11889 = vmatprep.subr.mxu1 %v18214_v5  ;;  %v14056_v11 = vmul.f32 %v13879_v49, %v13426_v50  ;;  %v1910_v23 = vadd.f32 %v1907_v17, %v1892_v29  ;;  %v1923_v4 = vsel %vm447_vm2, %v1921_v19, %v1922_v38  ;;  %v14113_v29 = vld [vmem:[%s18201_s2] ss:$0 sm:$0xff] }
 0x190   :  { %11811 = vmatmul.mubr.msk.f32.vlgmr.msra.gmra.mxu0 %vm467_vm1, %v13900_v13  ;;  %11867 = vmatprep.mubr.msk.f32.mxu1 %vm13146_vm0, %v18214_v5  ;;  %v14030_v13 = vadd.f32 %v13435_v55, %v1790_v26  ;;  %v14071_v49 = vadd.f32 %v13435_v55, %v1791_v35  ;;  %v1893_v55 = vmul.f32 %v13881_v52, %v13416_v45  ;;  %v14104_v27 = vpop.permute.xlu1 %3212 }
 0x191   :  { %11837 = vmatpush3.msra.mxu0 %v13656_v33  ;;  %11890 = vmatpush3.msra.mxu1 %v14035_v14  ;;  %v1924_v21 = vrot.slane %v14056_v11, 1  ;;  %v1835_v24 = vmul.f32 %v13830_v30, %v13426_v50  ;;  %v14116_v17 = vadd.f32 %v14113_v29, %v1792_v63  ;;  %v1818_v19 = vmul.f32 %v13834_v54, %v13422_v47  ;;  %v13055_v54 = vld [vmem:[%s18202_s3 + $0x38] sm:$0xff] }
 0x192   :  { %11838 = vmatprep.subr.mxu0 %v18214_v5  ;;  %11813 = vmatprep.mubr.msk.f32.mxu0 %vm13146_vm0, %v18214_v5  ;;  %v1798_v26 = vmax.f32 %v14030_v13, 0.0  ;;  %v1799_v35 = vmax.f32 %v14071_v49, 0.0  ;;  %v1931_v11 = vadd.f32 %v1923_v4, %v1910_v23  ;;  %v1894_v63 = vmul.f32 %v13946_v61, %v13416_v45  ;;  %v13061_v13 = vld [vmem:[%s18202_s3 + $0x48] sm:$0xff] }
 0x193   :  { %11839 = vmatpush3.msra.mxu0 %v13663_v34  ;;  %11868 = vmatmul.mubr.msk.f32.gmra.mxu1 %vm467_vm1, %v1469_v51  ;;  %v14061_v51 = vld [vmem:[%s18202_s3 + $0x8] sm:$0xff] }
 0x194   :  { %11891 = vmatprep.subr.mxu1 %v18214_v5  ;;  %11814 = vmatmul.mubr.msk.f32.gmra.mxu0 %vm467_vm1, %v13927_v20  ;;  %v1817_v20 = vmul.f32 %v13826_v36, %v13422_v47  ;;  %v1908_v36 = vmul.f32 %v1901_v18, %v13422_v47  ;;  %v1916_v18 = vmul.f32 %v14073_v12, %v13426_v50  ;;  %v14147_v4 = vpop.permute.xlu1 %3249 }
 0x195   :  { %11892 = vmatpush3.msra.mxu1 %v14061_v51  ;;  %11840 = vmatprep.subr.mxu0 %v18214_v5 }
 0x196   :  { %11893 = vmatprep.subr.mxu1 %v18214_v5  ;;  %11841 = vmatpush3.msra.mxu0 %v13670_v56  ;;  %v1820_v9 = vadd.f32 %v1817_v20, %v1802_v16  ;;  %v1911_v16 = vadd.f32 %v1908_v36, %v1893_v55  ;;  %v1905_v20 = vpop.permute.xlu0 %1904  ;;  %v1926_v23 = vrot.slane %v1916_v18, 1  ;;  %v1934_v55 = vadd.f32 %v14113_v29, %v1931_v11 }
 0x197   :  { %11894 = vmatpush3.msra.mxu1 %v14080_v7  ;;  %11895 = vmatprep.mubr.msk.f32.mxu1 %vm13146_vm0, %v18214_v5  ;;  %v1909_v37 = vmul.f32 %v1905_v20, %v13422_v47  ;;  %v1836_v11 = vmul.f32 %v13828_v62, %v13426_v50 }
 0x198   :  { %11816 = vmatprep.mubr.msk.f32.mxu0 %vm13146_vm0, %v18214_v5  ;;  %11896 = vmatmul.mubr.msk.f32.vlgmr.msra.gmra.mxu1 %vm467_vm1, %v1798_v26  ;;  %v1838_v18 = vadd.f32 %v1835_v24, %v1820_v9  ;;  %v1745_v9 = vmul.f32 %v14073_v12, %v13416_v45  ;;  %v1765_v24 = vmul.f32 %v13981_v25, %v13422_v47 }
 0x199   :  { %11817 = vmatmul.mubr.msk.f32.gmra.mxu0 %vm467_vm1, %v13897_v6  ;;  %11842 = vmatprep.subr.mxu0 %v18214_v5  ;;  %v1803_v6 = vmul.f32 %v13822_v32, %v13416_v45  ;;  %v1925_v32 = vsel %vm447_vm2, %v1922_v38, %v1924_v21  ;;  %v1800_v38 = vmax.f32 %v14116_v17, 0.0  ;;  %v1862_v25 = vmul.f32 %v13847_v15, %v13422_v47 }
 0x19a   :  { %11843 = vmatpush3.msra.mxu0 %v13677_v42  ;;  %11898 = vmatprep.mubr.msk.f32.mxu1 %vm13146_vm0, %v18214_v5  ;;  %v1932_v36 = vadd.f32 %v1925_v32, %v1911_v16  ;;  %v1804_v16 = vmul.f32 %v13855_v10, %v13416_v45  ;;  %v1927_v32 = vsel %vm447_vm2, %v1924_v21, %v1926_v23  ;;  %v13057_v10 = vld [vmem:[%s18202_s3 + $0x28] sm:$0xff] }
 0x19b   :  { %11844 = vmatprep.mubr.msk.f32.mxu0 %vm13146_vm0, %v18214_v5  ;;  %11870 = vmatprep.subr.mxu0 %v18214_v5  ;;  %v1821_v20 = vadd.f32 %v1818_v19, %v1803_v6  ;;  %v1847_v21 = vmul.f32 %v13830_v30, %v13416_v45  ;;  %v1841_v12 = vadd.f32 %v14113_v29, %v1838_v18 }
 0x19c   :  { %11899 = vmatmul.mubr.msk.f32.gmra.mxu1 %vm467_vm1, %v1799_v35  ;;  %11921 = vmatprep.subr.mxu1 %v18214_v5  ;;  %v1935_v6 = vadd.f32 %v14113_v29, %v1932_v36  ;;  %v1837_v23 = vmul.f32 %v13903_v1, %v13426_v50  ;;  %v1769_v36 = vadd.f32 %v1765_v24, %v1745_v9 }
 0x19d   :  { %11845 = vmatmul.mubr.msk.f32.vlgmr.msra.gmra.mxu0 %vm467_vm1, %v13930_v0  ;;  %11922 = vmatpush3.msra.mxu1 %v13055_v54  ;;  %v13056_v0 = vld [vmem:[%s18202_s3 + $0x30] sm:$0xff]  ;;  %v1839_v30 = vadd.f32 %v1836_v11, %v1821_v20  ;;  %v1865_v11 = vadd.f32 %v1862_v25, %v1847_v21  ;;  %v1863_v9 = vmul.f32 %v13979_v22, %v13422_v47 }
 0x19e   :  { %11871 = vmatpush3.msra.mxu0 %v13055_v54  ;;  %11923 = vmatprep.subr.mxu1 %v18214_v5  ;;  %v1912_v54 = vadd.f32 %v1909_v37, %v1894_v63  ;;  %v1819_v37 = vmul.f32 %v13832_v53, %v13422_v47  ;;  %v1784_v53 = vpop.permute.xlu0 %1783  ;;  %v13058_v63 = vld [vmem:[%s18202_s3 + $0x20] sm:$0xff]  ;;  %v1938_v18 = vmax.f32 %v1935_v6, 0.0  ;;  %v1849_v22 = vmul.f32 %v13903_v1, %v13416_v45  ;;  %v13060_v25 = vld [vmem:[%s18202_s3 + $0x50] sm:$0xff] }
 0x19f   :  { %11872 = vmatprep.subr.mxu0 %v18214_v5  ;;  %11901 = vmatprep.mubr.msk.f32.mxu1 %vm13146_vm0, %v18214_v5 }
 0x1a0   :  { %11924 = vmatpush3.msra.mxu1 %v13056_v0  ;;  %11847 = vmatprep.mubr.msk.f32.mxu0 %vm13146_vm0, %v18214_v5  ;;  %v1933_v19 = vadd.f32 %v1927_v32, %v1912_v54  ;;  %v1822_v15 = vadd.f32 %v1819_v37, %v1804_v16  ;;  %v1844_v54 = vmax.f32 %v1841_v12, 0.0  ;;  %v1880_v16 = vmul.f32 %v13937_v28, %v13426_v50 }
 0x1a1   :  { %11873 = vmatpush3.msra.mxu0 %v13056_v0  ;;  %11902 = vmatmul.mubr.msk.f32.gmra.mxu1 %vm467_vm1, %v1800_v38  ;;  %v1789_v0 = vmul.f32 %v1784_v53, %v13426_v50  ;;  %v1848_v37 = vmul.f32 %v13828_v62, %v13416_v45  ;;  %v1881_v53 = vmul.f32 %v13881_v52, %v13426_v50 }
 0x1a2   :  { %11925 = vmatprep.subr.mxu1 %v18214_v5  ;;  %11848 = vmatmul.mubr.msk.f32.gmra.mxu0 %vm467_vm1, %v13950_v3  ;;  %v1937_v3 = vmax.f32 %v1934_v55, 0.0  ;;  %v14187_v55 = vpop.permute.xlu1 %3189  ;;  %v14195_v20 = vpop.permute.xlu0 %3293  ;;  %v1936_v32 = vadd.f32 %v14113_v29, %v1933_v19  ;;  %v1840_v28 = vadd.f32 %v1837_v23, %v1822_v15  ;;  %v1883_v21 = vadd.f32 %v1880_v16, %v1865_v11  ;;  %v13062_v15 = vld [vmem:[%s18202_s3 + $0x40] sm:$0xff] }
 0x1a3   :  { %11926 = vmatpush3.msra.mxu1 %v13057_v10  ;;  %11874 = vmatprep.subr.mxu0 %v18214_v5  ;;  %v1793_v24 = vadd.f32 %v1789_v0, %v1769_v36  ;;  %v1866_v6 = vadd.f32 %v1863_v9, %v1848_v37  ;;  %v1864_v12 = vmul.f32 %v13905_v31, %v13422_v47  ;;  %v2386_v19 = vrot.slane %v1798_v26, 1 }
 0x1a4   :  { %11927 = vmatprep.subr.mxu1 %v18214_v5  ;;  %11875 = vmatpush3.msra.mxu0 %v13057_v10  ;;  %v13059_v10 = vld [vmem:[%s18202_s3 + $0x58] sm:$0xff]  ;;  %v2387_v47 = vrot.slane %v1799_v35, 1  ;;  %v14243_v31 = vadd.f32 %v14113_v29, %v1883_v21  ;;  %v1882_v35 = vmul.f32 %v13946_v61, %v13426_v50  ;;  %v2389_v50 = vrot.slane %v1800_v38, 1  ;;  %v14337_v21 = vld [vmem:[%s18199_s0 + $0x228] sm:$0xff] }
 0x1a5   :  { %11928 = vmatpush3.msra.mxu1 %v13058_v63  ;;  %11929 = vmatprep.mubr.msk.f32.mxu1 %vm13146_vm0, %v18214_v5  ;;  %v1797_v52 = vadd.f32 %v14113_v29, %v1793_v24  ;;  %v1884_v26 = vadd.f32 %v1881_v53, %v1866_v6  ;;  %v1867_v49 = vadd.f32 %v1864_v12, %v1849_v22  ;;  %v14329_v22 = vld [vmem:[%s18199_s0 + $0x288] sm:$0xff]  ;;  %v14379_v53 = vld [vmem:[%s18199_s0 + $0x210] sm:$0xff] }
 0x1a6   :  { %11850 = vmatprep.mubr.msk.f32.mxu0 %vm13146_vm0, %v18214_v5  ;;  %11930 = vmatmul.mubr.msk.f32.vlgmr.msra.gmra.mxu1 %vm467_vm1, %v1937_v3  ;;  %v14215_v62 = vpop.permute.xlu1 %3319  ;;  %v1939_v3 = vmax.f32 %v1936_v32, 0.0  ;;  %v14231_v1 = vpop.permute.xlu0 %3314  ;;  %v2388_v36 = vsel %vm447_vm2, %v2386_v19, %v2387_v47  ;;  %v2390_v16 = vsel %vm447_vm2, %v2387_v47, %v2389_v50  ;;  %v14287_v32 = vld [vmem:[%s18199_s0 + $0x280] sm:$0xff] }
 0x1a7   :  { %11851 = vmatmul.mubr.msk.f32.gmra.mxu0 %vm467_vm1, %v13969_v58  ;;  %11876 = vmatprep.subr.mxu0 %v18214_v5  ;;  %v1842_v58 = vadd.f32 %v14113_v29, %v1839_v30  ;;  %v1801_v23 = vmax.f32 %v1797_v52, 0.0  ;;  %v1887_v17 = vadd.f32 %v14113_v29, %v1884_v26  ;;  %v1885_v38 = vadd.f32 %v1882_v35, %v1867_v49  ;;  %v117_v52 = vld [vmem:[%s18199_s0 + $0x2c0] sm:$0xff]  ;;  %v115_v26 = vld [vmem:[%s18199_s0 + $0x2a8] sm:$0xff]  ;;  %v116_v35 = vld [vmem:[%s18199_s0 + $0x2b0] sm:$0xff] }
 0x1a8   :  { %11877 = vmatpush3.msra.mxu0 %v13058_v63  ;;  %11932 = vmatprep.mubr.msk.f32.mxu1 %vm13146_vm0, %v18214_v5  ;;  %v1843_v63 = vadd.f32 %v14113_v29, %v1840_v28 }
 0x1a9   :  { %11878 = vmatprep.mubr.msk.f32.mxu0 %vm13146_vm0, %v18214_v5  ;;  %11904 = vmatprep.subr.mxu0 %v18214_v5  ;;  %v1845_v45 = vmax.f32 %v1842_v58, 0.0  ;;  %v2391_v11 = vrot.slane %v1801_v23, 1  ;;  %v1888_v9 = vadd.f32 %v14113_v29, %v1885_v38  ;;  %v1890_v24 = vmax.f32 %v1887_v17, 0.0  ;;  %v14315_v29 = vld [vmem:[%s18199_s0 + $0x268] sm:$0xff]  ;;  %v103_v17 = vld [vmem:[%s18199_s0 + $0x238] sm:$0x1] }
 0x1aa   :  { %11933 = vmatmul.mubr.msk.f32.gmra.mxu1 %vm467_vm1, %v1938_v18  ;;  %11955 = vmatprep.subr.mxu1 %v18214_v5  ;;  %v14252_v30 = vpop.permute.xlu1 %3303  ;;  %v1846_v0 = vmax.f32 %v1843_v63, 0.0  ;;  %v14265_v61 = vpop.permute.xlu0 %3298  ;;  %v14272_v18 = vld [vmem:[%s18199_s0 + $0x248] sm:$0xff]  ;;  %v122_v38 = vld [vmem:[%s18199_s0 + $0x2f0] sm:$0xff] }
 0x1ab   :  { %11879 = vmatmul.mubr.msk.f32.vlgmr.msra.gmra.mxu0 %vm467_vm1, %v1844_v54  ;;  %11956 = vmatpush3.msra.mxu1 %v13059_v10  ;;  %v1889_v54 = vmax.f32 %v14243_v31, 0.0  ;;  %v2392_v28 = vsel %vm447_vm2, %v2389_v50, %v2391_v11  ;;  %v14427_v63 = vld [vmem:[%s18204_s5 + $0x28] sm:$0xff]  ;;  %v14439_v31 = vld [vmem:[%s18204_s5 + $0x20] sm:$0xff]  ;;  %v99_v50 = vld [vmem:[%s18199_s0 + $0x218] sm:$0x1] }
 0x1ac   :  { %11905 = vmatpush3.msra.mxu0 %v13059_v10  ;;  %11957 = vmatprep.subr.mxu1 %v18214_v5  ;;  %v1891_v10 = vmax.f32 %v1888_v9, 0.0  ;;  %v107_v9 = vld [vmem:[%s18199_s0 + $0x258] sm:$0x1] }
 0x1ad   :  { %11906 = vmatprep.subr.mxu0 %v18214_v5  ;;  %11935 = vmatprep.mubr.msk.f32.mxu1 %vm13146_vm0, %v18214_v5 }
 0x1ae   :  { %11958 = vmatpush3.msra.mxu1 %v13060_v25  ;;  %11881 = vmatprep.mubr.msk.f32.mxu0 %vm13146_vm0, %v18214_v5  ;;  %v14289_v58 = vpop.permute.xlu1 %3222  ;;  %v14297_v37 = vpop.permute.xlu0 %3217 }
 0x1af   :  { %11907 = vmatpush3.msra.mxu0 %v13060_v25  ;;  %11936 = vmatmul.mubr.msk.f32.gmra.mxu1 %vm467_vm1, %v1939_v3  ;;  %v14403_v25 = vld [vmem:[%s18199_s0 + $0x290] sm:$0xff] }
 0x1b0   :  { %11959 = vmatprep.subr.mxu1 %v18214_v5  ;;  %11882 = vmatmul.mubr.msk.f32.gmra.mxu0 %vm467_vm1, %v1845_v45  ;;  %v14420_v45 = vld [vmem:[%s18199_s0 + $0x2e0] sm:$0xff] }
 0x1b1   :  { %11960 = vmatpush3.msra.mxu1 %v13061_v13  ;;  %11908 = vmatprep.subr.mxu0 %v18214_v5 }
 0x1b2   :  { %11961 = vmatprep.subr.mxu1 %v18214_v5  ;;  %11909 = vmatpush3.msra.mxu0 %v13061_v13  ;;  %v118_v13 = vld [vmem:[%s18199_s0 + $0x2c8] sm:$0xff] }
 0x1b3   :  { %11962 = vmatpush3.msra.mxu1 %v13062_v15  ;;  %11963 = vmatprep.mubr.msk.f32.mxu1 %vm13146_vm0, %v18214_v5 }
 0x1b4   :  { %11884 = vmatprep.mubr.msk.f32.mxu0 %vm13146_vm0, %v18214_v5  ;;  %11964 = vmatmul.mubr.msk.f32.vlgmr.msra.gmra.mxu1 %vm467_vm1, %v2388_v36  ;;  %v119_v36 = vld [vmem:[%s18199_s0 + $0x2d0] sm:$0xff] }
 0x1b5   :  { %11885 = vmatmul.mubr.msk.f32.gmra.mxu0 %vm467_vm1, %v1846_v0  ;;  %11910 = vmatprep.subr.mxu0 %v18214_v5 }
 0x1b6   :  { %11911 = vmatpush3.msra.mxu0 %v13062_v15  ;;  %11966 = vmatprep.mubr.msk.f32.mxu1 %vm13146_vm0, %v18214_v5  ;;  %v121_v15 = vld [vmem:[%s18199_s0 + $0x2e8] sm:$0xff] }
 0x1b7   :  { %11912 = vmatprep.mubr.msk.f32.mxu0 %vm13146_vm0, %v18214_v5  ;;  %11938 = vmatprep.subr.mxu0 %v18214_v5 }
 0x1b8   :  { %11967 = vmatmul.mubr.msk.f32.gmra.mxu1 %vm467_vm1, %v2390_v16  ;;  %6224 = vperm.xlu1 %13031, %v14272_v18  }
 0x1b9   :  { %11913 = vmatmul.mubr.msk.f32.vlgmr.msra.gmra.mxu0 %vm467_vm1, %v1889_v54  ;;  %11969 = vmatprep.mubr.msk.f32.mxu1 %vm13146_vm0, %v18214_v5 }
 0x1ba   :  { %11939 = vmatpush3.msra.mxu0 %v14015_v2  ;;  %11915 = vmatprep.mubr.msk.f32.mxu0 %vm13146_vm0, %v18214_v5  ;;  %v14308_v2 = vld [vmem:[%s18199_s0 + $0x208] sm:$0xff] }
 0x1bb   :  { %11940 = vmatprep.subr.mxu0 %v18214_v5  ;;  %6289 = vperm.xlu0 %13032, %v14287_v32  }
 0x1bc   :  { %11941 = vmatpush3.msra.mxu0 %v14035_v14  ;;  %11970 = vmatmul.mubr.msk.f32.gmra.mxu1 %vm467_vm1, %v2392_v28  ;;  %v14320_v14 = vpop.permute.xlu1 %3344  ;;  %v18257_v28 = vmov 1  }
 0x1bd   :  { %11916 = vmatmul.mubr.msk.f32.gmra.mxu0 %vm467_vm1, %v1890_v24  ;;  %11942 = vmatprep.subr.mxu0 %v18214_v5 }
 0x1be   :  { %11943 = vmatpush3.msra.mxu0 %v14061_v51  ;;  %11918 = vmatprep.mubr.msk.f32.mxu0 %vm13146_vm0, %v18214_v5  ;;  %v14331_v51 = vpop.permute.xlu0 %3254 }
 0x1bf   :  { %11944 = vmatprep.subr.mxu0 %v18214_v5  ;;  %6164 = vperm.xlu1 %13031, %v14308_v2  }
 0x1c0   :  { %11945 = vmatpush3.msra.mxu0 %v14080_v7  ;;  %6273 = vperm.xlu0 %13032, %v14315_v29   ;;  %v14349_v7 = vld [vmem:[%s18199_s0 + $0x270] sm:$0xff]  ;;  %v14351_v3 = vpop.permute.xlu1 %3395 }
 0x1c1   :  { %11919 = vmatmul.mubr.msk.f32.gmra.mxu0 %vm467_vm1, %v1891_v10  ;;  %11989 = vmatprep.subr.mxu1 %v18214_v5 }
 0x1c2   :  { %11946 = vmatprep.mubr.msk.f32.mxu0 %vm13146_vm0, %v18214_v5  ;;  %11990 = vmatpush3.msra.mxu1 %v13656_v33  ;;  %v14358_v33 = vld [vmem:[%s18199_s0 + $0x250] sm:$0xff]  ;;  %v14363_v6 = vpop.permute.xlu0 %3194 }
 0x1c3   :  { %6294 = vperm.xlu1 %13031, %v14329_v22   ;;  %11991 = vmatprep.subr.mxu1 %v18214_v5 }
 0x1c4   :  { %6192 = vperm.xlu0 %13032, %v14337_v21   ;;  %11992 = vmatpush3.msra.mxu1 %v13663_v34  ;;  %v14372_v34 = vld [vmem:[%s18199_s0 + $0x230] sm:$0xff] }
 0x1c5   :  { %11947 = vmatmul.mubr.msk.f32.vlgmr.msra.gmra.mxu0 %vm467_vm1, %v1889_v54  ;;  %11993 = vmatprep.subr.mxu1 %v18214_v5 }
 0x1c6   :  { %11949 = vmatprep.mubr.msk.f32.mxu0 %vm13146_vm0, %v18214_v5  ;;  %11994 = vmatpush3.msra.mxu1 %v13670_v56  ;;  %v14385_v56 = vpop.permute.xlu1 %3370  ;;  %v14396_v12 = vpop.permute.xlu0 %3324 }
 0x1c7   :  { %6278 = vperm.xlu1 %13031, %v14349_v7   ;;  %11995 = vmatprep.subr.mxu1 %v18214_v5 }
 0x1c8   :  { %6229 = vperm.xlu0 %13032, %v14358_v33   ;;  %11996 = vmatpush3.msra.mxu1 %v13677_v42  ;;  %v14394_v42 = vld [vmem:[%s18199_s0 + $0x2a0] sm:$0xff] }
 0x1c9   :  { %11950 = vmatmul.mubr.msk.f32.gmra.mxu0 %vm467_vm1, %v1890_v24  ;;  %11997 = vmatprep.mubr.msk.f32.mxu1 %vm13146_vm0, %v18214_v5 }
 0x1ca   :  { %11952 = vmatprep.mubr.msk.f32.mxu0 %vm13146_vm0, %v18214_v5  ;;  %11972 = vmatprep.subr.mxu0 %v18214_v5  ;;  %v14422_v19 = vpop.permute.xlu1 %3354  ;;  %v14434_v47 = vpop.permute.xlu0 %3365 }
 0x1cb   :  { %6197 = vperm.xlu1 %13031, %v14372_v34   ;;  %11973 = vmatpush3.msra.mxu0 %v13684_v8  ;;  %v14409_v8 = vld [vmem:[%s18204_s5 + $0x30] sm:$0xff]  ;;  %18253 = vst [vmem:[#allocation6_spill] sm:$0xff] %v14422_v19 }
 0x1cc   :  { %6169 = vperm.xlu0 %13032, %v14379_v53   ;;  %11974 = vmatprep.subr.mxu0 %v18214_v5 }
 0x1cd   :  { %11953 = vmatmul.mubr.msk.f32.gmra.mxu0 %vm467_vm1, %v1891_v10  ;;  %12023 = vmatprep.subr.mxu1 %v18214_v5 }
 0x1ce   :  { %11975 = vmatpush3.msra.mxu0 %v14409_v8  ;;  %11980 = vmatprep.mubr.msk.f32.mxu0 %vm13146_vm0, %v18214_v5  ;;  %v14450_v49 = vpop.permute.xlu1 %3375  ;;  %v14455_v23 = vpop.permute.xlu0 %3349 }
 0x1cf   :  { %6319 = vperm.xlu1 %13031, %v14394_v42   ;;  %11976 = vmatprep.subr.mxu0 %v18214_v5  ;;  %18254 = vst [vmem:[#allocation7_spill] sm:$0xff] %v14455_v23 }
 0x1d0   :  { %6299 = vperm.xlu0 %13032, %v14403_v25   ;;  %11977 = vmatpush3.msra.mxu0 %v14427_v63 }
 0x1d1   :  { %11978 = vmatprep.subr.mxu0 %v18214_v5 }
 0x1d2   :  { %11979 = vmatpush3.msra.mxu0 %v14439_v31  ;;  %v14463_v0 = vpop.permute.xlu1 %3227  ;;  %v14468_v54 = vpop.permute.xlu0 %3400 }
 0x1d3   :  { %6370 = vperm.xlu1 %13031, %v14420_v45   ;;  %12006 = vmatprep.subr.mxu0 %v18214_v5  ;;  %18255 = vst [vmem:[#allocation8_spill] sm:$0xff] %v14463_v0 }
 0x1d4   :  { %6340 = vperm.xlu0 %13032, %v117_v52  }
 0x1d6   :  { %v14476_v11 = vpop.permute.xlu1 %4743  ;;  %v14478_v16 = vpop.permute.xlu0 %3199 }
 0x1d7   :  { %6345 = vperm.xlu1 %13031, %v118_v13   ;;  %18256 = vst [vmem:[#allocation9_spill] sm:$0xff] %v14476_v11 }
 0x1d8   :  { %6324 = vperm.xlu0 %13032, %v115_v26  }
 0x1da   :  { %v14485_v24 = vpop.permute.xlu1 %4699  ;;  %v14487_v10 = vpop.permute.xlu0 %3405 }
 0x1db   :  { %6329 = vperm.xlu1 %13031, %v116_v35   ;;  %18258 = vst [vmem:[#allocation10_spill] sm:$0xff] %v14485_v24 }
 0x1dc   :  { %6375 = vperm.xlu0 %13032, %v121_v15  }
 0x1de   :  { %v14492_v5 = vpop.permute.xlu1 %4719  ;;  %v14495_v11 = vpop.permute.xlu0 %3259 }
 0x1df   :  { %6350 = vperm.xlu1 %13031, %v119_v36   ;;  %18259 = vst [vmem:[#allocation11_spill] sm:$0xff] %v14492_v5  ;;  %18260 = vst [vmem:[#allocation12_spill] sm:$0xff] %v14495_v11 }
 0x1e0   :  { %6174 = vperm.xlu0 %13032, %v99_v50  }
 0x1e2   :  { %v14502_v24 = vpop.permute.xlu0 %4778 }
 0x1e3   :  { %6202 = vperm.xlu1 %13031, %v103_v17   ;;  %18262 = vst [vmem:[#allocation14_spill] sm:$0xff] %v14502_v24 }
 0x1e4   :  { %6380 = vperm.xlu0 %13032, %v122_v38  }
 0x1e7   :  { %13033 = vset.pattern.permute.xlu1 %v18257_v28 }
 0x1e8   :  { %7718 = vperm.xlu1 %13033, %v13875_v44   ;;  %6234 = vperm.xlu0 %13032, %v107_v9   ;;  %v14499_v44 = vpop.permute.xlu1 %4747 }
 0x1e9   :  { %18261 = vst [vmem:[#allocation13_spill] sm:$0xff] %v14499_v44 }
 0x1ec   :  { %7674 = vperm.xlu1 %13033, %v13889_v59   ;;  %13034 = vset.pattern.permute.xlu0 %v18257_v28  ;;  %v14506_v59 = vpop.permute.xlu1 %4703 }
 0x1ed   :  { %7753 = vperm.xlu0 %13034, %v13992_v48   ;;  %18263 = vst [vmem:[#allocation15_spill] sm:$0xff] %v14506_v59 }
 0x1f0   :  { %7694 = vperm.xlu1 %13033, %v13915_v43   ;;  %v14509_v43 = vpop.permute.xlu0 %4796  ;;  %v14513_v48 = vpop.permute.xlu1 %4800 }
 0x1f1   :  { %7771 = vperm.xlu0 %13034, %v14287_v32   ;;  %18264 = vst [vmem:[#allocation16_spill] sm:$0xff] %v14509_v43  ;;  %18265 = vst [vmem:[#allocation17_spill] sm:$0xff] %v14513_v48 }
 0x1f4   :  { %7722 = vperm.xlu1 %13033, %v14272_v18   ;;  %v14516_v18 = vpop.permute.xlu0 %4782  ;;  %v14520_v32 = vpop.permute.xlu1 %4786 }
 0x1f5   :  { %7757 = vperm.xlu0 %13034, %v14315_v29   ;;  %18266 = vst [vmem:[#allocation18_spill] sm:$0xff] %v14516_v18  ;;  %18267 = vst [vmem:[#allocation19_spill] sm:$0xff] %v14520_v32 }
 0x1f8   :  { %7678 = vperm.xlu1 %13033, %v14308_v2   ;;  %v14523_v2 = vpop.permute.xlu0 %4723  ;;  %v14526_v29 = vpop.permute.xlu1 %4727 }
 0x1f9   :  { %7698 = vperm.xlu0 %13034, %v14337_v21   ;;  %18268 = vst [vmem:[#allocation20_spill] sm:$0xff] %v14523_v2  ;;  %18269 = vst [vmem:[#allocation21_spill] sm:$0xff] %v14526_v29 }
 0x1fc   :  { %7775 = vperm.xlu1 %13033, %v14329_v22   ;;  %v14528_v22 = vpop.permute.xlu0 %4751  ;;  %v14530_v21 = vpop.permute.xlu1 %4823 }
 0x1fd   :  { %7726 = vperm.xlu0 %13034, %v14358_v33   ;;  %18270 = vst [vmem:[#allocation22_spill] sm:$0xff] %v14528_v22  ;;  %18271 = vst [vmem:[#allocation23_spill] sm:$0xff] %v14530_v21 }
 0x200   :  { %7761 = vperm.xlu1 %13033, %v14349_v7   ;;  %v14532_v7 = vpop.permute.xlu0 %4707  ;;  %v14534_v33 = vpop.permute.xlu1 %4868 }
 0x201   :  { %7682 = vperm.xlu0 %13034, %v14379_v53   ;;  %18272 = vst [vmem:[#allocation24_spill] sm:$0xff] %v14532_v7  ;;  %18273 = vst [vmem:[#allocation25_spill] sm:$0xff] %v14534_v33 }
 0x204   :  { %7702 = vperm.xlu1 %13033, %v14372_v34   ;;  %v14536_v34 = vpop.permute.xlu0 %4804  ;;  %v14538_v53 = vpop.permute.xlu1 %4845 }
 0x205   :  { %7779 = vperm.xlu0 %13034, %v14403_v25   ;;  %18274 = vst [vmem:[#allocation26_spill] sm:$0xff] %v14536_v34  ;;  %18275 = vst [vmem:[#allocation27_spill] sm:$0xff] %v14538_v53 }
 0x208   :  { %7798 = vperm.xlu1 %13033, %v14394_v42   ;;  %v14540_v42 = vpop.permute.xlu0 %4841  ;;  %v14542_v25 = vpop.permute.xlu1 %4831 }
 0x209   :  { %7816 = vperm.xlu0 %13034, %v117_v52   ;;  %18276 = vst [vmem:[#allocation28_spill] sm:$0xff] %v14540_v42  ;;  %18277 = vst [vmem:[#allocation29_spill] sm:$0xff] %v14542_v25 }
 0x20c   :  { %7843 = vperm.xlu1 %13033, %v14420_v45   ;;  %v14544_v45 = vpop.permute.xlu0 %4827  ;;  %v14546_v52 = vpop.permute.xlu1 %4849 }
 0x20d   :  { %7802 = vperm.xlu0 %13034, %v115_v26   ;;  %18278 = vst [vmem:[#allocation30_spill] sm:$0xff] %v14544_v45  ;;  %18279 = vst [vmem:[#allocation31_spill] sm:$0xff] %v14546_v52 }
 0x210   :  { %7820 = vperm.xlu1 %13033, %v118_v13   ;;  %v14548_v13 = vpop.permute.xlu0 %4872 }
 0x211   :  { %7847 = vperm.xlu0 %13034, %v121_v15   ;;  %18280 = vst [vmem:[#allocation32_spill] sm:$0xff] %v14548_v13  ;;  %v14550_v15 = vpop.permute.xlu1 %4731 }
 0x212   :  { %18281 = vst [vmem:[#allocation33_spill] sm:$0xff] %v14550_v15 }
 0x214   :  { %7806 = vperm.xlu1 %13033, %v116_v35  }
 0x215   :  { %7686 = vperm.xlu0 %13034, %v99_v50  }
 0x218   :  { %7824 = vperm.xlu1 %13033, %v119_v36   ;;  %v14552_v36 = vpop.permute.xlu0 %4711 }
 0x219   :  { %7851 = vperm.xlu0 %13034, %v122_v38   ;;  %18282 = vst [vmem:[#allocation34_spill] sm:$0xff] %v14552_v36  ;;  %v14554_v38 = vpop.permute.xlu1 %6219 }
 0x21a   :  { %18283 = vst [vmem:[#allocation35_spill] sm:$0xff] %v14554_v38 }
 0x21c   :  { %7706 = vperm.xlu1 %13033, %v103_v17  }
 0x21d   :  { %7730 = vperm.xlu0 %13034, %v107_v9   ;;  %v14556_v9 = vpop.permute.xlu0 %4876  ;;  %v14560_v45 = vpop.permute.xlu1 %6159 }
 0x21e   :  { %18284 = vst [vmem:[#allocation36_spill] sm:$0xff] %v14556_v9  ;;  %18285 = vst [vmem:[#allocation37_spill] sm:$0xff] %v14560_v45 }
 0x221   :  { %v14562_v34 = vpop.permute.xlu0 %4755  ;;  %v14564_v52 = vpop.permute.xlu1 %6187 }
 0x222   :  { %18286 = vst [vmem:[#allocation38_spill] sm:$0xff] %v14562_v34  ;;  %18287 = vst [vmem:[#allocation39_spill] sm:$0xff] %v14564_v52 }
 0x225   :  { %v14566_v36 = vpop.permute.xlu0 %6268 }
 0x226   :  { %18288 = vst [vmem:[#allocation40_spill] sm:$0xff] %v14566_v36 }
 0x22e   :  { %v1186_v26 = vpop.f32.mrf.mxu1 }
 0x230   :  { %v11795_v35 = vpop.f32.mrf.mxu1 }
 0x233   :  { %v14570_v53 = vpop.permute.xlu1 %6224 }
 0x234   :  { %v1191_v50 = vpop.f32.mrf.mxu1  ;;  %18289 = vst [vmem:[#allocation41_spill] sm:$0xff] %v14570_v53 }
 0x236   :  { %v11798_v17 = vpop.f32.mrf.mxu1  ;;  %v14572_v18 = vpop.permute.xlu0 %6289 }
 0x237   :  { %18290 = vst [vmem:[#allocation42_spill] sm:$0xff] %v14572_v18 }
 0x239   :  { %v14558_v28 = vpop.f32.mrf.mxu1 }
 0x23a   :  { %v14574_v52 = vpop.permute.xlu1 %6164 }
 0x23b   :  { %v11801_v25 = vpop.f32.mrf.mxu1  ;;  %18291 = vst [vmem:[#allocation43_spill] sm:$0xff] %v14574_v52  ;;  %v14576_v36 = vpop.permute.xlu0 %6273 }
 0x23c   :  { %18292 = vst [vmem:[#allocation44_spill] sm:$0xff] %v14576_v36 }
 0x23d   :  { %v1372_v21 = vpop.f32.mrf.mxu1 }
 0x23f   :  { %v11829_v32 = vpop.f32.mrf.mxu1  ;;  %v14580_v7 = vpop.permute.xlu0 %6192 }
 0x240   :  { %18294 = vst [vmem:[#allocation46_spill] sm:$0xff] %v14580_v7 }
 0x241   :  { %v1377_v35 = vpop.f32.mrf.mxu1 }
 0x243   :  { %v11832_v48 = vpop.f32.mrf.mxu1  ;;  %v14588_v59 = vpop.permute.xlu0 %6229 }
 0x244   :  { %v1097_v15 = vpop.f32.mrf.mxu0  ;;  %18296 = vst [vmem:[#allocation48_spill] sm:$0xff] %v14588_v59 }
 0x246   :  { %v11778_v17 = vpop.f32.mrf.mxu0  ;;  %v14568_v38 = vpop.f32.mrf.mxu1 }
 0x247   :  { %v14597_v59 = vpop.permute.xlu0 %6169 }
 0x248   :  { %v1102_v9 = vpop.f32.mrf.mxu0  ;;  %v11835_v13 = vpop.f32.mrf.mxu1 }
 0x249   :  { %v14578_v13 = vpop.permute.xlu1 %6294  ;;  %v1192_v5 = vadd.f32 %v1191_v50, %v1102_v9 }
 0x24a   :  { %v11781_v25 = vpop.f32.mrf.mxu0  ;;  %18293 = vst [vmem:[#allocation45_spill] sm:$0xff] %v14578_v13 }
 0x24b   :  { %v1543_v45 = vpop.f32.mrf.mxu1 }
 0x24c   :  { %v1107_v34 = vpop.f32.mrf.mxu0 }
 0x24d   :  { %v11863_v32 = vpop.f32.mrf.mxu1  ;;  %v14584_v44 = vpop.permute.xlu1 %6278 }
 0x24e   :  { %v11784_v43 = vpop.f32.mrf.mxu0  ;;  %18295 = vst [vmem:[#allocation47_spill] sm:$0xff] %v14584_v44 }
 0x24f   :  { %v1548_v42 = vpop.f32.mrf.mxu1  ;;  %v1187_v43 = vadd.f32 %v1186_v26, %v1097_v15 }
 0x250   :  { %v1277_v48 = vpop.f32.mrf.mxu0 }
 0x251   :  { %v11866_v33 = vpop.f32.mrf.mxu1  ;;  %v1291_v36 = vadd.f32 %v1277_v48, %v1187_v43 }
 0x252   :  { %v11812_v17 = vpop.f32.mrf.mxu0  ;;  %v13148_v33 = vmov 1983009808  }
 0x253   :  { %v1553_v22 = vpop.f32.mrf.mxu1  ;;  %v1573_v2 = vunpack.c.l.s4 %v13148_v33 }
 0x254   :  { %v1282_v24 = vpop.f32.mrf.mxu0 }
 0x255   :  { %v11869_v53 = vpop.f32.mrf.mxu1  ;;  %v1292_v33 = vadd.f32 %v1282_v24, %v1192_v5 }
 0x256   :  { %v11815_v25 = vpop.f32.mrf.mxu0  ;;  %v10554_v53 = vld [vmem:[%s18205_s6] ss:$0 sm:$0xff] }
 0x257   :  { %v1300_v15 = vadd.f32 %v10554_v53, %v1291_v36 }
 0x258   :  { %v14582_v18 = vpop.f32.mrf.mxu1 }
 0x259   :  { %v1287_v32 = vpop.f32.mrf.mxu0 }
 0x25a   :  { %v11897_v29 = vpop.f32.mrf.mxu1 }
 0x25b   :  { %v11818_v52 = vpop.f32.mrf.mxu0  ;;  %v1574_v29 = vunpack.c.0.s8 %v1573_v2 }
 0x25c   :  { %v14586_v17 = vpop.f32.mrf.mxu1  ;;  %v14593_v52 = vpop.permute.xlu1 %6197 }
 0x25d   :  { %v1452_v25 = vpop.f32.mrf.mxu0  ;;  %v14600_v0 = vsub.s32 %v1574_v29, %v13401_v39 }
 0x25e   :  { %v1453_v13 = vadd.f32 %v1452_v25, %v1372_v21  ;;  %v11900_v7 = vpop.f32.mrf.mxu1  ;;  %v1197_v21 = vadd.f32 %v14558_v28, %v1107_v34  ;;  %v14609_v28 = vpop.permute.xlu0 %6299 }
 0x25f   :  { %v11846_v26 = vpop.f32.mrf.mxu0  ;;  %v1303_v7 = vmax.f32 %v1300_v15, 0.0  ;;  %18298 = vst [vmem:[#allocation50_spill] sm:$0xff] %v14609_v28 }
 0x260   :  { %v1557_v44 = vadd.f32 %v1543_v45, %v1453_v13  ;;  %v1301_v45 = vadd.f32 %v10554_v53, %v1292_v33  ;;  %v1293_v5 = vadd.f32 %v1287_v32, %v1197_v21 }
 0x261   :  { %v14595_v48 = vpop.f32.mrf.mxu1 }
 0x262   :  { %v1560_v43 = vadd.f32 %v10554_v53, %v1557_v44  ;;  %v1457_v19 = vpop.f32.mrf.mxu0  ;;  %v14605_v44 = vpop.permute.xlu1 %6319  ;;  %v1302_v25 = vadd.f32 %v10554_v53, %v1293_v5 }
 0x263   :  { %v1458_v11 = vadd.f32 %v1457_v19, %v1377_v35  ;;  %v11903_v23 = vpop.f32.mrf.mxu1  ;;  %18297 = vst [vmem:[#allocation49_spill] sm:$0xff] %v14605_v44 }
 0x264   :  { %v1563_v2 = vmax.f32 %v1560_v43, 0.0  ;;  %v11849_v36 = vpop.f32.mrf.mxu0 }
 0x265   :  { %v1558_v50 = vadd.f32 %v1548_v42, %v1458_v11  ;;  %v1304_v11 = vmax.f32 %v1301_v45, 0.0 }
 0x266   :  { %v1566_v24 = vmax.f32 %v1303_v7, %v1563_v2  ;;  %v14603_v9 = vpop.f32.mrf.mxu1  ;;  %v14616_v36 = vpop.permute.xlu1 %6370 }
 0x267   :  { %v1561_v13 = vadd.f32 %v10554_v53, %v1558_v50  ;;  %v1462_v19 = vpop.f32.mrf.mxu0 }
 0x268   :  { %v1599_v23 = vcombine.high %v1566_v24, %v1566_v24  ;;  %v1463_v39 = vadd.f32 %v1462_v19, %v14568_v38  ;;  %v11931_v35 = vpop.f32.mrf.mxu1  ;;  %v1578_v34 = vrot.slane %v1566_v24, %v14600_v0  ;;  %1570 = vst.msk [vmem:[#allocation2] sm:$0x1] %vm1569_vm3, %v1566_v24 }
 0x269   :  { %v1564_v42 = vmax.f32 %v1561_v13, 0.0  ;;  %v11852_v32 = vpop.f32.mrf.mxu0  ;;  %v14621_v13 = vpop.permute.xlu0 %6340 }
 0x26a   :  { %v1559_v26 = vadd.f32 %v1553_v22, %v1463_v39  ;;  %v14612_v29 = vpop.f32.mrf.mxu1  ;;  %v10564_v15 = vrot.slane %v1578_v34, 9  ;;  %v1606_v33 = vrot.slane %v1599_v23, %v14600_v0  ;;  %v1305_v22 = vmax.f32 %v1302_v25, 0.0 }
 0x26b   :  { %v1567_v43 = vmax.f32 %v1304_v11, %v1564_v42  ;;  %v2015_v21 = vpop.f32.mrf.mxu0  ;;  %v1586_v24 = vcombine.high %v1578_v34, %v1578_v34 }
 0x26c   :  { %v1562_v38 = vadd.f32 %v10554_v53, %v1559_v26  ;;  %v11934_v7 = vpop.f32.mrf.mxu1  ;;  %1581 = vrot.lane.b32.xlu1 %v10564_v15, %s13149_s18  ;;  %v10566_v2 = vrot.slane %v1606_v33, 9  ;;  %1608 = vst.msk [vmem:[#allocation2 + $0x2] sm:$0x1] %vm1569_vm3, %v1606_v33  ;;  %v1615_v35 = vcombine.high %v1606_v33, %v1606_v33  ;;  %v14630_v26 = vpop.permute.xlu1 %6345 }
 0x26d   :  { %v1652_v45 = vcombine.high %v1567_v43, %v1567_v43  ;;  %v11880_v50 = vpop.f32.mrf.mxu0  ;;  %1626 = vst.msk [vmem:[#allocation2 + $0x4] sm:$0x1] %vm1569_vm3, %v1567_v43  ;;  %v10565_v34 = vrot.slane %v1586_v24, 9  ;;  %v1634_v25 = vrot.slane %v1567_v43, %v14600_v0  ;;  %v14639_v7 = vpop.permute.xlu0 %6324 }
 0x26e   :  { %v1565_v5 = vmax.f32 %v1562_v38, 0.0  ;;  %1611 = vrot.lane.b32.xlu0 %v10566_v2, %s13149_s18  ;;  %v10567_v33 = vrot.slane %v1615_v35, 9  ;;  %18299 = vst [vmem:[#allocation51_spill] sm:$0xff] %v14639_v7 }
 0x26f   :  { %v14623_v53 = vpop.f32.mrf.mxu1  ;;  %v1659_v19 = vrot.slane %v1652_v45, %v14600_v0  ;;  %v10568_v43 = vrot.slane %v1634_v25, 9 }
 0x270   :  { %v1568_v23 = vmax.f32 %v1305_v22, %v1565_v5  ;;  %v2020_v39 = vpop.f32.mrf.mxu0  ;;  %1587 = vrot.lane.b32.xlu1 %v1586_v24, %s13150_s19  ;;  %v2105_v22 = vadd.f32 %v14582_v18, %v2015_v21  ;;  %v14657_v18 = vld [vmem:[%s18203_s4] ss:$0 sm:$0xff] }
 0x271   :  { %v11937_v11 = vpop.f32.mrf.mxu1  ;;  %1661 = vst.msk [vmem:[#allocation2 + $0x6] sm:$0x1] %vm1569_vm3, %v1659_v19  ;;  %v10570_v24 = vrot.slane %v1659_v19, 9 }
 0x272   :  { %v1705_v42 = vcombine.high %v1568_v23, %v1568_v23  ;;  %v11883_v32 = vpop.f32.mrf.mxu0  ;;  %1616 = vrot.lane.b32.xlu0 %v1615_v35, %s13150_s19  ;;  %1679 = vst.msk [vmem:[#allocation2 + $0x8] sm:$0x1] %vm1569_vm3, %v1568_v23  ;;  %v14648_v35 = vpop.permute.xlu1 %6329 }
 0x273   :  { %18300 = vst [vmem:[#allocation52_spill] sm:$0xff] %v14648_v35  ;;  %v1687_v35 = vrot.slane %v1568_v23, %v14600_v0 }
 0x274   :  { %v14633_v15 = vpop.f32.mrf.mxu1  ;;  %1594 = vrot.lane.b32.xlu1 %v10565_v34, %s13151_s20  ;;  %v14637_v38 = vrot.slane %v1705_v42, %v14600_v0  ;;  %v1641_v34 = vcombine.high %v1634_v25, %v1634_v25 }
 0x275   :  { %v2025_v2 = vpop.f32.mrf.mxu0 }
 0x276   :  { %v11965_v45 = vpop.f32.mrf.mxu1  ;;  %1622 = vrot.lane.b32.xlu0 %v10567_v33, %s13151_s20  ;;  %1714 = vst.msk [vmem:[#allocation2 + $0xa] sm:$0x1] %vm1569_vm3, %v14637_v38  ;;  %v14651_v33 = vpop.permute.xlu0 %6375  ;;  %v2115_v7 = vadd.f32 %v14595_v48, %v2025_v2 }
 0x277   :  { %v11886_v50 = vpop.f32.mrf.mxu0 }
 0x278   :  { %v14645_v5 = vpop.f32.mrf.mxu1  ;;  %1637 = vrot.lane.b32.xlu1 %v10568_v43, %s13149_s18  ;;  %v2110_v50 = vadd.f32 %v14586_v17, %v2020_v39  ;;  %v14664_v17 = vpop.permute.xlu1 %6350 }
 0x279   :  { %v2193_v11 = vpop.f32.mrf.mxu0  ;;  %18301 = vst [vmem:[#allocation53_spill] sm:$0xff] %v14664_v17 }
 0x27a   :  { %v2207_v42 = vadd.f32 %v2193_v11, %v2105_v22  ;;  %v11968_v32 = vpop.f32.mrf.mxu1  ;;  %1664 = vrot.lane.b32.xlu0 %v10570_v24, %s13149_s18  ;;  %v1668_v22 = vcombine.high %v1659_v19, %v1659_v19 }
 0x27b   :  { %v11914_v45 = vpop.f32.mrf.mxu0 }
 0x27c   :  { %v2210_v21 = vadd.f32 %v14657_v18, %v2207_v42  ;;  %v14660_v43 = vpop.f32.mrf.mxu1  ;;  %1642 = vrot.lane.b32.xlu1 %v1641_v34, %s13150_s19  ;;  %v10569_v45 = vrot.slane %v1641_v34, 9  ;;  %v10571_v19 = vrot.slane %v1668_v22, 9  ;;  %v13067_v34 = vld [vmem:[%s18204_s5 + $0x38] sm:$0xff] }
 0x27d   :  { %v2198_v11 = vpop.f32.mrf.mxu0 }
 0x27e   :  { %v2213_v24 = vmax.f32 %v2210_v21, 0.0  ;;  %v2208_v25 = vadd.f32 %v2198_v11, %v2110_v50  ;;  %v11971_v32 = vpop.f32.mrf.mxu1  ;;  %1669 = vrot.lane.b32.xlu0 %v1668_v22, %s13150_s19  ;;  %v14671_v21 = vpop.permute.xlu0 %6174  ;;  %v18303_v11 = vmov 0.0   ;;  %v10572_v22 = vrot.slane %v1687_v35, 9 }
 0x27f   :  { %v11917_v39 = vpop.f32.mrf.mxu0  ;;  %18302 = vst [vmem:[#allocation54_spill] sm:$0xff] %v14671_v21  ;;  %v10574_v32 = vrot.slane %v14637_v38, 9 }
 0x280   :  { %v2211_v42 = vadd.f32 %v14657_v18, %v2208_v25  ;;  %11998 = vmatmul.mubr.msk.f32.vlgmr.msra.gmra.mxu1 %vm467_vm1, %v2213_v24  ;;  %1648 = vrot.lane.b32.xlu1 %v10569_v45, %s13151_s20  ;;  %v14685_v45 = vpop.permute.xlu1 %6202 }
 0x281   :  { %v2203_v50 = vpop.f32.mrf.mxu0  ;;  %12000 = vmatprep.mubr.msk.f32.mxu1 %vm13146_vm0, %v18303_v11  ;;  %12024 = vmatpush3.msra.mxu1 %v13067_v34  ;;  %18304 = vst [vmem:[#allocation55_spill] sm:$0xff] %v14685_v45  ;;  %v18359_v45 = vld [vmem:[#allocation17_spill] sm:$0xff] }
 0x282   :  { %v2214_v23 = vmax.f32 %v2211_v42, 0.0  ;;  %v2209_v48 = vadd.f32 %v2203_v50, %v2115_v7  ;;  %1675 = vrot.lane.b32.xlu0 %v10571_v19, %s13151_s20  ;;  %12025 = vmatprep.subr.mxu1 %v18303_v11  ;;  %v14693_v42 = vpop.permute.xlu0 %6380 }
 0x283   :  { %v11920_v2 = vpop.f32.mrf.mxu0  ;;  %12026 = vmatpush3.msra.mxu1 %v14409_v8  ;;  %18305 = vst [vmem:[#allocation56_spill] sm:$0xff] %v14693_v42 }
 0x284   :  { %v2212_v25 = vadd.f32 %v14657_v18, %v2209_v48  ;;  %12001 = vmatmul.mubr.msk.f32.gmra.mxu1 %vm467_vm1, %v2214_v23  ;;  %12027 = vmatprep.subr.mxu1 %v18303_v11  ;;  %v2667_v19 = vrot.slane %v2214_v23, 1  ;;  %v1694_v48 = vcombine.high %v1687_v35, %v1687_v35  ;;  %v1721_v2 = vcombine.high %v14637_v38, %v14637_v38 }
 0x285   :  { %v2371_v39 = vpop.f32.mrf.mxu0  ;;  %12003 = vmatprep.mubr.msk.f32.mxu1 %vm13146_vm0, %v18303_v11  ;;  %1690 = vrot.lane.b32.xlu1 %v10572_v22, %s13149_s18  ;;  %v2666_v22 = vrot.slane %v2213_v24, 1 }
 0x286   :  { %v2215_v7 = vmax.f32 %v2212_v25, 0.0  ;;  %v2372_v8 = vadd.f32 %v2371_v39, %v14603_v9  ;;  %12028 = vmatpush3.msra.mxu1 %v14427_v63  ;;  %1717 = vrot.lane.b32.xlu0 %v10574_v32, %s13149_s18  ;;  %v14720_v32 = vpop.permute.xlu0 %6234 }
 0x287   :  { %v11948_v50 = vpop.f32.mrf.mxu0  ;;  %12029 = vmatprep.subr.mxu1 %v18303_v11  ;;  %v14712_v24 = vsel %vm447_vm2, %v2666_v22, %v2667_v19  ;;  %18307 = vst [vmem:[#allocation58_spill] sm:$0xff] %v14720_v32 }
 0x288   :  { %v2479_v34 = vadd.f32 %v14633_v15, %v2372_v8  ;;  %12004 = vmatmul.mubr.msk.f32.gmra.mxu1 %vm467_vm1, %v2215_v7  ;;  %v14707_v15 = vpop.permute.xlu1 %7718  ;;  %v14709_v35 = vrot.slane %v2215_v7, 1  ;;  %v13068_v7 = vld [vmem:[%s18204_s5 + $0x58] sm:$0xff]  ;;  %v124_v8 = vld [vmem:[%s18200_s1 + $0x4] sm:$0x7] }
 0x289   :  { %v2376_v9 = vpop.f32.mrf.mxu0  ;;  %12030 = vmatpush3.msra.mxu1 %v14439_v31  ;;  %12031 = vmatprep.mubr.msk.f32.mxu1 %vm13146_vm0, %v18303_v11  ;;  %18306 = vst [vmem:[#allocation57_spill] sm:$0xff] %v14707_v15 }
 0x28a   :  { %v2482_v63 = vadd.f32 %v14657_v18, %v2479_v34  ;;  %v2377_v23 = vadd.f32 %v2376_v9, %v14612_v29  ;;  %1695 = vrot.lane.b32.xlu1 %v1694_v48, %s13150_s19  ;;  %1722 = vrot.lane.b32.xlu0 %v1721_v2, %s13150_s19  ;;  %v10573_v29 = vrot.slane %v1694_v48, 9  ;;  %v14737_v48 = vsel %vm447_vm2, %v2667_v19, %v14709_v35 }
 0x28b   :  { %v11951_v38 = vpop.f32.mrf.mxu0  ;;  %12057 = vmatprep.subr.mxu1 %v18303_v11  ;;  %v14750_v9 = vrot.slane %v124_v8, %v13404_v40  ;;  %v14753_v19 = vrot.slane %v124_v8, %v13407_v41 }
 0x28c   :  { %v14715_v31 = vmax.f32 %v2482_v63, 0.0  ;;  %v2480_v25 = vadd.f32 %v14645_v5, %v2377_v23  ;;  %12032 = vmatmul.mubr.msk.f32.vlgmr.msra.gmra.mxu1 %vm467_vm1, %v14712_v24  ;;  %v13069_v63 = vld [vmem:[%s18204_s5 + $0x50] sm:$0xff]  ;;  %v14763_v23 = vpop.permute.xlu0 %7753 }
 0x28d   :  { %v2381_v39 = vpop.f32.mrf.mxu0  ;;  %12034 = vmatprep.mubr.msk.f32.mxu1 %vm13146_vm0, %v18303_v11  ;;  %12058 = vmatpush3.msra.mxu1 %v13068_v7  ;;  %18309 = vst [vmem:[#allocation60_spill] sm:$0xff] %v14763_v23 }
 0x28e   :  { %v2483_v5 = vadd.f32 %v14657_v18, %v2480_v25  ;;  %v2382_v50 = vadd.f32 %v2381_v39, %v14623_v53  ;;  %11981 = vmatmul.mubr.msk.f32.vlgmr.msra.gmra.mxu0 %vm467_vm1, %v14715_v31  ;;  %1701 = vrot.lane.b32.xlu1 %v10573_v29, %s13151_s20  ;;  %v14747_v53 = vpop.permute.xlu1 %7674  ;;  %v13070_v25 = vld [vmem:[%s18204_s5 + $0x48] sm:$0xff]  ;;  %v3206_v29 = vmul.f32 %v14750_v9, %v14051_v60 }
 0x28f   :  { %12007 = vmatpush3.msra.mxu0 %v13068_v7  ;;  %v11954_v34 = vpop.f32.mrf.mxu0  ;;  %11983 = vmatprep.mubr.msk.f32.mxu0 %vm13146_vm0, %v18303_v11  ;;  %18308 = vst [vmem:[#allocation59_spill] sm:$0xff] %v14747_v53  ;;  %v3234_v39 = vmul.f32 %v14753_v19, %v14104_v27  ;;  %v13071_v27 = vld [vmem:[%s18204_s5 + $0x40] sm:$0xff] }
 0x290   :  { %v14741_v2 = vmax.f32 %v2483_v5, 0.0  ;;  %v2481_v22 = vadd.f32 %v14660_v43, %v2382_v50  ;;  %12008 = vmatprep.subr.mxu0 %v18303_v11  ;;  %12035 = vmatmul.mubr.msk.f32.gmra.mxu1 %vm467_vm1, %v14737_v48  ;;  %v14795_v50 = vpop.permute.xlu0 %7771 }
 0x291   :  { %12009 = vmatpush3.msra.mxu0 %v13069_v63  ;;  %12059 = vmatprep.subr.mxu1 %v18303_v11  ;;  %18311 = vst [vmem:[#allocation62_spill] sm:$0xff] %v14795_v50  ;;  %v3236_v50 = vmul.f32 %v14753_v19, %v14289_v58 }
 0x292   :  { %v2484_v43 = vadd.f32 %v14657_v18, %v2481_v22  ;;  %11984 = vmatmul.mubr.msk.f32.gmra.mxu0 %vm467_vm1, %v14741_v2  ;;  %12010 = vmatprep.subr.mxu0 %v18303_v11  ;;  %v14775_v18 = vrot.slane %v124_v8, %v13419_v46  ;;  %v2927_v7 = vrot.slane %v14741_v2, 1  ;;  %v14787_v5 = vpop.permute.xlu1 %7694  ;;  %v2926_v8 = vrot.slane %v14715_v31, 1 }
 0x293   :  { %12037 = vmatprep.mubr.msk.f32.mxu1 %vm13146_vm0, %v18303_v11  ;;  %12060 = vmatpush3.msra.mxu1 %v13069_v63  ;;  %18310 = vst [vmem:[#allocation61_spill] sm:$0xff] %v14787_v5  ;;  %v3238_v22 = vadd.f32 %v3234_v39, %v3206_v29  ;;  %v13072_v29 = vld [vmem:[%s18204_s5 + $0x18] sm:$0xff] }
 0x294   :  { %v14767_v38 = vmax.f32 %v2484_v43, 0.0  ;;  %12011 = vmatpush3.msra.mxu0 %v13070_v25  ;;  %12038 = vmatmul.mubr.msk.f32.gmra.mxu1 %vm467_vm1, %v14709_v35  ;;  %v3266_v34 = vmul.f32 %v14775_v18, %v14004_v57  ;;  %v2928_v63 = vsel %vm447_vm2, %v2926_v8, %v2927_v7  ;;  %v3414_v58 = vmul.f32 %v14775_v18, %v14051_v60  ;;  %v14872_v60 = vld [vmem:[%s18202_s3 + $0x68] sm:$0xff] }
 0x295   :  { %12061 = vmatprep.subr.mxu1 %v18303_v11  ;;  %11986 = vmatprep.mubr.msk.f32.mxu0 %vm13146_vm0, %v18303_v11  ;;  %v4808_v44 = vmul.f32 %v18359_v45, %v14775_v18 }
 0x296   :  { %12062 = vmatpush3.msra.mxu1 %v13070_v25  ;;  %11987 = vmatmul.mubr.msk.f32.gmra.mxu0 %vm467_vm1, %v14767_v38  ;;  %v2929_v43 = vrot.slane %v14767_v38, 1  ;;  %v3207_v25 = vmul.f32 %v14750_v9, %v14187_v55  ;;  %v14824_v39 = vpop.permute.xlu1 %7722  ;;  %v3270_v8 = vadd.f32 %v3266_v34, %v3238_v22  ;;  %v3208_v34 = vmul.f32 %v14750_v9, %v14363_v6  ;;  %v14848_v22 = vld [vmem:[%s18202_s3 + $0x70] sm:$0xff] }
 0x297   :  { %12012 = vmatprep.subr.mxu0 %v18303_v11  ;;  %12063 = vmatprep.subr.mxu1 %v18303_v11  ;;  %18312 = vst [vmem:[#allocation63_spill] sm:$0xff] %v14824_v39  ;;  %v14850_v39 = vpop.permute.xlu0 %7757  ;;  %v3422_v15 = vrot.slane %v3414_v58, 1 }
 0x298   :  { %12013 = vmatpush3.msra.mxu0 %v13071_v27  ;;  %12064 = vmatpush3.msra.mxu1 %v13071_v27  ;;  %v3235_v27 = vmul.f32 %v14753_v19, %v14297_v37  ;;  %v14822_v37 = vld [vmem:[%s18202_s3 + $0x78] sm:$0xff]  ;;  %18313 = vst [vmem:[#allocation64_spill] sm:$0xff] %v14850_v39  ;;  %v3288_v39 = vmul.f32 %v14004_v57, %v14750_v9 }
 0x299   :  { %12065 = vmatprep.mubr.msk.f32.mxu1 %vm13146_vm0, %v18303_v11  ;;  %12014 = vmatprep.mubr.msk.f32.mxu0 %vm13146_vm0, %v18303_v11  ;;  %v3390_v57 = vmul.f32 %v14434_v47, %v14750_v9 }
 0x29a   :  { %12066 = vmatmul.mubr.msk.f32.vlgmr.msra.gmra.mxu1 %vm467_vm1, %v2928_v63  ;;  %12040 = vmatprep.subr.mxu0 %v18303_v11  ;;  %v2930_v63 = vsel %vm447_vm2, %v2927_v7, %v2929_v43  ;;  %v3239_v23 = vadd.f32 %v3235_v27, %v3207_v25  ;;  %v13073_v7 = vld [vmem:[%s18204_s5 + $0x10] sm:$0xff]  ;;  %v14856_v25 = vmul.f32 %v14775_v18, %v14187_v55 }
 0x29b   :  { %12015 = vmatmul.mubr.msk.f32.vlgmr.msra.gmra.mxu0 %vm467_vm1, %v14712_v24  ;;  %12068 = vmatprep.mubr.msk.f32.mxu1 %vm13146_vm0, %v18303_v11  ;;  %v3267_v24 = vmul.f32 %v14775_v18, %v14147_v4 }
 0x29c   :  { %12041 = vmatpush3.msra.mxu0 %v13072_v29  ;;  %12091 = vmatprep.subr.mxu1 %v18303_v11  ;;  %v14835_v29 = vld [vmem:[%s18201_s2 + $0x1] ss:$0 sm:$0xff]  ;;  %v3423_v5 = vrot.slane %v14856_v25, 1 }
 0x29d   :  { %12042 = vmatprep.subr.mxu0 %v18303_v11  ;;  %12017 = vmatprep.mubr.msk.f32.mxu0 %vm13146_vm0, %v18303_v11  ;;  %v14864_v27 = vadd.f32 %v14835_v29, %v3270_v8  ;;  %v3271_v55 = vadd.f32 %v3267_v24, %v3239_v23  ;;  %v13074_v8 = vld [vmem:[%s18204_s5 + $0x8] sm:$0xff]  ;;  %v3306_v23 = vmul.f32 %v14195_v20, %v14753_v19  ;;  %v14902_v20 = vpop.permute.xlu0 %7698 }
 0x29e   :  { %12069 = vmatmul.mubr.msk.f32.gmra.mxu1 %vm467_vm1, %v2930_v63  ;;  %12043 = vmatpush3.msra.mxu0 %v13073_v7  ;;  %v3240_v63 = vadd.f32 %v3236_v50, %v3208_v34  ;;  %v14880_v7 = vpop.permute.xlu1 %7678  ;;  %v14893_v50 = vld [vmem:[%s18202_s3 + $0x60] sm:$0xff]  ;;  %18315 = vst [vmem:[#allocation66_spill] sm:$0xff] %v14902_v20  ;;  %v14906_v24 = vmul.f32 %v14775_v18, %v14363_v6 }
 0x29f   :  { %12092 = vmatpush3.msra.mxu1 %v14822_v37  ;;  %12018 = vmatmul.mubr.msk.f32.gmra.mxu0 %vm467_vm1, %v14737_v48  ;;  %v3268_v48 = vmul.f32 %v14775_v18, %v14331_v51  ;;  %18314 = vst [vmem:[#allocation65_spill] sm:$0xff] %v14880_v7  ;;  %v14912_v34 = vadd.f32 %v14835_v29, %v3271_v55 }
 0x2a0   :  { %12093 = vmatprep.subr.mxu1 %v18303_v11  ;;  %12044 = vmatprep.subr.mxu0 %v18303_v11  ;;  %v3289_v6 = vmul.f32 %v14147_v4, %v14750_v9  ;;  %v3309_v25 = vadd.f32 %v3306_v23, %v3288_v39  ;;  %v3391_v55 = vmul.f32 %v14385_v56, %v14750_v9  ;;  %v3425_v23 = vrot.slane %v14906_v24, 1 }
 0x2a1   :  { %12071 = vmatprep.mubr.msk.f32.mxu1 %vm13146_vm0, %v18303_v11  ;;  %12094 = vmatpush3.msra.mxu1 %v14848_v22  ;;  %v3272_v58 = vadd.f32 %v3268_v48, %v3240_v63  ;;  %v3409_v63 = vmul.f32 %v14468_v54, %v14753_v19  ;;  %v3307_v39 = vmul.f32 %v14265_v61, %v14753_v19  ;;  %v148_v54 = vld [vmem:[%s18202_s3 + $0x98] sm:$0xff]  ;;  %v14954_v24 = vpop.permute.xlu0 %7726 }
 0x2a2   :  { %12045 = vmatpush3.msra.mxu0 %v13074_v8  ;;  %12072 = vmatmul.mubr.msk.f32.gmra.mxu1 %vm467_vm1, %v2929_v43  ;;  %v3408_v43 = vmul.f32 %v14351_v3, %v14753_v19  ;;  %v18239_v3 = vmax.f32 %v14864_v27, 0.0  ;;  %v3424_v8 = vsel %vm447_vm2, %v3422_v15, %v3423_v5  ;;  %v14933_v4 = vpop.permute.xlu1 %7775  ;;  %v3327_v15 = vmul.f32 %v14231_v1, %v14775_v18 }
 0x2a3   :  { %12095 = vmatprep.subr.mxu1 %v18303_v11  ;;  %12020 = vmatprep.mubr.msk.f32.mxu0 %vm13146_vm0, %v18303_v11  ;;  %18316 = vst [vmem:[#allocation67_spill] sm:$0xff] %v14933_v4  ;;  %v14952_v61 = vadd.f32 %v14835_v29, %v3272_v58  ;;  %18317 = vst [vmem:[#allocation68_spill] sm:$0xff] %v14954_v24  ;;  %v3412_v58 = vadd.f32 %v3409_v63, %v3391_v55  ;;  %v18318_v24 = vmax.f32 %v14912_v34, 0.0 }
 0x2a4   :  { %12096 = vmatpush3.msra.mxu1 %v14872_v60  ;;  %12021 = vmatmul.mubr.msk.f32.gmra.mxu0 %vm467_vm1, %v14709_v35  ;;  %v13075_v35 = vld [vmem:[%s18204_s5] sm:$0xff]  ;;  %v3411_v48 = vadd.f32 %v3408_v43, %v3390_v57  ;;  %v3417_v43 = vmul.f32 %v14775_v18, %v14478_v16  ;;  %v3410_v4 = vmul.f32 %v14487_v10, %v14753_v19 }
 0x2a5   :  { %12046 = vmatprep.subr.mxu0 %v18303_v11  ;;  %12097 = vmatprep.subr.mxu1 %v18303_v11  ;;  %v3330_v20 = vadd.f32 %v3327_v15, %v3309_v25  ;;  %v3310_v7 = vadd.f32 %v3307_v39, %v3289_v6  ;;  %v3426_v53 = vsel %vm447_vm2, %v3423_v5, %v3425_v23  ;;  %v3286_v25 = vmax.f32 %v14952_v61, 0.0 }
 0x2a6   :  { %12047 = vmatpush3.msra.mxu0 %v13075_v35  ;;  %12098 = vmatpush3.msra.mxu1 %v14893_v50  ;;  %v3392_v35 = vmul.f32 %v14450_v49, %v14750_v9  ;;  %v3432_v57 = vadd.f32 %v3424_v8, %v3411_v48  ;;  %v3427_v32 = vrot.slane %v3417_v43, 1  ;;  %v3308_v8 = vmul.f32 %v14252_v30, %v14753_v19  ;;  %v14981_v6 = vpop.permute.xlu1 %7761  ;;  %v146_v30 = vld [vmem:[%s18202_s3 + $0x88] sm:$0xff]  ;;  %v14994_v48 = vpop.permute.xlu0 %7682 }
 0x2a7   :  { %12099 = vmatprep.mubr.msk.f32.mxu1 %vm13146_vm0, %v18303_v11  ;;  %12048 = vmatprep.mubr.msk.f32.mxu0 %vm13146_vm0, %v18303_v11  ;;  %v3290_v10 = vmul.f32 %v14331_v51, %v14750_v9  ;;  %18319 = vst [vmem:[#allocation69_spill] sm:$0xff] %v14981_v6  ;;  %v3339_v5 = vmul.f32 %v14231_v1, %v14750_v9  ;;  %18320 = vst [vmem:[#allocation70_spill] sm:$0xff] %v14994_v48 }
 0x2a8   :  { %12100 = vmatmul.mubr.msk.f32.vlgmr.msra.gmra.mxu1 %vm467_vm1, %v18239_v3  ;;  %12074 = vmatprep.subr.mxu0 %v18303_v11  ;;  %v147_v3 = vld [vmem:[%s18202_s3 + $0x90] sm:$0xff]  ;;  %v3435_v51 = vadd.f32 %v14835_v29, %v3432_v57  ;;  %v3413_v55 = vadd.f32 %v3410_v4, %v3392_v35  ;;  %v3333_v1 = vadd.f32 %v14835_v29, %v3330_v20 }
 0x2a9   :  { %12049 = vmatmul.mubr.msk.f32.vlgmr.msra.gmra.mxu0 %vm467_vm1, %v14715_v31  ;;  %12102 = vmatprep.mubr.msk.f32.mxu1 %vm13146_vm0, %v18303_v11  ;;  %v3328_v31 = vmul.f32 %v14215_v62, %v14775_v18  ;;  %v3357_v4 = vmul.f32 %v14320_v14, %v14753_v19  ;;  %v3311_v15 = vadd.f32 %v3308_v8, %v3290_v10 }
 0x2aa   :  { %12075 = vmatpush3.msra.mxu0 %v148_v54  ;;  %12125 = vmatprep.subr.mxu1 %v18303_v11  ;;  %v3329_v39 = vmul.f32 %v14396_v12, %v14775_v18  ;;  %v3209_v20 = vmul.f32 %v14750_v9, %v14478_v16  ;;  %v3336_v57 = vmax.f32 %v3333_v1, 0.0  ;;  %v3378_v35 = vmul.f32 %v14434_v47, %v14775_v18  ;;  %v151_v1 = vld [vmem:[%s18202_s3 + $0xb0] sm:$0xff] }
 0x2ab   :  { %12076 = vmatprep.subr.mxu0 %v18303_v11  ;;  %12051 = vmatprep.mubr.msk.f32.mxu0 %vm13146_vm0, %v18303_v11  ;;  %v3331_v63 = vadd.f32 %v3328_v31, %v3310_v7  ;;  %v3360_v16 = vadd.f32 %v3357_v4, %v3339_v5  ;;  %v152_v5 = vld [vmem:[%s18202_s3 + $0xb8] sm:$0xff] }
 0x2ac   :  { %12103 = vmatmul.mubr.msk.f32.gmra.mxu1 %vm467_vm1, %v18318_v24  ;;  %12077 = vmatpush3.msra.mxu0 %v147_v3  ;;  %v3332_v31 = vadd.f32 %v3329_v39, %v3311_v15  ;;  %v3379_v39 = vmul.f32 %v14385_v56, %v14775_v18  ;;  %v150_v56 = vld [vmem:[%s18202_s3 + $0xa8] sm:$0xff] }
 0x2ad   :  { %12126 = vmatpush3.msra.mxu1 %v148_v54  ;;  %12052 = vmatmul.mubr.msk.f32.gmra.mxu0 %vm467_vm1, %v14741_v2  ;;  %v3433_v2 = vadd.f32 %v3426_v53, %v3412_v58  ;;  %v145_v53 = vld [vmem:[%s18202_s3 + $0x80] sm:$0xff]  ;;  %v15017_v54 = vpop.permute.xlu1 %7702  ;;  %v3334_v24 = vadd.f32 %v14835_v29, %v3331_v63  ;;  %v15030_v58 = vpop.permute.xlu0 %7779  ;;  %v3381_v15 = vadd.f32 %v3378_v35, %v3360_v16 }
 0x2ae   :  { %12127 = vmatprep.subr.mxu1 %v18303_v11  ;;  %12078 = vmatprep.subr.mxu0 %v18303_v11  ;;  %18323 = vst [vmem:[#allocation71_spill] sm:$0xff] %v15030_v58 }
 0x2af   :  { %12105 = vmatprep.mubr.msk.f32.mxu1 %vm13146_vm0, %v18303_v11  ;;  %12128 = vmatpush3.msra.mxu1 %v147_v3  ;;  %v3428_v3 = vsel %vm447_vm2, %v3425_v23, %v3427_v32  ;;  %v18321_v32 = vld [vmem:[#allocation8_spill] sm:$0xff]  ;;  %v3438_v23 = vmax.f32 %v3435_v51, 0.0  ;;  %v3436_v14 = vadd.f32 %v14835_v29, %v3433_v2  ;;  %v3337_v63 = vmax.f32 %v3334_v24, 0.0 }
 0x2b0   :  { %12079 = vmatpush3.msra.mxu0 %v146_v30  ;;  %12106 = vmatmul.mubr.msk.f32.gmra.mxu1 %vm467_vm1, %v3286_v25  ;;  %v3237_v7 = vmul.f32 %v14753_v19, %v18321_v32  ;;  %v3434_v43 = vadd.f32 %v3428_v3, %v3413_v55  ;;  %18322 = vst [vmem:[#allocation8_spill] sm:$0xff] %v15017_v54  ;;  %v18329_v24 = vmax.f32 %v14864_v27, 0.0  ;;  %v18356_v54 = vld [vmem:[#allocation32_spill] sm:$0xff] }
 0x2b1   :  { %12129 = vmatprep.subr.mxu1 %v18303_v11  ;;  %12054 = vmatprep.mubr.msk.f32.mxu0 %vm13146_vm0, %v18303_v11  ;;  %v3439_v2 = vmax.f32 %v3436_v14, 0.0  ;;  %v3341_v55 = vmul.f32 %v14396_v12, %v14750_v9  ;;  %v3335_v3 = vadd.f32 %v14835_v29, %v3332_v31  ;;  %v15056_v12 = vpop.permute.xlu1 %7798  ;;  %v4880_v48 = vmul.f32 %v18356_v54, %v14753_v19  ;;  %v13082_v54 = vld [vmem:[%s18202_s3 + $0x98] sm:$0xff] }
 0x2b2   :  { %12130 = vmatpush3.msra.mxu1 %v146_v30  ;;  %12055 = vmatmul.mubr.msk.f32.gmra.mxu0 %vm467_vm1, %v14767_v38  ;;  %v3340_v38 = vmul.f32 %v14215_v62, %v14750_v9  ;;  %v18324_v62 = vld [vmem:[#allocation7_spill] sm:$0xff]  ;;  %v3241_v10 = vadd.f32 %v3237_v7, %v3209_v20  ;;  %v18325_v30 = vld [vmem:[#allocation12_spill] sm:$0xff]  ;;  %v3437_v47 = vadd.f32 %v14835_v29, %v3434_v43  ;;  %v3893_v16 = vrot.slane %v18329_v24, 1 }
 0x2b3   :  { %12080 = vmatprep.subr.mxu0 %v18303_v11  ;;  %12131 = vmatprep.subr.mxu1 %v18303_v11  ;;  %v3358_v8 = vmul.f32 %v18324_v62, %v14753_v19  ;;  %v3269_v51 = vmul.f32 %v14775_v18, %v18325_v30  ;;  %18327 = vst [vmem:[#allocation7_spill] sm:$0xff] %v15056_v12  ;;  %v18330_v62 = vmax.f32 %v14912_v34, 0.0 }
 0x2b4   :  { %12081 = vmatpush3.msra.mxu0 %v145_v53  ;;  %12132 = vmatpush3.msra.mxu1 %v145_v53  ;;  %v18326_v53 = vld [vmem:[#allocation6_spill] sm:$0xff]  ;;  %v3440_v20 = vmax.f32 %v3437_v47, 0.0  ;;  %v3384_v43 = vadd.f32 %v14835_v29, %v3381_v15 }
 0x2b5   :  { %12133 = vmatprep.mubr.msk.f32.mxu1 %vm13146_vm0, %v18303_v11  ;;  %12082 = vmatprep.mubr.msk.f32.mxu0 %vm13146_vm0, %v18303_v11  ;;  %v3359_v4 = vmul.f32 %v18326_v53, %v14753_v19  ;;  %v3361_v32 = vadd.f32 %v3358_v8, %v3340_v38  ;;  %v3273_v7 = vadd.f32 %v3269_v51, %v3241_v10  ;;  %v3894_v8 = vrot.slane %v18330_v62, 1  ;;  %v15086_v27 = vpop.permute.xlu1 %7843 }
 0x2b6   :  { %12134 = vmatmul.mubr.msk.f32.vlgmr.msra.gmra.mxu1 %vm467_vm1, %v3438_v23  ;;  %12108 = vmatprep.subr.mxu0 %v18303_v11  ;;  %v15063_v23 = vpop.permute.xlu0 %7816  ;;  %v3380_v38 = vmul.f32 %v14450_v49, %v14775_v18  ;;  %v149_v49 = vld [vmem:[%s18202_s3 + $0xa0] sm:$0xff]  ;;  %18331 = vst [vmem:[#allocation6_spill] sm:$0xff] %v15086_v27  ;;  %v3387_v34 = vmax.f32 %v3384_v43, 0.0 }
 0x2b7   :  { %12083 = vmatmul.mubr.msk.f32.vlgmr.msra.gmra.mxu0 %vm467_vm1, %v3336_v57  ;;  %12136 = vmatprep.mubr.msk.f32.mxu1 %vm13146_vm0, %v18303_v11  ;;  %18328 = vst [vmem:[#allocation12_spill] sm:$0xff] %v15063_v23  ;;  %v3362_v14 = vadd.f32 %v3359_v4, %v3341_v55  ;;  %v3338_v57 = vmax.f32 %v3335_v3, 0.0  ;;  %v3382_v31 = vadd.f32 %v3379_v39, %v3361_v32 }
 0x2b8   :  { %12109 = vmatpush3.msra.mxu0 %v152_v5  ;;  %12159 = vmatprep.subr.mxu1 %v18303_v11  ;;  %v3283_v35 = vadd.f32 %v14835_v29, %v3273_v7  ;;  %v3895_v47 = vsel %vm447_vm2, %v3893_v16, %v3894_v8 }
 0x2b9   :  { %12110 = vmatprep.subr.mxu0 %v18303_v11  ;;  %12085 = vmatprep.mubr.msk.f32.mxu0 %vm13146_vm0, %v18303_v11  ;;  %v3383_v10 = vadd.f32 %v3380_v38, %v3362_v14  ;;  %v3385_v51 = vadd.f32 %v14835_v29, %v3382_v31  ;;  %v15108_v55 = vpop.permute.xlu1 %7820 }
 0x2ba   :  { %12137 = vmatmul.mubr.msk.f32.gmra.mxu1 %vm467_vm1, %v3439_v2  ;;  %12111 = vmatpush3.msra.mxu0 %v151_v1  ;;  %v15090_v30 = vpop.permute.xlu0 %7802  ;;  %v3896_v2 = vrot.slane %v3286_v25, 1  ;;  %18333 = vst [vmem:[#allocation73_spill] sm:$0xff] %v15108_v55 }
 0x2bb   :  { %12160 = vmatpush3.msra.mxu1 %v152_v5  ;;  %12086 = vmatmul.mubr.msk.f32.gmra.mxu0 %vm467_vm1, %v3337_v63  ;;  %18332 = vst [vmem:[#allocation72_spill] sm:$0xff] %v15090_v30  ;;  %v3287_v5 = vmax.f32 %v3283_v35, 0.0  ;;  %v3388_v63 = vmax.f32 %v3385_v51, 0.0  ;;  %v15183_v51 = vld [vmem:[%s18204_s5 + $0x70] sm:$0xff] }
 0x2bc   :  { %12161 = vmatprep.subr.mxu1 %v18303_v11  ;;  %12112 = vmatprep.subr.mxu0 %v18303_v11  ;;  %v3897_v25 = vsel %vm447_vm2, %v3894_v8, %v3896_v2 }
 0x2bd   :  { %12139 = vmatprep.mubr.msk.f32.mxu1 %vm13146_vm0, %v18303_v11  ;;  %12162 = vmatpush3.msra.mxu1 %v151_v1  ;;  %v3386_v1 = vadd.f32 %v14835_v29, %v3383_v10  ;;  %v3898_v61 = vrot.slane %v3287_v5, 1  ;;  %v15176_v10 = vld [vmem:[%s18204_s5 + $0x78] sm:$0xff]  ;;  %v15190_v5 = vld [vmem:[%s18204_s5 + $0x68] sm:$0xff] }
 0x2be   :  { %12113 = vmatpush3.msra.mxu0 %v150_v56  ;;  %12140 = vmatmul.mubr.msk.f32.gmra.mxu1 %vm467_vm1, %v3440_v20 }
 0x2bf   :  { %12163 = vmatprep.subr.mxu1 %v18303_v11  ;;  %12088 = vmatprep.mubr.msk.f32.mxu0 %vm13146_vm0, %v18303_v11  ;;  %v3899_v29 = vsel %vm447_vm2, %v3896_v2, %v3898_v61  ;;  %v3389_v3 = vmax.f32 %v3386_v1, 0.0  ;;  %v15204_v2 = vld [vmem:[%s18204_s5 + $0x98] sm:$0xff]  ;;  %v15211_v1 = vld [vmem:[%s18204_s5 + $0x90] sm:$0xff]  ;;  %v15218_v61 = vld [vmem:[%s18204_s5 + $0x88] sm:$0xff] }
 0x2c0   :  { %12164 = vmatpush3.msra.mxu1 %v150_v56  ;;  %12089 = vmatmul.mubr.msk.f32.gmra.mxu0 %vm467_vm1, %v3338_v57 }
 0x2c1   :  { %12114 = vmatprep.subr.mxu0 %v18303_v11  ;;  %12165 = vmatprep.subr.mxu1 %v18303_v11 }
 0x2c2   :  { %12115 = vmatpush3.msra.mxu0 %v149_v49  ;;  %12166 = vmatpush3.msra.mxu1 %v149_v49 }
 0x2c3   :  { %12167 = vmatprep.mubr.msk.f32.mxu1 %vm13146_vm0, %v18303_v11  ;;  %12116 = vmatprep.mubr.msk.f32.mxu0 %vm13146_vm0, %v18303_v11 }
 0x2c4   :  { %12168 = vmatmul.mubr.msk.f32.vlgmr.msra.gmra.mxu1 %vm467_vm1, %v3895_v47  ;;  %12142 = vmatprep.subr.mxu0 %v18303_v11  ;;  %v15197_v47 = vld [vmem:[%s18204_s5 + $0x60] sm:$0xff] }
 0x2c5   :  { %12117 = vmatmul.mubr.msk.f32.vlgmr.msra.gmra.mxu0 %vm467_vm1, %v3387_v34  ;;  %12170 = vmatprep.mubr.msk.f32.mxu1 %vm13146_vm0, %v18303_v11 }
 0x2c6   :  { %12143 = vmatpush3.msra.mxu0 %v14822_v37  ;;  %12119 = vmatprep.mubr.msk.f32.mxu0 %vm13146_vm0, %v18303_v11  ;;  %v15116_v37 = vpop.permute.xlu0 %7847 }
 0x2c7   :  { %12144 = vmatprep.subr.mxu0 %v18303_v11  ;;  %12193 = vmatprep.subr.mxu1 %v18303_v11  ;;  %18334 = vst [vmem:[#allocation74_spill] sm:$0xff] %v15116_v37 }
 0x2c8   :  { %12171 = vmatmul.mubr.msk.f32.gmra.mxu1 %vm467_vm1, %v3897_v25  ;;  %12145 = vmatpush3.msra.mxu0 %v14848_v22  ;;  %v15129_v22 = vpop.permute.xlu1 %7806  ;;  %v15225_v25 = vld [vmem:[%s18204_s5 + $0x80] sm:$0xff] }
 0x2c9   :  { %12120 = vmatmul.mubr.msk.f32.gmra.mxu0 %vm467_vm1, %v3388_v63  ;;  %12146 = vmatprep.subr.mxu0 %v18303_v11  ;;  %18335 = vst [vmem:[#allocation75_spill] sm:$0xff] %v15129_v22 }
 0x2ca   :  { %12173 = vmatprep.mubr.msk.f32.mxu1 %vm13146_vm0, %v18303_v11  ;;  %12147 = vmatpush3.msra.mxu0 %v14872_v60  ;;  %v15136_v60 = vpop.permute.xlu0 %7686 }
 0x2cb   :  { %12122 = vmatprep.mubr.msk.f32.mxu0 %vm13146_vm0, %v18303_v11  ;;  %12148 = vmatprep.subr.mxu0 %v18303_v11  ;;  %18336 = vst [vmem:[#allocation76_spill] sm:$0xff] %v15136_v60 }
 0x2cc   :  { %12174 = vmatmul.mubr.msk.f32.gmra.mxu1 %vm467_vm1, %v3899_v29  ;;  %12149 = vmatpush3.msra.mxu0 %v14893_v50  ;;  %v15142_v50 = vpop.permute.xlu1 %7824 }
 0x2cd   :  { %12123 = vmatmul.mubr.msk.f32.gmra.mxu0 %vm467_vm1, %v3389_v3  ;;  %12201 = vmatprep.mubr.msk.f32.mxu1 %vm13146_vm0, %v18303_v11  ;;  %18337 = vst [vmem:[#allocation77_spill] sm:$0xff] %v15142_v50 }
 0x2ce   :  { %12150 = vmatprep.mubr.msk.f32.mxu0 %vm13146_vm0, %v18303_v11  ;;  %12176 = vmatprep.subr.mxu0 %v18303_v11  ;;  %v15144_v53 = vpop.permute.xlu0 %7851 }
 0x2cf   :  { %18338 = vst [vmem:[#allocation78_spill] sm:$0xff] %v15144_v53  ;;  %12194 = vmatpush3.msra.mxu1 %v15176_v10 }
 0x2d0   :  { %v15149_v4 = vpop.permute.xlu1 %7706  ;;  %12195 = vmatprep.subr.mxu1 %v18303_v11 }
 0x2d1   :  { %12151 = vmatmul.mubr.msk.f32.vlgmr.msra.gmra.mxu0 %vm467_vm1, %v3387_v34  ;;  %18339 = vst [vmem:[#allocation79_spill] sm:$0xff] %v15149_v4  ;;  %12196 = vmatpush3.msra.mxu1 %v15183_v51 }
 0x2d2   :  { %12153 = vmatprep.mubr.msk.f32.mxu0 %vm13146_vm0, %v18303_v11  ;;  %v15152_v15 = vpop.permute.xlu0 %7730  ;;  %12197 = vmatprep.subr.mxu1 %v18303_v11 }
 0x2d3   :  { %18340 = vst [vmem:[#allocation80_spill] sm:$0xff] %v15152_v15  ;;  %12198 = vmatpush3.msra.mxu1 %v15190_v5  ;;  %12177 = vmatpush3.msra.mxu0 %v15204_v2 }
 0x2d4   :  { %12199 = vmatprep.subr.mxu1 %v18303_v11  ;;  %12178 = vmatprep.subr.mxu0 %v18303_v11 }
 0x2d5   :  { %12154 = vmatmul.mubr.msk.f32.gmra.mxu0 %vm467_vm1, %v3388_v63  ;;  %12200 = vmatpush3.msra.mxu1 %v15197_v47 }
 0x2d6   :  { %12156 = vmatprep.mubr.msk.f32.mxu0 %vm13146_vm0, %v18303_v11  ;;  %12227 = vmatprep.subr.mxu1 %v18303_v11 }
 0x2d7   :  { %12179 = vmatpush3.msra.mxu0 %v15211_v1 }
 0x2d8   :  { %12180 = vmatprep.subr.mxu0 %v18303_v11 }
 0x2d9   :  { %12157 = vmatmul.mubr.msk.f32.gmra.mxu0 %vm467_vm1, %v3389_v3 }
 0x2da   :  { %12184 = vmatprep.mubr.msk.f32.mxu0 %vm13146_vm0, %v18303_v11  ;;  %12181 = vmatpush3.msra.mxu0 %v15218_v61 }
 0x2db   :  { %12182 = vmatprep.subr.mxu0 %v18303_v11 }
 0x2dc   :  { %12183 = vmatpush3.msra.mxu0 %v15225_v25 }
 0x2dd   :  { %12210 = vmatprep.subr.mxu0 %v18303_v11 }
 0x2de   :  { %v1582_v39 = vpop.permute.xlu1 %1581 }
 0x2df   :  { %1585 = vst.msk [vmem:[#allocation2] sm:$0x1] %vm1584_vm4, %v1582_v39 }
 0x2e0   :  { %v1612_v32 = vpop.permute.xlu0 %1611 }
 0x2e1   :  { %1614 = vst.msk [vmem:[#allocation2 + $0x2] sm:$0x1] %vm1584_vm4, %v1612_v32 }
 0x2e2   :  { %v1588_v7 = vpop.permute.xlu1 %1587 }
 0x2e3   :  { %1591 = vst.msk [vmem:[#allocation2] sm:$0x1] %vm1590_vm5, %v1588_v7 }
 0x2e4   :  { %v1617_v20 = vpop.permute.xlu0 %1616 }
 0x2e5   :  { %1619 = vst.msk [vmem:[#allocation2 + $0x2] sm:$0x1] %vm1590_vm5, %v1617_v20 }
 0x2e6   :  { %v1595_v56 = vpop.permute.xlu1 %1594 }
 0x2e7   :  { %1598 = vst.msk [vmem:[#allocation2] sm:$0x1] %vm1597_vm6, %v1595_v56 }
 0x2e8   :  { %v1623_v14 = vpop.permute.xlu0 %1622 }
 0x2e9   :  { %1625 = vst.msk [vmem:[#allocation2 + $0x2] sm:$0x1] %vm1597_vm6, %v1623_v14 }
 0x2ea   :  { %v1638_v43 = vpop.permute.xlu1 %1637 }
 0x2eb   :  { %1640 = vst.msk [vmem:[#allocation2 + $0x4] sm:$0x1] %vm1584_vm4, %v1638_v43 }
 0x2ec   :  { %v1665_v38 = vpop.permute.xlu0 %1664 }
 0x2ed   :  { %1667 = vst.msk [vmem:[#allocation2 + $0x6] sm:$0x1] %vm1584_vm4, %v1665_v38 }
 0x2ee   :  { %v1643_v57 = vpop.permute.xlu1 %1642 }
 0x2ef   :  { %1645 = vst.msk [vmem:[#allocation2 + $0x4] sm:$0x1] %vm1590_vm5, %v1643_v57 }
 0x2f0   :  { %v1670_v24 = vpop.permute.xlu0 %1669 }
 0x2f1   :  { %1672 = vst.msk [vmem:[#allocation2 + $0x6] sm:$0x1] %vm1590_vm5, %v1670_v24 }
 0x2f2   :  { %v1649_v16 = vpop.permute.xlu1 %1648 }
 0x2f3   :  { %1651 = vst.msk [vmem:[#allocation2 + $0x4] sm:$0x1] %vm1597_vm6, %v1649_v16 }
 0x2f4   :  { %v1676_v31 = vpop.permute.xlu0 %1675 }
 0x2f5   :  { %1678 = vst.msk [vmem:[#allocation2 + $0x6] sm:$0x1] %vm1597_vm6, %v1676_v31 }
 0x2f7   :  { %v1691_v35 = vpop.permute.xlu1 %1690 }
 0x2f8   :  { %1693 = vst.msk [vmem:[#allocation2 + $0x8] sm:$0x1] %vm1584_vm4, %v1691_v35  ;;  %v1718_v62 = vpop.permute.xlu0 %1717 }
 0x2f9   :  { %1720 = vst.msk [vmem:[#allocation2 + $0xa] sm:$0x1] %vm1584_vm4, %v1718_v62 }
 0x2fc   :  { %v1696_v8 = vpop.permute.xlu1 %1695  ;;  %v1723_v49 = vpop.permute.xlu0 %1722 }
 0x2fd   :  { %1698 = vst.msk [vmem:[#allocation2 + $0x8] sm:$0x1] %vm1590_vm5, %v1696_v8  ;;  %1725 = vst.msk [vmem:[#allocation2 + $0xa] sm:$0x1] %vm1590_vm5, %v1723_v49 }
 0x300   :  { %v1702_v34 = vpop.permute.xlu1 %1701 }
 0x301   :  { %1704 = vst.msk [vmem:[#allocation2 + $0x8] sm:$0x1] %vm1597_vm6, %v1702_v34 }
 0x340   :  { %v2652_v63 = vpop.f32.mrf.mxu1 }
 0x342   :  { %v11999_v29 = vpop.f32.mrf.mxu1 }
 0x344   :  { %v2657_v3 = vpop.f32.mrf.mxu1 }
 0x346   :  { %v12002_v39 = vpop.f32.mrf.mxu1 }
 0x348   :  { %v2662_v32 = vpop.f32.mrf.mxu1 }
 0x34a   :  { %v12005_v7 = vpop.f32.mrf.mxu1 }
 0x34c   :  { %v2832_v20 = vpop.f32.mrf.mxu1 }
 0x34e   :  { %v2563_v56 = vpop.f32.mrf.mxu0  ;;  %v12033_v14 = vpop.f32.mrf.mxu1 }
 0x350   :  { %v11982_v43 = vpop.f32.mrf.mxu0  ;;  %v2837_v38 = vpop.f32.mrf.mxu1 }
 0x351   :  { %v2653_v43 = vadd.f32 %v2652_v63, %v2563_v56 }
 0x352   :  { %v2568_v57 = vpop.f32.mrf.mxu0  ;;  %v12036_v24 = vpop.f32.mrf.mxu1 }
 0x353   :  { %v2658_v53 = vadd.f32 %v2657_v3, %v2568_v57 }
 0x354   :  { %v11985_v16 = vpop.f32.mrf.mxu0  ;;  %v2842_v31 = vpop.f32.mrf.mxu1 }
 0x356   :  { %v2573_v35 = vpop.f32.mrf.mxu0  ;;  %v12039_v62 = vpop.f32.mrf.mxu1 }
 0x358   :  { %v11988_v8 = vpop.f32.mrf.mxu0 }
 0x35a   :  { %v3003_v49 = vpop.f32.mrf.mxu1 }
 0x35b   :  { %v2743_v34 = vpop.f32.mrf.mxu0 }
 0x35c   :  { %v12067_v22 = vpop.f32.mrf.mxu1  ;;  %v2757_v6 = vadd.f32 %v2743_v34, %v2653_v43  ;;  %v2663_v34 = vadd.f32 %v2662_v32, %v2573_v35 }
 0x35d   :  { %v12016_v29 = vpop.f32.mrf.mxu0  ;;  %v13076_v22 = vld [vmem:[%s18205_s6] ss:$0 sm:$0xff] }
 0x35e   :  { %v3008_v15 = vpop.f32.mrf.mxu1  ;;  %v2760_v29 = vadd.f32 %v13076_v22, %v2757_v6 }
 0x35f   :  { %v2748_v39 = vpop.f32.mrf.mxu0 }
 0x360   :  { %v12070_v30 = vpop.f32.mrf.mxu1  ;;  %v2763_v37 = vmax.f32 %v2760_v29, 0.0 }
 0x361   :  { %v12019_v7 = vpop.f32.mrf.mxu0  ;;  %v2758_v30 = vadd.f32 %v2748_v39, %v2658_v53 }
 0x362   :  { %v3013_v4 = vpop.f32.mrf.mxu1 }
 0x363   :  { %v2761_v3 = vadd.f32 %v13076_v22, %v2758_v30 }
 0x364   :  { %v2753_v12 = vpop.f32.mrf.mxu0  ;;  %v12073_v14 = vpop.f32.mrf.mxu1 }
 0x365   :  { %v2764_v39 = vmax.f32 %v2761_v3, 0.0 }
 0x366   :  { %v12022_v58 = vpop.f32.mrf.mxu0 }
 0x368   :  { %v15229_v24 = vpop.f32.mrf.mxu1 }
 0x369   :  { %v2912_v16 = vpop.f32.mrf.mxu0 }
 0x36a   :  { %v2913_v62 = vadd.f32 %v2912_v16, %v2832_v20  ;;  %v12101_v8 = vpop.f32.mrf.mxu1  ;;  %v2759_v16 = vadd.f32 %v2753_v12, %v2663_v34 }
 0x36b   :  { %v12050_v50 = vpop.f32.mrf.mxu0 }
 0x36c   :  { %v3017_v7 = vadd.f32 %v3003_v49, %v2913_v62  ;;  %v15234_v60 = vpop.f32.mrf.mxu1  ;;  %v2762_v35 = vadd.f32 %v13076_v22, %v2759_v16 }
 0x36d   :  { %v2917_v14 = vpop.f32.mrf.mxu0 }
 0x36e   :  { %v3020_v63 = vadd.f32 %v13076_v22, %v3017_v7  ;;  %v2918_v58 = vadd.f32 %v2917_v14, %v2837_v38  ;;  %v12104_v56 = vpop.f32.mrf.mxu1 }
 0x36f   :  { %v12053_v43 = vpop.f32.mrf.mxu0  ;;  %v2765_v56 = vmax.f32 %v2762_v35, 0.0 }
 0x370   :  { %v3023_v20 = vmax.f32 %v3020_v63, 0.0  ;;  %v3018_v57 = vadd.f32 %v3008_v15, %v2918_v58  ;;  %v15236_v50 = vpop.f32.mrf.mxu1 }
 0x372   :  { %v3026_v8 = vmax.f32 %v2763_v37, %v3023_v20  ;;  %v3021_v55 = vadd.f32 %v13076_v22, %v3018_v57  ;;  %v2922_v6 = vpop.f32.mrf.mxu0  ;;  %v12107_v53 = vpop.f32.mrf.mxu1 }
 0x373   :  { %v2923_v49 = vadd.f32 %v2922_v6, %v2842_v31 }
 0x374   :  { %v3055_v62 = vcombine.high %v3026_v8, %v3026_v8  ;;  %3029 = vst.msk [vmem:[#allocation2 + $0x1] sm:$0x1] %vm1569_vm3, %v3026_v8  ;;  %v3024_v38 = vmax.f32 %v3021_v55, 0.0  ;;  %v12056_v7 = vpop.f32.mrf.mxu0  ;;  %v3037_v32 = vrot.slane %v3026_v8, %v14600_v0 }
 0x375   :  { %v3019_v29 = vadd.f32 %v3013_v4, %v2923_v49 }
 0x376   :  { %v3027_v30 = vmax.f32 %v2764_v39, %v3024_v38  ;;  %v15240_v15 = vpop.f32.mrf.mxu1  ;;  %v10611_v14 = vrot.slane %v3037_v32, 9  ;;  %v3062_v12 = vrot.slane %v3055_v62, %v14600_v0  ;;  %v3044_v3 = vcombine.high %v3037_v32, %v3037_v32 }
 0x377   :  { %v3022_v37 = vadd.f32 %v13076_v22, %v3019_v29  ;;  %v3516_v63 = vpop.f32.mrf.mxu0 }
 0x378   :  { %v3108_v58 = vcombine.high %v3027_v30, %v3027_v30  ;;  %3082 = vst.msk [vmem:[#allocation2 + $0x5] sm:$0x1] %vm1569_vm3, %v3027_v30  ;;  %v12135_v31 = vpop.f32.mrf.mxu1  ;;  %3040 = vrot.lane.b32.xlu1 %v10611_v14, %s13149_s18  ;;  %v10613_v55 = vrot.slane %v3062_v12, 9  ;;  %3064 = vst.msk [vmem:[#allocation2 + $0x3] sm:$0x1] %vm1569_vm3, %v3062_v12  ;;  %v3071_v8 = vcombine.high %v3062_v12, %v3062_v12  ;;  %v10612_v39 = vrot.slane %v3044_v3, 9 }
 0x379   :  { %v3025_v34 = vmax.f32 %v3022_v37, 0.0  ;;  %v12084_v4 = vpop.f32.mrf.mxu0  ;;  %v3090_v62 = vrot.slane %v3027_v30, %v14600_v0  ;;  %v3606_v12 = vadd.f32 %v15229_v24, %v3516_v63 }
 0x37a   :  { %v15246_v43 = vpop.f32.mrf.mxu1  ;;  %3067 = vrot.lane.b32.xlu0 %v10613_v55, %s13149_s18  ;;  %v3115_v22 = vrot.slane %v3108_v58, %v14600_v0  ;;  %v10614_v35 = vrot.slane %v3071_v8, 9  ;;  %v15269_v58 = vld [vmem:[%s18203_s4 + $0x1] ss:$0 sm:$0xff] }
 0x37b   :  { %v3028_v20 = vmax.f32 %v2765_v56, %v3025_v34  ;;  %v3521_v57 = vpop.f32.mrf.mxu0  ;;  %v10615_v14 = vrot.slane %v3090_v62, 9  ;;  %v3097_v34 = vcombine.high %v3090_v62, %v3090_v62 }
 0x37c   :  { %v12138_v16 = vpop.f32.mrf.mxu1  ;;  %3045 = vrot.lane.b32.xlu1 %v3044_v3, %s13150_s19  ;;  %3117 = vst.msk [vmem:[#allocation2 + $0x7] sm:$0x1] %vm1569_vm3, %v3115_v22  ;;  %v10617_v30 = vrot.slane %v3115_v22, 9  ;;  %v3611_v3 = vadd.f32 %v15234_v60, %v3521_v57 }
 0x37d   :  { %v3161_v6 = vcombine.high %v3028_v20, %v3028_v20  ;;  %3135 = vst.msk [vmem:[#allocation2 + $0x9] sm:$0x1] %vm1569_vm3, %v3028_v20  ;;  %v12087_v53 = vpop.f32.mrf.mxu0  ;;  %v3124_v16 = vcombine.high %v3115_v22, %v3115_v22 }
 0x37e   :  { %v15253_v49 = vpop.f32.mrf.mxu1  ;;  %3072 = vrot.lane.b32.xlu0 %v3071_v8, %s13150_s19 }
 0x37f   :  { %v15258_v38 = vrot.slane %v3161_v6, %v14600_v0  ;;  %v10618_v22 = vrot.slane %v3124_v16, 9 }
 0x380   :  { %v3526_v7 = vpop.f32.mrf.mxu0  ;;  %v12141_v32 = vpop.f32.mrf.mxu1  ;;  %3051 = vrot.lane.b32.xlu1 %v10612_v39, %s13151_s20 }
 0x381   :  { %3170 = vst.msk [vmem:[#allocation2 + $0xb] sm:$0x1] %vm1569_vm3, %v15258_v38  ;;  %v10616_v32 = vrot.slane %v3097_v34, 9  ;;  %v3616_v62 = vadd.f32 %v15236_v50, %v3526_v7 }
 0x382   :  { %v12090_v29 = vpop.f32.mrf.mxu0  ;;  %3078 = vrot.lane.b32.xlu0 %v10614_v35, %s13151_s20 }
 0x383   :  { %v3143_v29 = vrot.slane %v3028_v20, %v14600_v0 }
 0x384   :  { %v3972_v37 = vpop.f32.mrf.mxu1  ;;  %3093 = vrot.lane.b32.xlu1 %v10615_v14, %s13149_s18 }
 0x385   :  { %v3694_v31 = vpop.f32.mrf.mxu0  ;;  %v10619_v20 = vrot.slane %v3143_v29, 9 }
 0x386   :  { %v3708_v55 = vadd.f32 %v3694_v31, %v3606_v12  ;;  %v12169_v56 = vpop.f32.mrf.mxu1  ;;  %3120 = vrot.lane.b32.xlu0 %v10617_v30, %s13149_s18 }
 0x387   :  { %v12118_v4 = vpop.f32.mrf.mxu0 }
 0x388   :  { %v3717_v24 = vadd.f32 %v15269_v58, %v3708_v55  ;;  %v3977_v63 = vpop.f32.mrf.mxu1  ;;  %3098 = vrot.lane.b32.xlu1 %v3097_v34, %s13150_s19  ;;  %v10621_v55 = vrot.slane %v15258_v38, 9 }
 0x389   :  { %v3699_v8 = vpop.f32.mrf.mxu0 }
 0x38a   :  { %v3720_v6 = vmax.f32 %v3717_v24, 0.0  ;;  %v3709_v53 = vadd.f32 %v3699_v8, %v3611_v3  ;;  %v12172_v39 = vpop.f32.mrf.mxu1  ;;  %3125 = vrot.lane.b32.xlu0 %v3124_v16, %s13150_s19  ;;  %v3150_v8 = vcombine.high %v3143_v29, %v3143_v29 }
 0x38b   :  { %v12121_v35 = vpop.f32.mrf.mxu0 }
 0x38c   :  { %v3718_v60 = vadd.f32 %v15269_v58, %v3709_v53  ;;  %v3982_v57 = vpop.f32.mrf.mxu1  ;;  %12202 = vmatmul.mubr.msk.f32.vlgmr.msra.gmra.mxu1 %vm467_vm1, %v3720_v6  ;;  %3104 = vrot.lane.b32.xlu1 %v10616_v32, %s13151_s20  ;;  %v3177_v53 = vcombine.high %v15258_v38, %v15258_v38  ;;  %v4173_v39 = vrot.slane %v3720_v6, 1 }
 0x38d   :  { %v3704_v14 = vpop.f32.mrf.mxu0  ;;  %12204 = vmatprep.mubr.msk.f32.mxu1 %vm13146_vm0, %v18303_v11  ;;  %12228 = vmatpush3.msra.mxu1 %v15204_v2 }
 0x38e   :  { %v3721_v12 = vmax.f32 %v3718_v60, 0.0  ;;  %v3710_v30 = vadd.f32 %v3704_v14, %v3616_v62  ;;  %v12175_v31 = vpop.f32.mrf.mxu1  ;;  %3131 = vrot.lane.b32.xlu0 %v10618_v22, %s13151_s20  ;;  %12229 = vmatprep.subr.mxu1 %v18303_v11 }
 0x38f   :  { %v12124_v50 = vpop.f32.mrf.mxu0  ;;  %12230 = vmatpush3.msra.mxu1 %v15211_v1 }
 0x390   :  { %v3719_v7 = vadd.f32 %v15269_v58, %v3710_v30  ;;  %12205 = vmatmul.mubr.msk.f32.gmra.mxu1 %vm467_vm1, %v3721_v12  ;;  %12231 = vmatprep.subr.mxu1 %v18303_v11  ;;  %v4174_v3 = vrot.slane %v3721_v12, 1 }
 0x391   :  { %v3878_v56 = vpop.f32.mrf.mxu0  ;;  %12207 = vmatprep.mubr.msk.f32.mxu1 %vm13146_vm0, %v18303_v11  ;;  %3146 = vrot.lane.b32.xlu1 %v10619_v20, %s13149_s18 }
 0x392   :  { %v3722_v34 = vmax.f32 %v3719_v7, 0.0  ;;  %v3879_v4 = vadd.f32 %v3878_v56, %v15240_v15  ;;  %12232 = vmatpush3.msra.mxu1 %v15218_v61  ;;  %3173 = vrot.lane.b32.xlu0 %v10621_v55, %s13149_s18  ;;  %v4175_v29 = vsel %vm447_vm2, %v4173_v39, %v4174_v3  ;;  %v18341_v55 = vld [vmem:[#allocation10_spill] sm:$0xff] }
 0x393   :  { %v12152_v24 = vpop.f32.mrf.mxu0  ;;  %12233 = vmatprep.subr.mxu1 %v18303_v11  ;;  %v4714_v56 = vmul.f32 %v18341_v55, %v14750_v9 }
 0x394   :  { %v3986_v16 = vadd.f32 %v3972_v37, %v3879_v4  ;;  %12208 = vmatmul.mubr.msk.f32.gmra.mxu1 %vm467_vm1, %v3722_v34  ;;  %v15311_v37 = vld [vmem:[%s18204_s5 + $0xb8] sm:$0xff]  ;;  %v15313_v38 = vrot.slane %v3722_v34, 1  ;;  %v18342_v34 = vld [vmem:[#allocation11_spill] sm:$0xff]  ;;  %v15372_v24 = vld [vmem:[%s18204_s5 + $0xa0] sm:$0xff] }
 0x395   :  { %v3883_v32 = vpop.f32.mrf.mxu0  ;;  %12234 = vmatpush3.msra.mxu1 %v15225_v25  ;;  %12235 = vmatprep.mubr.msk.f32.mxu1 %vm13146_vm0, %v18303_v11  ;;  %v4734_v4 = vmul.f32 %v18342_v34, %v14753_v19 }
 0x396   :  { %v3989_v15 = vadd.f32 %v15269_v58, %v3986_v16  ;;  %v3884_v35 = vadd.f32 %v3883_v32, %v15246_v43  ;;  %3151 = vrot.lane.b32.xlu1 %v3150_v8, %s13150_s19  ;;  %3178 = vrot.lane.b32.xlu0 %v3177_v53, %s13150_s19  ;;  %v10620_v43 = vrot.slane %v3150_v8, 9  ;;  %v4177_v30 = vsel %vm447_vm2, %v4174_v3, %v15313_v38  ;;  %v18343_v8 = vld [vmem:[#allocation9_spill] sm:$0xff] }
 0x397   :  { %v12155_v6 = vpop.f32.mrf.mxu0  ;;  %12261 = vmatprep.subr.mxu1 %v18303_v11  ;;  %v4758_v53 = vmul.f32 %v18343_v8, %v14775_v18  ;;  %v4738_v39 = vadd.f32 %v4734_v4, %v4714_v56  ;;  %v18348_v56 = vld [vmem:[#allocation24_spill] sm:$0xff] }
 0x398   :  { %v15317_v62 = vmax.f32 %v3989_v15, 0.0  ;;  %v3987_v60 = vadd.f32 %v3977_v63, %v3884_v35  ;;  %12236 = vmatmul.mubr.msk.f32.vlgmr.msra.gmra.mxu1 %vm467_vm1, %v4175_v29  ;;  %v18344_v35 = vld [vmem:[#allocation15_spill] sm:$0xff]  ;;  %v4716_v34 = vmul.f32 %v18348_v56, %v14750_v9  ;;  %v15416_v4 = vld [vmem:[%s18202_s3 + $0x78] sm:$0xff] }
 0x399   :  { %v3888_v22 = vpop.f32.mrf.mxu0  ;;  %12238 = vmatprep.mubr.msk.f32.mxu1 %vm13146_vm0, %v18303_v11  ;;  %12262 = vmatpush3.msra.mxu1 %v15311_v37  ;;  %v4715_v6 = vmul.f32 %v18344_v35, %v14750_v9 }
 0x39a   :  { %v3990_v14 = vadd.f32 %v15269_v58, %v3987_v60  ;;  %v3889_v12 = vadd.f32 %v3888_v22, %v15253_v49  ;;  %12185 = vmatmul.mubr.msk.f32.vlgmr.msra.gmra.mxu0 %vm467_vm1, %v15317_v62  ;;  %3157 = vrot.lane.b32.xlu0 %v10620_v43, %s13151_s20  ;;  %v15340_v49 = vld [vmem:[%s18204_s5 + $0xb0] sm:$0xff]  ;;  %v4439_v16 = vrot.slane %v15317_v62, 1  ;;  %v4762_v22 = vadd.f32 %v4758_v53, %v4738_v39  ;;  %v15433_v39 = vld [vmem:[%s18201_s2 + $0x1] ss:$0 sm:$0xff] }
 0x39b   :  { %12211 = vmatpush3.msra.mxu0 %v15311_v37  ;;  %v12158_v63 = vpop.f32.mrf.mxu0  ;;  %12187 = vmatprep.mubr.msk.f32.mxu0 %vm13146_vm0, %v18303_v11  ;;  %v18345_v60 = vld [vmem:[#allocation20_spill] sm:$0xff]  ;;  %v4774_v53 = vmul.f32 %v18343_v8, %v14750_v9 }
 0x39c   :  { %v15333_v31 = vmax.f32 %v3990_v14, 0.0  ;;  %v3988_v50 = vadd.f32 %v3982_v57, %v3889_v12  ;;  %12212 = vmatprep.subr.mxu0 %v18303_v11  ;;  %12239 = vmatmul.mubr.msk.f32.gmra.mxu1 %vm467_vm1, %v4177_v30  ;;  %v15354_v57 = vld [vmem:[%s18204_s5 + $0xa8] sm:$0xff]  ;;  %v4735_v43 = vmul.f32 %v18345_v60, %v14753_v19  ;;  %v18346_v14 = vld [vmem:[#allocation13_spill] sm:$0xff] }
 0x39d   :  { %12213 = vmatpush3.msra.mxu0 %v15340_v49  ;;  %12263 = vmatprep.subr.mxu1 %v18303_v11  ;;  %v4759_v12 = vmul.f32 %v18346_v14, %v14775_v18 }
 0x39e   :  { %v3991_v20 = vadd.f32 %v15269_v58, %v3988_v50  ;;  %12188 = vmatmul.mubr.msk.f32.gmra.mxu0 %vm467_vm1, %v15333_v31  ;;  %12214 = vmatprep.subr.mxu0 %v18303_v11  ;;  %v4440_v3 = vrot.slane %v15333_v31, 1  ;;  %v4739_v50 = vadd.f32 %v4735_v43, %v4715_v6  ;;  %v18350_v6 = vld [vmem:[#allocation22_spill] sm:$0xff] }
 0x39f   :  { %12241 = vmatprep.mubr.msk.f32.mxu1 %vm13146_vm0, %v18303_v11  ;;  %12264 = vmatpush3.msra.mxu1 %v15340_v49  ;;  %v4760_v60 = vmul.f32 %v18350_v6, %v14775_v18 }
 0x3a0   :  { %v15356_v7 = vmax.f32 %v3991_v20, 0.0  ;;  %12215 = vmatpush3.msra.mxu0 %v15354_v57  ;;  %12242 = vmatmul.mubr.msk.f32.gmra.mxu1 %vm467_vm1, %v15313_v38  ;;  %v4441_v32 = vsel %vm447_vm2, %v4439_v16, %v4440_v3  ;;  %v15424_v16 = vmul.f32 %v18344_v35, %v14775_v18  ;;  %v15445_v35 = vld [vmem:[%s18202_s3 + $0x70] sm:$0xff]  ;;  %v4763_v8 = vadd.f32 %v4759_v12, %v4739_v50 }
 0x3a1   :  { %12265 = vmatprep.subr.mxu1 %v18303_v11  ;;  %12190 = vmatprep.mubr.msk.f32.mxu0 %vm13146_vm0, %v18303_v11 }
 0x3a2   :  { %12266 = vmatpush3.msra.mxu1 %v15354_v57  ;;  %12191 = vmatmul.mubr.msk.f32.gmra.mxu0 %vm467_vm1, %v15356_v7  ;;  %v4442_v15 = vrot.slane %v15356_v7, 1  ;;  %v4894_v50 = vrot.slane %v15424_v16, 1  ;;  %v18353_v16 = vld [vmem:[#allocation16_spill] sm:$0xff]  ;;  %v15478_v27 = vadd.f32 %v15433_v39, %v4763_v8  ;;  %v18355_v8 = vld [vmem:[#allocation27_spill] sm:$0xff] }
 0x3a3   :  { %12216 = vmatprep.subr.mxu0 %v18303_v11  ;;  %12267 = vmatprep.subr.mxu1 %v18303_v11 }
 0x3a4   :  { %12217 = vmatpush3.msra.mxu0 %v15372_v24  ;;  %12268 = vmatpush3.msra.mxu1 %v15372_v24  ;;  %v4443_v63 = vsel %vm447_vm2, %v4440_v3, %v4442_v15  ;;  %v4885_v3 = vmul.f32 %v18341_v55, %v14775_v18  ;;  %v18349_v55 = vld [vmem:[#allocation14_spill] sm:$0xff] }
 0x3a5   :  { %12269 = vmatprep.mubr.msk.f32.mxu1 %vm13146_vm0, %v18303_v11  ;;  %12218 = vmatprep.mubr.msk.f32.mxu0 %vm13146_vm0, %v18303_v11 }
 0x3a6   :  { %12270 = vmatmul.mubr.msk.f32.vlgmr.msra.gmra.mxu1 %vm467_vm1, %v4441_v32  ;;  %12244 = vmatprep.subr.mxu0 %v18303_v11  ;;  %v4789_v32 = vmul.f32 %v18349_v55, %v14753_v19  ;;  %v4893_v12 = vrot.slane %v4885_v3, 1 }
 0x3a7   :  { %12219 = vmatmul.mubr.msk.f32.vlgmr.msra.gmra.mxu0 %vm467_vm1, %v4175_v29  ;;  %12272 = vmatprep.mubr.msk.f32.mxu1 %vm13146_vm0, %v18303_v11  ;;  %v18347_v29 = vld [vmem:[#allocation21_spill] sm:$0xff] }
 0x3a8   :  { %12245 = vmatpush3.msra.mxu0 %v15176_v10  ;;  %12295 = vmatprep.subr.mxu1 %v18303_v11  ;;  %v4736_v20 = vmul.f32 %v18347_v29, %v14753_v19  ;;  %v18352_v29 = vld [vmem:[#allocation28_spill] sm:$0xff] }
 0x3a9   :  { %12246 = vmatprep.subr.mxu0 %v18303_v11  ;;  %12221 = vmatprep.mubr.msk.f32.mxu0 %vm13146_vm0, %v18303_v11  ;;  %v4864_v55 = vmul.f32 %v18352_v29, %v14750_v9 }
 0x3aa   :  { %12273 = vmatmul.mubr.msk.f32.gmra.mxu1 %vm467_vm1, %v4443_v63  ;;  %12247 = vmatpush3.msra.mxu0 %v15183_v51  ;;  %v4740_v43 = vadd.f32 %v4736_v20, %v4716_v34  ;;  %v15463_v20 = vld [vmem:[%s18202_s3 + $0x68] sm:$0xff]  ;;  %v15470_v34 = vmul.f32 %v18348_v56, %v14775_v18  ;;  %v4775_v56 = vmul.f32 %v18346_v14, %v14750_v9 }
 0x3ab   :  { %12296 = vmatpush3.msra.mxu1 %v15416_v4  ;;  %12222 = vmatmul.mubr.msk.f32.gmra.mxu0 %vm467_vm1, %v4177_v30  ;;  %v15436_v30 = vadd.f32 %v15433_v39, %v4762_v22  ;;  %v18351_v22 = vld [vmem:[#allocation25_spill] sm:$0xff] }
 0x3ac   :  { %12297 = vmatprep.subr.mxu1 %v18303_v11  ;;  %12248 = vmatprep.subr.mxu0 %v18303_v11  ;;  %v4879_v63 = vmul.f32 %v18351_v22, %v14753_v19  ;;  %v4807_v22 = vmul.f32 %v18353_v16, %v14775_v18  ;;  %v4764_v23 = vadd.f32 %v4760_v60, %v4740_v43 }
 0x3ad   :  { %12275 = vmatprep.mubr.msk.f32.mxu1 %vm13146_vm0, %v18303_v11  ;;  %12298 = vmatpush3.msra.mxu1 %v15445_v35  ;;  %v4865_v60 = vmul.f32 %v18355_v8, %v14750_v9  ;;  %v4895_v43 = vsel %vm447_vm2, %v4893_v12, %v4894_v50  ;;  %v18357_v14 = vmax.f32 %v15436_v30, 0.0 }
 0x3ae   :  { %12249 = vmatpush3.msra.mxu0 %v15190_v5  ;;  %12276 = vmatmul.mubr.msk.f32.gmra.mxu1 %vm467_vm1, %v4442_v15  ;;  %v4792_v15 = vadd.f32 %v4789_v32, %v4774_v53  ;;  %v18354_v53 = vld [vmem:[#allocation18_spill] sm:$0xff]  ;;  %v4882_v3 = vadd.f32 %v4879_v63, %v4864_v55  ;;  %v4896_v63 = vrot.slane %v15470_v34, 1  ;;  %v15517_v34 = vadd.f32 %v15433_v39, %v4764_v23 }
 0x3af   :  { %12299 = vmatprep.subr.mxu1 %v18303_v11  ;;  %12224 = vmatprep.mubr.msk.f32.mxu0 %vm13146_vm0, %v18303_v11  ;;  %v4790_v32 = vmul.f32 %v18354_v53, %v14753_v19  ;;  %v18358_v55 = vld [vmem:[#allocation34_spill] sm:$0xff]  ;;  %v4883_v42 = vadd.f32 %v4880_v48, %v4865_v60  ;;  %v18362_v23 = vmax.f32 %v15478_v27, 0.0 }
 0x3b0   :  { %12300 = vmatpush3.msra.mxu1 %v15463_v20  ;;  %12225 = vmatmul.mubr.msk.f32.gmra.mxu0 %vm467_vm1, %v15313_v38  ;;  %v15484_v38 = vld [vmem:[%s18202_s3 + $0x60] sm:$0xff]  ;;  %v4888_v53 = vmul.f32 %v18358_v55, %v14775_v18  ;;  %v4810_v12 = vadd.f32 %v4807_v22, %v4792_v15  ;;  %v4903_v28 = vadd.f32 %v4895_v43, %v4882_v3  ;;  %v18360_v15 = vld [vmem:[#allocation31_spill] sm:$0xff] }
 0x3b1   :  { %12250 = vmatprep.subr.mxu0 %v18303_v11  ;;  %12301 = vmatprep.subr.mxu1 %v18303_v11  ;;  %v4866_v22 = vmul.f32 %v18360_v15, %v14750_v9  ;;  %v13083_v3 = vld [vmem:[%s18202_s3 + $0x90] sm:$0xff]  ;;  %v4776_v43 = vmul.f32 %v18350_v6, %v14750_v9  ;;  %v4897_v48 = vsel %vm447_vm2, %v4894_v50, %v4896_v63 }
 0x3b2   :  { %12251 = vmatpush3.msra.mxu0 %v15197_v47  ;;  %12302 = vmatpush3.msra.mxu1 %v15484_v38  ;;  %v4898_v60 = vrot.slane %v4888_v53, 1  ;;  %v4906_v6 = vadd.f32 %v15433_v39, %v4903_v28  ;;  %v4904_v50 = vadd.f32 %v4897_v48, %v4883_v42  ;;  %v4819_v28 = vmul.f32 %v18353_v16, %v14750_v9 }
 0x3b3   :  { %12303 = vmatprep.mubr.msk.f32.mxu1 %vm13146_vm0, %v18303_v11  ;;  %12252 = vmatprep.mubr.msk.f32.mxu0 %vm13146_vm0, %v18303_v11  ;;  %v4820_v48 = vmul.f32 %v18359_v45, %v14750_v9 }
 0x3b4   :  { %12304 = vmatmul.mubr.msk.f32.vlgmr.msra.gmra.mxu1 %vm467_vm1, %v18357_v14  ;;  %12278 = vmatprep.subr.mxu0 %v18303_v11  ;;  %v18361_v14 = vld [vmem:[#allocation36_spill] sm:$0xff]  ;;  %v4907_v16 = vadd.f32 %v15433_v39, %v4904_v50  ;;  %v4852_v50 = vmul.f32 %v18352_v29, %v14775_v18 }
 0x3b5   :  { %12253 = vmatmul.mubr.msk.f32.vlgmr.msra.gmra.mxu0 %vm467_vm1, %v15317_v62  ;;  %12306 = vmatprep.mubr.msk.f32.mxu1 %vm13146_vm0, %v18303_v11  ;;  %v4793_v62 = vadd.f32 %v4790_v32, %v4775_v56  ;;  %v4881_v17 = vmul.f32 %v18361_v14, %v14753_v19  ;;  %v18363_v56 = vld [vmem:[#allocation19_spill] sm:$0xff]  ;;  %v4772_v14 = vmax.f32 %v15517_v34, 0.0  ;;  %v13086_v29 = vld [vmem:[%s18202_s3 + $0xb8] sm:$0xff] }
 0x3b6   :  { %12279 = vmatpush3.msra.mxu0 %v13082_v54  ;;  %12329 = vmatprep.subr.mxu1 %v18303_v11  ;;  %v4791_v32 = vmul.f32 %v18363_v56, %v14753_v19  ;;  %v4909_v56 = vmax.f32 %v4906_v6, 0.0 }
 0x3b7   :  { %12280 = vmatprep.subr.mxu0 %v18303_v11  ;;  %12255 = vmatprep.mubr.msk.f32.mxu0 %vm13146_vm0, %v18303_v11  ;;  %v4811_v21 = vadd.f32 %v4808_v44, %v4793_v62  ;;  %v4884_v53 = vadd.f32 %v4881_v17, %v4866_v22  ;;  %v18364_v44 = vld [vmem:[#allocation26_spill] sm:$0xff]  ;;  %v4899_v62 = vsel %vm447_vm2, %v4896_v63, %v4898_v60  ;;  %v18365_v17 = vld [vmem:[#allocation23_spill] sm:$0xff]  ;;  %v18366_v22 = vld [vmem:[#allocation33_spill] sm:$0xff] }
 0x3b8   :  { %12307 = vmatmul.mubr.msk.f32.gmra.mxu1 %vm467_vm1, %v18362_v23  ;;  %12281 = vmatpush3.msra.mxu0 %v13083_v3  ;;  %v4813_v23 = vadd.f32 %v15433_v39, %v4810_v12  ;;  %v4809_v12 = vmul.f32 %v18364_v44, %v14775_v18  ;;  %v4834_v42 = vmul.f32 %v18365_v17, %v14753_v19 }
 0x3b9   :  { %12330 = vmatpush3.msra.mxu1 %v13082_v54  ;;  %12256 = vmatmul.mubr.msk.f32.gmra.mxu0 %vm467_vm1, %v15333_v31  ;;  %v13084_v31 = vld [vmem:[%s18202_s3 + $0x88] sm:$0xff]  ;;  %v4794_v54 = vadd.f32 %v4791_v32, %v4776_v43  ;;  %v4717_v63 = vmul.f32 %v18358_v55, %v14750_v9  ;;  %v4905_v32 = vadd.f32 %v4899_v62, %v4884_v53  ;;  %v13085_v43 = vld [vmem:[%s18202_s3 + $0x80] sm:$0xff] }
 0x3ba   :  { %12331 = vmatprep.subr.mxu1 %v18303_v11  ;;  %12282 = vmatprep.subr.mxu0 %v18303_v11  ;;  %v4814_v55 = vadd.f32 %v15433_v39, %v4811_v21  ;;  %v4837_v6 = vadd.f32 %v4834_v42, %v4819_v28  ;;  %v18367_v53 = vld [vmem:[#allocation30_spill] sm:$0xff]  ;;  %v4853_v17 = vmul.f32 %v18355_v8, %v14775_v18 }
 0x3bb   :  { %12309 = vmatprep.mubr.msk.f32.mxu1 %vm13146_vm0, %v18303_v11  ;;  %12332 = vmatpush3.msra.mxu1 %v13083_v3  ;;  %v4737_v3 = vmul.f32 %v18366_v22, %v14753_v19  ;;  %v4812_v60 = vadd.f32 %v4809_v12, %v4794_v54  ;;  %v18368_v21 = vld [vmem:[#allocation38_spill] sm:$0xff]  ;;  %v4910_v54 = vmax.f32 %v4907_v16, 0.0  ;;  %v4908_v12 = vadd.f32 %v15433_v39, %v4905_v32 }
 0x3bc   :  { %12283 = vmatpush3.msra.mxu0 %v13084_v31  ;;  %12310 = vmatmul.mubr.msk.f32.gmra.mxu1 %vm467_vm1, %v4772_v14  ;;  %v4817_v62 = vmax.f32 %v4814_v55, 0.0  ;;  %v4855_v42 = vadd.f32 %v4852_v50, %v4837_v6 }
 0x3bd   :  { %12333 = vmatprep.subr.mxu1 %v18303_v11  ;;  %12258 = vmatprep.mubr.msk.f32.mxu0 %vm13146_vm0, %v18303_v11  ;;  %v4741_v45 = vadd.f32 %v4737_v3, %v4717_v63  ;;  %v4815_v28 = vadd.f32 %v15433_v39, %v4812_v60  ;;  %v13087_v3 = vld [vmem:[%s18202_s3 + $0xb0] sm:$0xff]  ;;  %v4821_v63 = vmul.f32 %v18364_v44, %v14750_v9  ;;  %v4911_v8 = vmax.f32 %v4908_v12, 0.0 }
 0x3be   :  { %12334 = vmatpush3.msra.mxu1 %v13084_v31  ;;  %12259 = vmatmul.mubr.msk.f32.gmra.mxu0 %vm467_vm1, %v15356_v7  ;;  %v4816_v7 = vmax.f32 %v4813_v23, 0.0  ;;  %v4835_v31 = vmul.f32 %v18367_v53, %v14753_v19  ;;  %v4761_v23 = vmul.f32 %v18368_v21, %v14775_v18  ;;  %v4858_v44 = vadd.f32 %v15433_v39, %v4855_v42 }
 0x3bf   :  { %12284 = vmatprep.subr.mxu0 %v18303_v11  ;;  %12335 = vmatprep.subr.mxu1 %v18303_v11  ;;  %v4818_v9 = vmax.f32 %v4815_v28, 0.0  ;;  %v4854_v60 = vmul.f32 %v18360_v15, %v14775_v18 }
 0x3c0   :  { %12285 = vmatpush3.msra.mxu0 %v13085_v43  ;;  %12336 = vmatpush3.msra.mxu1 %v13085_v43  ;;  %v4838_v22 = vadd.f32 %v4835_v31, %v4820_v48  ;;  %v4765_v32 = vadd.f32 %v4761_v23, %v4741_v45  ;;  %v18370_v43 = vmax.f32 %v15436_v30, 0.0  ;;  %v13088_v48 = vld [vmem:[%s18202_s3 + $0xa8] sm:$0xff]  ;;  %v18371_v30 = vmax.f32 %v15478_v27, 0.0  ;;  %v13089_v27 = vld [vmem:[%s18202_s3 + $0xa0] sm:$0xff] }
 0x3c1   :  { %12337 = vmatprep.mubr.msk.f32.mxu1 %vm13146_vm0, %v18303_v11  ;;  %12286 = vmatprep.mubr.msk.f32.mxu0 %vm13146_vm0, %v18303_v11  ;;  %v4861_v53 = vmax.f32 %v4858_v44, 0.0  ;;  %v5361_v45 = vrot.slane %v4772_v14, 1 }
 0x3c2   :  { %12338 = vmatmul.mubr.msk.f32.vlgmr.msra.gmra.mxu1 %vm467_vm1, %v4909_v56  ;;  %12312 = vmatprep.subr.mxu0 %v18303_v11  ;;  %v18369_v56 = vld [vmem:[#allocation29_spill] sm:$0xff]  ;;  %v4769_v6 = vadd.f32 %v15433_v39, %v4765_v32  ;;  %v5359_v50 = vrot.slane %v18371_v30, 1 }
 0x3c3   :  { %12287 = vmatmul.mubr.msk.f32.vlgmr.msra.gmra.mxu0 %vm467_vm1, %v4816_v7  ;;  %12340 = vmatprep.mubr.msk.f32.mxu1 %vm13146_vm0, %v18303_v11  ;;  %v4836_v16 = vmul.f32 %v18369_v56, %v14753_v19  ;;  %v5358_v7 = vrot.slane %v18370_v43, 1  ;;  %v4856_v19 = vadd.f32 %v4853_v17, %v4838_v22 }
 0x3c4   :  { %12313 = vmatpush3.msra.mxu0 %v13086_v29  ;;  %12363 = vmatprep.subr.mxu1 %v18303_v11  ;;  %v4773_v31 = vmax.f32 %v4769_v6, 0.0 }
 0x3c5   :  { %12314 = vmatprep.subr.mxu0 %v18303_v11  ;;  %12289 = vmatprep.mubr.msk.f32.mxu0 %vm13146_vm0, %v18303_v11  ;;  %v4839_v55 = vadd.f32 %v4836_v16, %v4821_v63  ;;  %v4859_v18 = vadd.f32 %v15433_v39, %v4856_v19  ;;  %v5360_v21 = vsel %vm447_vm2, %v5358_v7, %v5359_v50 }
 0x3c6   :  { %12341 = vmatmul.mubr.msk.f32.gmra.mxu1 %vm467_vm1, %v4910_v54  ;;  %12315 = vmatpush3.msra.mxu0 %v13087_v3  ;;  %v5363_v23 = vrot.slane %v4773_v31, 1  ;;  %v5362_v54 = vsel %vm447_vm2, %v5359_v50, %v5361_v45 }
 0x3c7   :  { %12364 = vmatpush3.msra.mxu1 %v13086_v29  ;;  %12290 = vmatmul.mubr.msk.f32.gmra.mxu0 %vm467_vm1, %v4817_v62  ;;  %v4857_v15 = vadd.f32 %v4854_v60, %v4839_v55  ;;  %v4862_v34 = vmax.f32 %v4859_v18, 0.0 }
 0x3c8   :  { %12365 = vmatprep.subr.mxu1 %v18303_v11  ;;  %12316 = vmatprep.subr.mxu0 %v18303_v11 }
 0x3c9   :  { %12343 = vmatprep.mubr.msk.f32.mxu1 %vm13146_vm0, %v18303_v11  ;;  %12366 = vmatpush3.msra.mxu1 %v13087_v3  ;;  %v4860_v14 = vadd.f32 %v15433_v39, %v4857_v15  ;;  %v5364_v39 = vsel %vm447_vm2, %v5361_v45, %v5363_v23 }
 0x3ca   :  { %12317 = vmatpush3.msra.mxu0 %v13088_v48  ;;  %12344 = vmatmul.mubr.msk.f32.gmra.mxu1 %vm467_vm1, %v4911_v8 }
 0x3cb   :  { %12367 = vmatprep.subr.mxu1 %v18303_v11  ;;  %12292 = vmatprep.mubr.msk.f32.mxu0 %vm13146_vm0, %v18303_v11 }
 0x3cc   :  { %12368 = vmatpush3.msra.mxu1 %v13088_v48  ;;  %12293 = vmatmul.mubr.msk.f32.gmra.mxu0 %vm467_vm1, %v4818_v9 }
 0x3cd   :  { %12318 = vmatprep.subr.mxu0 %v18303_v11  ;;  %12369 = vmatprep.subr.mxu1 %v18303_v11 }
 0x3ce   :  { %12319 = vmatpush3.msra.mxu0 %v13089_v27  ;;  %12370 = vmatpush3.msra.mxu1 %v13089_v27 }
 0x3cf   :  { %12371 = vmatprep.mubr.msk.f32.mxu1 %vm13146_vm0, %v18303_v11  ;;  %12320 = vmatprep.mubr.msk.f32.mxu0 %vm13146_vm0, %v18303_v11 }
 0x3d0   :  { %12372 = vmatmul.mubr.msk.f32.vlgmr.msra.gmra.mxu1 %vm467_vm1, %v5360_v21  ;;  %12346 = vmatprep.subr.mxu0 %v18303_v11 }
 0x3d1   :  { %12321 = vmatmul.mubr.msk.f32.vlgmr.msra.gmra.mxu0 %vm467_vm1, %v4861_v53  ;;  %12374 = vmatprep.mubr.msk.f32.mxu1 %vm13146_vm0, %v18303_v11 }
 0x3d2   :  { %12347 = vmatpush3.msra.mxu0 %v15416_v4  ;;  %12323 = vmatprep.mubr.msk.f32.mxu0 %vm13146_vm0, %v18303_v11  ;;  %v4863_v4 = vmax.f32 %v4860_v14, 0.0 }
 0x3d3   :  { %12348 = vmatprep.subr.mxu0 %v18303_v11  ;;  %12397 = vmatprep.subr.mxu1 %v18303_v11 }
 0x3d4   :  { %12375 = vmatmul.mubr.msk.f32.gmra.mxu1 %vm467_vm1, %v5362_v54  ;;  %12349 = vmatpush3.msra.mxu0 %v15445_v35 }
 0x3d5   :  { %12324 = vmatmul.mubr.msk.f32.gmra.mxu0 %vm467_vm1, %v4862_v34  ;;  %12350 = vmatprep.subr.mxu0 %v18303_v11 }
 0x3d6   :  { %12377 = vmatprep.mubr.msk.f32.mxu1 %vm13146_vm0, %v18303_v11  ;;  %12351 = vmatpush3.msra.mxu0 %v15463_v20 }
 0x3d7   :  { %12326 = vmatprep.mubr.msk.f32.mxu0 %vm13146_vm0, %v18303_v11  ;;  %12352 = vmatprep.subr.mxu0 %v18303_v11 }
 0x3d8   :  { %12378 = vmatmul.mubr.msk.f32.gmra.mxu1 %vm467_vm1, %v5364_v39  ;;  %12353 = vmatpush3.msra.mxu0 %v15484_v38 }
 0x3d9   :  { %12327 = vmatmul.mubr.msk.f32.gmra.mxu0 %vm467_vm1, %v4863_v4  ;;  %12398 = vmatpush3.msra.mxu1 %v15176_v10 }
 0x3da   :  { %12354 = vmatprep.mubr.msk.f32.mxu0 %vm13146_vm0, %v18303_v11  ;;  %12399 = vmatprep.subr.mxu1 %v18303_v11 }
 0x3db   :  { %12400 = vmatpush3.msra.mxu1 %v15183_v51  ;;  %12405 = vmatprep.mubr.msk.f32.mxu1 %vm13146_vm0, %v18303_v11 }
 0x3dc   :  { %12401 = vmatprep.subr.mxu1 %v18303_v11  ;;  %12380 = vmatprep.subr.mxu0 %v18303_v11 }
 0x3dd   :  { %12355 = vmatmul.mubr.msk.f32.vlgmr.msra.gmra.mxu0 %vm467_vm1, %v4861_v53  ;;  %12402 = vmatpush3.msra.mxu1 %v15190_v5 }
 0x3de   :  { %12357 = vmatprep.mubr.msk.f32.mxu0 %vm13146_vm0, %v18303_v11  ;;  %12403 = vmatprep.subr.mxu1 %v18303_v11 }
 0x3df   :  { %12404 = vmatpush3.msra.mxu1 %v15197_v47  ;;  %12381 = vmatpush3.msra.mxu0 %v15204_v2 }
 0x3e0   :  { %12382 = vmatprep.subr.mxu0 %v18303_v11  ;;  %12431 = vmatprep.subr.mxu1 %v18303_v11 }
 0x3e1   :  { %12358 = vmatmul.mubr.msk.f32.gmra.mxu0 %vm467_vm1, %v4862_v34 }
 0x3e2   :  { %12360 = vmatprep.mubr.msk.f32.mxu0 %vm13146_vm0, %v18303_v11  ;;  %12383 = vmatpush3.msra.mxu0 %v15211_v1 }
 0x3e3   :  { %12384 = vmatprep.subr.mxu0 %v18303_v11 }
 0x3e4   :  { %12385 = vmatpush3.msra.mxu0 %v15218_v61 }
 0x3e5   :  { %12361 = vmatmul.mubr.msk.f32.gmra.mxu0 %vm467_vm1, %v4863_v4  ;;  %12386 = vmatprep.subr.mxu0 %v18303_v11 }
 0x3e6   :  { %12387 = vmatpush3.msra.mxu0 %v15225_v25  ;;  %12388 = vmatprep.mubr.msk.f32.mxu0 %vm13146_vm0, %v18303_v11 }
 0x3e7   :  { %12414 = vmatprep.subr.mxu0 %v18303_v11 }
 0x3ea   :  { %v3041_v10 = vpop.permute.xlu1 %3040 }
 0x3eb   :  { %3043 = vst.msk [vmem:[#allocation2 + $0x1] sm:$0x1] %vm1584_vm4, %v3041_v10 }
 0x3ec   :  { %v3068_v51 = vpop.permute.xlu0 %3067 }
 0x3ed   :  { %3070 = vst.msk [vmem:[#allocation2 + $0x3] sm:$0x1] %vm1584_vm4, %v3068_v51 }
 0x3ee   :  { %v3046_v5 = vpop.permute.xlu1 %3045 }
 0x3ef   :  { %3048 = vst.msk [vmem:[#allocation2 + $0x1] sm:$0x1] %vm1590_vm5, %v3046_v5  ;;  %v10651_v5 = vld [vmem:[%s18205_s6 + $0x1] ss:$0 sm:$0xff] }
 0x3f0   :  { %v3073_v47 = vpop.permute.xlu0 %3072 }
 0x3f1   :  { %3075 = vst.msk [vmem:[#allocation2 + $0x3] sm:$0x1] %vm1590_vm5, %v3073_v47 }
 0x3f2   :  { %v3052_v2 = vpop.permute.xlu1 %3051 }
 0x3f3   :  { %3054 = vst.msk [vmem:[#allocation2 + $0x1] sm:$0x1] %vm1597_vm6, %v3052_v2 }
 0x3f4   :  { %v3079_v1 = vpop.permute.xlu0 %3078 }
 0x3f5   :  { %3081 = vst.msk [vmem:[#allocation2 + $0x3] sm:$0x1] %vm1597_vm6, %v3079_v1 }
 0x3f6   :  { %v3094_v61 = vpop.permute.xlu1 %3093 }
 0x3f7   :  { %3096 = vst.msk [vmem:[#allocation2 + $0x5] sm:$0x1] %vm1584_vm4, %v3094_v61 }
 0x3f8   :  { %v3121_v25 = vpop.permute.xlu0 %3120 }
 0x3f9   :  { %3123 = vst.msk [vmem:[#allocation2 + $0x7] sm:$0x1] %vm1584_vm4, %v3121_v25 }
 0x3fa   :  { %v3099_v35 = vpop.permute.xlu1 %3098 }
 0x3fb   :  { %3101 = vst.msk [vmem:[#allocation2 + $0x5] sm:$0x1] %vm1590_vm5, %v3099_v35 }
 0x3fc   :  { %v3126_v20 = vpop.permute.xlu0 %3125 }
 0x3fd   :  { %3128 = vst.msk [vmem:[#allocation2 + $0x7] sm:$0x1] %vm1590_vm5, %v3126_v20 }
 0x3fe   :  { %v3105_v38 = vpop.permute.xlu1 %3104 }
 0x3ff   :  { %3107 = vst.msk [vmem:[#allocation2 + $0x5] sm:$0x1] %vm1597_vm6, %v3105_v38 }
 0x400   :  { %v3132_v12 = vpop.permute.xlu0 %3131 }
 0x401   :  { %3134 = vst.msk [vmem:[#allocation2 + $0x7] sm:$0x1] %vm1597_vm6, %v3132_v12 }
 0x403   :  { %v3147_v29 = vpop.permute.xlu1 %3146 }
 0x404   :  { %3149 = vst.msk [vmem:[#allocation2 + $0x9] sm:$0x1] %vm1584_vm4, %v3147_v29  ;;  %v3174_v62 = vpop.permute.xlu0 %3173 }
 0x405   :  { %3176 = vst.msk [vmem:[#allocation2 + $0xb] sm:$0x1] %vm1584_vm4, %v3174_v62 }
 0x408   :  { %v3152_v28 = vpop.permute.xlu1 %3151  ;;  %v3179_v17 = vpop.permute.xlu0 %3178 }
 0x409   :  { %3154 = vst.msk [vmem:[#allocation2 + $0x9] sm:$0x1] %vm1590_vm5, %v3152_v28  ;;  %3181 = vst.msk [vmem:[#allocation2 + $0xb] sm:$0x1] %vm1590_vm5, %v3179_v17 }
 0x40c   :  { %v3158_v42 = vpop.permute.xlu0 %3157 }
 0x40d   :  { %3160 = vst.msk [vmem:[#allocation2 + $0x9] sm:$0x1] %vm1597_vm6, %v3158_v42 }
 0x44c   :  { %v4159_v22 = vpop.f32.mrf.mxu1 }
 0x44e   :  { %v12203_v3 = vpop.f32.mrf.mxu1 }
 0x450   :  { %v4164_v63 = vpop.f32.mrf.mxu1 }
 0x452   :  { %v12206_v56 = vpop.f32.mrf.mxu1 }
 0x454   :  { %v4169_v16 = vpop.f32.mrf.mxu1 }
 0x456   :  { %v12209_v32 = vpop.f32.mrf.mxu1 }
 0x458   :  { %v4345_v8 = vpop.f32.mrf.mxu1 }
 0x45a   :  { %v4070_v43 = vpop.f32.mrf.mxu0  ;;  %v12237_v7 = vpop.f32.mrf.mxu1 }
 0x45b   :  { %v4160_v4 = vadd.f32 %v4159_v22, %v4070_v43 }
 0x45c   :  { %v12186_v9 = vpop.f32.mrf.mxu0  ;;  %v4350_v44 = vpop.f32.mrf.mxu1 }
 0x45e   :  { %v4075_v19 = vpop.f32.mrf.mxu0  ;;  %v12240_v48 = vpop.f32.mrf.mxu1 }
 0x45f   :  { %v4165_v2 = vadd.f32 %v4164_v63, %v4075_v19 }
 0x460   :  { %v12189_v55 = vpop.f32.mrf.mxu0  ;;  %v4355_v60 = vpop.f32.mrf.mxu1 }
 0x462   :  { %v4080_v6 = vpop.f32.mrf.mxu0  ;;  %v12243_v30 = vpop.f32.mrf.mxu1 }
 0x463   :  { %v4170_v42 = vadd.f32 %v4169_v16, %v4080_v6 }
 0x464   :  { %v12192_v50 = vpop.f32.mrf.mxu0 }
 0x466   :  { %v4516_v53 = vpop.f32.mrf.mxu1 }
 0x467   :  { %v4250_v18 = vpop.f32.mrf.mxu0 }
 0x468   :  { %v12271_v27 = vpop.f32.mrf.mxu1  ;;  %v4264_v10 = vadd.f32 %v4250_v18, %v4160_v4 }
 0x469   :  { %v12220_v15 = vpop.f32.mrf.mxu0 }
 0x46a   :  { %v4521_v31 = vpop.f32.mrf.mxu1  ;;  %v4273_v35 = vadd.f32 %v10651_v5, %v4264_v10 }
 0x46b   :  { %v4255_v45 = vpop.f32.mrf.mxu0 }
 0x46c   :  { %v12274_v21 = vpop.f32.mrf.mxu1  ;;  %v4265_v20 = vadd.f32 %v4255_v45, %v4165_v2  ;;  %v4276_v3 = vmax.f32 %v4273_v35, 0.0 }
 0x46d   :  { %v12223_v34 = vpop.f32.mrf.mxu0 }
 0x46e   :  { %v4526_v14 = vpop.f32.mrf.mxu1  ;;  %v4274_v56 = vadd.f32 %v10651_v5, %v4265_v20 }
 0x470   :  { %v4260_v23 = vpop.f32.mrf.mxu0  ;;  %v12277_v54 = vpop.f32.mrf.mxu1  ;;  %v4277_v30 = vmax.f32 %v4274_v56, 0.0 }
 0x471   :  { %v4266_v63 = vadd.f32 %v4260_v23, %v4170_v42 }
 0x472   :  { %v12226_v39 = vpop.f32.mrf.mxu0 }
 0x473   :  { %v4275_v16 = vadd.f32 %v10651_v5, %v4266_v63 }
 0x474   :  { %v15720_v51 = vpop.f32.mrf.mxu1 }
 0x475   :  { %v4425_v47 = vpop.f32.mrf.mxu0  ;;  %v4278_v4 = vmax.f32 %v4275_v16, 0.0 }
 0x476   :  { %v4426_v1 = vadd.f32 %v4425_v47, %v4345_v8  ;;  %v12305_v61 = vpop.f32.mrf.mxu1 }
 0x477   :  { %v12254_v25 = vpop.f32.mrf.mxu0 }
 0x478   :  { %v4530_v38 = vadd.f32 %v4516_v53, %v4426_v1  ;;  %v15725_v12 = vpop.f32.mrf.mxu1 }
 0x479   :  { %v4430_v29 = vpop.f32.mrf.mxu0 }
 0x47a   :  { %v4533_v62 = vadd.f32 %v10651_v5, %v4530_v38  ;;  %v4431_v28 = vadd.f32 %v4430_v29, %v4350_v44  ;;  %v12308_v17 = vpop.f32.mrf.mxu1 }
 0x47b   :  { %v12257_v22 = vpop.f32.mrf.mxu0 }
 0x47c   :  { %v4536_v32 = vmax.f32 %v4533_v62, 0.0  ;;  %v4531_v43 = vadd.f32 %v4521_v31, %v4431_v28  ;;  %v15727_v7 = vpop.f32.mrf.mxu1 }
 0x47e   :  { %v4539_v8 = vmax.f32 %v4276_v3, %v4536_v32  ;;  %v4534_v9 = vadd.f32 %v10651_v5, %v4531_v43  ;;  %v4435_v19 = vpop.f32.mrf.mxu0  ;;  %v12311_v48 = vpop.f32.mrf.mxu1 }
 0x47f   :  { %v4436_v55 = vadd.f32 %v4435_v19, %v4355_v60 }
 0x480   :  { %v4569_v50 = vcombine.high %v4539_v8, %v4539_v8  ;;  %v4537_v53 = vmax.f32 %v4534_v9, 0.0  ;;  %v12260_v18 = vpop.f32.mrf.mxu0  ;;  %v4549_v44 = vrot.slane %v4539_v8, %v14600_v0 }
 0x481   :  { %v4532_v6 = vadd.f32 %v4526_v14, %v4436_v55 }
 0x482   :  { %v4540_v27 = vmax.f32 %v4277_v30, %v4537_v53  ;;  %v15730_v15 = vpop.f32.mrf.mxu1  ;;  %4550 = vrot.lane.b32.xlu1 %v4549_v44, %s13151_s20  ;;  %v4576_v31 = vrot.slane %v4569_v50, %v14600_v0  ;;  %v10661_v45 = vrot.slane %v4549_v44, 9  ;;  %v4558_v54 = vcombine.high %v4549_v44, %v4549_v44 }
 0x483   :  { %v4535_v21 = vadd.f32 %v10651_v5, %v4532_v6  ;;  %v4987_v34 = vpop.f32.mrf.mxu0 }
 0x484   :  { %v4623_v23 = vcombine.high %v4540_v27, %v4540_v27  ;;  %v12339_v60 = vpop.f32.mrf.mxu1  ;;  %4577 = vrot.lane.b32.xlu0 %v4576_v31, %s13151_s20  ;;  %4557 = vst.msk [vmem:[#allocation2 + $0xc] sm:$0x1] %vm1569_vm3, %v10661_v45  ;;  %v4603_v10 = vrot.slane %v4540_v27, %v14600_v0  ;;  %v10663_v47 = vrot.slane %v4576_v31, 9  ;;  %v4585_v5 = vcombine.high %v4576_v31, %v4576_v31 }
 0x485   :  { %v4538_v39 = vmax.f32 %v4535_v21, 0.0  ;;  %v12288_v14 = vpop.f32.mrf.mxu0  ;;  %v10662_v38 = vrot.slane %v4558_v54, 9  ;;  %v5077_v19 = vadd.f32 %v15720_v51, %v4987_v34  ;;  %v15768_v60 = vld [vmem:[%s18203_s4 + $0x1] ss:$0 sm:$0xff] }
 0x486   :  { %v4630_v2 = vrot.slane %v4623_v23, %v14600_v0  ;;  %v15738_v1 = vpop.f32.mrf.mxu1  ;;  %4559 = vrot.lane.b32.xlu1 %v4558_v54, %s13149_s18  ;;  %4584 = vst.msk [vmem:[#allocation2 + $0xe] sm:$0x1] %vm1569_vm3, %v10663_v47  ;;  %v10665_v35 = vrot.slane %v4603_v10, 9  ;;  %v10664_v22 = vrot.slane %v4585_v5, 9  ;;  %v4612_v55 = vcombine.high %v4603_v10, %v4603_v10 }
 0x487   :  { %v4541_v61 = vmax.f32 %v4278_v4, %v4538_v39  ;;  %v4992_v25 = vpop.f32.mrf.mxu0 }
 0x488   :  { %v12342_v20 = vpop.f32.mrf.mxu1  ;;  %4586 = vrot.lane.b32.xlu0 %v4585_v5, %s13149_s18  ;;  %v10667_v29 = vrot.slane %v4630_v2, 9  ;;  %4611 = vst.msk [vmem:[#allocation2 + $0x10] sm:$0x1] %vm1569_vm3, %v10665_v35  ;;  %v4639_v9 = vcombine.high %v4630_v2, %v4630_v2  ;;  %v5082_v44 = vadd.f32 %v15725_v12, %v4992_v25  ;;  %v10666_v54 = vrot.slane %v4612_v55, 9  ;;  %v13092_v5 = vld [vmem:[%s18204_s5 + $0x90] sm:$0xff] }
 0x489   :  { %v4677_v62 = vcombine.high %v4541_v61, %v4541_v61  ;;  %v12291_v28 = vpop.f32.mrf.mxu0  ;;  %v4657_v17 = vrot.slane %v4541_v61, %v14600_v0 }
 0x48a   :  { %v15745_v42 = vpop.f32.mrf.mxu1  ;;  %4565 = vrot.lane.b32.xlu1 %v10662_v38, %s13150_s19  ;;  %4638 = vst.msk [vmem:[#allocation2 + $0x12] sm:$0x1] %vm1569_vm3, %v10667_v29  ;;  %v10668_v21 = vrot.slane %v4639_v9, 9  ;;  %v13093_v29 = vld [vmem:[%s18204_s5 + $0x88] sm:$0xff] }
 0x48b   :  { %v15750_v3 = vrot.slane %v4677_v62, %v14600_v0  ;;  %v10669_v56 = vrot.slane %v4657_v17, 9  ;;  %v4666_v25 = vcombine.high %v4657_v17, %v4657_v17 }
 0x48c   :  { %v4997_v32 = vpop.f32.mrf.mxu0  ;;  %v12345_v43 = vpop.f32.mrf.mxu1  ;;  %4592 = vrot.lane.b32.xlu0 %v10664_v22, %s13150_s19 }
 0x48d   :  { %v10671_v63 = vrot.slane %v15750_v3, 9  ;;  %4665 = vst.msk [vmem:[#allocation2 + $0x14] sm:$0x1] %vm1569_vm3, %v10669_v56  ;;  %v5087_v23 = vadd.f32 %v15727_v7, %v4997_v32  ;;  %v13091_v7 = vld [vmem:[%s18204_s5 + $0x98] sm:$0xff]  ;;  %v4693_v47 = vcombine.high %v15750_v3, %v15750_v3 }
 0x48e   :  { %v12294_v8 = vpop.f32.mrf.mxu0  ;;  %4604 = vrot.lane.b32.xlu1 %v4603_v10, %s13151_s20 }
 0x48f   :  { %4692 = vst.msk [vmem:[#allocation2 + $0x16] sm:$0x1] %vm1569_vm3, %v10671_v63 }
 0x490   :  { %v5437_v48 = vpop.f32.mrf.mxu1  ;;  %4640 = vrot.lane.b32.xlu0 %v4639_v9, %s13149_s18 }
 0x491   :  { %v5165_v30 = vpop.f32.mrf.mxu0 }
 0x492   :  { %v5179_v50 = vadd.f32 %v5165_v30, %v5077_v19  ;;  %v12373_v53 = vpop.f32.mrf.mxu1  ;;  %4613 = vrot.lane.b32.xlu1 %v4612_v55, %s13149_s18 }
 0x493   :  { %v12322_v18 = vpop.f32.mrf.mxu0 }
 0x494   :  { %v5182_v16 = vadd.f32 %v15269_v58, %v5179_v50  ;;  %v5442_v6 = vpop.f32.mrf.mxu1  ;;  %4658 = vrot.lane.b32.xlu0 %v4657_v17, %s13151_s20  ;;  %v10670_v18 = vrot.slane %v4666_v25, 9 }
 0x495   :  { %v5170_v27 = vpop.f32.mrf.mxu0 }
 0x496   :  { %v5185_v31 = vmax.f32 %v5182_v16, 0.0  ;;  %v5180_v51 = vadd.f32 %v5170_v27, %v5082_v44  ;;  %v12376_v45 = vpop.f32.mrf.mxu1  ;;  %4631 = vrot.lane.b32.xlu1 %v4630_v2, %s13151_s20  ;;  %v18372_v27 = vld [vmem:[#allocation37_spill] sm:$0xff] }
 0x497   :  { %v12325_v34 = vpop.f32.mrf.mxu0 }
 0x498   :  { %v5183_v58 = vadd.f32 %v15768_v60, %v5180_v51  ;;  %v15771_v12 = vpop.f32.mrf.mxu1  ;;  %12406 = vmatmul.mubr.msk.f32.vlgmr.msra.gmra.mxu1 %vm467_vm1, %v5185_v31  ;;  %4646 = vrot.lane.b32.xlu0 %v10668_v21, %s13150_s19  ;;  %v5638_v22 = vrot.slane %v5185_v31, 1  ;;  %v18373_v51 = vld [vmem:[#allocation39_spill] sm:$0xff] }
 0x499   :  { %v5175_v4 = vpop.f32.mrf.mxu0  ;;  %12408 = vmatprep.mubr.msk.f32.mxu1 %vm13146_vm0, %v18303_v11  ;;  %12432 = vmatpush3.msra.mxu1 %v13091_v7  ;;  %v15900_v7 = vld [vmem:[%s18202_s3 + $0xd8] sm:$0xff] }
 0x49a   :  { %v5186_v39 = vmax.f32 %v5183_v58, 0.0  ;;  %v5181_v14 = vadd.f32 %v5175_v4, %v5087_v23  ;;  %v12379_v10 = vpop.f32.mrf.mxu1  ;;  %12433 = vmatprep.subr.mxu1 %v18303_v11  ;;  %4619 = vrot.lane.b32.xlu1 %v10666_v54, %s13150_s19  ;;  %v18375_v58 = vld [vmem:[#allocation43_spill] sm:$0xff]  ;;  %v18376_v54 = vld [vmem:[#allocation46_spill] sm:$0xff]  ;;  %v13095_v4 = vld [vmem:[%s18204_s5 + $0x78] sm:$0xff] }
 0x49b   :  { %v12328_v2 = vpop.f32.mrf.mxu0  ;;  %12434 = vmatpush3.msra.mxu1 %v13092_v5 }
 0x49c   :  { %v5184_v61 = vadd.f32 %v15768_v60, %v5181_v14  ;;  %12409 = vmatmul.mubr.msk.f32.gmra.mxu1 %vm467_vm1, %v5186_v39  ;;  %4694 = vrot.lane.b32.xlu0 %v4693_v47, %s13149_s18  ;;  %v5639_v62 = vrot.slane %v5186_v39, 1  ;;  %v18377_v14 = vld [vmem:[#allocation41_spill] sm:$0xff] }
 0x49d   :  { %v5343_v35 = vpop.f32.mrf.mxu0  ;;  %12411 = vmatprep.mubr.msk.f32.mxu1 %vm13146_vm0, %v18303_v11  ;;  %12435 = vmatprep.subr.mxu1 %v18303_v11  ;;  %v15911_v2 = vld [vmem:[%s18201_s2 + $0x2] ss:$0 sm:$0xff] }
 0x49e   :  { %v5187_v20 = vmax.f32 %v5184_v61, 0.0  ;;  %v5344_v38 = vadd.f32 %v5343_v35, %v15730_v15  ;;  %12436 = vmatpush3.msra.mxu1 %v13093_v29  ;;  %4667 = vrot.lane.b32.xlu1 %v4666_v25, %s13149_s18  ;;  %v13094_v15 = vld [vmem:[%s18204_s5 + $0x80] sm:$0xff]  ;;  %v5640_v63 = vsel %vm447_vm2, %v5638_v22, %v5639_v62  ;;  %v13096_v35 = vld [vmem:[%s18204_s5 + $0x70] sm:$0xff]  ;;  %v15949_v22 = vld [vmem:[%s18202_s3 + $0xc8] sm:$0xff] }
 0x49f   :  { %v12356_v28 = vpop.f32.mrf.mxu0  ;;  %12437 = vmatprep.subr.mxu1 %v18303_v11 }
 0x4a0   :  { %v5451_v17 = vadd.f32 %v5437_v48, %v5344_v38  ;;  %12412 = vmatmul.mubr.msk.f32.gmra.mxu1 %vm467_vm1, %v5187_v20  ;;  %v15811_v8 = vrot.slane %v5187_v20, 1  ;;  %v15924_v20 = vld [vmem:[%s18202_s3 + $0xd0] sm:$0xff] }
 0x4a1   :  { %v5348_v56 = vpop.f32.mrf.mxu0  ;;  %12438 = vmatpush3.msra.mxu1 %v13094_v15  ;;  %12439 = vmatprep.mubr.msk.f32.mxu1 %vm13146_vm0, %v18303_v11  ;;  %v18378_v28 = vld [vmem:[#allocation40_spill] sm:$0xff] }
 0x4a2   :  { %v5454_v32 = vadd.f32 %v15768_v60, %v5451_v17  ;;  %v5349_v43 = vadd.f32 %v5348_v56, %v15738_v1  ;;  %4685 = vrot.lane.b32.xlu1 %v15750_v3, %s13151_s20  ;;  %12465 = vmatprep.subr.mxu1 %v18303_v11  ;;  %v125_v1 = vld [vmem:[%s18200_s1 + $0x8] sm:$0x7]  ;;  %v5642_v53 = vsel %vm447_vm2, %v5639_v62, %v15811_v8  ;;  %v18379_v15 = vld [vmem:[#allocation48_spill] sm:$0xff] }
 0x4a3   :  { %v12359_v9 = vpop.f32.mrf.mxu0 }
 0x4a4   :  { %v15813_v19 = vmax.f32 %v5454_v32, 0.0  ;;  %v5452_v48 = vadd.f32 %v5442_v6, %v5349_v43  ;;  %12440 = vmatmul.mubr.msk.f32.vlgmr.msra.gmra.mxu1 %vm467_vm1, %v5640_v63 }
 0x4a5   :  { %v5353_v55 = vpop.f32.mrf.mxu0  ;;  %12442 = vmatprep.mubr.msk.f32.mxu1 %vm13146_vm0, %v18303_v11  ;;  %12466 = vmatpush3.msra.mxu1 %v15311_v37 }
 0x4a6   :  { %v5455_v3 = vadd.f32 %v15768_v60, %v5452_v48  ;;  %v5354_v30 = vadd.f32 %v5353_v55, %v15745_v42  ;;  %12389 = vmatmul.mubr.msk.f32.vlgmr.msra.gmra.mxu0 %vm467_vm1, %v15813_v19  ;;  %12467 = vmatprep.subr.mxu1 %v18303_v11  ;;  %v15838_v42 = vrot.slane %v125_v1, %v13404_v40  ;;  %v15967_v55 = vld [vmem:[%s18202_s3 + $0xc0] sm:$0xff] }
 0x4a7   :  { %12415 = vmatpush3.msra.mxu0 %v15311_v37  ;;  %v12362_v50 = vpop.f32.mrf.mxu0  ;;  %12391 = vmatprep.mubr.msk.f32.mxu0 %vm13146_vm0, %v18303_v11  ;;  %v15841_v37 = vrot.slane %v125_v1, %v13407_v41  ;;  %v15858_v41 = vrot.slane %v125_v1, %v13419_v46  ;;  %v5898_v46 = vrot.slane %v15813_v19, 1 }
 0x4a8   :  { %v15832_v44 = vmax.f32 %v5455_v3, 0.0  ;;  %v5453_v16 = vadd.f32 %v15771_v12, %v5354_v30  ;;  %12416 = vmatprep.subr.mxu0 %v18303_v11  ;;  %12443 = vmatmul.mubr.msk.f32.gmra.mxu1 %vm467_vm1, %v5642_v53  ;;  %v6181_v31 = vmul.f32 %v15838_v42, %v18372_v27  ;;  %v6182_v12 = vmul.f32 %v15838_v42, %v18375_v58 }
 0x4a9   :  { %12417 = vmatpush3.msra.mxu0 %v15340_v49  ;;  %4673 = vrot.lane.b32.xlu1 %v10670_v18, %s13150_s19  ;;  %v6209_v45 = vmul.f32 %v15841_v37, %v18373_v51  ;;  %v6242_v10 = vmul.f32 %v15858_v41, %v18377_v14  ;;  %v6211_v61 = vmul.f32 %v15841_v37, %v14593_v52 }
 0x4aa   :  { %v5456_v6 = vadd.f32 %v15768_v60, %v5453_v16  ;;  %12392 = vmatmul.mubr.msk.f32.gmra.mxu0 %vm467_vm1, %v15832_v44  ;;  %12418 = vmatprep.subr.mxu0 %v18303_v11  ;;  %v5899_v21 = vrot.slane %v15832_v44, 1  ;;  %v6183_v25 = vmul.f32 %v15838_v42, %v14597_v59  ;;  %v6389_v52 = vmul.f32 %v15858_v41, %v18372_v27  ;;  %v18381_v27 = vld [vmem:[#allocation44_spill] sm:$0xff] }
 0x4ab   :  { %12445 = vmatprep.mubr.msk.f32.mxu1 %vm13146_vm0, %v18303_v11  ;;  %12468 = vmatpush3.msra.mxu1 %v15340_v49  ;;  %v18374_v49 = vld [vmem:[#allocation35_spill] sm:$0xff]  ;;  %v6213_v23 = vadd.f32 %v6209_v45, %v6181_v31  ;;  %v15932_v38 = vmul.f32 %v15858_v41, %v18375_v58  ;;  %v6281_v17 = vmul.f32 %v18378_v28, %v15841_v37 }
 0x4ac   :  { %v15852_v40 = vmax.f32 %v5456_v6, 0.0  ;;  %12419 = vmatpush3.msra.mxu0 %v15354_v57  ;;  %12446 = vmatmul.mubr.msk.f32.gmra.mxu1 %vm467_vm1, %v15811_v8  ;;  %v6241_v34 = vmul.f32 %v15858_v41, %v18374_v49  ;;  %v6263_v29 = vmul.f32 %v18374_v49, %v15838_v42  ;;  %v6243_v32 = vmul.f32 %v15858_v41, %v18379_v15 }
 0x4ad   :  { %12469 = vmatprep.subr.mxu1 %v18303_v11  ;;  %12394 = vmatprep.mubr.msk.f32.mxu0 %vm13146_vm0, %v18303_v11  ;;  %v6215_v43 = vadd.f32 %v6211_v61, %v6183_v25  ;;  %v6383_v9 = vmul.f32 %v14616_v36, %v15841_v37  ;;  %v6365_v48 = vmul.f32 %v14621_v13, %v15838_v42  ;;  %v6397_v1 = vrot.slane %v6389_v52, 1  ;;  %v18386_v61 = vld [vmem:[#allocation47_spill] sm:$0xff] }
 0x4ae   :  { %12470 = vmatpush3.msra.mxu1 %v15354_v57  ;;  %12395 = vmatmul.mubr.msk.f32.gmra.mxu0 %vm467_vm1, %v15852_v40  ;;  %v5901_v60 = vrot.slane %v15852_v40, 1  ;;  %v5900_v57 = vsel %vm447_vm2, %v5898_v46, %v5899_v21  ;;  %v6245_v39 = vadd.f32 %v6241_v34, %v6213_v23  ;;  %v6398_v3 = vrot.slane %v15932_v38, 1  ;;  %v18382_v34 = vld [vmem:[#allocation54_spill] sm:$0xff] }
 0x4af   :  { %12420 = vmatprep.subr.mxu0 %v18303_v11  ;;  %12471 = vmatprep.subr.mxu1 %v18303_v11  ;;  %v6284_v36 = vadd.f32 %v6281_v17, %v6263_v29  ;;  %v15975_v30 = vmul.f32 %v15858_v41, %v14597_v59  ;;  %v6247_v6 = vadd.f32 %v6243_v32, %v6215_v43 }
 0x4b0   :  { %12421 = vmatpush3.msra.mxu0 %v15372_v24  ;;  %12472 = vmatpush3.msra.mxu1 %v15372_v24  ;;  %v6210_v24 = vmul.f32 %v15841_v37, %v18376_v54  ;;  %v5902_v47 = vsel %vm447_vm2, %v5899_v21, %v5901_v60  ;;  %v15939_v62 = vadd.f32 %v15911_v2, %v6245_v39  ;;  %v18383_v54 = vld [vmem:[#allocation45_spill] sm:$0xff] }
 0x4b1   :  { %12473 = vmatprep.mubr.msk.f32.mxu1 %vm13146_vm0, %v18303_v11  ;;  %12422 = vmatprep.mubr.msk.f32.mxu0 %vm13146_vm0, %v18303_v11  ;;  %v6264_v59 = vmul.f32 %v18377_v14, %v15838_v42  ;;  %v6282_v31 = vmul.f32 %v18381_v27, %v15841_v37  ;;  %v6386_v51 = vadd.f32 %v6383_v9, %v6365_v48  ;;  %v6400_v49 = vrot.slane %v15975_v30, 1  ;;  %v18384_v14 = vld [vmem:[#allocation53_spill] sm:$0xff] }
 0x4b2   :  { %12474 = vmatmul.mubr.msk.f32.vlgmr.msra.gmra.mxu1 %vm467_vm1, %v5900_v57  ;;  %12448 = vmatprep.subr.mxu0 %v18303_v11  ;;  %v6214_v5 = vadd.f32 %v6210_v24, %v6182_v12  ;;  %v6259_v50 = vmax.f32 %v15939_v62, 0.0  ;;  %v6399_v45 = vsel %vm447_vm2, %v6397_v1, %v6398_v3  ;;  %v6366_v21 = vmul.f32 %v14630_v26, %v15838_v42  ;;  %v157_v1 = vld [vmem:[%s18202_s3 + $0xe0] sm:$0xff] }
 0x4b3   :  { %12423 = vmatmul.mubr.msk.f32.vlgmr.msra.gmra.mxu0 %vm467_vm1, %v5640_v63  ;;  %12476 = vmatprep.mubr.msk.f32.mxu1 %vm13146_vm0, %v18303_v11  ;;  %v13097_v63 = vld [vmem:[%s18204_s5 + $0x68] sm:$0xff]  ;;  %v6384_v46 = vmul.f32 %v14651_v33, %v15841_v37  ;;  %v6392_v23 = vmul.f32 %v15858_v41, %v18382_v34  ;;  %v16018_v58 = vadd.f32 %v15911_v2, %v6247_v6  ;;  %v16149_v62 = vld [vmem:[%s18202_s3 + $0x100] sm:$0xff] }
 0x4b4   :  { %12449 = vmatpush3.msra.mxu0 %v13095_v4  ;;  %12499 = vmatprep.subr.mxu1 %v18303_v11  ;;  %v6246_v56 = vadd.f32 %v6242_v10, %v6214_v5  ;;  %v6285_v12 = vadd.f32 %v6282_v31, %v6264_v59  ;;  %v6407_v24 = vadd.f32 %v6399_v45, %v6386_v51  ;;  %v159_v4 = vld [vmem:[%s18202_s3 + $0xf0] sm:$0xff] }
 0x4b5   :  { %12450 = vmatprep.subr.mxu0 %v18303_v11  ;;  %12425 = vmatprep.mubr.msk.f32.mxu0 %vm13146_vm0, %v18303_v11  ;;  %v6387_v39 = vadd.f32 %v6384_v46, %v6366_v21  ;;  %v6367_v10 = vmul.f32 %v18384_v14, %v15838_v42  ;;  %v6283_v25 = vmul.f32 %v18386_v61, %v15841_v37  ;;  %v6402_v38 = vrot.slane %v6392_v23, 1  ;;  %v18389_v6 = vld [vmem:[#allocation55_spill] sm:$0xff]  ;;  %v18392_v61 = vld [vmem:[#allocation52_spill] sm:$0xff] }
 0x4b6   :  { %12477 = vmatmul.mubr.msk.f32.gmra.mxu1 %vm467_vm1, %v5902_v47  ;;  %12451 = vmatpush3.msra.mxu0 %v13096_v35  ;;  %v15983_v16 = vadd.f32 %v15911_v2, %v6246_v56  ;;  %v18385_v47 = vld [vmem:[#allocation56_spill] sm:$0xff]  ;;  %v6265_v35 = vmul.f32 %v18379_v15, %v15838_v42  ;;  %v6401_v52 = vsel %vm447_vm2, %v6398_v3, %v6400_v49  ;;  %v6261_v29 = vmax.f32 %v16018_v58, 0.0  ;;  %v158_v56 = vld [vmem:[%s18202_s3 + $0xe8] sm:$0xff] }
 0x4b7   :  { %12500 = vmatpush3.msra.mxu1 %v15900_v7  ;;  %12426 = vmatmul.mubr.msk.f32.gmra.mxu0 %vm467_vm1, %v5642_v53  ;;  %v18380_v53 = vld [vmem:[#allocation42_spill] sm:$0xff]  ;;  %v6385_v5 = vmul.f32 %v18385_v47, %v15841_v37  ;;  %v6410_v15 = vadd.f32 %v15911_v2, %v6407_v24  ;;  %v6403_v48 = vsel %vm447_vm2, %v6400_v49, %v6402_v38  ;;  %v18390_v49 = vld [vmem:[#allocation51_spill] sm:$0xff]  ;;  %v6868_v38 = vrot.slane %v6259_v50, 1 }
 0x4b8   :  { %12501 = vmatprep.subr.mxu1 %v18303_v11  ;;  %12452 = vmatprep.subr.mxu0 %v18303_v11  ;;  %v6302_v18 = vmul.f32 %v18380_v53, %v15858_v41  ;;  %v6260_v57 = vmax.f32 %v15983_v16, 0.0  ;;  %v6286_v43 = vadd.f32 %v6283_v25, %v6265_v35  ;;  %v6314_v3 = vmul.f32 %v18380_v53, %v15838_v42 }
 0x4b9   :  { %12479 = vmatprep.mubr.msk.f32.mxu1 %vm13146_vm0, %v18303_v11  ;;  %12502 = vmatpush3.msra.mxu1 %v15924_v20  ;;  %v6388_v32 = vadd.f32 %v6385_v5, %v6367_v10  ;;  %v6413_v59 = vmax.f32 %v6410_v15, 0.0  ;;  %v6353_v46 = vmul.f32 %v14621_v13, %v15858_v41  ;;  %v6354_v10 = vmul.f32 %v14630_v26, %v15858_v41  ;;  %v16131_v26 = vld [vmem:[%s18202_s3 + $0x108] sm:$0xff] }
 0x4ba   :  { %12453 = vmatpush3.msra.mxu0 %v13097_v63  ;;  %12480 = vmatmul.mubr.msk.f32.gmra.mxu1 %vm467_vm1, %v5901_v60  ;;  %v160_v60 = vld [vmem:[%s18202_s3 + $0xf8] sm:$0xff]  ;;  %v6305_v33 = vadd.f32 %v6302_v18, %v6284_v36  ;;  %v18387_v63 = vld [vmem:[#allocation50_spill] sm:$0xff]  ;;  %v6184_v18 = vmul.f32 %v15838_v42, %v18382_v34  ;;  %v6333_v34 = vmul.f32 %v18390_v49, %v15841_v37  ;;  %v6869_v15 = vrot.slane %v6260_v57, 1  ;;  %v16232_v49 = vld [vmem:[%s18204_s5 + $0xd0] sm:$0xff] }
 0x4bb   :  { %12503 = vmatprep.subr.mxu1 %v18303_v11  ;;  %12428 = vmatprep.mubr.msk.f32.mxu0 %vm13146_vm0, %v18303_v11  ;;  %v6304_v9 = vmul.f32 %v18387_v63, %v15858_v41  ;;  %v18388_v36 = vld [vmem:[#allocation49_spill] sm:$0xff]  ;;  %v6409_v27 = vadd.f32 %v6403_v48, %v6388_v32  ;;  %v6316_v5 = vmul.f32 %v18387_v63, %v15838_v42 }
 0x4bc   :  { %12504 = vmatpush3.msra.mxu1 %v15949_v22  ;;  %12429 = vmatmul.mubr.msk.f32.gmra.mxu0 %vm467_vm1, %v15811_v8  ;;  %v13098_v8 = vld [vmem:[%s18204_s5 + $0x60] sm:$0xff]  ;;  %v6308_v28 = vadd.f32 %v15911_v2, %v6305_v33  ;;  %v6332_v30 = vmul.f32 %v18388_v36, %v15841_v37  ;;  %v6334_v25 = vmul.f32 %v18392_v61, %v15841_v37 }
 0x4bd   :  { %12454 = vmatprep.subr.mxu0 %v18303_v11  ;;  %12505 = vmatprep.subr.mxu1 %v18303_v11  ;;  %v6307_v45 = vadd.f32 %v6304_v9, %v6286_v43  ;;  %v6355_v32 = vmul.f32 %v18384_v14, %v15858_v41  ;;  %v6870_v63 = vsel %vm447_vm2, %v6868_v38, %v6869_v15  ;;  %v6871_v9 = vrot.slane %v6261_v29, 1 }
 0x4be   :  { %12455 = vmatpush3.msra.mxu0 %v13098_v8  ;;  %12506 = vmatpush3.msra.mxu1 %v15967_v55  ;;  %v6212_v8 = vmul.f32 %v15841_v37, %v18389_v6  ;;  %v6311_v31 = vmax.f32 %v6308_v28, 0.0  ;;  %v6335_v21 = vadd.f32 %v6332_v30, %v6314_v3 }
 0x4bf   :  { %12507 = vmatprep.mubr.msk.f32.mxu1 %vm13146_vm0, %v18303_v11  ;;  %12456 = vmatprep.mubr.msk.f32.mxu0 %vm13146_vm0, %v18303_v11  ;;  %v6310_v24 = vadd.f32 %v15911_v2, %v6307_v45  ;;  %v6872_v58 = vsel %vm447_vm2, %v6869_v15, %v6871_v9 }
 0x4c0   :  { %12508 = vmatmul.mubr.msk.f32.vlgmr.msra.gmra.mxu1 %vm467_vm1, %v6259_v50  ;;  %12482 = vmatprep.subr.mxu0 %v18303_v11  ;;  %v6216_v23 = vadd.f32 %v6212_v8, %v6184_v18 }
 0x4c1   :  { %12457 = vmatmul.mubr.msk.f32.vlgmr.msra.gmra.mxu0 %vm467_vm1, %v15813_v19  ;;  %12510 = vmatprep.mubr.msk.f32.mxu1 %vm13146_vm0, %v18303_v11  ;;  %v6303_v19 = vmul.f32 %v18383_v54, %v15858_v41  ;;  %v6313_v28 = vmax.f32 %v6310_v24, 0.0 }
 0x4c2   :  { %12483 = vmatpush3.msra.mxu0 %v160_v60  ;;  %12533 = vmatprep.subr.mxu1 %v18303_v11 }
 0x4c3   :  { %12484 = vmatprep.subr.mxu0 %v18303_v11  ;;  %12459 = vmatprep.mubr.msk.f32.mxu0 %vm13146_vm0, %v18303_v11  ;;  %v6306_v17 = vadd.f32 %v6303_v19, %v6285_v12  ;;  %v16097_v12 = vld [vmem:[%s18202_s3 + $0x118] sm:$0xff] }
 0x4c4   :  { %12511 = vmatmul.mubr.msk.f32.gmra.mxu1 %vm467_vm1, %v6260_v57  ;;  %12485 = vmatpush3.msra.mxu0 %v159_v4 }
 0x4c5   :  { %12534 = vmatpush3.msra.mxu1 %v160_v60  ;;  %12460 = vmatmul.mubr.msk.f32.gmra.mxu0 %vm467_vm1, %v15832_v44  ;;  %v6408_v44 = vadd.f32 %v6401_v52, %v6387_v39  ;;  %v6309_v51 = vadd.f32 %v15911_v2, %v6306_v17  ;;  %v18391_v60 = vld [vmem:[#allocation58_spill] sm:$0xff]  ;;  %v6356_v39 = vadd.f32 %v6353_v46, %v6335_v21  ;;  %v16225_v46 = vld [vmem:[%s18204_s5 + $0xd8] sm:$0xff] }
 0x4c6   :  { %12535 = vmatprep.subr.mxu1 %v18303_v11  ;;  %12486 = vmatprep.subr.mxu0 %v18303_v11  ;;  %v6244_v33 = vmul.f32 %v15858_v41, %v18391_v60  ;;  %v16253_v60 = vld [vmem:[%s18204_s5 + $0xf8] sm:$0xff] }
 0x4c7   :  { %12513 = vmatprep.mubr.msk.f32.mxu1 %vm13146_vm0, %v18303_v11  ;;  %12536 = vmatpush3.msra.mxu1 %v159_v4  ;;  %v6411_v53 = vadd.f32 %v15911_v2, %v6408_v44  ;;  %v6312_v19 = vmax.f32 %v6309_v51, 0.0  ;;  %v16111_v4 = vld [vmem:[%s18202_s3 + $0x110] sm:$0xff]  ;;  %v6359_v17 = vadd.f32 %v15911_v2, %v6356_v39  ;;  %v6337_v44 = vadd.f32 %v6334_v25, %v6316_v5 }
 0x4c8   :  { %12487 = vmatpush3.msra.mxu0 %v158_v56  ;;  %12514 = vmatmul.mubr.msk.f32.gmra.mxu1 %vm467_vm1, %v6261_v29  ;;  %v6248_v35 = vadd.f32 %v6244_v33, %v6216_v23  ;;  %v16246_v23 = vld [vmem:[%s18204_s5 + $0xc0] sm:$0xff]  ;;  %v16260_v33 = vld [vmem:[%s18204_s5 + $0xf0] sm:$0xff] }
 0x4c9   :  { %12537 = vmatprep.subr.mxu1 %v18303_v11  ;;  %12462 = vmatprep.mubr.msk.f32.mxu0 %vm13146_vm0, %v18303_v11  ;;  %v6414_v13 = vmax.f32 %v6411_v53, 0.0  ;;  %v6362_v50 = vmax.f32 %v6359_v17, 0.0  ;;  %v6358_v57 = vadd.f32 %v6355_v32, %v6337_v44 }
 0x4ca   :  { %12538 = vmatpush3.msra.mxu1 %v158_v56  ;;  %12463 = vmatmul.mubr.msk.f32.gmra.mxu0 %vm467_vm1, %v15852_v40  ;;  %v6315_v40 = vmul.f32 %v18383_v54, %v15838_v42  ;;  %v6412_v54 = vadd.f32 %v15911_v2, %v6409_v27  ;;  %v6258_v43 = vadd.f32 %v15911_v2, %v6248_v35 }
 0x4cb   :  { %12488 = vmatprep.subr.mxu0 %v18303_v11  ;;  %12539 = vmatprep.subr.mxu1 %v18303_v11 }
 0x4cc   :  { %12489 = vmatpush3.msra.mxu0 %v157_v1  ;;  %12540 = vmatpush3.msra.mxu1 %v157_v1  ;;  %v6336_v47 = vadd.f32 %v6333_v34, %v6315_v40  ;;  %v6415_v52 = vmax.f32 %v6412_v54, 0.0  ;;  %v6262_v14 = vmax.f32 %v6258_v43, 0.0  ;;  %v6361_v1 = vadd.f32 %v15911_v2, %v6358_v57  ;;  %v16239_v34 = vld [vmem:[%s18204_s5 + $0xc8] sm:$0xff]  ;;  %v16274_v54 = vld [vmem:[%s18204_s5 + $0xe0] sm:$0xff] }
 0x4cd   :  { %12541 = vmatprep.mubr.msk.f32.mxu1 %vm13146_vm0, %v18303_v11  ;;  %12490 = vmatprep.mubr.msk.f32.mxu0 %vm13146_vm0, %v18303_v11 }
 0x4ce   :  { %12542 = vmatmul.mubr.msk.f32.vlgmr.msra.gmra.mxu1 %vm467_vm1, %v6413_v59  ;;  %12516 = vmatprep.subr.mxu0 %v18303_v11  ;;  %v6357_v56 = vadd.f32 %v6354_v10, %v6336_v47  ;;  %v6873_v3 = vrot.slane %v6262_v14, 1 }
 0x4cf   :  { %12491 = vmatmul.mubr.msk.f32.vlgmr.msra.gmra.mxu0 %vm467_vm1, %v6311_v31  ;;  %12544 = vmatprep.mubr.msk.f32.mxu1 %vm13146_vm0, %v18303_v11 }
 0x4d0   :  { %12517 = vmatpush3.msra.mxu0 %v16097_v12  ;;  %12567 = vmatprep.subr.mxu1 %v18303_v11  ;;  %v6360_v16 = vadd.f32 %v15911_v2, %v6357_v56  ;;  %v6874_v2 = vsel %vm447_vm2, %v6871_v9, %v6873_v3 }
 0x4d1   :  { %12518 = vmatprep.subr.mxu0 %v18303_v11  ;;  %12493 = vmatprep.mubr.msk.f32.mxu0 %vm13146_vm0, %v18303_v11 }
 0x4d2   :  { %12545 = vmatmul.mubr.msk.f32.gmra.mxu1 %vm467_vm1, %v6414_v13  ;;  %12519 = vmatpush3.msra.mxu0 %v16111_v4  ;;  %v6363_v48 = vmax.f32 %v6360_v16, 0.0  ;;  %v16267_v13 = vld [vmem:[%s18204_s5 + $0xe8] sm:$0xff] }
 0x4d3   :  { %12568 = vmatpush3.msra.mxu1 %v16097_v12  ;;  %12494 = vmatmul.mubr.msk.f32.gmra.mxu0 %vm467_vm1, %v6312_v19 }
 0x4d4   :  { %12569 = vmatprep.subr.mxu1 %v18303_v11  ;;  %12520 = vmatprep.subr.mxu0 %v18303_v11 }
 0x4d5   :  { %12547 = vmatprep.mubr.msk.f32.mxu1 %vm13146_vm0, %v18303_v11  ;;  %12570 = vmatpush3.msra.mxu1 %v16111_v4 }
 0x4d6   :  { %12521 = vmatpush3.msra.mxu0 %v16131_v26  ;;  %12548 = vmatmul.mubr.msk.f32.gmra.mxu1 %vm467_vm1, %v6415_v52 }
 0x4d7   :  { %12571 = vmatprep.subr.mxu1 %v18303_v11  ;;  %12496 = vmatprep.mubr.msk.f32.mxu0 %vm13146_vm0, %v18303_v11 }
 0x4d8   :  { %12572 = vmatpush3.msra.mxu1 %v16131_v26  ;;  %12497 = vmatmul.mubr.msk.f32.gmra.mxu0 %vm467_vm1, %v6313_v28 }
 0x4d9   :  { %12522 = vmatprep.subr.mxu0 %v18303_v11  ;;  %12573 = vmatprep.subr.mxu1 %v18303_v11 }
 0x4da   :  { %12523 = vmatpush3.msra.mxu0 %v16149_v62  ;;  %12574 = vmatpush3.msra.mxu1 %v16149_v62 }
 0x4db   :  { %12575 = vmatprep.mubr.msk.f32.mxu1 %vm13146_vm0, %v18303_v11  ;;  %12524 = vmatprep.mubr.msk.f32.mxu0 %vm13146_vm0, %v18303_v11 }
 0x4dc   :  { %12576 = vmatmul.mubr.msk.f32.vlgmr.msra.gmra.mxu1 %vm467_vm1, %v6870_v63  ;;  %12550 = vmatprep.subr.mxu0 %v18303_v11 }
 0x4dd   :  { %12525 = vmatmul.mubr.msk.f32.vlgmr.msra.gmra.mxu0 %vm467_vm1, %v6362_v50  ;;  %12578 = vmatprep.mubr.msk.f32.mxu1 %vm13146_vm0, %v18303_v11 }
 0x4de   :  { %12551 = vmatpush3.msra.mxu0 %v15900_v7  ;;  %12527 = vmatprep.mubr.msk.f32.mxu0 %vm13146_vm0, %v18303_v11  ;;  %v6364_v7 = vmax.f32 %v6361_v1, 0.0 }
 0x4df   :  { %12552 = vmatprep.subr.mxu0 %v18303_v11  ;;  %12601 = vmatprep.subr.mxu1 %v18303_v11 }
 0x4e0   :  { %12579 = vmatmul.mubr.msk.f32.gmra.mxu1 %vm467_vm1, %v6872_v58  ;;  %12553 = vmatpush3.msra.mxu0 %v15924_v20 }
 0x4e1   :  { %12528 = vmatmul.mubr.msk.f32.gmra.mxu0 %vm467_vm1, %v6363_v48  ;;  %12554 = vmatprep.subr.mxu0 %v18303_v11 }
 0x4e2   :  { %12581 = vmatprep.mubr.msk.f32.mxu1 %vm13146_vm0, %v18303_v11  ;;  %12555 = vmatpush3.msra.mxu0 %v15949_v22 }
 0x4e3   :  { %12530 = vmatprep.mubr.msk.f32.mxu0 %vm13146_vm0, %v18303_v11  ;;  %12556 = vmatprep.subr.mxu0 %v18303_v11 }
 0x4e4   :  { %12582 = vmatmul.mubr.msk.f32.gmra.mxu1 %vm467_vm1, %v6874_v2  ;;  %12557 = vmatpush3.msra.mxu0 %v15967_v55 }
 0x4e5   :  { %12531 = vmatmul.mubr.msk.f32.gmra.mxu0 %vm467_vm1, %v6364_v7  ;;  %12609 = vmatprep.mubr.msk.f32.mxu1 %vm13146_vm0, %v18303_v11 }
 0x4e6   :  { %12558 = vmatprep.mubr.msk.f32.mxu0 %vm13146_vm0, %v18303_v11  ;;  %12584 = vmatprep.subr.mxu0 %v18303_v11 }
 0x4e7   :  { %12602 = vmatpush3.msra.mxu1 %v16225_v46 }
 0x4e8   :  { %12603 = vmatprep.subr.mxu1 %v18303_v11 }
 0x4e9   :  { %12559 = vmatmul.mubr.msk.f32.vlgmr.msra.gmra.mxu0 %vm467_vm1, %v6362_v50  ;;  %12604 = vmatpush3.msra.mxu1 %v16232_v49 }
 0x4ea   :  { %12561 = vmatprep.mubr.msk.f32.mxu0 %vm13146_vm0, %v18303_v11  ;;  %12605 = vmatprep.subr.mxu1 %v18303_v11 }
 0x4eb   :  { %12606 = vmatpush3.msra.mxu1 %v16239_v34  ;;  %12585 = vmatpush3.msra.mxu0 %v16253_v60 }
 0x4ec   :  { %12607 = vmatprep.subr.mxu1 %v18303_v11  ;;  %12586 = vmatprep.subr.mxu0 %v18303_v11 }
 0x4ed   :  { %12562 = vmatmul.mubr.msk.f32.gmra.mxu0 %vm467_vm1, %v6363_v48  ;;  %12608 = vmatpush3.msra.mxu1 %v16246_v23 }
 0x4ee   :  { %12564 = vmatprep.mubr.msk.f32.mxu0 %vm13146_vm0, %v18303_v11  ;;  %12635 = vmatprep.subr.mxu1 %v18303_v11 }
 0x4ef   :  { %12587 = vmatpush3.msra.mxu0 %v16260_v33 }
 0x4f0   :  { %12588 = vmatprep.subr.mxu0 %v18303_v11 }
 0x4f1   :  { %12565 = vmatmul.mubr.msk.f32.gmra.mxu0 %vm467_vm1, %v6364_v7 }
 0x4f2   :  { %12592 = vmatprep.mubr.msk.f32.mxu0 %vm13146_vm0, %v18303_v11  ;;  %12589 = vmatpush3.msra.mxu0 %v16267_v13 }
 0x4f3   :  { %12590 = vmatprep.subr.mxu0 %v18303_v11 }
 0x4f4   :  { %v4551_v20 = vpop.permute.xlu1 %4550  ;;  %12591 = vmatpush3.msra.mxu0 %v16274_v54 }
 0x4f5   :  { %4553 = vst.msk [vmem:[#allocation2 + $0xa] sm:$0x1] %vm1597_vm6, %v4551_v20  ;;  %12618 = vmatprep.subr.mxu0 %v18303_v11 }
 0x4f6   :  { %v4578_v22 = vpop.permute.xlu0 %4577 }
 0x4f8   :  { %v4560_v55 = vpop.permute.xlu1 %4559 }
 0x4f9   :  { %4562 = vst.msk [vmem:[#allocation2 + $0xc] sm:$0x1] %vm1584_vm4, %v4560_v55 }
 0x4fa   :  { %v4587_v29 = vpop.permute.xlu0 %4586 }
 0x4fb   :  { %4589 = vst.msk [vmem:[#allocation2 + $0xe] sm:$0x1] %vm1584_vm4, %v4587_v29 }
 0x4fc   :  { %v4566_v36 = vpop.permute.xlu1 %4565 }
 0x4fd   :  { %4568 = vst.msk [vmem:[#allocation2 + $0xc] sm:$0x1] %vm1590_vm5, %v4566_v36 }
 0x4fe   :  { %4580 = vst.msk [vmem:[#allocation2 + $0xc] sm:$0x1] %vm1597_vm6, %v4578_v22  ;;  %v4593_v30 = vpop.permute.xlu0 %4592 }
 0x4ff   :  { %4595 = vst.msk [vmem:[#allocation2 + $0xe] sm:$0x1] %vm1590_vm5, %v4593_v30 }
 0x500   :  { %v4605_v18 = vpop.permute.xlu1 %4604 }
 0x501   :  { %4607 = vst.msk [vmem:[#allocation2 + $0xe] sm:$0x1] %vm1597_vm6, %v4605_v18 }
 0x502   :  { %v4641_v6 = vpop.permute.xlu0 %4640 }
 0x503   :  { %4643 = vst.msk [vmem:[#allocation2 + $0x12] sm:$0x1] %vm1584_vm4, %v4641_v6 }
 0x504   :  { %v4614_v8 = vpop.permute.xlu1 %4613 }
 0x505   :  { %4616 = vst.msk [vmem:[#allocation2 + $0x10] sm:$0x1] %vm1584_vm4, %v4614_v8  ;;  %v13099_v8 = vld [vmem:[%s18205_s6 + $0x1] ss:$0 sm:$0xff] }
 0x506   :  { %v4659_v59 = vpop.permute.xlu0 %4658 }
 0x508   :  { %v4632_v53 = vpop.permute.xlu1 %4631 }
 0x50a   :  { %v4647_v27 = vpop.permute.xlu0 %4646 }
 0x50b   :  { %4649 = vst.msk [vmem:[#allocation2 + $0x12] sm:$0x1] %vm1590_vm5, %v4647_v27 }
 0x50c   :  { %4661 = vst.msk [vmem:[#allocation2 + $0x12] sm:$0x1] %vm1597_vm6, %v4659_v59  ;;  %v4620_v31 = vpop.permute.xlu1 %4619 }
 0x50d   :  { %4622 = vst.msk [vmem:[#allocation2 + $0x10] sm:$0x1] %vm1590_vm5, %v4620_v31 }
 0x50e   :  { %4634 = vst.msk [vmem:[#allocation2 + $0x10] sm:$0x1] %vm1597_vm6, %v4632_v53  ;;  %v4695_v51 = vpop.permute.xlu0 %4694 }
 0x50f   :  { %4697 = vst.msk [vmem:[#allocation2 + $0x16] sm:$0x1] %vm1584_vm4, %v4695_v51 }
 0x510   :  { %v4668_v40 = vpop.permute.xlu1 %4667 }
 0x511   :  { %4670 = vst.msk [vmem:[#allocation2 + $0x14] sm:$0x1] %vm1584_vm4, %v4668_v40 }
 0x514   :  { %v4686_v45 = vpop.permute.xlu1 %4685 }
 0x51b   :  { %v4674_v21 = vpop.permute.xlu1 %4673 }
 0x51c   :  { %4676 = vst.msk [vmem:[#allocation2 + $0x14] sm:$0x1] %vm1590_vm5, %v4674_v21 }
 0x51d   :  { %4688 = vst.msk [vmem:[#allocation2 + $0x14] sm:$0x1] %vm1597_vm6, %v4686_v45 }
 0x558   :  { %v5624_v19 = vpop.f32.mrf.mxu1 }
 0x55a   :  { %v12407_v24 = vpop.f32.mrf.mxu1 }
 0x55c   :  { %v5629_v39 = vpop.f32.mrf.mxu1 }
 0x55e   :  { %v12410_v10 = vpop.f32.mrf.mxu1 }
 0x560   :  { %v5634_v47 = vpop.f32.mrf.mxu1 }
 0x562   :  { %v12413_v5 = vpop.f32.mrf.mxu1 }
 0x564   :  { %v5804_v61 = vpop.f32.mrf.mxu1 }
 0x566   :  { %v5535_v25 = vpop.f32.mrf.mxu0  ;;  %v12441_v35 = vpop.f32.mrf.mxu1 }
 0x567   :  { %v5625_v2 = vadd.f32 %v5624_v19, %v5535_v25 }
 0x568   :  { %v12390_v52 = vpop.f32.mrf.mxu0  ;;  %v5809_v38 = vpop.f32.mrf.mxu1 }
 0x56a   :  { %v5540_v28 = vpop.f32.mrf.mxu0  ;;  %v12444_v17 = vpop.f32.mrf.mxu1 }
 0x56b   :  { %v5630_v36 = vadd.f32 %v5629_v39, %v5540_v28 }
 0x56c   :  { %v12393_v56 = vpop.f32.mrf.mxu0  ;;  %v5814_v15 = vpop.f32.mrf.mxu1 }
 0x56e   :  { %v5545_v44 = vpop.f32.mrf.mxu0  ;;  %v12447_v32 = vpop.f32.mrf.mxu1 }
 0x56f   :  { %v5635_v19 = vadd.f32 %v5634_v47, %v5545_v44 }
 0x570   :  { %v12396_v43 = vpop.f32.mrf.mxu0 }
 0x572   :  { %v5975_v50 = vpop.f32.mrf.mxu1 }
 0x573   :  { %v5715_v16 = vpop.f32.mrf.mxu0 }
 0x574   :  { %v12475_v57 = vpop.f32.mrf.mxu1  ;;  %v5729_v22 = vadd.f32 %v5715_v16, %v5625_v2 }
 0x575   :  { %v12424_v14 = vpop.f32.mrf.mxu0 }
 0x576   :  { %v5980_v63 = vpop.f32.mrf.mxu1  ;;  %v5732_v59 = vadd.f32 %v13099_v8, %v5729_v22 }
 0x577   :  { %v5720_v9 = vpop.f32.mrf.mxu0 }
 0x578   :  { %v12478_v48 = vpop.f32.mrf.mxu1  ;;  %v5730_v53 = vadd.f32 %v5720_v9, %v5630_v36  ;;  %v5735_v10 = vmax.f32 %v5732_v59, 0.0 }
 0x579   :  { %v12427_v1 = vpop.f32.mrf.mxu0 }
 0x57a   :  { %v5985_v3 = vpop.f32.mrf.mxu1  ;;  %v5733_v39 = vadd.f32 %v13099_v8, %v5730_v53 }
 0x57c   :  { %v5725_v58 = vpop.f32.mrf.mxu0  ;;  %v12481_v7 = vpop.f32.mrf.mxu1  ;;  %v5736_v43 = vmax.f32 %v5733_v39, 0.0 }
 0x57d   :  { %v5731_v35 = vadd.f32 %v5725_v58, %v5635_v19 }
 0x57e   :  { %v12430_v20 = vpop.f32.mrf.mxu0 }
 0x57f   :  { %v5734_v47 = vadd.f32 %v13099_v8, %v5731_v35 }
 0x580   :  { %v16278_v55 = vpop.f32.mrf.mxu1 }
 0x581   :  { %v5884_v29 = vpop.f32.mrf.mxu0 }
 0x582   :  { %v5885_v30 = vadd.f32 %v5884_v29, %v5804_v61  ;;  %v12509_v18 = vpop.f32.mrf.mxu1 }
 0x583   :  { %v12458_v6 = vpop.f32.mrf.mxu0 }
 0x584   :  { %v5989_v27 = vadd.f32 %v5975_v50, %v5885_v30  ;;  %v16283_v31 = vpop.f32.mrf.mxu1 }
 0x585   :  { %v5889_v51 = vpop.f32.mrf.mxu0 }
 0x586   :  { %v5992_v40 = vadd.f32 %v13099_v8, %v5989_v27  ;;  %v5890_v45 = vadd.f32 %v5889_v51, %v5809_v38  ;;  %v12512_v21 = vpop.f32.mrf.mxu1 }
 0x587   :  { %v12461_v24 = vpop.f32.mrf.mxu0 }
 0x588   :  { %v5995_v5 = vmax.f32 %v5992_v40, 0.0  ;;  %v5990_v61 = vadd.f32 %v5980_v63, %v5890_v45  ;;  %v16285_v25 = vpop.f32.mrf.mxu1 }
 0x58a   :  { %v5998_v52 = vmax.f32 %v5735_v10, %v5995_v5  ;;  %v5993_v28 = vadd.f32 %v13099_v8, %v5990_v61  ;;  %v5894_v17 = vpop.f32.mrf.mxu0  ;;  %v12515_v56 = vpop.f32.mrf.mxu1 }
 0x58b   :  { %v5895_v32 = vadd.f32 %v5894_v17, %v5814_v15 }
 0x58c   :  { %v6028_v50 = vcombine.high %v5998_v52, %v5998_v52  ;;  %v5996_v16 = vmax.f32 %v5993_v28, 0.0  ;;  %v12464_v57 = vpop.f32.mrf.mxu0  ;;  %v6008_v38 = vrot.slane %v5998_v52, %v14600_v0 }
 0x58d   :  { %v5991_v44 = vadd.f32 %v5985_v3, %v5895_v32  ;;  %v5737_v3 = vmax.f32 %v5734_v47, 0.0 }
 0x58e   :  { %v6035_v14 = vrot.slane %v6028_v50, %v14600_v0  ;;  %v5999_v9 = vmax.f32 %v5736_v43, %v5996_v16  ;;  %v16289_v63 = vpop.f32.mrf.mxu1  ;;  %6009 = vrot.lane.b32.xlu0 %v6008_v38, %s13151_s20  ;;  %v6017_v48 = vcombine.high %v6008_v38, %v6008_v38  ;;  %v10708_v1 = vrot.slane %v6008_v38, 9  ;;  %v16320_v43 = vld [vmem:[%s18203_s4 + $0x2] ss:$0 sm:$0xff] }
 0x58f   :  { %v5994_v58 = vadd.f32 %v13099_v8, %v5991_v44  ;;  %v6491_v7 = vpop.f32.mrf.mxu0 }
 0x590   :  { %v6082_v15 = vcombine.high %v5999_v9, %v5999_v9  ;;  %v12543_v2 = vpop.f32.mrf.mxu1  ;;  %6018 = vrot.lane.b32.xlu1 %v6017_v48, %s13149_s18  ;;  %v6044_v20 = vcombine.high %v6035_v14, %v6035_v14  ;;  %v6062_v22 = vrot.slane %v5999_v9, %v14600_v0  ;;  %6016 = vst.msk [vmem:[#allocation2 + $0xd] sm:$0x1] %vm1569_vm3, %v10708_v1  ;;  %v10710_v30 = vrot.slane %v6035_v14, 9 }
 0x591   :  { %v5997_v29 = vmax.f32 %v5994_v58, 0.0  ;;  %v12492_v36 = vpop.f32.mrf.mxu0  ;;  %v10709_v24 = vrot.slane %v6017_v48, 9  ;;  %v6581_v56 = vadd.f32 %v16278_v55, %v6491_v7 }
 0x592   :  { %v16295_v18 = vpop.f32.mrf.mxu1  ;;  %6045 = vrot.lane.b32.xlu0 %v6044_v20, %s13149_s18  ;;  %v6089_v6 = vrot.slane %v6082_v15, %v14600_v0  ;;  %v10712_v8 = vrot.slane %v6062_v22, 9  ;;  %6043 = vst.msk [vmem:[#allocation2 + $0xf] sm:$0x1] %vm1569_vm3, %v10710_v30  ;;  %v10711_v35 = vrot.slane %v6044_v20, 9  ;;  %v6071_v17 = vcombine.high %v6062_v22, %v6062_v22 }
 0x593   :  { %v6000_v59 = vmax.f32 %v5737_v3, %v5997_v29  ;;  %v6496_v53 = vpop.f32.mrf.mxu0 }
 0x594   :  { %v12546_v27 = vpop.f32.mrf.mxu1  ;;  %6036 = vrot.lane.b32.xlu1 %v6035_v14, %s13151_s20  ;;  %6070 = vst.msk [vmem:[#allocation2 + $0x11] sm:$0x1] %vm1569_vm3, %v10712_v8  ;;  %v10714_v51 = vrot.slane %v6089_v6, 9  ;;  %v6586_v47 = vadd.f32 %v16283_v31, %v6496_v53  ;;  %v6098_v55 = vcombine.high %v6089_v6, %v6089_v6  ;;  %v10713_v31 = vrot.slane %v6071_v17, 9 }
 0x595   :  { %v6136_v40 = vcombine.high %v6000_v59, %v6000_v59  ;;  %v12495_v45 = vpop.f32.mrf.mxu0  ;;  %v6116_v21 = vrot.slane %v6000_v59, %v14600_v0 }
 0x596   :  { %v16303_v19 = vpop.f32.mrf.mxu1  ;;  %6063 = vrot.lane.b32.xlu0 %v6062_v22, %s13151_s20  ;;  %6097 = vst.msk [vmem:[#allocation2 + $0x13] sm:$0x1] %vm1569_vm3, %v10714_v51 }
 0x597   :  { %v16308_v10 = vrot.slane %v6136_v40, %v14600_v0  ;;  %v10716_v39 = vrot.slane %v6116_v21, 9  ;;  %v6125_v7 = vcombine.high %v6116_v21, %v6116_v21 }
 0x598   :  { %v6501_v5 = vpop.f32.mrf.mxu0  ;;  %v12549_v61 = vpop.f32.mrf.mxu1  ;;  %6024 = vrot.lane.b32.xlu1 %v10709_v24, %s13150_s19 }
 0x599   :  { %6124 = vst.msk [vmem:[#allocation2 + $0x15] sm:$0x1] %vm1569_vm3, %v10716_v39  ;;  %v10718_v52 = vrot.slane %v16308_v10, 9  ;;  %v6591_v2 = vadd.f32 %v16285_v25, %v6501_v5  ;;  %v10715_v25 = vrot.slane %v6098_v55, 9  ;;  %v16360_v61 = vld [vmem:[%s18204_s5 + $0x118] sm:$0xff] }
 0x59a   :  { %v12498_v28 = vpop.f32.mrf.mxu0  ;;  %6051 = vrot.lane.b32.xlu0 %v10711_v35, %s13150_s19 }
 0x59b   :  { %6151 = vst.msk [vmem:[#allocation2 + $0x17] sm:$0x1] %vm1569_vm3, %v10718_v52 }
 0x59c   :  { %v6947_v32 = vpop.f32.mrf.mxu1  ;;  %6072 = vrot.lane.b32.xlu1 %v6071_v17, %s13149_s18 }
 0x59d   :  { %v6669_v50 = vpop.f32.mrf.mxu0 }
 0x59e   :  { %v6683_v16 = vadd.f32 %v6669_v50, %v6581_v56  ;;  %v12577_v57 = vpop.f32.mrf.mxu1  ;;  %6090 = vrot.lane.b32.xlu0 %v6089_v6, %s13151_s20 }
 0x59f   :  { %v12526_v38 = vpop.f32.mrf.mxu0 }
 0x5a0   :  { %v6692_v44 = vadd.f32 %v16320_v43, %v6683_v16  ;;  %v6952_v14 = vpop.f32.mrf.mxu1  ;;  %6117 = vrot.lane.b32.xlu1 %v6116_v21, %s13151_s20  ;;  %v6152_v21 = vcombine.high %v16308_v10, %v16308_v10 }
 0x5a1   :  { %v6674_v9 = vpop.f32.mrf.mxu0 }
 0x5a2   :  { %v6695_v48 = vmax.f32 %v6692_v44, 0.0  ;;  %v6684_v1 = vadd.f32 %v6674_v9, %v6586_v47  ;;  %v12580_v58 = vpop.f32.mrf.mxu1  ;;  %6099 = vrot.lane.b32.xlu0 %v6098_v55, %s13149_s18  ;;  %v18393_v9 = vld [vmem:[#allocation59_spill] sm:$0xff] }
 0x5a3   :  { %v12529_v15 = vpop.f32.mrf.mxu0 }
 0x5a4   :  { %v6693_v20 = vadd.f32 %v16320_v43, %v6684_v1  ;;  %v6957_v22 = vpop.f32.mrf.mxu1  ;;  %12610 = vmatmul.mubr.msk.f32.vlgmr.msra.gmra.mxu1 %vm467_vm1, %v6695_v48  ;;  %6126 = vrot.lane.b32.xlu1 %v6125_v7, %s13149_s18  ;;  %v7148_v24 = vrot.slane %v6695_v48, 1  ;;  %v7689_v48 = vmul.f32 %v18393_v9, %v15838_v42  ;;  %v18394_v1 = vld [vmem:[#allocation61_spill] sm:$0xff] }
 0x5a5   :  { %v6679_v3 = vpop.f32.mrf.mxu0  ;;  %12612 = vmatprep.mubr.msk.f32.mxu1 %vm13146_vm0, %v18303_v11  ;;  %12636 = vmatpush3.msra.mxu1 %v16253_v60  ;;  %v7709_v58 = vmul.f32 %v18394_v1, %v15841_v37  ;;  %v16421_v15 = vld [vmem:[%s18204_s5 + $0x100] sm:$0xff] }
 0x5a6   :  { %v6696_v29 = vmax.f32 %v6693_v20, 0.0  ;;  %v6685_v36 = vadd.f32 %v6679_v3, %v6591_v2  ;;  %v12583_v30 = vpop.f32.mrf.mxu1  ;;  %6078 = vrot.lane.b32.xlu0 %v10713_v31, %s13150_s19  ;;  %12637 = vmatprep.subr.mxu1 %v18303_v11  ;;  %v18395_v20 = vld [vmem:[#allocation57_spill] sm:$0xff] }
 0x5a7   :  { %v12532_v6 = vpop.f32.mrf.mxu0  ;;  %12638 = vmatpush3.msra.mxu1 %v16260_v33  ;;  %v7713_v31 = vadd.f32 %v7709_v58, %v7689_v48  ;;  %v18404_v48 = vld [vmem:[#allocation6_spill] sm:$0xff] }
 0x5a8   :  { %v6694_v8 = vadd.f32 %v16320_v43, %v6685_v36  ;;  %12613 = vmatmul.mubr.msk.f32.gmra.mxu1 %vm467_vm1, %v6696_v29  ;;  %6105 = vrot.lane.b32.xlu1 %v10715_v25, %s13150_s19  ;;  %v7149_v51 = vrot.slane %v6696_v29, 1  ;;  %v18396_v36 = vld [vmem:[#allocation65_spill] sm:$0xff]  ;;  %v18397_v25 = vld [vmem:[#allocation66_spill] sm:$0xff]  ;;  %v7854_v1 = vmul.f32 %v18404_v48, %v15841_v37 }
 0x5a9   :  { %v6853_v59 = vpop.f32.mrf.mxu0  ;;  %12615 = vmatprep.mubr.msk.f32.mxu1 %vm13146_vm0, %v18303_v11  ;;  %12639 = vmatprep.subr.mxu1 %v18303_v11  ;;  %v7690_v30 = vmul.f32 %v18396_v36, %v15838_v42  ;;  %v7710_v6 = vmul.f32 %v18397_v25, %v15841_v37  ;;  %v18411_v48 = vld [vmem:[#allocation77_spill] sm:$0xff] }
 0x5aa   :  { %v6697_v53 = vmax.f32 %v6694_v8, 0.0  ;;  %v6854_v27 = vadd.f32 %v6853_v59, %v16289_v63  ;;  %12640 = vmatpush3.msra.mxu1 %v16267_v13  ;;  %6144 = vrot.lane.b32.xlu0 %v16308_v10, %s13151_s20  ;;  %v7150_v10 = vsel %vm447_vm2, %v7148_v24, %v7149_v51  ;;  %v18398_v59 = vld [vmem:[#allocation63_spill] sm:$0xff] }
 0x5ab   :  { %v12560_v40 = vpop.f32.mrf.mxu0  ;;  %12641 = vmatprep.subr.mxu1 %v18303_v11  ;;  %v7750_v25 = vmul.f32 %v18398_v59, %v15838_v42 }
 0x5ac   :  { %v6961_v45 = vadd.f32 %v6947_v32, %v6854_v27  ;;  %12616 = vmatmul.mubr.msk.f32.gmra.mxu1 %vm467_vm1, %v6697_v53  ;;  %v16364_v35 = vrot.slane %v6697_v53, 1  ;;  %v7734_v53 = vmul.f32 %v18398_v59, %v15858_v41  ;;  %v18399_v40 = vld [vmem:[#allocation70_spill] sm:$0xff] }
 0x5ad   :  { %v6858_v39 = vpop.f32.mrf.mxu0  ;;  %12642 = vmatpush3.msra.mxu1 %v16274_v54  ;;  %12643 = vmatprep.mubr.msk.f32.mxu1 %vm13146_vm0, %v18303_v11 }
 0x5ae   :  { %v6964_v63 = vadd.f32 %v16320_v43, %v6961_v45  ;;  %v6859_v5 = vadd.f32 %v6858_v39, %v16295_v18  ;;  %6153 = vrot.lane.b32.xlu0 %v6152_v21, %s13149_s18  ;;  %12669 = vmatprep.subr.mxu1 %v18303_v11  ;;  %v10717_v18 = vrot.slane %v6125_v7, 9  ;;  %v7152_v57 = vsel %vm447_vm2, %v7149_v51, %v16364_v35  ;;  %v18400_v21 = vld [vmem:[#allocation8_spill] sm:$0xff] }
 0x5af   :  { %v12563_v52 = vpop.f32.mrf.mxu0  ;;  %v7714_v51 = vadd.f32 %v7710_v6, %v7690_v30  ;;  %v7691_v45 = vmul.f32 %v18399_v40, %v15838_v42  ;;  %v7711_v24 = vmul.f32 %v18400_v21, %v15841_v37  ;;  %v16465_v39 = vld [vmem:[%s18202_s3 + $0xd8] sm:$0xff] }
 0x5b0   :  { %v16366_v28 = vmax.f32 %v6964_v63, 0.0  ;;  %v6962_v17 = vadd.f32 %v6952_v14, %v6859_v5  ;;  %12644 = vmatmul.mubr.msk.f32.vlgmr.msra.gmra.mxu1 %vm467_vm1, %v7150_v10  ;;  %v16403_v14 = vld [vmem:[%s18204_s5 + $0x108] sm:$0xff]  ;;  %v7860_v63 = vmul.f32 %v18393_v9, %v15858_v41  ;;  %v16473_v5 = vmul.f32 %v18396_v36, %v15858_v41  ;;  %v18401_v52 = vld [vmem:[#allocation60_spill] sm:$0xff] }
 0x5b1   :  { %v6863_v56 = vpop.f32.mrf.mxu0  ;;  %12646 = vmatprep.mubr.msk.f32.mxu1 %vm13146_vm0, %v18303_v11  ;;  %12670 = vmatpush3.msra.mxu1 %v16360_v61  ;;  %v18406_v6 = vld [vmem:[#allocation64_spill] sm:$0xff] }
 0x5b2   :  { %v6965_v32 = vadd.f32 %v16320_v43, %v6962_v17  ;;  %v6864_v50 = vadd.f32 %v6863_v56, %v16303_v19  ;;  %12593 = vmatmul.mubr.msk.f32.vlgmr.msra.gmra.mxu0 %vm467_vm1, %v16366_v28  ;;  %6132 = vrot.lane.b32.xlu0 %v10717_v18, %s13150_s19  ;;  %v16389_v19 = vld [vmem:[%s18204_s5 + $0x110] sm:$0xff]  ;;  %v7414_v2 = vrot.slane %v16366_v28, 1  ;;  %v7764_v17 = vmul.f32 %v18401_v52, %v15841_v37  ;;  %v16484_v18 = vld [vmem:[%s18201_s2 + $0x2] ss:$0 sm:$0xff] }
 0x5b3   :  { %12619 = vmatpush3.msra.mxu0 %v16360_v61  ;;  %v12566_v16 = vpop.f32.mrf.mxu0  ;;  %12595 = vmatprep.mubr.msk.f32.mxu0 %vm13146_vm0, %v18303_v11  ;;  %v7868_v58 = vrot.slane %v7860_v63, 1 }
 0x5b4   :  { %v16382_v38 = vmax.f32 %v6965_v32, 0.0  ;;  %v6963_v47 = vadd.f32 %v6957_v22, %v6864_v50  ;;  %12620 = vmatprep.subr.mxu0 %v18303_v11  ;;  %12647 = vmatmul.mubr.msk.f32.gmra.mxu1 %vm467_vm1, %v7152_v57  ;;  %v7733_v22 = vmul.f32 %v18395_v20, %v15858_v41  ;;  %v16494_v32 = vld [vmem:[%s18202_s3 + $0xd0] sm:$0xff]  ;;  %v7738_v50 = vadd.f32 %v7734_v53, %v7714_v51  ;;  %v18407_v51 = vld [vmem:[#allocation73_spill] sm:$0xff] }
 0x5b5   :  { %12621 = vmatpush3.msra.mxu0 %v16389_v19  ;;  %12671 = vmatprep.subr.mxu1 %v18303_v11  ;;  %v18402_v16 = vld [vmem:[#allocation68_spill] sm:$0xff] }
 0x5b6   :  { %v6966_v44 = vadd.f32 %v16320_v43, %v6963_v47  ;;  %12596 = vmatmul.mubr.msk.f32.gmra.mxu0 %vm467_vm1, %v16382_v38  ;;  %12622 = vmatprep.subr.mxu0 %v18303_v11  ;;  %v7415_v7 = vrot.slane %v16382_v38, 1  ;;  %v7737_v8 = vadd.f32 %v7733_v22, %v7713_v31  ;;  %v7715_v47 = vadd.f32 %v7711_v24, %v7691_v45  ;;  %v18408_v45 = vld [vmem:[#allocation74_spill] sm:$0xff]  ;;  %v18409_v24 = vld [vmem:[#allocation76_spill] sm:$0xff] }
 0x5b7   :  { %12649 = vmatprep.mubr.msk.f32.mxu1 %vm13146_vm0, %v18303_v11  ;;  %12672 = vmatpush3.msra.mxu1 %v16389_v19  ;;  %v16519_v22 = vmul.f32 %v18399_v40, %v15858_v41  ;;  %v16527_v36 = vadd.f32 %v16484_v18, %v7738_v50  ;;  %v7840_v40 = vmul.f32 %v18407_v51, %v15838_v42 }
 0x5b8   :  { %v16405_v55 = vmax.f32 %v6966_v44, 0.0  ;;  %12623 = vmatpush3.msra.mxu0 %v16403_v14  ;;  %12650 = vmatmul.mubr.msk.f32.gmra.mxu1 %vm467_vm1, %v16364_v35  ;;  %v7416_v29 = vsel %vm447_vm2, %v7414_v2, %v7415_v7  ;;  %v16487_v56 = vadd.f32 %v16484_v18, %v7737_v8  ;;  %v18403_v44 = vld [vmem:[#allocation12_spill] sm:$0xff]  ;;  %v16512_v2 = vld [vmem:[%s18202_s3 + $0xc8] sm:$0xff]  ;;  %v7765_v8 = vmul.f32 %v18406_v6, %v15841_v37 }
 0x5b9   :  { %12673 = vmatprep.subr.mxu1 %v18303_v11  ;;  %12598 = vmatprep.mubr.msk.f32.mxu0 %vm13146_vm0, %v18303_v11  ;;  %v7839_v9 = vmul.f32 %v18403_v44, %v15838_v42  ;;  %v7855_v21 = vmul.f32 %v18408_v45, %v15841_v37  ;;  %v7871_v59 = vrot.slane %v16519_v22, 1  ;;  %v7863_v63 = vmul.f32 %v18409_v24, %v15858_v41  ;;  %v13106_v22 = vld [vmem:[%s18202_s3 + $0xf0] sm:$0xff] }
 0x5ba   :  { %12674 = vmatpush3.msra.mxu1 %v16403_v14  ;;  %12599 = vmatmul.mubr.msk.f32.gmra.mxu0 %vm467_vm1, %v16405_v55  ;;  %v7417_v3 = vrot.slane %v16405_v55, 1  ;;  %v7745_v31 = vmax.f32 %v16487_v56, 0.0  ;;  %v7768_v50 = vadd.f32 %v7765_v8, %v7750_v25 }
 0x5bb   :  { %12624 = vmatprep.subr.mxu0 %v18303_v11  ;;  %12675 = vmatprep.subr.mxu1 %v18303_v11  ;;  %v7857_v53 = vadd.f32 %v7854_v1, %v7839_v9  ;;  %v7858_v9 = vadd.f32 %v7855_v21, %v7840_v40  ;;  %v7841_v1 = vmul.f32 %v18411_v48, %v15838_v42  ;;  %v7873_v8 = vrot.slane %v7863_v63, 1  ;;  %v18414_v63 = vld [vmem:[#allocation71_spill] sm:$0xff] }
 0x5bc   :  { %12625 = vmatpush3.msra.mxu0 %v16421_v15  ;;  %12676 = vmatpush3.msra.mxu1 %v16421_v15  ;;  %v7418_v27 = vsel %vm447_vm2, %v7415_v7, %v7417_v3  ;;  %v7869_v7 = vrot.slane %v16473_v5, 1 }
 0x5bd   :  { %12677 = vmatprep.mubr.msk.f32.mxu1 %vm13146_vm0, %v18303_v11  ;;  %12626 = vmatprep.mubr.msk.f32.mxu0 %vm13146_vm0, %v18303_v11 }
 0x5be   :  { %12678 = vmatmul.mubr.msk.f32.vlgmr.msra.gmra.mxu1 %vm467_vm1, %v7416_v29  ;;  %12652 = vmatprep.subr.mxu0 %v18303_v11  ;;  %v7872_v6 = vsel %vm447_vm2, %v7869_v7, %v7871_v59 }
 0x5bf   :  { %12627 = vmatmul.mubr.msk.f32.vlgmr.msra.gmra.mxu0 %vm467_vm1, %v7150_v10  ;;  %12680 = vmatprep.mubr.msk.f32.mxu1 %vm13146_vm0, %v18303_v11  ;;  %v7749_v10 = vmul.f32 %v18395_v20, %v15838_v42 }
 0x5c0   :  { %12653 = vmatpush3.msra.mxu0 %v16225_v46  ;;  %12703 = vmatprep.subr.mxu1 %v18303_v11 }
 0x5c1   :  { %12654 = vmatprep.subr.mxu0 %v18303_v11  ;;  %12629 = vmatprep.mubr.msk.f32.mxu0 %vm13146_vm0, %v18303_v11  ;;  %v7767_v20 = vadd.f32 %v7764_v17, %v7749_v10  ;;  %v7746_v10 = vmax.f32 %v16527_v36, 0.0  ;;  %v13105_v17 = vld [vmem:[%s18202_s3 + $0xf8] sm:$0xff] }
 0x5c2   :  { %12681 = vmatmul.mubr.msk.f32.gmra.mxu1 %vm467_vm1, %v7418_v27  ;;  %12655 = vmatpush3.msra.mxu0 %v16232_v49  ;;  %v7870_v27 = vsel %vm447_vm2, %v7868_v58, %v7869_v7  ;;  %v18412_v58 = vld [vmem:[#allocation78_spill] sm:$0xff]  ;;  %v7879_v7 = vadd.f32 %v7872_v6, %v7858_v9  ;;  %v7692_v9 = vmul.f32 %v18409_v24, %v15838_v42 }
 0x5c3   :  { %12704 = vmatpush3.msra.mxu1 %v16465_v39  ;;  %12630 = vmatmul.mubr.msk.f32.gmra.mxu0 %vm467_vm1, %v7152_v57  ;;  %v7735_v57 = vmul.f32 %v18402_v16, %v15858_v41  ;;  %v7827_v6 = vmul.f32 %v18403_v44, %v15858_v41 }
 0x5c4   :  { %12705 = vmatprep.subr.mxu1 %v18303_v11  ;;  %12656 = vmatprep.subr.mxu0 %v18303_v11 }
 0x5c5   :  { %12683 = vmatprep.mubr.msk.f32.mxu1 %vm13146_vm0, %v18303_v11  ;;  %12706 = vmatpush3.msra.mxu1 %v16494_v32  ;;  %v7739_v30 = vadd.f32 %v7735_v57, %v7715_v47  ;;  %v18410_v57 = vld [vmem:[#allocation67_spill] sm:$0xff]  ;;  %v7878_v47 = vadd.f32 %v7870_v27, %v7857_v53 }
 0x5c6   :  { %12657 = vmatpush3.msra.mxu0 %v16239_v34  ;;  %12684 = vmatmul.mubr.msk.f32.gmra.mxu1 %vm467_vm1, %v7417_v3  ;;  %v18405_v3 = vld [vmem:[#allocation62_spill] sm:$0xff] }
 0x5c7   :  { %12707 = vmatprep.subr.mxu1 %v18303_v11  ;;  %12632 = vmatprep.mubr.msk.f32.mxu0 %vm13146_vm0, %v18303_v11  ;;  %v7782_v29 = vmul.f32 %v18405_v3, %v15858_v41  ;;  %v16562_v52 = vadd.f32 %v16484_v18, %v7739_v30  ;;  %v18413_v30 = vld [vmem:[#allocation69_spill] sm:$0xff] }
 0x5c8   :  { %12708 = vmatpush3.msra.mxu1 %v16512_v2  ;;  %12633 = vmatmul.mubr.msk.f32.gmra.mxu0 %vm467_vm1, %v16364_v35  ;;  %v16533_v35 = vld [vmem:[%s18202_s3 + $0xc0] sm:$0xff]  ;;  %v7766_v25 = vmul.f32 %v18413_v30, %v15841_v37 }
 0x5c9   :  { %12658 = vmatprep.subr.mxu0 %v18303_v11  ;;  %12709 = vmatprep.subr.mxu1 %v18303_v11  ;;  %v7785_v5 = vadd.f32 %v7782_v29, %v7767_v20  ;;  %v7856_v20 = vmul.f32 %v18412_v58, %v15841_v37  ;;  %v7751_v29 = vmul.f32 %v18402_v16, %v15838_v42  ;;  %v7747_v53 = vmax.f32 %v16562_v52, 0.0 }
 0x5ca   :  { %12659 = vmatpush3.msra.mxu0 %v16246_v23  ;;  %12710 = vmatpush3.msra.mxu1 %v16533_v35  ;;  %v7881_v16 = vadd.f32 %v16484_v18, %v7878_v47 }
 0x5cb   :  { %12711 = vmatprep.mubr.msk.f32.mxu1 %vm13146_vm0, %v18303_v11  ;;  %12660 = vmatprep.mubr.msk.f32.mxu0 %vm13146_vm0, %v18303_v11  ;;  %v7788_v27 = vadd.f32 %v16484_v18, %v7785_v5  ;;  %v7859_v45 = vadd.f32 %v7856_v20, %v7841_v1  ;;  %v7769_v21 = vadd.f32 %v7766_v25, %v7751_v29 }
 0x5cc   :  { %12712 = vmatmul.mubr.msk.f32.vlgmr.msra.gmra.mxu1 %vm467_vm1, %v7745_v31  ;;  %12686 = vmatprep.subr.mxu0 %v18303_v11  ;;  %v7784_v5 = vmul.f32 %v18414_v63, %v15858_v41  ;;  %v7884_v58 = vmax.f32 %v7881_v16, 0.0  ;;  %v7795_v29 = vmul.f32 %v18410_v57, %v15838_v42 }
 0x5cd   :  { %12661 = vmatmul.mubr.msk.f32.vlgmr.msra.gmra.mxu0 %vm467_vm1, %v16366_v28  ;;  %12714 = vmatprep.mubr.msk.f32.mxu1 %vm13146_vm0, %v18303_v11  ;;  %v7783_v28 = vmul.f32 %v18410_v57, %v15858_v41  ;;  %v18418_v57 = vld [vmem:[#allocation80_spill] sm:$0xff] }
 0x5ce   :  { %12687 = vmatpush3.msra.mxu0 %v13105_v17  ;;  %12737 = vmatprep.subr.mxu1 %v18303_v11  ;;  %v7787_v30 = vadd.f32 %v7784_v5, %v7769_v21 }
 0x5cf   :  { %12688 = vmatprep.subr.mxu0 %v18303_v11  ;;  %12663 = vmatprep.mubr.msk.f32.mxu0 %vm13146_vm0, %v18303_v11  ;;  %v7786_v40 = vadd.f32 %v7783_v28, %v7768_v50  ;;  %v7794_v50 = vmul.f32 %v18405_v3, %v15838_v42  ;;  %v18415_v28 = vld [vmem:[#allocation7_spill] sm:$0xff]  ;;  %v7882_v3 = vadd.f32 %v16484_v18, %v7879_v7 }
 0x5d0   :  { %12715 = vmatmul.mubr.msk.f32.gmra.mxu1 %vm467_vm1, %v7746_v10  ;;  %12689 = vmatpush3.msra.mxu0 %v13106_v22  ;;  %v7809_v47 = vmul.f32 %v18415_v28, %v15841_v37 }
 0x5d1   :  { %12738 = vmatpush3.msra.mxu1 %v13105_v17  ;;  %12664 = vmatmul.mubr.msk.f32.gmra.mxu0 %vm467_vm1, %v16382_v38  ;;  %v13107_v38 = vld [vmem:[%s18202_s3 + $0xe8] sm:$0xff]  ;;  %v7874_v17 = vsel %vm447_vm2, %v7871_v59, %v7873_v8  ;;  %v7789_v24 = vadd.f32 %v16484_v18, %v7786_v40  ;;  %v18417_v8 = vld [vmem:[#allocation72_spill] sm:$0xff]  ;;  %v7736_v40 = vmul.f32 %v18418_v57, %v15858_v41  ;;  %v7885_v7 = vmax.f32 %v7882_v3, 0.0 }
 0x5d2   :  { %12739 = vmatprep.subr.mxu1 %v18303_v11  ;;  %12690 = vmatprep.subr.mxu0 %v18303_v11  ;;  %v18416_v59 = vld [vmem:[#allocation79_spill] sm:$0xff]  ;;  %v7880_v20 = vadd.f32 %v7874_v17, %v7859_v45  ;;  %v7812_v25 = vadd.f32 %v7809_v47, %v7794_v50  ;;  %v7810_v16 = vmul.f32 %v18417_v8, %v15841_v37 }
 0x5d3   :  { %12717 = vmatprep.mubr.msk.f32.mxu1 %vm13146_vm0, %v18303_v11  ;;  %12740 = vmatpush3.msra.mxu1 %v13106_v22  ;;  %v7712_v1 = vmul.f32 %v18416_v59, %v15841_v37  ;;  %v13108_v22 = vld [vmem:[%s18202_s3 + $0xe0] sm:$0xff]  ;;  %v7792_v44 = vmax.f32 %v7789_v24, 0.0  ;;  %v7828_v17 = vmul.f32 %v18407_v51, %v15858_v41  ;;  %v18419_v50 = vld [vmem:[#allocation75_spill] sm:$0xff]  ;;  %v7829_v3 = vmul.f32 %v18411_v48, %v15858_v41 }
 0x5d4   :  { %12691 = vmatpush3.msra.mxu0 %v13107_v38  ;;  %12718 = vmatmul.mubr.msk.f32.gmra.mxu1 %vm467_vm1, %v7747_v53  ;;  %v7883_v45 = vadd.f32 %v16484_v18, %v7880_v20  ;;  %v7830_v21 = vadd.f32 %v7827_v6, %v7812_v25  ;;  %v7813_v5 = vadd.f32 %v7810_v16, %v7795_v29  ;;  %v8336_v48 = vrot.slane %v7747_v53, 1 }
 0x5d5   :  { %12741 = vmatprep.subr.mxu1 %v18303_v11  ;;  %12666 = vmatprep.mubr.msk.f32.mxu0 %vm13146_vm0, %v18303_v11  ;;  %v7811_v28 = vmul.f32 %v18419_v50, %v15841_v37  ;;  %v8333_v37 = vrot.slane %v7745_v31, 1 }
 0x5d6   :  { %12742 = vmatpush3.msra.mxu1 %v13107_v38  ;;  %12667 = vmatmul.mubr.msk.f32.gmra.mxu0 %vm467_vm1, %v16405_v55  ;;  %v7791_v55 = vmax.f32 %v7788_v27, 0.0  ;;  %v7716_v27 = vadd.f32 %v7712_v1, %v7692_v9  ;;  %v7790_v38 = vadd.f32 %v16484_v18, %v7787_v30  ;;  %v13109_v9 = vld [vmem:[%s18202_s3 + $0x118] sm:$0xff]  ;;  %v7886_v59 = vmax.f32 %v7883_v45, 0.0 }
 0x5d7   :  { %12692 = vmatprep.subr.mxu0 %v18303_v11  ;;  %12743 = vmatprep.subr.mxu1 %v18303_v11  ;;  %v7833_v51 = vadd.f32 %v16484_v18, %v7830_v21  ;;  %v8334_v1 = vrot.slane %v7746_v10, 1 }
 0x5d8   :  { %12693 = vmatpush3.msra.mxu0 %v13108_v22  ;;  %12744 = vmatpush3.msra.mxu1 %v13108_v22  ;;  %v7740_v47 = vadd.f32 %v7736_v40, %v7716_v27 }
 0x5d9   :  { %12745 = vmatprep.mubr.msk.f32.mxu1 %vm13146_vm0, %v18303_v11  ;;  %12694 = vmatprep.mubr.msk.f32.mxu0 %vm13146_vm0, %v18303_v11  ;;  %v7836_v56 = vmax.f32 %v7833_v51, 0.0  ;;  %v8335_v10 = vsel %vm447_vm2, %v8333_v37, %v8334_v1  ;;  %v8337_v52 = vsel %vm447_vm2, %v8334_v1, %v8336_v48 }
 0x5da   :  { %12746 = vmatmul.mubr.msk.f32.vlgmr.msra.gmra.mxu1 %vm467_vm1, %v7884_v58  ;;  %12720 = vmatprep.subr.mxu0 %v18303_v11  ;;  %v7744_v20 = vadd.f32 %v16484_v18, %v7740_v47 }
 0x5db   :  { %12695 = vmatmul.mubr.msk.f32.vlgmr.msra.gmra.mxu0 %vm467_vm1, %v7791_v55  ;;  %12748 = vmatprep.mubr.msk.f32.mxu1 %vm13146_vm0, %v18303_v11 }
 0x5dc   :  { %12721 = vmatpush3.msra.mxu0 %v16097_v12  ;;  %12771 = vmatprep.subr.mxu1 %v18303_v11  ;;  %v7796_v12 = vmul.f32 %v18414_v63, %v15838_v42  ;;  %v13110_v42 = vld [vmem:[%s18202_s3 + $0x110] sm:$0xff]  ;;  %v7831_v63 = vadd.f32 %v7828_v17, %v7813_v5  ;;  %v7748_v36 = vmax.f32 %v7744_v20, 0.0 }
 0x5dd   :  { %12722 = vmatprep.subr.mxu0 %v18303_v11  ;;  %12697 = vmatprep.mubr.msk.f32.mxu0 %vm13146_vm0, %v18303_v11 }
 0x5de   :  { %12749 = vmatmul.mubr.msk.f32.gmra.mxu1 %vm467_vm1, %v7885_v7  ;;  %12723 = vmatpush3.msra.mxu0 %v16111_v4  ;;  %v7793_v4 = vmax.f32 %v7790_v38, 0.0  ;;  %v7814_v58 = vadd.f32 %v7811_v28, %v7796_v12  ;;  %v7834_v41 = vadd.f32 %v16484_v18, %v7831_v63  ;;  %v8338_v55 = vrot.slane %v7748_v36, 1 }
 0x5df   :  { %12772 = vmatpush3.msra.mxu1 %v13109_v9  ;;  %12698 = vmatmul.mubr.msk.f32.gmra.mxu0 %vm467_vm1, %v7792_v44 }
 0x5e0   :  { %12773 = vmatprep.subr.mxu1 %v18303_v11  ;;  %12724 = vmatprep.subr.mxu0 %v18303_v11  ;;  %v7832_v31 = vadd.f32 %v7829_v3, %v7814_v58 }
 0x5e1   :  { %12751 = vmatprep.mubr.msk.f32.mxu1 %vm13146_vm0, %v18303_v11  ;;  %12774 = vmatpush3.msra.mxu1 %v13110_v42 }
 0x5e2   :  { %12725 = vmatpush3.msra.mxu0 %v16131_v26  ;;  %12752 = vmatmul.mubr.msk.f32.gmra.mxu1 %vm467_vm1, %v7886_v59  ;;  %v13111_v26 = vld [vmem:[%s18202_s3 + $0x108] sm:$0xff]  ;;  %v7835_v22 = vadd.f32 %v16484_v18, %v7832_v31  ;;  %v8339_v18 = vsel %vm447_vm2, %v8336_v48, %v8338_v55  ;;  %v10748_v48 = vld [vmem:[%s18205_s6 + $0x2] ss:$0 sm:$0xff] }
 0x5e3   :  { %12775 = vmatprep.subr.mxu1 %v18303_v11  ;;  %12700 = vmatprep.mubr.msk.f32.mxu0 %vm13146_vm0, %v18303_v11 }
 0x5e4   :  { %12776 = vmatpush3.msra.mxu1 %v13111_v26  ;;  %12701 = vmatmul.mubr.msk.f32.gmra.mxu0 %vm467_vm1, %v7793_v4 }
 0x5e5   :  { %12726 = vmatprep.subr.mxu0 %v18303_v11  ;;  %12777 = vmatprep.subr.mxu1 %v18303_v11 }
 0x5e6   :  { %12727 = vmatpush3.msra.mxu0 %v16149_v62  ;;  %12778 = vmatpush3.msra.mxu1 %v16149_v62  ;;  %v7837_v62 = vmax.f32 %v7834_v41, 0.0 }
 0x5e7   :  { %12779 = vmatprep.mubr.msk.f32.mxu1 %vm13146_vm0, %v18303_v11  ;;  %12728 = vmatprep.mubr.msk.f32.mxu0 %vm13146_vm0, %v18303_v11 }
 0x5e8   :  { %12780 = vmatmul.mubr.msk.f32.vlgmr.msra.gmra.mxu1 %vm467_vm1, %v8335_v10  ;;  %12754 = vmatprep.subr.mxu0 %v18303_v11 }
 0x5e9   :  { %12729 = vmatmul.mubr.msk.f32.vlgmr.msra.gmra.mxu0 %vm467_vm1, %v7836_v56  ;;  %12782 = vmatprep.mubr.msk.f32.mxu1 %vm13146_vm0, %v18303_v11 }
 0x5ea   :  { %12755 = vmatpush3.msra.mxu0 %v16465_v39  ;;  %12731 = vmatprep.mubr.msk.f32.mxu0 %vm13146_vm0, %v18303_v11  ;;  %v7838_v39 = vmax.f32 %v7835_v22, 0.0 }
 0x5eb   :  { %12756 = vmatprep.subr.mxu0 %v18303_v11  ;;  %12805 = vmatprep.subr.mxu1 %v18303_v11 }
 0x5ec   :  { %12783 = vmatmul.mubr.msk.f32.gmra.mxu1 %vm467_vm1, %v8337_v52  ;;  %12757 = vmatpush3.msra.mxu0 %v16494_v32 }
 0x5ed   :  { %12732 = vmatmul.mubr.msk.f32.gmra.mxu0 %vm467_vm1, %v7837_v62  ;;  %12758 = vmatprep.subr.mxu0 %v18303_v11 }
 0x5ee   :  { %12785 = vmatprep.mubr.msk.f32.mxu1 %vm13146_vm0, %v18303_v11  ;;  %12759 = vmatpush3.msra.mxu0 %v16512_v2 }
 0x5ef   :  { %12734 = vmatprep.mubr.msk.f32.mxu0 %vm13146_vm0, %v18303_v11  ;;  %12760 = vmatprep.subr.mxu0 %v18303_v11 }
 0x5f0   :  { %12786 = vmatmul.mubr.msk.f32.gmra.mxu1 %vm467_vm1, %v8339_v18  ;;  %12761 = vmatpush3.msra.mxu0 %v16533_v35 }
 0x5f1   :  { %12735 = vmatmul.mubr.msk.f32.gmra.mxu0 %vm467_vm1, %v7838_v39  ;;  %12806 = vmatpush3.msra.mxu1 %v16225_v46 }
 0x5f2   :  { %12762 = vmatprep.mubr.msk.f32.mxu0 %vm13146_vm0, %v18303_v11  ;;  %12807 = vmatprep.subr.mxu1 %v18303_v11 }
 0x5f3   :  { %12808 = vmatpush3.msra.mxu1 %v16232_v49  ;;  %12813 = vmatprep.mubr.msk.f32.mxu1 %vm13146_vm0, %v18303_v11 }
 0x5f4   :  { %12809 = vmatprep.subr.mxu1 %v18303_v11  ;;  %12788 = vmatprep.subr.mxu0 %v18303_v11 }
 0x5f5   :  { %12763 = vmatmul.mubr.msk.f32.vlgmr.msra.gmra.mxu0 %vm467_vm1, %v7836_v56  ;;  %12810 = vmatpush3.msra.mxu1 %v16239_v34 }
 0x5f6   :  { %12765 = vmatprep.mubr.msk.f32.mxu0 %vm13146_vm0, %v18303_v11  ;;  %12811 = vmatprep.subr.mxu1 %v18303_v11 }
 0x5f7   :  { %12812 = vmatpush3.msra.mxu1 %v16246_v23  ;;  %12789 = vmatpush3.msra.mxu0 %v16253_v60 }
 0x5f8   :  { %12790 = vmatprep.subr.mxu0 %v18303_v11  ;;  %12839 = vmatprep.subr.mxu1 %v18303_v11 }
 0x5f9   :  { %12766 = vmatmul.mubr.msk.f32.gmra.mxu0 %vm467_vm1, %v7837_v62 }
 0x5fa   :  { %12768 = vmatprep.mubr.msk.f32.mxu0 %vm13146_vm0, %v18303_v11  ;;  %12791 = vmatpush3.msra.mxu0 %v16260_v33 }
 0x5fb   :  { %12792 = vmatprep.subr.mxu0 %v18303_v11 }
 0x5fc   :  { %12793 = vmatpush3.msra.mxu0 %v16267_v13 }
 0x5fd   :  { %12769 = vmatmul.mubr.msk.f32.gmra.mxu0 %vm467_vm1, %v7838_v39  ;;  %12794 = vmatprep.subr.mxu0 %v18303_v11 }
 0x5fe   :  { %12795 = vmatpush3.msra.mxu0 %v16274_v54  ;;  %12796 = vmatprep.mubr.msk.f32.mxu0 %vm13146_vm0, %v18303_v11 }
 0x5ff   :  { %12822 = vmatprep.subr.mxu0 %v18303_v11 }
 0x600   :  { %v6010_v46 = vpop.permute.xlu0 %6009 }
 0x601   :  { %6012 = vst.msk [vmem:[#allocation2 + $0xb] sm:$0x1] %vm1597_vm6, %v6010_v46 }
 0x602   :  { %v6019_v49 = vpop.permute.xlu1 %6018 }
 0x603   :  { %6021 = vst.msk [vmem:[#allocation2 + $0xd] sm:$0x1] %vm1584_vm4, %v6019_v49 }
 0x604   :  { %v6046_v34 = vpop.permute.xlu0 %6045 }
 0x605   :  { %6048 = vst.msk [vmem:[#allocation2 + $0xf] sm:$0x1] %vm1584_vm4, %v6046_v34 }
 0x606   :  { %v6037_v23 = vpop.permute.xlu1 %6036 }
 0x608   :  { %v6064_v60 = vpop.permute.xlu0 %6063 }
 0x60a   :  { %v6025_v33 = vpop.permute.xlu1 %6024 }
 0x60b   :  { %6027 = vst.msk [vmem:[#allocation2 + $0xd] sm:$0x1] %vm1590_vm5, %v6025_v33 }
 0x60c   :  { %6039 = vst.msk [vmem:[#allocation2 + $0xd] sm:$0x1] %vm1597_vm6, %v6037_v23  ;;  %v6052_v13 = vpop.permute.xlu0 %6051 }
 0x60d   :  { %6054 = vst.msk [vmem:[#allocation2 + $0xf] sm:$0x1] %vm1590_vm5, %v6052_v13 }
 0x60e   :  { %6066 = vst.msk [vmem:[#allocation2 + $0xf] sm:$0x1] %vm1597_vm6, %v6064_v60  ;;  %v6073_v54 = vpop.permute.xlu1 %6072 }
 0x60f   :  { %6075 = vst.msk [vmem:[#allocation2 + $0x11] sm:$0x1] %vm1584_vm4, %v6073_v54 }
 0x610   :  { %v6091_v32 = vpop.permute.xlu0 %6090 }
 0x612   :  { %v6118_v2 = vpop.permute.xlu1 %6117 }
 0x614   :  { %v6100_v35 = vpop.permute.xlu0 %6099 }
 0x615   :  { %6102 = vst.msk [vmem:[#allocation2 + $0x13] sm:$0x1] %vm1584_vm4, %v6100_v35 }
 0x616   :  { %v6127_v53 = vpop.permute.xlu1 %6126 }
 0x617   :  { %6129 = vst.msk [vmem:[#allocation2 + $0x15] sm:$0x1] %vm1584_vm4, %v6127_v53 }
 0x618   :  { %v6079_v24 = vpop.permute.xlu0 %6078 }
 0x619   :  { %6081 = vst.msk [vmem:[#allocation2 + $0x11] sm:$0x1] %vm1590_vm5, %v6079_v24 }
 0x61a   :  { %6093 = vst.msk [vmem:[#allocation2 + $0x11] sm:$0x1] %vm1597_vm6, %v6091_v32  ;;  %v6106_v29 = vpop.permute.xlu1 %6105 }
 0x61b   :  { %6108 = vst.msk [vmem:[#allocation2 + $0x13] sm:$0x1] %vm1590_vm5, %v6106_v29 }
 0x61c   :  { %6120 = vst.msk [vmem:[#allocation2 + $0x13] sm:$0x1] %vm1597_vm6, %v6118_v2  ;;  %v6145_v30 = vpop.permute.xlu0 %6144 }
 0x620   :  { %v6154_v25 = vpop.permute.xlu0 %6153 }
 0x621   :  { %6156 = vst.msk [vmem:[#allocation2 + $0x17] sm:$0x1] %vm1584_vm4, %v6154_v25 }
 0x624   :  { %v6133_v6 = vpop.permute.xlu0 %6132 }
 0x625   :  { %6135 = vst.msk [vmem:[#allocation2 + $0x15] sm:$0x1] %vm1590_vm5, %v6133_v6 }
 0x626   :  { %6147 = vst.msk [vmem:[#allocation2 + $0x15] sm:$0x1] %vm1597_vm6, %v6145_v30 }
 0x664   :  { %v7134_v8 = vpop.f32.mrf.mxu1 }
 0x666   :  { %v12611_v16 = vpop.f32.mrf.mxu1 }
 0x668   :  { %v7139_v27 = vpop.f32.mrf.mxu1 }
 0x66a   :  { %v12614_v57 = vpop.f32.mrf.mxu1 }
 0x66c   :  { %v7144_v40 = vpop.f32.mrf.mxu1 }
 0x66e   :  { %v12617_v7 = vpop.f32.mrf.mxu1 }
 0x670   :  { %v7320_v45 = vpop.f32.mrf.mxu1 }
 0x672   :  { %v7045_v44 = vpop.f32.mrf.mxu0  ;;  %v12645_v38 = vpop.f32.mrf.mxu1 }
 0x673   :  { %v7135_v41 = vadd.f32 %v7134_v8, %v7045_v44 }
 0x674   :  { %v12594_v21 = vpop.f32.mrf.mxu0  ;;  %v7325_v5 = vpop.f32.mrf.mxu1 }
 0x676   :  { %v7050_v17 = vpop.f32.mrf.mxu0  ;;  %v12648_v12 = vpop.f32.mrf.mxu1 }
 0x677   :  { %v7140_v22 = vadd.f32 %v7139_v27, %v7050_v17 }
 0x678   :  { %v12597_v50 = vpop.f32.mrf.mxu0  ;;  %v7330_v28 = vpop.f32.mrf.mxu1 }
 0x67a   :  { %v7055_v47 = vpop.f32.mrf.mxu0  ;;  %v12651_v9 = vpop.f32.mrf.mxu1 }
 0x67b   :  { %v7145_v54 = vadd.f32 %v7144_v40, %v7055_v47 }
 0x67c   :  { %v12600_v59 = vpop.f32.mrf.mxu0 }
 0x67e   :  { %v7491_v42 = vpop.f32.mrf.mxu1 }
 0x67f   :  { %v7225_v37 = vpop.f32.mrf.mxu0 }
 0x680   :  { %v12679_v4 = vpop.f32.mrf.mxu1  ;;  %v7239_v36 = vadd.f32 %v7225_v37, %v7135_v41 }
 0x681   :  { %v12628_v51 = vpop.f32.mrf.mxu0 }
 0x682   :  { %v7496_v63 = vpop.f32.mrf.mxu1  ;;  %v7248_v18 = vadd.f32 %v10748_v48, %v7239_v36 }
 0x683   :  { %v7230_v1 = vpop.f32.mrf.mxu0 }
 0x684   :  { %v12682_v58 = vpop.f32.mrf.mxu1  ;;  %v7240_v46 = vadd.f32 %v7230_v1, %v7140_v22  ;;  %v7251_v2 = vmax.f32 %v7248_v18, 0.0 }
 0x685   :  { %v12631_v3 = vpop.f32.mrf.mxu0 }
 0x686   :  { %v7501_v20 = vpop.f32.mrf.mxu1  ;;  %v7249_v35 = vadd.f32 %v10748_v48, %v7240_v46 }
 0x688   :  { %v7235_v26 = vpop.f32.mrf.mxu0  ;;  %v12685_v56 = vpop.f32.mrf.mxu1  ;;  %v7252_v57 = vmax.f32 %v7249_v35, 0.0 }
 0x689   :  { %v7241_v30 = vadd.f32 %v7235_v26, %v7145_v54 }
 0x68a   :  { %v12634_v31 = vpop.f32.mrf.mxu0 }
 0x68b   :  { %v7250_v40 = vadd.f32 %v10748_v48, %v7241_v30 }
 0x68c   :  { %v16771_v10 = vpop.f32.mrf.mxu1 }
 0x68d   :  { %v7400_v62 = vpop.f32.mrf.mxu0  ;;  %v7253_v51 = vmax.f32 %v7250_v40, 0.0  ;;  %v13112_v40 = vld [vmem:[%s18204_s5 + $0xf8] sm:$0xff] }
 0x68e   :  { %v7401_v55 = vadd.f32 %v7400_v62, %v7320_v45  ;;  %v12713_v52 = vpop.f32.mrf.mxu1 }
 0x68f   :  { %v12662_v39 = vpop.f32.mrf.mxu0 }
 0x690   :  { %v7505_v49 = vadd.f32 %v7491_v42, %v7401_v55  ;;  %v16776_v34 = vpop.f32.mrf.mxu1 }
 0x691   :  { %v7405_v23 = vpop.f32.mrf.mxu0 }
 0x692   :  { %v7508_v60 = vadd.f32 %v10748_v48, %v7505_v49  ;;  %v7406_v33 = vadd.f32 %v7405_v23, %v7325_v5  ;;  %v12716_v13 = vpop.f32.mrf.mxu1 }
 0x693   :  { %v12665_v32 = vpop.f32.mrf.mxu0 }
 0x694   :  { %v7511_v53 = vmax.f32 %v7508_v60, 0.0  ;;  %v7506_v24 = vadd.f32 %v7496_v63, %v7406_v33  ;;  %v16778_v29 = vpop.f32.mrf.mxu1 }
 0x696   :  { %v7514_v25 = vmax.f32 %v7251_v2, %v7511_v53  ;;  %v7509_v6 = vadd.f32 %v10748_v48, %v7506_v24  ;;  %v7410_v8 = vpop.f32.mrf.mxu0  ;;  %v12719_v16 = vpop.f32.mrf.mxu1 }
 0x697   :  { %v7411_v27 = vadd.f32 %v7410_v8, %v7330_v28 }
 0x698   :  { %v7544_v7 = vcombine.high %v7514_v25, %v7514_v25  ;;  %v7512_v45 = vmax.f32 %v7509_v6, 0.0  ;;  %v12668_v44 = vpop.f32.mrf.mxu0  ;;  %v7524_v38 = vrot.slane %v7514_v25, %v14600_v0 }
 0x699   :  { %v7507_v21 = vadd.f32 %v7501_v20, %v7411_v27 }
 0x69a   :  { %v7551_v5 = vrot.slane %v7544_v7, %v14600_v0  ;;  %v7515_v17 = vmax.f32 %v7252_v57, %v7512_v45  ;;  %v16782_v12 = vpop.f32.mrf.mxu1  ;;  %7525 = vrot.lane.b32.xlu1 %v7524_v38, %s13150_s19  ;;  %v7535_v50 = vcombine.high %v7524_v38, %v7524_v38  ;;  %v10758_v37 = vrot.slane %v7524_v38, 9 }
 0x69b   :  { %v7510_v47 = vadd.f32 %v10748_v48, %v7507_v21  ;;  %v7962_v9 = vpop.f32.mrf.mxu0 }
 0x69c   :  { %v7598_v59 = vcombine.high %v7515_v17, %v7515_v17  ;;  %v12747_v28 = vpop.f32.mrf.mxu1  ;;  %v16786_v42 = vrot.slane %v7515_v17, %v14600_v0  ;;  %v7562_v4 = vcombine.high %v7551_v5, %v7551_v5  ;;  %7537 = vst.msk [vmem:[#allocation2 + $0x18] sm:$0x1] %vm1569_vm3, %v7535_v50  ;;  %v10759_v49 = vrot.slane %v7535_v50, 9  ;;  %v13114_v50 = vld [vmem:[%s18203_s4 + $0x2] ss:$0 sm:$0xff] }
 0x69d   :  { %v7513_v63 = vmax.f32 %v7510_v47, 0.0  ;;  %v12696_v1 = vpop.f32.mrf.mxu0  ;;  %v8052_v33 = vadd.f32 %v16771_v10, %v7962_v9  ;;  %v10760_v32 = vrot.slane %v7551_v5, 9  ;;  %v13115_v28 = vld [vmem:[%s18204_s5 + $0xe8] sm:$0xff] }
 0x69e   :  { %v16790_v58 = vrot.slane %v7598_v59, %v14600_v0  ;;  %v16792_v3 = vpop.f32.mrf.mxu1  ;;  %7579 = vrot.lane.b32.xlu0 %v16786_v42, %s13150_s19  ;;  %7531 = vrot.lane.b32.xlu1 %v10758_v37, %s13151_s20  ;;  %7564 = vst.msk [vmem:[#allocation2 + $0x1a] sm:$0x1] %vm1569_vm3, %v7562_v4  ;;  %v7589_v20 = vcombine.high %v16786_v42, %v16786_v42  ;;  %v10761_v31 = vrot.slane %v7562_v4, 9  ;;  %v13116_v1 = vld [vmem:[%s18204_s5 + $0xe0] sm:$0xff] }
 0x69f   :  { %v7516_v26 = vmax.f32 %v7253_v51, %v7513_v63  ;;  %v7967_v56 = vpop.f32.mrf.mxu0 }
 0x6a0   :  { %v12750_v41 = vpop.f32.mrf.mxu1  ;;  %v7616_v36 = vcombine.high %v16790_v58, %v16790_v58  ;;  %7591 = vst.msk [vmem:[#allocation2 + $0x1c] sm:$0x1] %vm1569_vm3, %v7589_v20  ;;  %v8057_v30 = vadd.f32 %v16776_v34, %v7967_v56  ;;  %v10763_v38 = vrot.slane %v7589_v20, 9  ;;  %v10764_v9 = vrot.slane %v16790_v58, 9 }
 0x6a1   :  { %v7652_v48 = vcombine.high %v7516_v26, %v7516_v26  ;;  %v12699_v62 = vpop.f32.mrf.mxu0  ;;  %v16804_v22 = vrot.slane %v7516_v26, %v14600_v0 }
 0x6a2   :  { %v16806_v55 = vpop.f32.mrf.mxu1  ;;  %7567 = vrot.lane.b32.xlu0 %v10761_v31, %s13149_s18  ;;  %7552 = vrot.lane.b32.xlu1 %v7551_v5, %s13150_s19  ;;  %7618 = vst.msk [vmem:[#allocation2 + $0x1e] sm:$0x1] %vm1569_vm3, %v7616_v36  ;;  %v10765_v54 = vrot.slane %v7616_v36, 9 }
 0x6a3   :  { %v16813_v52 = vcombine.high %v16804_v22, %v16804_v22  ;;  %v16816_v39 = vrot.slane %v7652_v48, %v14600_v0 }
 0x6a4   :  { %v7972_v18 = vpop.f32.mrf.mxu0  ;;  %v12753_v46 = vpop.f32.mrf.mxu1 }
 0x6a5   :  { %7645 = vst.msk [vmem:[#allocation2 + $0x20] sm:$0x1] %vm1569_vm3, %v16813_v52  ;;  %v7670_v23 = vcombine.high %v16816_v39, %v16816_v39  ;;  %v8062_v7 = vadd.f32 %v16778_v29, %v7972_v18  ;;  %v13113_v29 = vld [vmem:[%s18204_s5 + $0xf0] sm:$0xff] }
 0x6a6   :  { %v12702_v60 = vpop.f32.mrf.mxu0  ;;  %7633 = vrot.lane.b32.xlu0 %v16804_v22, %s13150_s19  ;;  %7540 = vrot.lane.b32.xlu1 %v10759_v49, %s13149_s18 }
 0x6a7   :  { %7672 = vst.msk [vmem:[#allocation2 + $0x22] sm:$0x1] %vm1569_vm3, %v7670_v23 }
 0x6a8   :  { %v8412_v13 = vpop.f32.mrf.mxu1 }
 0x6a9   :  { %v8140_v2 = vpop.f32.mrf.mxu0 }
 0x6aa   :  { %v8154_v35 = vadd.f32 %v8140_v2, %v8052_v33  ;;  %v12781_v53 = vpop.f32.mrf.mxu1  ;;  %7621 = vrot.lane.b32.xlu0 %v10765_v54, %s13149_s18  ;;  %7558 = vrot.lane.b32.xlu1 %v10760_v32, %s13151_s20  ;;  %v9200_v54 = vld [vmem:[%s18206_s7 + $0x1f8] sm:$0xff]  ;;  %v9199_v2 = vld [vmem:[%s18206_s7 + $0x1f0] sm:$0xff] }
 0x6ab   :  { %v12730_v24 = vpop.f32.mrf.mxu0  ;;  %v16930_v53 = vld [vmem:[#allocation2] sm:$0xff] }
 0x6ac   :  { %v8157_v25 = vadd.f32 %v16320_v43, %v8154_v35  ;;  %v8417_v6 = vpop.f32.mrf.mxu1  ;;  %v9183_v35 = vld [vmem:[%s18206_s7 + $0x170] sm:$0xff]  ;;  %v9198_v24 = vld [vmem:[%s18206_s7 + $0x1e8] sm:$0xff] }
 0x6ad   :  { %v8145_v8 = vpop.f32.mrf.mxu0 }
 0x6ae   :  { %v8160_v16 = vmax.f32 %v8157_v25, 0.0  ;;  %v8155_v27 = vadd.f32 %v8145_v8, %v8057_v30  ;;  %v12784_v10 = vpop.f32.mrf.mxu1  ;;  %7606 = vrot.lane.b32.xlu1 %v16790_v58, %s13150_s19  ;;  %v9425_v30 = vcombine.high %v16930_v53, %v16930_v53  ;;  %v13117_v25 = vld [vmem:[%s18204_s5 + $0xd8] sm:$0xff] }
 0x6af   :  { %v12733_v57 = vpop.f32.mrf.mxu0  ;;  %v13118_v10 = vld [vmem:[%s18204_s5 + $0xd0] sm:$0xff] }
 0x6b0   :  { %v8158_v45 = vadd.f32 %v16320_v43, %v8155_v27  ;;  %v8422_v44 = vpop.f32.mrf.mxu1  ;;  %12814 = vmatmul.mubr.msk.f32.vlgmr.msra.gmra.mxu1 %vm467_vm1, %v8160_v16  ;;  %v8613_v20 = vrot.slane %v8160_v16, 1  ;;  %v9197_v16 = vld [vmem:[%s18206_s7 + $0x1e0] sm:$0xff]  ;;  %v9196_v57 = vld [vmem:[%s18206_s7 + $0x1d8] sm:$0xff] }
 0x6b1   :  { %v8150_v34 = vpop.f32.mrf.mxu0  ;;  %12816 = vmatprep.mubr.msk.f32.mxu1 %vm13146_vm0, %v18303_v11  ;;  %12840 = vmatpush3.msra.mxu1 %v13112_v40  ;;  %v9181_v27 = vld [vmem:[%s18206_s7 + $0x160] sm:$0xff]  ;;  %v9179_v40 = vld [vmem:[%s18206_s7 + $0x150] sm:$0xff] }
 0x6b2   :  { %v8161_v21 = vmax.f32 %v8158_v45, 0.0  ;;  %v8156_v5 = vadd.f32 %v8150_v34, %v8062_v7  ;;  %v12787_v17 = vpop.f32.mrf.mxu1  ;;  %7594 = vrot.lane.b32.xlu1 %v10763_v38, %s13149_s18  ;;  %12841 = vmatprep.subr.mxu1 %v18303_v11  ;;  %v16968_v7 = vrot.slane %v9425_v30, %v14600_v0  ;;  %v9180_v45 = vld [vmem:[%s18206_s7 + $0x158] sm:$0xff]  ;;  %v13119_v38 = vld [vmem:[%s18204_s5 + $0xc8] sm:$0xff] }
 0x6b3   :  { %v12736_v43 = vpop.f32.mrf.mxu0  ;;  %12842 = vmatpush3.msra.mxu1 %v13113_v29  ;;  %v9168_v17 = vld [vmem:[%s18206_s7 + $0xf8] sm:$0xff]  ;;  %v9193_v29 = vld [vmem:[%s18206_s7 + $0x1c0] sm:$0xff] }
 0x6b4   :  { %v8159_v47 = vadd.f32 %v13114_v50, %v8156_v5  ;;  %12817 = vmatmul.mubr.msk.f32.gmra.mxu1 %vm467_vm1, %v8161_v21  ;;  %12843 = vmatprep.subr.mxu1 %v18303_v11  ;;  %v8614_v51 = vrot.slane %v8161_v21, 1  ;;  %v9441_v34 = vcombine.high %v16968_v7, %v16968_v7  ;;  %v9194_v21 = vld [vmem:[%s18206_s7 + $0x1c8] sm:$0xff]  ;;  %v13120_v43 = vld [vmem:[%s18204_s5 + $0xc0] sm:$0xff] }
 0x6b5   :  { %v8318_v59 = vpop.f32.mrf.mxu0  ;;  %12819 = vmatprep.mubr.msk.f32.mxu1 %vm13146_vm0, %v18303_v11  ;;  %12844 = vmatpush3.msra.mxu1 %v13115_v28  ;;  %v9178_v5 = vld [vmem:[%s18206_s7 + $0x148] sm:$0xff]  ;;  %v9151_v28 = vld [vmem:[%s18206_s7 + $0x70] sm:$0xff] }
 0x6b6   :  { %v8162_v37 = vmax.f32 %v8159_v47, 0.0  ;;  %v8319_v4 = vadd.f32 %v8318_v59, %v16782_v12  ;;  %7612 = vrot.lane.b32.xlu1 %v10764_v9, %s13151_s20  ;;  %12845 = vmatprep.subr.mxu1 %v18303_v11  ;;  %v8615_v41 = vsel %vm447_vm2, %v8613_v20, %v8614_v51  ;;  %v9177_v47 = vld [vmem:[%s18206_s7 + $0x140] sm:$0xff]  ;;  %v9167_v9 = vld [vmem:[%s18206_s7 + $0xf0] sm:$0xff]  ;;  %v9192_v59 = vld [vmem:[%s18206_s7 + $0x1b8] sm:$0xff] }
 0x6b7   :  { %v12764_v63 = vpop.f32.mrf.mxu0  ;;  %12846 = vmatpush3.msra.mxu1 %v13116_v1  ;;  %v9175_v1 = vld [vmem:[%s18206_s7 + $0x130] sm:$0xff]  ;;  %v9190_v20 = vld [vmem:[%s18206_s7 + $0x1a8] sm:$0xff] }
 0x6b8   :  { %v8426_v58 = vadd.f32 %v8412_v13, %v8319_v4  ;;  %12820 = vmatmul.mubr.msk.f32.gmra.mxu1 %vm467_vm1, %v8162_v37  ;;  %12873 = vmatprep.subr.mxu1 %v18303_v11  ;;  %v16869_v31 = vrot.slane %v8162_v37, 1  ;;  %v9176_v37 = vld [vmem:[%s18206_s7 + $0x138] sm:$0xff]  ;;  %v9166_v4 = vld [vmem:[%s18206_s7 + $0xe8] sm:$0xff] }
 0x6b9   :  { %v8323_v26 = vpop.f32.mrf.mxu0  ;;  %12847 = vmatprep.mubr.msk.f32.mxu1 %vm13146_vm0, %v18303_v11  ;;  %v9150_v63 = vld [vmem:[%s18206_s7 + $0x68] sm:$0xff] }
 0x6ba   :  { %v8429_v12 = vadd.f32 %v13114_v50, %v8426_v58  ;;  %v8324_v56 = vadd.f32 %v8323_v26, %v16792_v3  ;;  %v8617_v23 = vsel %vm447_vm2, %v8614_v51, %v16869_v31  ;;  %v9191_v51 = vld [vmem:[%s18206_s7 + $0x1b0] sm:$0xff]  ;;  %v9165_v58 = vld [vmem:[%s18206_s7 + $0xe0] sm:$0xff] }
 0x6bb   :  { %v12767_v36 = vpop.f32.mrf.mxu0  ;;  %v9149_v26 = vld [vmem:[%s18206_s7 + $0x60] sm:$0xff] }
 0x6bc   :  { %v16871_v48 = vmax.f32 %v8429_v12, 0.0  ;;  %v8427_v62 = vadd.f32 %v8417_v6, %v8324_v56  ;;  %12848 = vmatmul.mubr.msk.f32.vlgmr.msra.gmra.mxu1 %vm467_vm1, %v8615_v41  ;;  %v9182_v6 = vld [vmem:[%s18206_s7 + $0x168] sm:$0xff]  ;;  %v9164_v56 = vld [vmem:[%s18206_s7 + $0xd8] sm:$0xff] }
 0x6bd   :  { %v8328_v18 = vpop.f32.mrf.mxu0  ;;  %12850 = vmatprep.mubr.msk.f32.mxu1 %vm13146_vm0, %v18303_v11  ;;  %12874 = vmatpush3.msra.mxu1 %v16360_v61  ;;  %v9174_v12 = vld [vmem:[%s18206_s7 + $0x128] sm:$0xff]  ;;  %v9148_v36 = vld [vmem:[%s18206_s7 + $0x58] sm:$0xff] }
 0x6be   :  { %v8430_v46 = vadd.f32 %v13114_v50, %v8427_v62  ;;  %v8329_v49 = vadd.f32 %v8328_v18, %v16806_v55  ;;  %12797 = vmatmul.mubr.msk.f32.vlgmr.msra.gmra.mxu0 %vm467_vm1, %v16871_v48  ;;  %12875 = vmatprep.subr.mxu1 %v18303_v11  ;;  %v9163_v62 = vld [vmem:[%s18206_s7 + $0xd0] sm:$0xff] }
 0x6bf   :  { %12823 = vmatpush3.msra.mxu0 %v16360_v61  ;;  %v12770_v3 = vpop.f32.mrf.mxu0  ;;  %12799 = vmatprep.mubr.msk.f32.mxu0 %vm13146_vm0, %v18303_v11 }
 0x6c0   :  { %v16886_v60 = vmax.f32 %v8430_v46, 0.0  ;;  %v8428_v33 = vadd.f32 %v8422_v44, %v8329_v49  ;;  %12824 = vmatprep.subr.mxu0 %v18303_v11  ;;  %12851 = vmatmul.mubr.msk.f32.gmra.mxu1 %vm467_vm1, %v8617_v23  ;;  %v9195_v44 = vld [vmem:[%s18206_s7 + $0x1d0] sm:$0xff]  ;;  %v9188_v46 = vld [vmem:[%s18206_s7 + $0x198] sm:$0xff]  ;;  %v17090_v3 = vld [vmem:[#allocation2 + $0x8] sm:$0xff] }
 0x6c1   :  { %12825 = vmatpush3.msra.mxu0 %v16389_v19  ;;  %12876 = vmatpush3.msra.mxu1 %v16389_v19  ;;  %v8873_v19 = vrot.slane %v16871_v48, 1  ;;  %v9147_v49 = vld [vmem:[%s18206_s7 + $0x50] sm:$0xff] }
 0x6c2   :  { %v8431_v55 = vadd.f32 %v13114_v50, %v8428_v33  ;;  %12800 = vmatmul.mubr.msk.f32.gmra.mxu0 %vm467_vm1, %v16886_v60  ;;  %12826 = vmatprep.subr.mxu0 %v18303_v11  ;;  %v8874_v61 = vrot.slane %v16886_v60, 1  ;;  %v9152_v50 = vld [vmem:[%s18206_s7 + $0x78] sm:$0xff]  ;;  %v9187_v33 = vld [vmem:[%s18206_s7 + $0x190] sm:$0xff] }
 0x6c3   :  { %12853 = vmatprep.mubr.msk.f32.mxu1 %vm13146_vm0, %v18303_v11  ;;  %12877 = vmatprep.subr.mxu1 %v18303_v11 }
 0x6c4   :  { %v16899_v13 = vmax.f32 %v8431_v55, 0.0  ;;  %12827 = vmatpush3.msra.mxu0 %v16403_v14  ;;  %12854 = vmatmul.mubr.msk.f32.gmra.mxu1 %vm467_vm1, %v16869_v31  ;;  %v8875_v32 = vsel %vm447_vm2, %v8873_v19, %v8874_v61  ;;  %v9146_v55 = vld [vmem:[%s18206_s7 + $0x48] sm:$0xff]  ;;  %v9442_v19 = vcombine.high %v17090_v3, %v17090_v3 }
 0x6c5   :  { %12878 = vmatpush3.msra.mxu1 %v16403_v14  ;;  %12802 = vmatprep.mubr.msk.f32.mxu0 %vm13146_vm0, %v18303_v11  ;;  %v9184_v14 = vld [vmem:[%s18206_s7 + $0x178] sm:$0xff] }
 0x6c6   :  { %12879 = vmatprep.subr.mxu1 %v18303_v11  ;;  %12803 = vmatmul.mubr.msk.f32.gmra.mxu0 %vm467_vm1, %v16899_v13  ;;  %v17137_v30 = vrot.slane %v9442_v19, %v14600_v0  ;;  %v9212_v19 = vld [vmem:[%s18206_s7 + $0x258] sm:$0xff] }
 0x6c7   :  { %12828 = vmatprep.subr.mxu0 %v18303_v11  ;;  %12880 = vmatpush3.msra.mxu1 %v16421_v15 }
 0x6c8   :  { %12829 = vmatpush3.msra.mxu0 %v16421_v15  ;;  %12881 = vmatprep.mubr.msk.f32.mxu1 %vm13146_vm0, %v18303_v11  ;;  %v8876_v15 = vrot.slane %v16899_v13, 1 }
 0x6c9   :  { %11365 = vmatprep.subr.mxu1 %v9200_v54  ;;  %12882 = vmatmul.mubr.msk.f32.vlgmr.msra.gmra.mxu1 %vm467_vm1, %v8875_v32  ;;  %v9186_v54 = vld [vmem:[%s18206_s7 + $0x188] sm:$0xff] }
 0x6ca   :  { %11366 = vmatpush3.msra.mxu1 %v9184_v14  ;;  %12830 = vmatprep.mubr.msk.f32.mxu0 %vm13146_vm0, %v18303_v11  ;;  %v8877_v8 = vsel %vm447_vm2, %v8874_v61, %v8876_v15  ;;  %v9171_v61 = vld [vmem:[%s18206_s7 + $0x110] sm:$0xff]  ;;  %v9145_v14 = vld [vmem:[%s18206_s7 + $0x40] sm:$0xff]  ;;  %v9170_v32 = vld [vmem:[%s18206_s7 + $0x108] sm:$0xff] }
 0x6cb   :  { %12856 = vmatprep.subr.mxu0 %v18303_v11  ;;  %11367 = vmatprep.subr.mxu1 %v9199_v2  ;;  %v9160_v2 = vld [vmem:[%s18206_s7 + $0xb8] sm:$0xff] }
 0x6cc   :  { %12831 = vmatmul.mubr.msk.f32.vlgmr.msra.gmra.mxu0 %vm467_vm1, %v8615_v41  ;;  %11368 = vmatpush3.msra.mxu1 %v9183_v35  ;;  %v17064_v41 = vrot.slane %v16930_v53, %v14600_v0  ;;  %v9185_v35 = vld [vmem:[%s18206_s7 + $0x180] sm:$0xff]  ;;  %v9144_v53 = vld [vmem:[%s18206_s7 + $0x38] sm:$0xff] }
 0x6cd   :  { %12857 = vmatpush3.msra.mxu0 %v13117_v25  ;;  %12884 = vmatprep.mubr.msk.f32.mxu1 %vm13146_vm0, %v18303_v11  ;;  %v9264_v25 = vld [vmem:[%s18206_s7 + $0x3f8] sm:$0xff] }
 0x6ce   :  { %11369 = vmatprep.subr.mxu1 %v9198_v24  ;;  %12858 = vmatprep.subr.mxu0 %v18303_v11  ;;  %v9440_v18 = vcombine.high %v17064_v41, %v17064_v41  ;;  %v9159_v24 = vld [vmem:[%s18206_s7 + $0xb0] sm:$0xff] }
 0x6cf   :  { %12885 = vmatmul.mubr.msk.f32.gmra.mxu1 %vm467_vm1, %v8877_v8  ;;  %12833 = vmatprep.mubr.msk.f32.mxu0 %vm13146_vm0, %v18303_v11  ;;  %v9248_v8 = vld [vmem:[%s18206_s7 + $0x378] sm:$0xff] }
 0x6d0   :  { %11370 = vmatpush3.msra.mxu1 %v9182_v6  ;;  %12859 = vmatpush3.msra.mxu0 %v13118_v10  ;;  %v9143_v6 = vld [vmem:[%s18206_s7 + $0x30] sm:$0xff] }
 0x6d1   :  { %11371 = vmatprep.subr.mxu1 %v9197_v16  ;;  %12834 = vmatmul.mubr.msk.f32.gmra.mxu0 %vm467_vm1, %v8617_v23  ;;  %v9172_v23 = vld [vmem:[%s18206_s7 + $0x118] sm:$0xff]  ;;  %v9158_v16 = vld [vmem:[%s18206_s7 + $0xa8] sm:$0xff]  ;;  %v9263_v10 = vld [vmem:[%s18206_s7 + $0x3f0] sm:$0xff] }
 0x6d2   :  { %11372 = vmatpush3.msra.mxu1 %v9181_v27  ;;  %12860 = vmatprep.subr.mxu0 %v18303_v11  ;;  %v9458_v27 = vcombine.high %v17137_v30, %v17137_v30 }
 0x6d3   :  { %12887 = vmatprep.mubr.msk.f32.mxu1 %vm13146_vm0, %v18303_v11  ;;  %11373 = vmatprep.subr.mxu1 %v9196_v57  ;;  %v9142_v57 = vld [vmem:[%s18206_s7 + $0x28] sm:$0xff] }
 0x6d4   :  { %12861 = vmatpush3.msra.mxu0 %v13119_v38  ;;  %12888 = vmatmul.mubr.msk.f32.gmra.mxu1 %vm467_vm1, %v8876_v15  ;;  %v9169_v15 = vld [vmem:[%s18206_s7 + $0x100] sm:$0xff] }
 0x6d5   :  { %11374 = vmatpush3.msra.mxu1 %v9180_v45  ;;  %12836 = vmatprep.mubr.msk.f32.mxu0 %vm13146_vm0, %v18303_v11  ;;  %v9247_v45 = vld [vmem:[%s18206_s7 + $0x370] sm:$0xff]  ;;  %v9141_v38 = vld [vmem:[%s18206_s7 + $0x20] sm:$0xff] }
 0x6d6   :  { %11375 = vmatprep.subr.mxu1 %v9195_v44  ;;  %9654 = vmatprep.mubr.f32.mxu1 %v9441_v34  ;;  %v9262_v44 = vld [vmem:[%s18206_s7 + $0x3e8] sm:$0xff] }
 0x6d7   :  { %12837 = vmatmul.mubr.msk.f32.gmra.mxu0 %vm467_vm1, %v16869_v31  ;;  %12862 = vmatprep.subr.mxu0 %v18303_v11  ;;  %v9189_v31 = vld [vmem:[%s18206_s7 + $0x1a0] sm:$0xff]  ;;  %v9246_v34 = vld [vmem:[%s18206_s7 + $0x368] sm:$0xff] }
 0x6d8   :  { %11376 = vmatpush3.msra.mxu1 %v9179_v40  ;;  %12863 = vmatpush3.msra.mxu0 %v13120_v43  ;;  %v9156_v40 = vld [vmem:[%s18206_s7 + $0x98] sm:$0xff]  ;;  %v9155_v43 = vld [vmem:[%s18206_s7 + $0x90] sm:$0xff] }
 0x6d9   :  { %11377 = vmatprep.subr.mxu1 %v9194_v21  ;;  %12864 = vmatprep.mubr.msk.f32.mxu0 %vm13146_vm0, %v18303_v11  ;;  %v9261_v21 = vld [vmem:[%s18206_s7 + $0x3e0] sm:$0xff] }
 0x6da   :  { %11378 = vmatpush3.msra.mxu1 %v9178_v5  ;;  %11330 = vmatprep.subr.mxu0 %v9168_v17  ;;  %v9140_v5 = vld [vmem:[%s18206_s7 + $0x18] sm:$0xff]  ;;  %v9245_v17 = vld [vmem:[%s18206_s7 + $0x360] sm:$0xff] }
 0x6db   :  { %11379 = vmatprep.subr.mxu1 %v9193_v29  ;;  %12865 = vmatmul.mubr.msk.f32.vlgmr.msra.gmra.mxu0 %vm467_vm1, %v16871_v48  ;;  %v9173_v48 = vld [vmem:[%s18206_s7 + $0x120] sm:$0xff]  ;;  %v9260_v29 = vld [vmem:[%s18206_s7 + $0x3d8] sm:$0xff] }
 0x6dc   :  { %11331 = vmatpush3.msra.mxu0 %v9152_v50  ;;  %11380 = vmatpush3.msra.mxu1 %v9177_v47  ;;  %v9139_v50 = vld [vmem:[%s18206_s7 + $0x10] sm:$0xff]  ;;  %v9244_v47 = vld [vmem:[%s18206_s7 + $0x358] sm:$0xff] }
 0x6dd   :  { %11332 = vmatprep.subr.mxu0 %v9167_v9  ;;  %11381 = vmatprep.subr.mxu1 %v9192_v59  ;;  %v9154_v9 = vld [vmem:[%s18206_s7 + $0x88] sm:$0xff]  ;;  %v9259_v59 = vld [vmem:[%s18206_s7 + $0x3d0] sm:$0xff] }
 0x6de   :  { %11333 = vmatpush3.msra.mxu0 %v9151_v28  ;;  %11382 = vmatpush3.msra.mxu1 %v9176_v37  ;;  %v9138_v28 = vld [vmem:[%s18206_s7 + $0x8] sm:$0xff]  ;;  %v9243_v37 = vld [vmem:[%s18206_s7 + $0x350] sm:$0xff] }
 0x6df   :  { %12867 = vmatprep.mubr.msk.f32.mxu0 %vm13146_vm0, %v18303_v11  ;;  %11334 = vmatprep.subr.mxu0 %v9166_v4  ;;  %v9153_v4 = vld [vmem:[%s18206_s7 + $0x80] sm:$0xff] }
 0x6e0   :  { %11383 = vmatprep.subr.mxu1 %v9191_v51  ;;  %12868 = vmatmul.mubr.msk.f32.gmra.mxu0 %vm467_vm1, %v16886_v60  ;;  %v9162_v60 = vld [vmem:[%s18206_s7 + $0xc8] sm:$0xff] }
 0x6e1   :  { %11335 = vmatpush3.msra.mxu0 %v9150_v63  ;;  %11384 = vmatpush3.msra.mxu1 %v9175_v1  ;;  %v9258_v51 = vld [vmem:[%s18206_s7 + $0x3c8] sm:$0xff]  ;;  %v9137_v63 = vld [vmem:[%s18206_s7] sm:$0xff]  ;;  %v17222_v1 = vrot.slane %v17090_v3, %v14600_v0  ;;  %v9239_v3 = vld [vmem:[%s18206_s7 + $0x330] sm:$0xff] }
 0x6e2   :  { %11336 = vmatprep.subr.mxu0 %v9165_v58  ;;  %11385 = vmatprep.subr.mxu1 %v9190_v20  ;;  %v9242_v58 = vld [vmem:[%s18206_s7 + $0x348] sm:$0xff]  ;;  %v9232_v20 = vld [vmem:[%s18206_s7 + $0x2f8] sm:$0xff] }
 0x6e3   :  { %11337 = vmatpush3.msra.mxu0 %v9149_v26  ;;  %11386 = vmatpush3.msra.mxu1 %v9174_v12  ;;  %v9257_v26 = vld [vmem:[%s18206_s7 + $0x3c0] sm:$0xff]  ;;  %v9216_v12 = vld [vmem:[%s18206_s7 + $0x278] sm:$0xff] }
 0x6e4   :  { %12870 = vmatprep.mubr.msk.f32.mxu0 %vm13146_vm0, %v18303_v11  ;;  %11338 = vmatprep.subr.mxu0 %v9164_v56  ;;  %v9457_v56 = vcombine.high %v17222_v1, %v17222_v1 }
 0x6e5   :  { %11387 = vmatprep.subr.mxu1 %v9189_v31  ;;  %12871 = vmatmul.mubr.msk.f32.gmra.mxu0 %vm467_vm1, %v16899_v13  ;;  %v9161_v13 = vld [vmem:[%s18206_s7 + $0xc0] sm:$0xff] }
 0x6e6   :  { %11339 = vmatpush3.msra.mxu0 %v9148_v36  ;;  %11388 = vmatpush3.msra.mxu1 %v9173_v48  ;;  %v9241_v31 = vld [vmem:[%s18206_s7 + $0x340] sm:$0xff]  ;;  %v9231_v36 = vld [vmem:[%s18206_s7 + $0x2f0] sm:$0xff]  ;;  %v9256_v48 = vld [vmem:[%s18206_s7 + $0x3b8] sm:$0xff] }
 0x6e7   :  { %11340 = vmatprep.subr.mxu0 %v9163_v62  ;;  %9584 = vmatprep.mubr.f32.mxu0 %v9440_v18  ;;  %v9240_v62 = vld [vmem:[%s18206_s7 + $0x338] sm:$0xff]  ;;  %v9230_v18 = vld [vmem:[%s18206_s7 + $0x2e8] sm:$0xff] }
 0x6e8   :  { %11389 = vmatprep.subr.mxu1 %v9188_v46  ;;  %11341 = vmatpush3.msra.mxu0 %v9147_v49  ;;  %v9255_v46 = vld [vmem:[%s18206_s7 + $0x3b0] sm:$0xff]  ;;  %v9214_v49 = vld [vmem:[%s18206_s7 + $0x268] sm:$0xff] }
 0x6e9   :  { %11390 = vmatpush3.msra.mxu1 %v9172_v23  ;;  %11342 = vmatprep.subr.mxu0 %v9162_v60  ;;  %v9229_v23 = vld [vmem:[%s18206_s7 + $0x2e0] sm:$0xff]  ;;  %v9254_v60 = vld [vmem:[%s18206_s7 + $0x3a8] sm:$0xff] }
 0x6ea   :  { %11391 = vmatprep.subr.mxu1 %v9187_v33  ;;  %11343 = vmatpush3.msra.mxu0 %v9146_v55  ;;  %v9213_v33 = vld [vmem:[%s18206_s7 + $0x260] sm:$0xff]  ;;  %v9238_v55 = vld [vmem:[%s18206_s7 + $0x328] sm:$0xff] }
 0x6eb   :  { %11392 = vmatpush3.msra.mxu1 %v9171_v61  ;;  %11344 = vmatprep.subr.mxu0 %v9161_v13  ;;  %v9228_v61 = vld [vmem:[%s18206_s7 + $0x2d8] sm:$0xff]  ;;  %v9253_v13 = vld [vmem:[%s18206_s7 + $0x3a0] sm:$0xff] }
 0x6ec   :  { %11393 = vmatprep.subr.mxu1 %v9186_v54  ;;  %11345 = vmatpush3.msra.mxu0 %v9145_v14  ;;  %v9237_v54 = vld [vmem:[%s18206_s7 + $0x320] sm:$0xff]  ;;  %v9227_v14 = vld [vmem:[%s18206_s7 + $0x2d0] sm:$0xff] }
 0x6ed   :  { %11394 = vmatpush3.msra.mxu1 %v9170_v32  ;;  %11346 = vmatprep.subr.mxu0 %v9160_v2  ;;  %v9252_v32 = vld [vmem:[%s18206_s7 + $0x398] sm:$0xff]  ;;  %v9211_v2 = vld [vmem:[%s18206_s7 + $0x250] sm:$0xff] }
 0x6ee   :  { %11395 = vmatprep.subr.mxu1 %v9185_v35  ;;  %11347 = vmatpush3.msra.mxu0 %v9144_v53  ;;  %v9236_v35 = vld [vmem:[%s18206_s7 + $0x318] sm:$0xff]  ;;  %v9226_v53 = vld [vmem:[%s18206_s7 + $0x2c8] sm:$0xff] }
 0x6ef   :  { %11396 = vmatpush3.msra.mxu1 %v9169_v15  ;;  %11348 = vmatprep.subr.mxu0 %v9159_v24  ;;  %v9251_v15 = vld [vmem:[%s18206_s7 + $0x390] sm:$0xff]  ;;  %v9210_v24 = vld [vmem:[%s18206_s7 + $0x248] sm:$0xff] }
 0x6f0   :  { %9655 = vmatmul.mubr.f32.vlgmr.msra.gmra.mxu1 %v16968_v7  ;;  %11435 = vmatprep.subr.mxu1 %v9264_v25  ;;  %v9157_v7 = vld [vmem:[%s18206_s7 + $0xa0] sm:$0xff]  ;;  %v9235_v25 = vld [vmem:[%s18206_s7 + $0x310] sm:$0xff] }
 0x6f1   :  { %11349 = vmatpush3.msra.mxu0 %v9143_v6  ;;  %11436 = vmatpush3.msra.mxu1 %v9248_v8  ;;  %v9225_v6 = vld [vmem:[%s18206_s7 + $0x2c0] sm:$0xff]  ;;  %v9250_v8 = vld [vmem:[%s18206_s7 + $0x388] sm:$0xff] }
 0x6f2   :  { %9794 = vmatprep.mubr.f32.mxu1 %v9458_v27  ;;  %11350 = vmatprep.subr.mxu0 %v9158_v16  ;;  %v9209_v16 = vld [vmem:[%s18206_s7 + $0x240] sm:$0xff]  ;;  %v9234_v27 = vld [vmem:[%s18206_s7 + $0x308] sm:$0xff] }
 0x6f3   :  { %11437 = vmatprep.subr.mxu1 %v9263_v10  ;;  %11351 = vmatpush3.msra.mxu0 %v9142_v57  ;;  %v9224_v10 = vld [vmem:[%s18206_s7 + $0x2b8] sm:$0xff] }
 0x6f4   :  { %11438 = vmatpush3.msra.mxu1 %v9247_v45  ;;  %11352 = vmatprep.subr.mxu0 %v9157_v7  ;;  %v9249_v45 = vld [vmem:[%s18206_s7 + $0x380] sm:$0xff]  ;;  %v9208_v7 = vld [vmem:[%s18206_s7 + $0x238] sm:$0xff] }
 0x6f5   :  { %11439 = vmatprep.subr.mxu1 %v9262_v44  ;;  %11353 = vmatpush3.msra.mxu0 %v9141_v38  ;;  %v9233_v44 = vld [vmem:[%s18206_s7 + $0x300] sm:$0xff]  ;;  %v9223_v38 = vld [vmem:[%s18206_s7 + $0x2b0] sm:$0xff] }
 0x6f6   :  { %11440 = vmatpush3.msra.mxu1 %v9246_v34  ;;  %11354 = vmatprep.subr.mxu0 %v9156_v40  ;;  %v9207_v34 = vld [vmem:[%s18206_s7 + $0x230] sm:$0xff]  ;;  %v9222_v40 = vld [vmem:[%s18206_s7 + $0x2a8] sm:$0xff] }
 0x6f7   :  { %11441 = vmatprep.subr.mxu1 %v9261_v21  ;;  %11355 = vmatpush3.msra.mxu0 %v9140_v5 }
 0x6f8   :  { %11442 = vmatpush3.msra.mxu1 %v9245_v17  ;;  %11356 = vmatprep.subr.mxu0 %v9155_v43  ;;  %v9206_v17 = vld [vmem:[%s18206_s7 + $0x228] sm:$0xff]  ;;  %v9221_v43 = vld [vmem:[%s18206_s7 + $0x2a0] sm:$0xff] }
 0x6f9   :  { %11443 = vmatprep.subr.mxu1 %v9260_v29  ;;  %11357 = vmatpush3.msra.mxu0 %v9139_v50  ;;  %v9205_v29 = vld [vmem:[%s18206_s7 + $0x220] sm:$0xff]  ;;  %v9220_v50 = vld [vmem:[%s18206_s7 + $0x298] sm:$0xff] }
 0x6fa   :  { %11444 = vmatpush3.msra.mxu1 %v9244_v47  ;;  %11358 = vmatprep.subr.mxu0 %v9154_v9 }
 0x6fb   :  { %11445 = vmatprep.subr.mxu1 %v9259_v59  ;;  %11359 = vmatpush3.msra.mxu0 %v9138_v28  ;;  %v9219_v59 = vld [vmem:[%s18206_s7 + $0x290] sm:$0xff] }
 0x6fc   :  { %11446 = vmatpush3.msra.mxu1 %v9243_v37  ;;  %11360 = vmatprep.subr.mxu0 %v9153_v4  ;;  %v9203_v28 = vld [vmem:[%s18206_s7 + $0x210] sm:$0xff]  ;;  %v9218_v37 = vld [vmem:[%s18206_s7 + $0x288] sm:$0xff] }
 0x6fd   :  { %11447 = vmatprep.subr.mxu1 %v9258_v51  ;;  %11361 = vmatpush3.msra.mxu0 %v9137_v63  ;;  %v9202_v63 = vld [vmem:[%s18206_s7 + $0x208] sm:$0xff] }
 0x6fe   :  { %11448 = vmatpush3.msra.mxu1 %v9242_v58  ;;  %9585 = vmatmul.mubr.f32.vlgmr.msra.gmra.mxu0 %v17064_v41  ;;  %v9215_v41 = vld [vmem:[%s18206_s7 + $0x270] sm:$0xff]  ;;  %v9217_v58 = vld [vmem:[%s18206_s7 + $0x280] sm:$0xff] }
 0x6ff   :  { %11400 = vmatprep.subr.mxu0 %v9232_v20  ;;  %11449 = vmatprep.subr.mxu1 %v9257_v26  ;;  %v9201_v20 = vld [vmem:[%s18206_s7 + $0x200] sm:$0xff] }
 0x700   :  { %11401 = vmatpush3.msra.mxu0 %v9216_v12  ;;  %9724 = vmatprep.mubr.f32.mxu0 %v9457_v56 }
 0x701   :  { %11450 = vmatpush3.msra.mxu1 %v9241_v31  ;;  %11402 = vmatprep.subr.mxu0 %v9231_v36 }
 0x702   :  { %11451 = vmatprep.subr.mxu1 %v9256_v48  ;;  %11403 = vmatpush3.msra.mxu0 %v9215_v41  ;;  %v9296_v48 = vld [vmem:[%s18206_s7 + $0x4f8] sm:$0xff] }
 0x703   :  { %11452 = vmatpush3.msra.mxu1 %v9240_v62  ;;  %11404 = vmatprep.subr.mxu0 %v9230_v18  ;;  %v9280_v41 = vld [vmem:[%s18206_s7 + $0x478] sm:$0xff]  ;;  %v9279_v62 = vld [vmem:[%s18206_s7 + $0x470] sm:$0xff] }
 0x704   :  { %11453 = vmatprep.subr.mxu1 %v9255_v46  ;;  %11405 = vmatpush3.msra.mxu0 %v9214_v49  ;;  %v9328_v18 = vld [vmem:[%s18206_s7 + $0x5f8] sm:$0xff]  ;;  %v9294_v46 = vld [vmem:[%s18206_s7 + $0x4e8] sm:$0xff] }
 0x705   :  { %11454 = vmatpush3.msra.mxu1 %v9239_v3  ;;  %11406 = vmatprep.subr.mxu0 %v9229_v23  ;;  %v9312_v49 = vld [vmem:[%s18206_s7 + $0x578] sm:$0xff]  ;;  %v9327_v3 = vld [vmem:[%s18206_s7 + $0x5f0] sm:$0xff]  ;;  %v9278_v23 = vld [vmem:[%s18206_s7 + $0x468] sm:$0xff] }
 0x706   :  { %11455 = vmatprep.subr.mxu1 %v9254_v60  ;;  %11407 = vmatpush3.msra.mxu0 %v9213_v33  ;;  %v9311_v60 = vld [vmem:[%s18206_s7 + $0x570] sm:$0xff]  ;;  %v9293_v33 = vld [vmem:[%s18206_s7 + $0x4e0] sm:$0xff] }
 0x707   :  { %11456 = vmatpush3.msra.mxu1 %v9238_v55  ;;  %11408 = vmatprep.subr.mxu0 %v9228_v61  ;;  %v9326_v55 = vld [vmem:[%s18206_s7 + $0x5e8] sm:$0xff] }
 0x708   :  { %11457 = vmatprep.subr.mxu1 %v9253_v13  ;;  %11409 = vmatpush3.msra.mxu0 %v9212_v19  ;;  %v9310_v61 = vld [vmem:[%s18206_s7 + $0x568] sm:$0xff]  ;;  %v9277_v13 = vld [vmem:[%s18206_s7 + $0x460] sm:$0xff] }
 0x709   :  { %11458 = vmatpush3.msra.mxu1 %v9237_v54  ;;  %11410 = vmatprep.subr.mxu0 %v9227_v14  ;;  %v9325_v19 = vld [vmem:[%s18206_s7 + $0x5e0] sm:$0xff]  ;;  %v9292_v54 = vld [vmem:[%s18206_s7 + $0x4d8] sm:$0xff] }
 0x70a   :  { %11459 = vmatprep.subr.mxu1 %v9252_v32  ;;  %11411 = vmatpush3.msra.mxu0 %v9211_v2  ;;  %v9309_v14 = vld [vmem:[%s18206_s7 + $0x560] sm:$0xff]  ;;  %v9276_v32 = vld [vmem:[%s18206_s7 + $0x458] sm:$0xff] }
 0x70b   :  { %11460 = vmatpush3.msra.mxu1 %v9236_v35  ;;  %11412 = vmatprep.subr.mxu0 %v9226_v53  ;;  %v9324_v2 = vld [vmem:[%s18206_s7 + $0x5d8] sm:$0xff]  ;;  %v9291_v35 = vld [vmem:[%s18206_s7 + $0x4d0] sm:$0xff] }
 0x70c   :  { %11461 = vmatprep.subr.mxu1 %v9251_v15  ;;  %11413 = vmatpush3.msra.mxu0 %v9210_v24  ;;  %v7526_v57 = vpop.permute.xlu1 %7525  ;;  %v9308_v53 = vld [vmem:[%s18206_s7 + $0x558] sm:$0xff]  ;;  %v9275_v15 = vld [vmem:[%s18206_s7 + $0x450] sm:$0xff] }
 0x70d   :  { %11462 = vmatpush3.msra.mxu1 %v9235_v25  ;;  %11414 = vmatprep.subr.mxu0 %v9225_v6  ;;  %7528 = vst.msk [vmem:[#allocation2 + $0x16] sm:$0x1] %vm1590_vm5, %v7526_v57  ;;  %v9323_v24 = vld [vmem:[%s18206_s7 + $0x5d0] sm:$0xff]  ;;  %v9290_v25 = vld [vmem:[%s18206_s7 + $0x4c8] sm:$0xff] }
 0x70e   :  { %11463 = vmatprep.subr.mxu1 %v9250_v8  ;;  %11415 = vmatpush3.msra.mxu0 %v9209_v16  ;;  %v9307_v6 = vld [vmem:[%s18206_s7 + $0x550] sm:$0xff]  ;;  %v9274_v8 = vld [vmem:[%s18206_s7 + $0x448] sm:$0xff] }
 0x70f   :  { %11464 = vmatpush3.msra.mxu1 %v9234_v27  ;;  %11416 = vmatprep.subr.mxu0 %v9224_v10  ;;  %v9289_v27 = vld [vmem:[%s18206_s7 + $0x4c0] sm:$0xff] }
 0x710   :  { %11465 = vmatprep.subr.mxu1 %v9249_v45  ;;  %11417 = vmatpush3.msra.mxu0 %v9208_v7  ;;  %v7580_v21 = vpop.permute.xlu0 %7579  ;;  %v7532_v5 = vpop.permute.xlu1 %7531 }
 0x711   :  { %11466 = vmatpush3.msra.mxu1 %v9233_v44  ;;  %11418 = vmatprep.subr.mxu0 %v9223_v38  ;;  %7534 = vst.msk [vmem:[#allocation2 + $0x16] sm:$0x1] %vm1597_vm6, %v7532_v5 }
 0x712   :  { %9795 = vmatmul.mubr.f32.vlgmr.msra.gmra.mxu1 %v17137_v30  ;;  %11419 = vmatpush3.msra.mxu0 %v9207_v34  ;;  %v9204_v30 = vld [vmem:[%s18206_s7 + $0x218] sm:$0xff] }
 0x713   :  { %11420 = vmatprep.subr.mxu0 %v9222_v40  ;;  %11505 = vmatprep.subr.mxu1 %v9328_v18  ;;  %v9288_v18 = vld [vmem:[%s18206_s7 + $0x4b8] sm:$0xff] }
 0x714   :  { %11421 = vmatpush3.msra.mxu0 %v9206_v17  ;;  %v7568_v47 = vpop.permute.xlu0 %7567  ;;  %v7553_v9 = vpop.permute.xlu1 %7552  ;;  %11506 = vmatpush3.msra.mxu1 %v9312_v49  ;;  %v9306_v49 = vld [vmem:[%s18206_s7 + $0x548] sm:$0xff] }
 0x715   :  { %11422 = vmatprep.subr.mxu0 %v9221_v43  ;;  %7570 = vst.msk [vmem:[#allocation2 + $0x1a] sm:$0x1] %vm1584_vm4, %v7568_v47  ;;  %11507 = vmatprep.subr.mxu1 %v9327_v3  ;;  %v9272_v3 = vld [vmem:[%s18206_s7 + $0x438] sm:$0xff] }
 0x716   :  { %11423 = vmatpush3.msra.mxu0 %v9205_v29  ;;  %7582 = vst.msk [vmem:[#allocation2 + $0x1a] sm:$0x1] %vm1590_vm5, %v7580_v21  ;;  %11508 = vmatpush3.msra.mxu1 %v9311_v60 }
 0x717   :  { %11424 = vmatprep.subr.mxu0 %v9220_v50  ;;  %11509 = vmatprep.subr.mxu1 %v9326_v55  ;;  %v9287_v55 = vld [vmem:[%s18206_s7 + $0x4b0] sm:$0xff] }
 0x718   :  { %11425 = vmatpush3.msra.mxu0 %v9204_v30  ;;  %v7634_v4 = vpop.permute.xlu0 %7633  ;;  %v7541_v51 = vpop.permute.xlu1 %7540  ;;  %11510 = vmatpush3.msra.mxu1 %v9310_v61  ;;  %v9305_v61 = vld [vmem:[%s18206_s7 + $0x540] sm:$0xff] }
 0x719   :  { %11426 = vmatprep.subr.mxu0 %v9219_v59  ;;  %7543 = vst.msk [vmem:[#allocation2 + $0x18] sm:$0x1] %vm1584_vm4, %v7541_v51  ;;  %11511 = vmatprep.subr.mxu1 %v9325_v19 }
 0x71a   :  { %11427 = vmatpush3.msra.mxu0 %v9203_v28  ;;  %7555 = vst.msk [vmem:[#allocation2 + $0x18] sm:$0x1] %vm1590_vm5, %v7553_v9  ;;  %11512 = vmatpush3.msra.mxu1 %v9309_v14 }
 0x71b   :  { %11428 = vmatprep.subr.mxu0 %v9218_v37  ;;  %11513 = vmatprep.subr.mxu1 %v9324_v2  ;;  %v9320_v2 = vld [vmem:[%s18206_s7 + $0x5b8] sm:$0xff] }
 0x71c   :  { %11429 = vmatpush3.msra.mxu0 %v9202_v63  ;;  %v7622_v26 = vpop.permute.xlu0 %7621  ;;  %v7559_v12 = vpop.permute.xlu1 %7558  ;;  %11514 = vmatpush3.msra.mxu1 %v9308_v53 }
 0x71d   :  { %11430 = vmatprep.subr.mxu0 %v9217_v58  ;;  %7624 = vst.msk [vmem:[#allocation2 + $0x1e] sm:$0x1] %vm1584_vm4, %v7622_v26  ;;  %11515 = vmatprep.subr.mxu1 %v9323_v24  ;;  %v9304_v24 = vld [vmem:[%s18206_s7 + $0x538] sm:$0xff] }
 0x71e   :  { %7561 = vst.msk [vmem:[#allocation2 + $0x18] sm:$0x1] %vm1597_vm6, %v7559_v12  ;;  %11431 = vmatpush3.msra.mxu0 %v9201_v20  ;;  %11516 = vmatpush3.msra.mxu1 %v9307_v6  ;;  %v9319_v6 = vld [vmem:[%s18206_s7 + $0x5b0] sm:$0xff] }
 0x71f   :  { %7636 = vst.msk [vmem:[#allocation2 + $0x1e] sm:$0x1] %vm1590_vm5, %v7634_v4  ;;  %9725 = vmatmul.mubr.f32.vlgmr.msra.gmra.mxu0 %v17222_v1  ;;  %v9295_v1 = vld [vmem:[%s18206_s7 + $0x4f0] sm:$0xff]  ;;  %11470 = vmatprep.subr.mxu0 %v9296_v48 }
 0x720   :  { %v7607_v56 = vpop.permute.xlu1 %7606  ;;  %11471 = vmatpush3.msra.mxu0 %v9280_v41 }
 0x721   :  { %11472 = vmatprep.subr.mxu0 %v9295_v1  ;;  %v9273_v1 = vld [vmem:[%s18206_s7 + $0x440] sm:$0xff] }
 0x722   :  { %11473 = vmatpush3.msra.mxu0 %v9279_v62  ;;  %v9322_v62 = vld [vmem:[%s18206_s7 + $0x5c8] sm:$0xff] }
 0x723   :  { %11474 = vmatprep.subr.mxu0 %v9294_v46  ;;  %11517 = vmatprep.subr.mxu1 %v9322_v62  ;;  %v9266_v62 = vld [vmem:[%s18206_s7 + $0x408] sm:$0xff] }
 0x724   :  { %v7595_v31 = vpop.permute.xlu1 %7594  ;;  %11475 = vmatpush3.msra.mxu0 %v9278_v23  ;;  %v9321_v23 = vld [vmem:[%s18206_s7 + $0x5c0] sm:$0xff]  ;;  %11518 = vmatpush3.msra.mxu1 %v9306_v49 }
 0x725   :  { %7597 = vst.msk [vmem:[#allocation2 + $0x1c] sm:$0x1] %vm1584_vm4, %v7595_v31  ;;  %11476 = vmatprep.subr.mxu0 %v9293_v33  ;;  %11519 = vmatprep.subr.mxu1 %v9321_v23 }
 0x726   :  { %7609 = vst.msk [vmem:[#allocation2 + $0x1c] sm:$0x1] %vm1590_vm5, %v7607_v56  ;;  %11477 = vmatpush3.msra.mxu0 %v9277_v13  ;;  %v17506_v13 = vld [vmem:[%s18205_s6 + $0x2] ss:$0 sm:$0xff]  ;;  %11520 = vmatpush3.msra.mxu1 %v9305_v61 }
 0x727   :  { %11478 = vmatprep.subr.mxu0 %v9292_v54  ;;  %11521 = vmatprep.subr.mxu1 %v9320_v2  ;;  %v9360_v2 = vld [vmem:[%s18206_s7 + $0x6f8] sm:$0xff] }
 0x728   :  { %v7613_v36 = vpop.permute.xlu1 %7612  ;;  %11479 = vmatpush3.msra.mxu0 %v9276_v32  ;;  %v9271_v32 = vld [vmem:[%s18206_s7 + $0x430] sm:$0xff]  ;;  %11522 = vmatpush3.msra.mxu1 %v9304_v24 }
 0x729   :  { %7615 = vst.msk [vmem:[#allocation2 + $0x1c] sm:$0x1] %vm1597_vm6, %v7613_v36  ;;  %11480 = vmatprep.subr.mxu0 %v9291_v35  ;;  %v9286_v35 = vld [vmem:[%s18206_s7 + $0x4a8] sm:$0xff]  ;;  %11523 = vmatprep.subr.mxu1 %v9319_v6  ;;  %v9297_v6 = vld [vmem:[%s18206_s7 + $0x500] sm:$0xff] }
 0x72a   :  { %11481 = vmatpush3.msra.mxu0 %v9275_v15 }
 0x72b   :  { %11482 = vmatprep.subr.mxu0 %v9290_v25  ;;  %v9270_v25 = vld [vmem:[%s18206_s7 + $0x428] sm:$0xff] }
 0x72c   :  { %11483 = vmatpush3.msra.mxu0 %v9274_v8 }
 0x72d   :  { %11484 = vmatprep.subr.mxu0 %v9289_v27 }
 0x72e   :  { %11485 = vmatpush3.msra.mxu0 %v9273_v1  ;;  %v9300_v1 = vld [vmem:[%s18206_s7 + $0x518] sm:$0xff] }
 0x72f   :  { %11486 = vmatprep.subr.mxu0 %v9288_v18  ;;  %v9315_v18 = vld [vmem:[%s18206_s7 + $0x590] sm:$0xff] }
 0x730   :  { %11487 = vmatpush3.msra.mxu0 %v9272_v3 }
 0x731   :  { %11488 = vmatprep.subr.mxu0 %v9287_v55 }
 0x732   :  { %11489 = vmatpush3.msra.mxu0 %v9271_v32  ;;  %v9298_v32 = vld [vmem:[%s18206_s7 + $0x508] sm:$0xff] }
 0x733   :  { %11490 = vmatprep.subr.mxu0 %v9286_v35 }
 0x734   :  { %11491 = vmatpush3.msra.mxu0 %v9270_v25  ;;  %v10762_v25 = vrot.slane %v16786_v42, 9  ;;  %v9392_v42 = vld [vmem:[%s18206_s7 + $0x7f8] sm:$0xff] }
 0x770   :  { %v8599_v16 = vpop.f32.mrf.mxu1 }
 0x772   :  { %v12815_v10 = vpop.f32.mrf.mxu1 }
 0x774   :  { %v8604_v57 = vpop.f32.mrf.mxu1 }
 0x776   :  { %v12818_v45 = vpop.f32.mrf.mxu1 }
 0x777   :  { %v9285_v45 = vld [vmem:[%s18206_s7 + $0x4a0] sm:$0xff] }
 0x778   :  { %v8609_v7 = vpop.f32.mrf.mxu1  ;;  %11492 = vmatprep.subr.mxu0 %v9285_v45 }
 0x77a   :  { %v12821_v44 = vpop.f32.mrf.mxu1 }
 0x77b   :  { %v9303_v44 = vld [vmem:[%s18206_s7 + $0x530] sm:$0xff] }
 0x77c   :  { %v8779_v38 = vpop.f32.mrf.mxu1  ;;  %11524 = vmatpush3.msra.mxu1 %v9303_v44 }
 0x77e   :  { %v8510_v34 = vpop.f32.mrf.mxu0  ;;  %v12849_v40 = vpop.f32.mrf.mxu1 }
 0x77f   :  { %v8600_v31 = vadd.f32 %v8599_v16, %v8510_v34  ;;  %v9269_v40 = vld [vmem:[%s18206_s7 + $0x420] sm:$0xff] }
 0x780   :  { %v12798_v21 = vpop.f32.mrf.mxu0  ;;  %v8784_v5 = vpop.f32.mrf.mxu1  ;;  %11493 = vmatpush3.msra.mxu0 %v9269_v40 }
 0x781   :  { %v9318_v21 = vld [vmem:[%s18206_s7 + $0x5a8] sm:$0xff] }
 0x782   :  { %v8515_v17 = vpop.f32.mrf.mxu0  ;;  %v12852_v43 = vpop.f32.mrf.mxu1  ;;  %11525 = vmatprep.subr.mxu1 %v9318_v21  ;;  %v10767_v21 = vrot.slane %v16813_v52, 9 }
 0x783   :  { %v8605_v60 = vadd.f32 %v8604_v57, %v8515_v17  ;;  %v9302_v43 = vld [vmem:[%s18206_s7 + $0x528] sm:$0xff] }
 0x784   :  { %v12801_v29 = vpop.f32.mrf.mxu0  ;;  %v17475_v50 = vpop.f32.mrf.mxu1  ;;  %11526 = vmatpush3.msra.mxu1 %v9302_v43 }
 0x785   :  { %v9268_v29 = vld [vmem:[%s18206_s7 + $0x418] sm:$0xff] }
 0x786   :  { %v8520_v47 = vpop.f32.mrf.mxu0  ;;  %v12855_v9 = vpop.f32.mrf.mxu1 }
 0x787   :  { %v8610_v8 = vadd.f32 %v8609_v7, %v8520_v47  ;;  %v9317_v47 = vld [vmem:[%s18206_s7 + $0x5a0] sm:$0xff] }
 0x788   :  { %v12804_v30 = vpop.f32.mrf.mxu0  ;;  %11527 = vmatprep.subr.mxu1 %v9317_v47 }
 0x789   :  { %v8950_v59 = vpop.f32.mrf.mxu1 }
 0x78b   :  { %v12883_v28 = vpop.f32.mrf.mxu1 }
 0x78c   :  { %v8690_v37 = vpop.f32.mrf.mxu0  ;;  %v9301_v28 = vld [vmem:[%s18206_s7 + $0x520] sm:$0xff] }
 0x78d   :  { %v8704_v48 = vadd.f32 %v8690_v37, %v8600_v31  ;;  %11528 = vmatpush3.msra.mxu1 %v9301_v28  ;;  %v9316_v31 = vld [vmem:[%s18206_s7 + $0x598] sm:$0xff] }
 0x78e   :  { %v12832_v4 = vpop.f32.mrf.mxu0  ;;  %11529 = vmatprep.subr.mxu1 %v9316_v31  ;;  %v9344_v31 = vld [vmem:[%s18206_s7 + $0x678] sm:$0xff] }
 0x78f   :  { %v8955_v51 = vpop.f32.mrf.mxu1  ;;  %v8707_v19 = vadd.f32 %v17506_v13, %v8704_v48  ;;  %11530 = vmatpush3.msra.mxu1 %v9300_v1  ;;  %v9376_v1 = vld [vmem:[%s18206_s7 + $0x778] sm:$0xff] }
 0x790   :  { %11531 = vmatprep.subr.mxu1 %v9315_v18  ;;  %v9391_v18 = vld [vmem:[%s18206_s7 + $0x7f0] sm:$0xff] }
 0x791   :  { %v8695_v63 = vpop.f32.mrf.mxu0  ;;  %v12886_v58 = vpop.f32.mrf.mxu1  ;;  %v8710_v27 = vmax.f32 %v8707_v19, 0.0 }
 0x792   :  { %v8705_v14 = vadd.f32 %v8695_v63, %v8605_v60  ;;  %v9299_v60 = vld [vmem:[%s18206_s7 + $0x510] sm:$0xff] }
 0x793   :  { %v12835_v20 = vpop.f32.mrf.mxu0  ;;  %11532 = vmatpush3.msra.mxu1 %v9299_v60 }
 0x794   :  { %v17477_v26 = vpop.f32.mrf.mxu1 }
 0x796   :  { %v12889_v12 = vpop.f32.mrf.mxu1 }
 0x797   :  { %v8700_v56 = vpop.f32.mrf.mxu0 }
 0x798   :  { %v8706_v34 = vadd.f32 %v8700_v56, %v8610_v8  ;;  %v9267_v56 = vld [vmem:[%s18206_s7 + $0x410] sm:$0xff] }
 0x799   :  { %v12838_v36 = vpop.f32.mrf.mxu0 }
 0x79a   :  { %v8709_v58 = vadd.f32 %v17506_v13, %v8706_v34 }
 0x79b   :  { %v8859_v41 = vpop.f32.mrf.mxu0 }
 0x79c   :  { %v8860_v46 = vadd.f32 %v8859_v41, %v8779_v38  ;;  %v8708_v38 = vadd.f32 %v17506_v13, %v8705_v14  ;;  %v8712_v19 = vmax.f32 %v8709_v58, 0.0 }
 0x79d   :  { %v12866_v33 = vpop.f32.mrf.mxu0 }
 0x79e   :  { %v8964_v54 = vadd.f32 %v8950_v59, %v8860_v46  ;;  %v9283_v59 = vld [vmem:[%s18206_s7 + $0x490] sm:$0xff]  ;;  %v8711_v63 = vmax.f32 %v8708_v38, 0.0  ;;  %v9265_v33 = vld [vmem:[%s18206_s7 + $0x400] sm:$0xff] }
 0x7a0   :  { %v8967_v53 = vadd.f32 %v17506_v13, %v8964_v54  ;;  %v8864_v15 = vpop.f32.mrf.mxu0 }
 0x7a1   :  { %v8865_v16 = vadd.f32 %v8864_v15, %v8784_v5  ;;  %v9284_v5 = vld [vmem:[%s18206_s7 + $0x498] sm:$0xff]  ;;  %v9313_v15 = vld [vmem:[%s18206_s7 + $0x580] sm:$0xff] }
 0x7a2   :  { %v8970_v10 = vmax.f32 %v8967_v53, 0.0  ;;  %v12869_v57 = vpop.f32.mrf.mxu0  ;;  %11494 = vmatprep.subr.mxu0 %v9284_v5 }
 0x7a3   :  { %v8965_v7 = vadd.f32 %v8955_v51, %v8865_v16  ;;  %11495 = vmatpush3.msra.mxu0 %v9268_v29  ;;  %v10766_v57 = vrot.slane %v16804_v22, 9 }
 0x7a4   :  { %v8973_v17 = vmax.f32 %v8710_v27, %v8970_v10  ;;  %11496 = vmatprep.subr.mxu0 %v9283_v59 }
 0x7a5   :  { %v8968_v9 = vadd.f32 %v17506_v13, %v8965_v7  ;;  %v8869_v30 = vpop.f32.mrf.mxu0  ;;  %11497 = vmatpush3.msra.mxu0 %v9267_v56 }
 0x7a6   :  { %v9003_v37 = vcombine.high %v8973_v17, %v8973_v17  ;;  %v8870_v4 = vadd.f32 %v8869_v30, %v17475_v50  ;;  %v8983_v51 = vrot.slane %v8973_v17, %v14600_v0  ;;  %v9282_v50 = vld [vmem:[%s18206_s7 + $0x488] sm:$0xff]  ;;  %v10768_v17 = vrot.slane %v16816_v39, 9 }
 0x7a7   :  { %v8971_v20 = vmax.f32 %v8968_v9, 0.0  ;;  %v12872_v12 = vpop.f32.mrf.mxu0  ;;  %11498 = vmatprep.subr.mxu0 %v9282_v50 }
 0x7a8   :  { %v8966_v36 = vadd.f32 %v17477_v26, %v8870_v4  ;;  %8984 = vrot.lane.b32.xlu0 %v8983_v51, %s13150_s19  ;;  %v9010_v48 = vrot.slane %v9003_v37, %v14600_v0  ;;  %v8994_v41 = vcombine.high %v8983_v51, %v8983_v51  ;;  %v9281_v26 = vld [vmem:[%s18206_s7 + $0x480] sm:$0xff]  ;;  %v10805_v3 = vrot.slane %v8983_v51, 9  ;;  %11499 = vmatpush3.msra.mxu0 %v9266_v62  ;;  %v9358_v62 = vld [vmem:[%s18206_s7 + $0x6e8] sm:$0xff] }
 0x7a9   :  { %v8974_v46 = vmax.f32 %v8711_v63, %v8971_v20  ;;  %11500 = vmatprep.subr.mxu0 %v9281_v26  ;;  %v9342_v26 = vld [vmem:[%s18206_s7 + $0x668] sm:$0xff] }
 0x7aa   :  { %v8969_v49 = vadd.f32 %v17506_v13, %v8966_v36  ;;  %9011 = vrot.lane.b32.xlu1 %v9010_v48, %s13150_s19  ;;  %8996 = vst.msk [vmem:[#allocation2 + $0x19] sm:$0x1] %vm1569_vm3, %v8994_v41  ;;  %v9021_v23 = vcombine.high %v9010_v48, %v9010_v48  ;;  %v9314_v13 = vld [vmem:[%s18206_s7 + $0x588] sm:$0xff]  ;;  %v10806_v14 = vrot.slane %v8994_v41, 9  ;;  %11501 = vmatpush3.msra.mxu0 %v9265_v33  ;;  %v10807_v27 = vrot.slane %v9010_v48, 9  ;;  %v9359_v36 = vld [vmem:[%s18206_s7 + $0x6f0] sm:$0xff] }
 0x7ab   :  { %v9057_v55 = vcombine.high %v8974_v46, %v8974_v46  ;;  %v9037_v61 = vrot.slane %v8974_v46, %v14600_v0  ;;  %11533 = vmatprep.subr.mxu1 %v9314_v13  ;;  %11540 = vmatprep.subr.mxu0 %v9360_v2  ;;  %v9343_v41 = vld [vmem:[%s18206_s7 + $0x670] sm:$0xff]  ;;  %v9341_v33 = vld [vmem:[%s18206_s7 + $0x660] sm:$0xff]  ;;  %v9388_v2 = vld [vmem:[%s18206_s7 + $0x7d8] sm:$0xff] }
 0x7ac   :  { %v8972_v54 = vmax.f32 %v8969_v49, 0.0  ;;  %8990 = vrot.lane.b32.xlu0 %v10805_v3, %s13151_s20  ;;  %9023 = vst.msk [vmem:[#allocation2 + $0x1b] sm:$0x1] %vm1569_vm3, %v9021_v23  ;;  %11534 = vmatpush3.msra.mxu1 %v9298_v32  ;;  %v10808_v7 = vrot.slane %v9021_v23, 9  ;;  %v9375_v49 = vld [vmem:[%s18206_s7 + $0x770] sm:$0xff]  ;;  %v9357_v3 = vld [vmem:[%s18206_s7 + $0x6e0] sm:$0xff] }
 0x7ad   :  { %v9064_v35 = vrot.slane %v9057_v55, %v14600_v0  ;;  %v9048_v53 = vcombine.high %v9037_v61, %v9037_v61  ;;  %11535 = vmatprep.subr.mxu1 %v9313_v15  ;;  %v10809_v40 = vrot.slane %v9037_v61, 9  ;;  %v9390_v23 = vld [vmem:[%s18206_s7 + $0x7e8] sm:$0xff]  ;;  %v9389_v13 = vld [vmem:[%s18206_s7 + $0x7e0] sm:$0xff]  ;;  %v9355_v32 = vld [vmem:[%s18206_s7 + $0x6d0] sm:$0xff] }
 0x7ae   :  { %v8975_v24 = vmax.f32 %v8712_v19, %v8972_v54  ;;  %8999 = vrot.lane.b32.xlu1 %v10806_v14, %s13149_s18  ;;  %11536 = vmatpush3.msra.mxu1 %v9297_v6  ;;  %v9374_v55 = vld [vmem:[%s18206_s7 + $0x768] sm:$0xff]  ;;  %v9340_v54 = vld [vmem:[%s18206_s7 + $0x658] sm:$0xff]  ;;  %v9373_v14 = vld [vmem:[%s18206_s7 + $0x760] sm:$0xff] }
 0x7af   :  { %9050 = vst.msk [vmem:[#allocation2 + $0x1d] sm:$0x1] %vm1569_vm3, %v9048_v53  ;;  %v9075_v8 = vcombine.high %v9064_v35, %v9064_v35  ;;  %11575 = vmatprep.subr.mxu1 %v9392_v42  ;;  %v10810_v34 = vrot.slane %v9048_v53, 9  ;;  %v10811_v22 = vrot.slane %v9064_v35, 9  ;;  %v9339_v53 = vld [vmem:[%s18206_s7 + $0x650] sm:$0xff]  ;;  %v9372_v15 = vld [vmem:[%s18206_s7 + $0x758] sm:$0xff] }
 0x7b0   :  { %v9111_v16 = vcombine.high %v8975_v24, %v8975_v24  ;;  %7585 = vrot.lane.b32.xlu0 %v10762_v25, %s13151_s20  ;;  %v9091_v10 = vrot.slane %v8975_v24, %v14600_v0  ;;  %v9354_v24 = vld [vmem:[%s18206_s7 + $0x6c8] sm:$0xff]  ;;  %v9387_v25 = vld [vmem:[%s18206_s7 + $0x7d0] sm:$0xff] }
 0x7b1   :  { %9077 = vst.msk [vmem:[#allocation2 + $0x1f] sm:$0x1] %vm1569_vm3, %v9075_v8  ;;  %v10812_v5 = vrot.slane %v9075_v8, 9  ;;  %v9338_v8 = vld [vmem:[%s18206_s7 + $0x648] sm:$0xff] }
 0x7b2   :  { %9017 = vrot.lane.b32.xlu1 %v10807_v27, %s13151_s20  ;;  %v9118_v45 = vrot.slane %v9111_v16, %v14600_v0  ;;  %v9102_v44 = vcombine.high %v9091_v10, %v9091_v10  ;;  %v10813_v43 = vrot.slane %v9091_v10, 9  ;;  %v9371_v16 = vld [vmem:[%s18206_s7 + $0x750] sm:$0xff]  ;;  %v9353_v27 = vld [vmem:[%s18206_s7 + $0x6c0] sm:$0xff] }
 0x7b4   :  { %7639 = vrot.lane.b32.xlu0 %v10766_v57, %s13151_s20  ;;  %v9129_v38 = vcombine.high %v9118_v45, %v9118_v45  ;;  %9104 = vst.msk [vmem:[#allocation2 + $0x21] sm:$0x1] %vm1569_vm3, %v9102_v44  ;;  %v10814_v52 = vrot.slane %v9102_v44, 9  ;;  %v10815_v29 = vrot.slane %v9118_v45, 9  ;;  %v9337_v57 = vld [vmem:[%s18206_s7 + $0x640] sm:$0xff]  ;;  %v9352_v44 = vld [vmem:[%s18206_s7 + $0x6b8] sm:$0xff] }
 0x7b6   :  { %9065 = vrot.lane.b32.xlu1 %v9064_v35, %s13150_s19  ;;  %9131 = vst.msk [vmem:[#allocation2 + $0x23] sm:$0x1] %vm1569_vm3, %v9129_v38  ;;  %v9385_v38 = vld [vmem:[%s18206_s7 + $0x7c0] sm:$0xff] }
 0x7b8   :  { %9038 = vrot.lane.b32.xlu0 %v9037_v61, %s13150_s19  ;;  %v9356_v61 = vld [vmem:[%s18206_s7 + $0x6d8] sm:$0xff] }
 0x7ba   :  { %9053 = vrot.lane.b32.xlu1 %v10810_v34, %s13149_s18 }
 0x7bc   :  { %9026 = vrot.lane.b32.xlu0 %v10808_v7, %s13149_s18  ;;  %v9336_v7 = vld [vmem:[%s18206_s7 + $0x638] sm:$0xff] }
 0x7be   :  { %9071 = vrot.lane.b32.xlu1 %v10811_v22, %s13151_s20  ;;  %v9369_v22 = vld [vmem:[%s18206_s7 + $0x740] sm:$0xff] }
 0x7c0   :  { %9044 = vrot.lane.b32.xlu0 %v10809_v40, %s13151_s20  ;;  %v9351_v40 = vld [vmem:[%s18206_s7 + $0x6b0] sm:$0xff] }
 0x7c2   :  { %7648 = vrot.lane.b32.xlu1 %v10767_v21, %s13149_s18  ;;  %v9384_v21 = vld [vmem:[%s18206_s7 + $0x7b8] sm:$0xff] }
 0x7c4   :  { %9092 = vrot.lane.b32.xlu0 %v9091_v10, %s13150_s19  ;;  %v9386_v10 = vld [vmem:[%s18206_s7 + $0x7c8] sm:$0xff] }
 0x7c6   :  { %7660 = vrot.lane.b32.xlu1 %v16816_v39, %s13150_s19 }
 0x7c8   :  { %9080 = vrot.lane.b32.xlu0 %v10812_v5, %s13149_s18 }
 0x7ca   :  { %7666 = vrot.lane.b32.xlu1 %v10768_v17, %s13151_s20  ;;  %v9335_v17 = vld [vmem:[%s18206_s7 + $0x630] sm:$0xff] }
 0x7cc   :  { %9098 = vrot.lane.b32.xlu0 %v10813_v43, %s13151_s20  ;;  %v9368_v43 = vld [vmem:[%s18206_s7 + $0x738] sm:$0xff] }
 0x7d0   :  { %9119 = vrot.lane.b32.xlu0 %v9118_v45, %s13150_s19  ;;  %v9370_v45 = vld [vmem:[%s18206_s7 + $0x748] sm:$0xff] }
 0x7d4   :  { %9107 = vrot.lane.b32.xlu0 %v10814_v52, %s13149_s18  ;;  %v9350_v52 = vld [vmem:[%s18206_s7 + $0x6a8] sm:$0xff] }
 0x7d8   :  { %9125 = vrot.lane.b32.xlu0 %v10815_v29, %s13151_s20  ;;  %v9383_v29 = vld [vmem:[%s18206_s7 + $0x7b0] sm:$0xff] }
 0x81a   :  { %v8985_v47 = vpop.permute.xlu0 %8984 }
 0x81b   :  { %8987 = vst.msk [vmem:[#allocation2 + $0x17] sm:$0x1] %vm1590_vm5, %v8985_v47 }
 0x81c   :  { %v9012_v9 = vpop.permute.xlu1 %9011 }
 0x81e   :  { %v8991_v30 = vpop.permute.xlu0 %8990 }
 0x81f   :  { %8993 = vst.msk [vmem:[#allocation2 + $0x17] sm:$0x1] %vm1597_vm6, %v8991_v30  ;;  %v9367_v30 = vld [vmem:[%s18206_s7 + $0x730] sm:$0xff] }
 0x820   :  { %v9000_v39 = vpop.permute.xlu1 %8999 }
 0x821   :  { %9002 = vst.msk [vmem:[#allocation2 + $0x19] sm:$0x1] %vm1584_vm4, %v9000_v39  ;;  %v9349_v39 = vld [vmem:[%s18206_s7 + $0x6a0] sm:$0xff] }
 0x822   :  { %9014 = vst.msk [vmem:[#allocation2 + $0x19] sm:$0x1] %vm1590_vm5, %v9012_v9  ;;  %v7586_v59 = vpop.permute.xlu0 %7585  ;;  %v9334_v9 = vld [vmem:[%s18206_s7 + $0x628] sm:$0xff] }
 0x823   :  { %7588 = vst.msk [vmem:[#allocation2 + $0x1a] sm:$0x1] %vm1597_vm6, %v7586_v59  ;;  %v9382_v59 = vld [vmem:[%s18206_s7 + $0x7a8] sm:$0xff] }
 0x824   :  { %v9018_v28 = vpop.permute.xlu1 %9017 }
 0x825   :  { %9020 = vst.msk [vmem:[#allocation2 + $0x19] sm:$0x1] %vm1597_vm6, %v9018_v28  ;;  %v9333_v28 = vld [vmem:[%s18206_s7 + $0x620] sm:$0xff] }
 0x826   :  { %v7640_v37 = vpop.permute.xlu0 %7639  ;;  %v9134_v4 = vld [vmem:[#allocation2 + $0x10] sm:$0xff] }
 0x827   :  { %7642 = vst.msk [vmem:[#allocation2 + $0x1e] sm:$0x1] %vm1597_vm6, %v7640_v37  ;;  %v9466_v51 = vrot.slane %v9134_v4, %v14600_v0  ;;  %v9459_v63 = vcombine.high %v9134_v4, %v9134_v4  ;;  %v9366_v37 = vld [vmem:[%s18206_s7 + $0x728] sm:$0xff]  ;;  %v9348_v4 = vld [vmem:[%s18206_s7 + $0x698] sm:$0xff] }
 0x828   :  { %v9066_v58 = vpop.permute.xlu1 %9065 }
 0x829   :  { %v9474_v20 = vcombine.high %v9466_v51, %v9466_v51  ;;  %v9473_v12 = vrot.slane %v9459_v63, %v14600_v0 }
 0x82a   :  { %v9039_v56 = vpop.permute.xlu0 %9038 }
 0x82b   :  { %9864 = vmatprep.mubr.f32.mxu0 %v9474_v20  ;;  %v9475_v50 = vcombine.high %v9473_v12, %v9473_v12  ;;  %v9365_v20 = vld [vmem:[%s18206_s7 + $0x720] sm:$0xff] }
 0x82c   :  { %9865 = vmatmul.mubr.f32.vlgmr.msra.gmra.mxu0 %v9466_v51  ;;  %v9054_v48 = vpop.permute.xlu1 %9053  ;;  %v9381_v51 = vld [vmem:[%s18206_s7 + $0x7a0] sm:$0xff] }
 0x82d   :  { %11541 = vmatpush3.msra.mxu0 %v9344_v31  ;;  %9056 = vst.msk [vmem:[#allocation2 + $0x1d] sm:$0x1] %vm1584_vm4, %v9054_v48  ;;  %9934 = vmatprep.mubr.f32.mxu1 %v9475_v50  ;;  %v9331_v31 = vld [vmem:[%s18206_s7 + $0x610] sm:$0xff]  ;;  %v9364_v50 = vld [vmem:[%s18206_s7 + $0x718] sm:$0xff] }
 0x82e   :  { %9068 = vst.msk [vmem:[#allocation2 + $0x1d] sm:$0x1] %vm1590_vm5, %v9066_v58  ;;  %11542 = vmatprep.subr.mxu0 %v9359_v36  ;;  %v9027_v46 = vpop.permute.xlu0 %9026  ;;  %9935 = vmatmul.mubr.f32.vlgmr.msra.gmra.mxu1 %v9473_v12  ;;  %v9332_v58 = vld [vmem:[%s18206_s7 + $0x618] sm:$0xff]  ;;  %v9347_v12 = vld [vmem:[%s18206_s7 + $0x690] sm:$0xff]  ;;  %v9346_v36 = vld [vmem:[%s18206_s7 + $0x688] sm:$0xff] }
 0x82f   :  { %9029 = vst.msk [vmem:[#allocation2 + $0x1b] sm:$0x1] %vm1584_vm4, %v9027_v46  ;;  %11543 = vmatpush3.msra.mxu0 %v9343_v41  ;;  %11576 = vmatpush3.msra.mxu1 %v9376_v1  ;;  %v9379_v48 = vld [vmem:[%s18206_s7 + $0x790] sm:$0xff]  ;;  %v9330_v1 = vld [vmem:[%s18206_s7 + $0x608] sm:$0xff]  ;;  %v9345_v46 = vld [vmem:[%s18206_s7 + $0x680] sm:$0xff] }
 0x830   :  { %9041 = vst.msk [vmem:[#allocation2 + $0x1b] sm:$0x1] %vm1590_vm5, %v9039_v56  ;;  %11544 = vmatprep.subr.mxu0 %v9358_v62  ;;  %11577 = vmatprep.subr.mxu1 %v9391_v18  ;;  %v9072_v60 = vpop.permute.xlu1 %9071  ;;  %v9380_v56 = vld [vmem:[%s18206_s7 + $0x798] sm:$0xff]  ;;  %v9363_v62 = vld [vmem:[%s18206_s7 + $0x710] sm:$0xff] }
 0x831   :  { %11545 = vmatpush3.msra.mxu0 %v9342_v26  ;;  %9074 = vst.msk [vmem:[#allocation2 + $0x1d] sm:$0x1] %vm1597_vm6, %v9072_v60  ;;  %11578 = vmatpush3.msra.mxu1 %v9375_v49  ;;  %v9378_v26 = vld [vmem:[%s18206_s7 + $0x788] sm:$0xff] }
 0x832   :  { %11546 = vmatprep.subr.mxu0 %v9357_v3  ;;  %v9045_v19 = vpop.permute.xlu0 %9044  ;;  %11579 = vmatprep.subr.mxu1 %v9390_v23  ;;  %v9329_v23 = vld [vmem:[%s18206_s7 + $0x600] sm:$0xff] }
 0x833   :  { %9047 = vst.msk [vmem:[#allocation2 + $0x1b] sm:$0x1] %vm1597_vm6, %v9045_v19  ;;  %11547 = vmatpush3.msra.mxu0 %v9341_v33  ;;  %11580 = vmatpush3.msra.mxu1 %v9374_v55  ;;  %v9362_v33 = vld [vmem:[%s18206_s7 + $0x708] sm:$0xff]  ;;  %v9408_v19 = vld [vmem:[%s18206_s7 + $0x878] sm:$0xff] }
 0x834   :  { %11548 = vmatprep.subr.mxu0 %v9356_v61  ;;  %11581 = vmatprep.subr.mxu1 %v9389_v13  ;;  %v7649_v35 = vpop.permute.xlu1 %7648  ;;  %v9377_v13 = vld [vmem:[%s18206_s7 + $0x780] sm:$0xff] }
 0x835   :  { %11549 = vmatpush3.msra.mxu0 %v9340_v54  ;;  %7651 = vst.msk [vmem:[#allocation2 + $0x20] sm:$0x1] %vm1584_vm4, %v7649_v35  ;;  %11582 = vmatpush3.msra.mxu1 %v9373_v14  ;;  %v9361_v54 = vld [vmem:[%s18206_s7 + $0x700] sm:$0xff]  ;;  %v9407_v14 = vld [vmem:[%s18206_s7 + $0x870] sm:$0xff] }
 0x836   :  { %11550 = vmatprep.subr.mxu0 %v9355_v32  ;;  %v9093_v6 = vpop.permute.xlu0 %9092  ;;  %11583 = vmatprep.subr.mxu1 %v9388_v2  ;;  %v9406_v32 = vld [vmem:[%s18206_s7 + $0x868] sm:$0xff]  ;;  %v17874_v2 = vld [vmem:[%s18208_s9 + $0x60] sm:$0xf] }
 0x837   :  { %11551 = vmatpush3.msra.mxu0 %v9339_v53  ;;  %11584 = vmatpush3.msra.mxu1 %v9372_v15  ;;  %v9405_v35 = vld [vmem:[%s18206_s7 + $0x860] sm:$0xff]  ;;  %v17884_v53 = vld [vmem:[%s18208_s9 + $0x58] sm:$0xff] }
 0x838   :  { %11552 = vmatprep.subr.mxu0 %v9354_v24  ;;  %11585 = vmatprep.subr.mxu1 %v9387_v25  ;;  %v7661_v42 = vpop.permute.xlu1 %7660  ;;  %v9404_v24 = vld [vmem:[%s18206_s7 + $0x858] sm:$0xff] }
 0x839   :  { %11553 = vmatpush3.msra.mxu0 %v9338_v8  ;;  %7663 = vst.msk [vmem:[#allocation2 + $0x20] sm:$0x1] %vm1590_vm5, %v7661_v42  ;;  %11586 = vmatpush3.msra.mxu1 %v9371_v16  ;;  %v9403_v8 = vld [vmem:[%s18206_s7 + $0x850] sm:$0xff]  ;;  %v17912_v16 = vld [vmem:[%s18208_s9 + $0x48] sm:$0xff]  ;;  %v9401_v42 = vld [vmem:[%s18206_s7 + $0x840] sm:$0xff] }
 0x83a   :  { %11554 = vmatprep.subr.mxu0 %v9353_v27  ;;  %v9081_v34 = vpop.permute.xlu0 %9080  ;;  %11587 = vmatprep.subr.mxu1 %v9386_v10  ;;  %v9402_v27 = vld [vmem:[%s18206_s7 + $0x848] sm:$0xff]  ;;  %v17923_v10 = vld [vmem:[%s18208_s9 + $0x40] sm:$0xff] }
 0x83b   :  { %9083 = vst.msk [vmem:[#allocation2 + $0x1f] sm:$0x1] %vm1584_vm4, %v9081_v34  ;;  %11555 = vmatpush3.msra.mxu0 %v9337_v57  ;;  %11588 = vmatpush3.msra.mxu1 %v9370_v45  ;;  %v17934_v57 = vld [vmem:[%s18208_s9 + $0x38] sm:$0xff]  ;;  %v17956_v34 = vld [vmem:[%s18208_s9 + $0x28] sm:$0xff] }
 0x83c   :  { %9095 = vst.msk [vmem:[#allocation2 + $0x1f] sm:$0x1] %vm1590_vm5, %v9093_v6  ;;  %11556 = vmatprep.subr.mxu0 %v9352_v44  ;;  %11589 = vmatprep.subr.mxu1 %v9385_v38  ;;  %v7667_v5 = vpop.permute.xlu1 %7666  ;;  %v17901_v6 = vld [vmem:[%s18208_s9 + $0x50] sm:$0xff]  ;;  %v9400_v45 = vld [vmem:[%s18206_s7 + $0x838] sm:$0xff] }
 0x83d   :  { %11557 = vmatpush3.msra.mxu0 %v9336_v7  ;;  %7669 = vst.msk [vmem:[#allocation2 + $0x20] sm:$0x1] %vm1597_vm6, %v7667_v5  ;;  %11590 = vmatpush3.msra.mxu1 %v9369_v22  ;;  %v17945_v44 = vld [vmem:[%s18208_s9 + $0x30] sm:$0xff]  ;;  %v9398_v7 = vld [vmem:[%s18206_s7 + $0x828] sm:$0xff]  ;;  %v17967_v22 = vld [vmem:[%s18208_s9 + $0x20] sm:$0xff] }
 0x83e   :  { %11558 = vmatprep.subr.mxu0 %v9351_v40  ;;  %v9099_v47 = vpop.permute.xlu0 %9098  ;;  %11591 = vmatprep.subr.mxu1 %v9384_v21  ;;  %v9399_v38 = vld [vmem:[%s18206_s7 + $0x830] sm:$0xff]  ;;  %v9397_v40 = vld [vmem:[%s18206_s7 + $0x820] sm:$0xff]  ;;  %v17978_v21 = vld [vmem:[%s18208_s9 + $0x18] sm:$0xff] }
 0x83f   :  { %9101 = vst.msk [vmem:[#allocation2 + $0x1f] sm:$0x1] %vm1597_vm6, %v9099_v47  ;;  %11559 = vmatpush3.msra.mxu0 %v9335_v17  ;;  %11592 = vmatpush3.msra.mxu1 %v9368_v43  ;;  %v9396_v5 = vld [vmem:[%s18206_s7 + $0x818] sm:$0xff]  ;;  %v10152_v17 = vld [vmem:[%s18208_s9 + $0x10] sm:$0xff]  ;;  %v10150_v47 = vld [vmem:[%s18208_s9] sm:$0xff] }
 0x840   :  { %11560 = vmatprep.subr.mxu0 %v9350_v52  ;;  %11593 = vmatprep.subr.mxu1 %v9383_v29  ;;  %v9395_v43 = vld [vmem:[%s18206_s7 + $0x810] sm:$0xff]  ;;  %v10151_v52 = vld [vmem:[%s18208_s9 + $0x8] sm:$0xff] }
 0x841   :  { %11561 = vmatpush3.msra.mxu0 %v9334_v9  ;;  %11594 = vmatpush3.msra.mxu1 %v9367_v30  ;;  %v9394_v29 = vld [vmem:[%s18206_s7 + $0x808] sm:$0xff]  ;;  %v9393_v9 = vld [vmem:[%s18206_s7 + $0x800] sm:$0xff]  ;;  %v9412_v30 = vld [vmem:[%s18206_s7 + $0x898] sm:$0xff] }
 0x842   :  { %11562 = vmatprep.subr.mxu0 %v9349_v39  ;;  %v9120_v63 = vpop.permute.xlu0 %9119  ;;  %11595 = vmatprep.subr.mxu1 %v9382_v59  ;;  %v9411_v39 = vld [vmem:[%s18206_s7 + $0x890] sm:$0xff]  ;;  %v9410_v59 = vld [vmem:[%s18206_s7 + $0x888] sm:$0xff] }
 0x843   :  { %11563 = vmatpush3.msra.mxu0 %v9333_v28  ;;  %11596 = vmatpush3.msra.mxu1 %v9366_v37  ;;  %v9409_v28 = vld [vmem:[%s18206_s7 + $0x880] sm:$0xff] }
 0x844   :  { %11564 = vmatprep.subr.mxu0 %v9348_v4  ;;  %11597 = vmatprep.subr.mxu1 %v9381_v51  ;;  %v18064_v37 = vld [vmem:[%s18209_s10 + $0x60] sm:$0xf]  ;;  %v18069_v4 = vld [vmem:[%s18209_s10 + $0x58] sm:$0xff]  ;;  %v18077_v51 = vld [vmem:[%s18209_s10 + $0x50] sm:$0xff] }
 0x845   :  { %11565 = vmatpush3.msra.mxu0 %v9332_v58  ;;  %11598 = vmatpush3.msra.mxu1 %v9365_v20  ;;  %v18093_v58 = vld [vmem:[%s18209_s10 + $0x40] sm:$0xff]  ;;  %v18098_v20 = vld [vmem:[%s18209_s10 + $0x38] sm:$0xff] }
 0x846   :  { %11566 = vmatprep.subr.mxu0 %v9347_v12  ;;  %v9108_v41 = vpop.permute.xlu0 %9107  ;;  %11599 = vmatprep.subr.mxu1 %v9380_v56  ;;  %v9135_v18 = vld [vmem:[#allocation2 + $0x18] sm:$0xff]  ;;  %v18105_v12 = vld [vmem:[%s18209_s10 + $0x30] sm:$0xff]  ;;  %v18112_v56 = vld [vmem:[%s18209_s10 + $0x28] sm:$0xff] }
 0x847   :  { %9110 = vst.msk [vmem:[#allocation2 + $0x21] sm:$0x1] %vm1584_vm4, %v9108_v41  ;;  %11567 = vmatpush3.msra.mxu0 %v9331_v31  ;;  %11600 = vmatpush3.msra.mxu1 %v9364_v50  ;;  %v9483_v49 = vrot.slane %v9135_v18, %v14600_v0  ;;  %v9476_v3 = vcombine.high %v9135_v18, %v9135_v18  ;;  %v18119_v31 = vld [vmem:[%s18209_s10 + $0x20] sm:$0xff]  ;;  %v18126_v50 = vld [vmem:[%s18209_s10 + $0x18] sm:$0xff] }
 0x848   :  { %9122 = vst.msk [vmem:[#allocation2 + $0x21] sm:$0x1] %vm1590_vm5, %v9120_v63  ;;  %11568 = vmatprep.subr.mxu0 %v9346_v36  ;;  %11601 = vmatprep.subr.mxu1 %v9379_v48  ;;  %v18086_v63 = vld [vmem:[%s18209_s10 + $0x48] sm:$0xff]  ;;  %v18133_v36 = vld [vmem:[%s18209_s10 + $0x10] sm:$0xff]  ;;  %v18147_v41 = vld [vmem:[%s18209_s10] sm:$0xff] }
 0x849   :  { %11569 = vmatpush3.msra.mxu0 %v9330_v1  ;;  %11602 = vmatpush3.msra.mxu1 %v9363_v62  ;;  %v9491_v60 = vcombine.high %v9483_v49, %v9483_v49  ;;  %v9490_v55 = vrot.slane %v9476_v3, %v14600_v0  ;;  %v18140_v48 = vld [vmem:[%s18209_s10 + $0x8] sm:$0xff]  ;;  %v11362_v1 = vpop.f32.mrf.mxu0  ;;  %v11397_v62 = vpop.f32.mrf.mxu1  ;;  %v10816_v3 = vld [vmem:[%s18207_s8] ss:$0 sm:$0xff] }
 0x84a   :  { %11570 = vmatprep.subr.mxu0 %v9345_v46  ;;  %v9126_v61 = vpop.permute.xlu0 %9125  ;;  %11603 = vmatprep.subr.mxu1 %v9378_v26 }
 0x84b   :  { %9128 = vst.msk [vmem:[#allocation2 + $0x21] sm:$0x1] %vm1597_vm6, %v9126_v61  ;;  %11571 = vmatpush3.msra.mxu0 %v9329_v23  ;;  %10004 = vmatprep.mubr.f32.mxu0 %v9491_v60  ;;  %v9492_v0 = vcombine.high %v9490_v55, %v9490_v55  ;;  %v11363_v18 = vpop.f32.mrf.mxu0  ;;  %v11398_v46 = vpop.f32.mrf.mxu1 }
 0x84c   :  { %11604 = vmatpush3.msra.mxu1 %v9362_v33  ;;  %10080 = vmatprep.subr.mxu0 %v18303_v11 }
 0x84d   :  { %10005 = vmatmul.mubr.f32.vlgmr.msra.gmra.mxu0 %v9483_v49  ;;  %11605 = vmatprep.subr.mxu1 %v9377_v13  ;;  %v11432_v26 = vpop.f32.mrf.mxu0  ;;  %v11364_v49 = vadd.f32 %v11363_v18, %v11362_v1  ;;  %v11467_v23 = vpop.f32.mrf.mxu1  ;;  %v11399_v13 = vadd.f32 %v11398_v46, %v11397_v62 }
 0x84e   :  { %10081 = vmatpush1.msra.mxu0 %v9408_v19  ;;  %11606 = vmatpush3.msra.mxu1 %v9361_v54 }
 0x84f   :  { %10074 = vmatprep.mubr.f32.mxu1 %v9492_v0  ;;  %10082 = vmatprep.subr.mxu0 %v18303_v11  ;;  %v11433_v60 = vpop.f32.mrf.mxu0  ;;  %v9587_v33 = vadd.f32 %v11364_v49, %v10816_v3 }
 0x850   :  { %10075 = vmatmul.mubr.f32.vlgmr.msra.gmra.mxu1 %v9490_v55  ;;  %10083 = vmatpush1.msra.mxu0 %v9407_v14  ;;  %v11468_v55 = vpop.f32.mrf.mxu1  ;;  %v11434_v19 = vadd.f32 %v11433_v60, %v11432_v26 }
 0x851   :  { %10084 = vmatprep.subr.mxu0 %v18303_v11  ;;  %12890 = vmatprep.subr.mxu1 %v18303_v11  ;;  %v9657_v0 = vadd.f32 %v11399_v13, %v9587_v33 }
 0x852   :  { %10085 = vmatpush1.msra.mxu0 %v9406_v32  ;;  %v17886_v15 = vld.sshfl [vmem:[#allocation2 + $0x20] sm:$0x33 pattern:$0x76325410]  ;;  %12891 = vmatpush3.msk.msra.mxu1 %vm10181_vm7, %v17874_v2 }
 0x853   :  { %10086 = vmatprep.subr.mxu0 %v18303_v11  ;;  %v9500_v25 = vcombine.high %v17886_v15, %v17886_v15  ;;  %12892 = vmatprep.subr.mxu1 %v18303_v11  ;;  %v9727_v32 = vadd.f32 %v11434_v19, %v9657_v0 }
 0x854   :  { %10087 = vmatpush1.msra.mxu0 %v9405_v35  ;;  %12893 = vmatpush3.msra.mxu1 %v17884_v53 }
 0x855   :  { %10088 = vmatprep.subr.mxu0 %v18303_v11  ;;  %10818 = vmatprep.mubr.msk.f32.mxu0 %vm467_vm1, %v9500_v25 }
 0x856   :  { %10089 = vmatpush1.msra.mxu0 %v9404_v24  ;;  %12894 = vmatprep.subr.mxu1 %v18303_v11 }
 0x857   :  { %10090 = vmatprep.subr.mxu0 %v18303_v11  ;;  %12895 = vmatpush3.msra.mxu1 %v17901_v6 }
 0x858   :  { %10091 = vmatpush1.msra.mxu0 %v9403_v8  ;;  %12896 = vmatprep.subr.mxu1 %v18303_v11 }
 0x859   :  { %10092 = vmatprep.subr.mxu0 %v18303_v11  ;;  %12897 = vmatpush3.msra.mxu1 %v17912_v16 }
 0x85a   :  { %10093 = vmatpush1.msra.mxu0 %v9402_v27  ;;  %12898 = vmatprep.subr.mxu1 %v18303_v11 }
 0x85b   :  { %10094 = vmatprep.subr.mxu0 %v18303_v11  ;;  %12899 = vmatpush3.msra.mxu1 %v17923_v10 }
 0x85c   :  { %10095 = vmatpush1.msra.mxu0 %v9401_v42  ;;  %12900 = vmatprep.subr.mxu1 %v18303_v11 }
 0x85d   :  { %10096 = vmatprep.subr.mxu0 %v18303_v11  ;;  %12901 = vmatpush3.msra.mxu1 %v17934_v57 }
 0x85e   :  { %10097 = vmatpush1.msra.mxu0 %v9400_v45  ;;  %12902 = vmatprep.subr.mxu1 %v18303_v11 }
 0x85f   :  { %10098 = vmatprep.subr.mxu0 %v18303_v11  ;;  %12903 = vmatpush3.msra.mxu1 %v17945_v44 }
 0x860   :  { %10099 = vmatpush1.msra.mxu0 %v9399_v38  ;;  %12904 = vmatprep.subr.mxu1 %v18303_v11 }
 0x861   :  { %10100 = vmatprep.subr.mxu0 %v18303_v11  ;;  %12905 = vmatpush3.msra.mxu1 %v17956_v34 }
 0x862   :  { %10101 = vmatpush1.msra.mxu0 %v9398_v7  ;;  %12906 = vmatprep.subr.mxu1 %v18303_v11 }
 0x863   :  { %10102 = vmatprep.subr.mxu0 %v18303_v11  ;;  %12907 = vmatpush3.msra.mxu1 %v17967_v22 }
 0x864   :  { %10103 = vmatpush1.msra.mxu0 %v9397_v40  ;;  %12908 = vmatprep.subr.mxu1 %v18303_v11 }
 0x865   :  { %10104 = vmatprep.subr.mxu0 %v18303_v11  ;;  %12909 = vmatpush3.msra.mxu1 %v17978_v21 }
 0x866   :  { %10105 = vmatpush1.msra.mxu0 %v9396_v5  ;;  %12910 = vmatprep.subr.mxu1 %v18303_v11 }
 0x867   :  { %10106 = vmatprep.subr.mxu0 %v18303_v11  ;;  %12911 = vmatpush3.msra.mxu1 %v10152_v17 }
 0x868   :  { %10107 = vmatpush1.msra.mxu0 %v9395_v43  ;;  %12912 = vmatprep.subr.mxu1 %v18303_v11 }
 0x869   :  { %10108 = vmatprep.subr.mxu0 %v18303_v11  ;;  %12913 = vmatpush3.msra.mxu1 %v10151_v52 }
 0x86a   :  { %10109 = vmatpush1.msra.mxu0 %v9394_v29  ;;  %12914 = vmatprep.subr.mxu1 %v18303_v11 }
 0x86b   :  { %10110 = vmatprep.subr.mxu0 %v18303_v11  ;;  %12915 = vmatpush3.msra.mxu1 %v10150_v47 }
 0x86c   :  { %10111 = vmatpush1.msra.mxu0 %v9393_v9  ;;  %12916 = vmatprep.mubr.msk.f32.mxu1 %vm13146_vm0, %v18303_v11 }
 0x86d   :  { %10136 = vmatprep.subr.mxu0 %v18303_v11  ;;  %12917 = vmatmul.mubr.f32.vlgmr.msra.gmra.mxu1 %v18303_v11 }
 0x86e   :  { %10137 = vmatpush2.msra.mxu0 %v9412_v30  ;;  %12919 = vmatprep.subr.mxu1 %v18303_v11 }
 0x86f   :  { %10138 = vmatprep.subr.mxu0 %v18303_v11  ;;  %12945 = vmatprep.mubr.msk.f32.mxu1 %vm13146_vm0, %v18303_v11 }
 0x870   :  { %10139 = vmatpush2.msra.mxu0 %v9411_v39  ;;  %12920 = vmatpush3.msk.msra.mxu1 %vm10181_vm7, %v18064_v37 }
 0x871   :  { %10140 = vmatprep.subr.mxu0 %v18303_v11  ;;  %12921 = vmatprep.subr.mxu1 %v18303_v11 }
 0x872   :  { %10141 = vmatpush2.msra.mxu0 %v9410_v59  ;;  %12922 = vmatpush3.msra.mxu1 %v18069_v4 }
 0x873   :  { %10142 = vmatprep.subr.mxu0 %v18303_v11  ;;  %12923 = vmatprep.subr.mxu1 %v18303_v11 }
 0x874   :  { %10143 = vmatpush2.msra.mxu0 %v9409_v28  ;;  %12924 = vmatpush3.msra.mxu1 %v18077_v51 }
 0x875   :  { %10145 = vmatmul.mubr.f32.vlgmr.msra.gmra.mxu0 %v17886_v15  ;;  %12948 = vmatprep.subr.mxu0 %v18303_v11 }
 0x876   :  { %12949 = vmatpush3.msk.msra.mxu0 %vm10181_vm7, %v17874_v2  ;;  %12974 = vmatprep.mubr.msk.f32.mxu0 %vm13146_vm0, %v18303_v11 }
 0x877   :  { %12950 = vmatprep.subr.mxu0 %v18303_v11  ;;  %12925 = vmatprep.subr.mxu1 %v18303_v11 }
 0x878   :  { %12951 = vmatpush3.msra.mxu0 %v17884_v53  ;;  %12926 = vmatpush3.msra.mxu1 %v18086_v63  ;;  %v11469_v53 = vadd.f32 %v11468_v55, %v11467_v23 }
 0x879   :  { %12952 = vmatprep.subr.mxu0 %v18303_v11  ;;  %12927 = vmatprep.subr.mxu1 %v18303_v11 }
 0x87a   :  { %12953 = vmatpush3.msra.mxu0 %v17901_v6  ;;  %12928 = vmatpush3.msra.mxu1 %v18093_v58  ;;  %v9797_v25 = vadd.f32 %v11469_v53, %v9727_v32 }
 0x87b   :  { %12954 = vmatprep.subr.mxu0 %v18303_v11  ;;  %12929 = vmatprep.subr.mxu1 %v18303_v11 }
 0x87c   :  { %12955 = vmatpush3.msra.mxu0 %v17912_v16  ;;  %12930 = vmatpush3.msra.mxu1 %v18098_v20 }
 0x87d   :  { %12956 = vmatprep.subr.mxu0 %v18303_v11  ;;  %12931 = vmatprep.subr.mxu1 %v18303_v11 }
 0x87e   :  { %12957 = vmatpush3.msra.mxu0 %v17923_v10  ;;  %12932 = vmatpush3.msra.mxu1 %v18105_v12 }
 0x87f   :  { %12958 = vmatprep.subr.mxu0 %v18303_v11  ;;  %12933 = vmatprep.subr.mxu1 %v18303_v11 }
 0x880   :  { %12959 = vmatpush3.msra.mxu0 %v17934_v57  ;;  %12934 = vmatpush3.msra.mxu1 %v18112_v56 }
 0x881   :  { %12960 = vmatprep.subr.mxu0 %v18303_v11  ;;  %12935 = vmatprep.subr.mxu1 %v18303_v11 }
 0x882   :  { %12961 = vmatpush3.msra.mxu0 %v17945_v44  ;;  %12936 = vmatpush3.msra.mxu1 %v18119_v31 }
 0x883   :  { %12962 = vmatprep.subr.mxu0 %v18303_v11  ;;  %12937 = vmatprep.subr.mxu1 %v18303_v11 }
 0x884   :  { %12963 = vmatpush3.msra.mxu0 %v17956_v34  ;;  %12938 = vmatpush3.msra.mxu1 %v18126_v50 }
 0x885   :  { %12964 = vmatprep.subr.mxu0 %v18303_v11  ;;  %12939 = vmatprep.subr.mxu1 %v18303_v11 }
 0x886   :  { %12965 = vmatpush3.msra.mxu0 %v17967_v22  ;;  %12940 = vmatpush3.msra.mxu1 %v18133_v36 }
 0x887   :  { %12966 = vmatprep.subr.mxu0 %v18303_v11  ;;  %12941 = vmatprep.subr.mxu1 %v18303_v11 }
 0x888   :  { %12967 = vmatpush3.msra.mxu0 %v17978_v21  ;;  %12942 = vmatpush3.msra.mxu1 %v18140_v48 }
 0x889   :  { %12968 = vmatprep.subr.mxu0 %v18303_v11  ;;  %12943 = vmatprep.subr.mxu1 %v18303_v11 }
 0x88a   :  { %12969 = vmatpush3.msra.mxu0 %v10152_v17  ;;  %12944 = vmatpush3.msra.mxu1 %v18147_v41  ;;  %v10176_v17 = vld [vmem:[%s18210_s11] sm:$0x1]  ;;  %s13152_s11 = smov [#allocation3]  }
 0x88b   :  { %12970 = vmatprep.subr.mxu0 %v18303_v11  ;;  %12977 = vmatprep.subr.mxu1 %v18303_v11  ;;  %s10517_s24 = sshll.u32 %s13152_s11, 4  ;;  %s10518_s24 = int_to_ptr.vmem [resolvable:$true] %s10517_s24 }
 0x88c   :  { %12971 = vmatpush3.msra.mxu0 %v10151_v52  ;;  %s13122_s3 = scalar_lea.vmem %s10518_s24, 32  ;;  %p13127_p1 = scmp.lt.s32.totalorder %s10518_s24, %s10518_s24 }
 0x88d   :  { %12972 = vmatprep.subr.mxu0 %v18303_v11  ;;  %p13123_p0 = scmp.ne.s32.totalorder %s10518_s24, %s13122_s3  ;;  %p13128_p2 = scmp.lt.s32.totalorder %s13122_s3, %s13122_s3 }
 0x88e   :  { %12973 = vmatpush3.msra.mxu0 %v10150_v47 }
 0x88f   :  { %p13129_p3 = por %p13128_p2, %p13127_p1 }
 0x891   :  { %p13130_p4 = pnand %p13129_p3, %p13123_p0 }
 0x8ec   :  { %v11502_v61 = vpop.f32.mrf.mxu0 }
 0x8ee   :  { %v11537_v54 = vpop.f32.mrf.mxu1  ;;  %v11503_v14 = vpop.f32.mrf.mxu0 }
 0x8ef   :  { %v11504_v15 = vadd.f32 %v11503_v14, %v11502_v61 }
 0x8f0   :  { %v11538_v2 = vpop.f32.mrf.mxu1 }
 0x8f1   :  { %v9867_v8 = vadd.f32 %v11504_v15, %v9797_v25  ;;  %v11539_v16 = vadd.f32 %v11538_v2, %v11537_v54 }
 0x8f3   :  { %v9937_v57 = vadd.f32 %v11539_v16, %v9867_v8 }
 0x90d   :  { %v11572_v35 = vpop.f32.mrf.mxu0 }
 0x90f   :  { %v11573_v6 = vpop.f32.mrf.mxu0 }
 0x910   :  { %v11607_v24 = vpop.f32.mrf.mxu1  ;;  %v11574_v10 = vadd.f32 %v11573_v6, %v11572_v35 }
 0x912   :  { %v11608_v27 = vpop.f32.mrf.mxu1  ;;  %v10007_v44 = vadd.f32 %v11574_v10, %v9937_v57 }
 0x913   :  { %v11609_v38 = vadd.f32 %v11608_v27, %v11607_v24 }
 0x915   :  { %v10077_v34 = vadd.f32 %v11609_v38, %v10007_v44 }
 0x92d   :  { %v10251_v42 = vpop.f32.mrf.mxu1 }
 0x92f   :  { %v12918_v45 = vpop.f32.mrf.mxu1 }
 0x935   :  { %v10146_v7 = vpop.f32.mrf.mxu0 }
 0x936   :  { %v10147_v22 = vadd.f32 %v10146_v7, %v10077_v34 }
 0x937   :  { %v10148_v40 = vpop.f32.mrf.mxu0 }
 0x938   :  { %v10255_v21 = vadd.f32 %v10251_v42, %v10147_v22 }
 0x93a   :  { %13038 = vtanh.f32 %v10255_v21 }
 0x947   :  { %v13039_v5 = vpop.eup %13038 }
 0x948   :  { %12946 = vmatmul.mubr.msk.f32.vlgmr.msra.gmra.mxu1 %vm10177_vm8, %v13039_v5  ;;  %12975 = vmatmul.mubr.msk.f32.vlgmr.msra.gmra.mxu0 %vm10177_vm8, %v13039_v5 }
 0x949   :  { %12978 = vmatpush3.msk.msra.mxu1 %vm10181_vm7, %v18064_v37  ;;  %13003 = vmatprep.mubr.msk.f32.mxu1 %vm13146_vm0, %v18303_v11 }
 0x94a   :  { %12979 = vmatprep.subr.mxu1 %v18303_v11 }
 0x94b   :  { %12980 = vmatpush3.msra.mxu1 %v18069_v4 }
 0x94c   :  { %12981 = vmatprep.subr.mxu1 %v18303_v11 }
 0x94d   :  { %12982 = vmatpush3.msra.mxu1 %v18077_v51 }
 0x94e   :  { %12983 = vmatprep.subr.mxu1 %v18303_v11 }
 0x94f   :  { %12984 = vmatpush3.msra.mxu1 %v18086_v63 }
 0x950   :  { %12985 = vmatprep.subr.mxu1 %v18303_v11 }
 0x951   :  { %12986 = vmatpush3.msra.mxu1 %v18093_v58 }
 0x952   :  { %12987 = vmatprep.subr.mxu1 %v18303_v11 }
 0x953   :  { %12988 = vmatpush3.msra.mxu1 %v18098_v20 }
 0x954   :  { %12989 = vmatprep.subr.mxu1 %v18303_v11 }
 0x955   :  { %12990 = vmatpush3.msra.mxu1 %v18105_v12 }
 0x956   :  { %12991 = vmatprep.subr.mxu1 %v18303_v11 }
 0x957   :  { %12992 = vmatpush3.msra.mxu1 %v18112_v56 }
 0x958   :  { %12993 = vmatprep.subr.mxu1 %v18303_v11 }
 0x959   :  { %12994 = vmatpush3.msra.mxu1 %v18119_v31 }
 0x95a   :  { %12995 = vmatprep.subr.mxu1 %v18303_v11 }
 0x95b   :  { %12996 = vmatpush3.msra.mxu1 %v18126_v50 }
 0x95c   :  { %12997 = vmatprep.subr.mxu1 %v18303_v11 }
 0x95d   :  { %12998 = vmatpush3.msra.mxu1 %v18133_v36 }
 0x95e   :  { %12999 = vmatprep.subr.mxu1 %v18303_v11 }
 0x95f   :  { %13000 = vmatpush3.msra.mxu1 %v18140_v48 }
 0x960   :  { %13001 = vmatprep.subr.mxu1 %v18303_v11 }
 0x961   :  { %13002 = vmatpush3.msra.mxu1 %v18147_v41 }
 0xa08   :  { %v10329_v43 = vpop.f32.mrf.mxu1  ;;  %v10414_v52 = vpop.f32.mrf.mxu0 }
 0xa09   :  { %v10330_v29 = vadd.f32 %v10329_v43, %v10176_v17  ;;  %v10419_v47 = vrot.slane %v10414_v52, 7 }
 0xa0a   :  { %v12947_v9 = vpop.f32.mrf.mxu1  ;;  %v12976_v30 = vpop.f32.mrf.mxu0 }
 0xa0b   :  { %v10421_v39 = vadd.f32 %v10419_v47, %v10147_v22  ;;  %v10334_v59 = vsel %vm10333_vm9, %v10330_v29, -inf }
 0xa0c   :  { %10335 = vmax.xlane.f32.xlu1 %v10334_v59 }
 0xa0d   :  { %13040 = vtanh.f32 %v10421_v39 }
 0xa1a   :  { %v13041_v28 = vpop.eup %13040 }
 0xa1b   :  { %v10424_v11 = vrot.slane %v13041_v28, 1 }
 0xa1d   :  { %13004 = vmatmul.mubr.msk.f32.vlgmr.msra.gmra.mxu1 %vm10177_vm8, %v10424_v11 }
 0xa95   :  { %v10336_v37 = vpop.xlane.xlu1 %10335 }
 0xa96   :  { %v10337_v4 = vsub.f32 %v10330_v29, %v10336_v37 }
 0xa98   :  { %v10338_v51 = vmul.f32 1.442695, %v10337_v4 }
 0xa9a   :  { %13042 = vpow2.f32 %v10338_v51 }
 0xaa7   :  { %v13043_v56 = vpop.eup %13042 }
 0xaa8   :  { %v10340_v31 = vsel %vm10333_vm9, %v13043_v56, 0.0 }
 0xadd   :  { %v10493_v63 = vpop.f32.mrf.mxu1 }
 0xade   :  { %v10494_v58 = vadd.f32 %v10493_v63, %v10176_v17 }
 0xadf   :  { %v13005_v20 = vpop.f32.mrf.mxu1 }
 0xae0   :  { %v10497_v12 = vsel %vm10333_vm9, %v10494_v58, -inf }
 0xae1   :  { %10498 = vmax.xlane.f32.xlu0 %v10497_v12 }
 0xae5   :  { %10341 = vadd.xlane.f32.xlu0 %v10340_v31 }
 0xb6a   :  { %v10499_v50 = vpop.xlane.xlu0 %10498 }
 0xb6b   :  { %v10500_v36 = vsub.f32 %v10494_v58, %v10499_v50 }
 0xb6d   :  { %v10501_v48 = vmul.f32 1.442695, %v10500_v36 }
 0xb6e   :  { %v10342_v41 = vpop.xlane.xlu0 %10341 }
 0xb6f   :  { %13044 = vpow2.f32 %v10501_v48 }
 0xb70   :  { %13046 = vlog2.f32 %v10342_v41 }
 0xb7c   :  { %v13045_v1 = vpop.eup %13044 }
 0xb7d   :  { %v13047_v62 = vpop.eup %13046  ;;  %v10503_v18 = vsel %vm10333_vm9, %v13045_v1, 0.0 }
 0xb7e   :  { %v10344_v46 = vmul.f32 0.6931472, %v13047_v62  ;;  %10504 = vadd.xlane.f32.xlu1 %v10503_v18 }
 0xb80   :  { %v10345_v26 = vadd.f32 %v10344_v46, %v10336_v37 }
 0xb82   :  { %v10346_v49 = vsub.f32 %v10330_v29, %v10345_v26 }
 0xb84   :  { %10347 = vst.msk [vmem:[#allocation3] sm:$0x1] %vm10333_vm9, %v10346_v49 }
 0xc07   :  { %v10505_v3 = vpop.xlane.xlu1 %10504 }
 0xc08   :  { %13048 = vlog2.f32 %v10505_v3 }
 0xc15   :  { %v13049_v23 = vpop.eup %13048 }
 0xc16   :  { %v10507_v60 = vmul.f32 0.6931472, %v13049_v23 }
 0xc18   :  { %v10508_v33 = vadd.f32 %v10507_v60, %v10499_v50 }
 0xc1a   :  { %v10509_v55 = vsub.f32 %v10494_v58, %v10508_v33 }
 0xc1c   :  { %10510 = vst.msk [vmem:[#allocation3 + $0x1] sm:$0x1] %vm10333_vm9, %v10509_v55 }
 0xc1d   :  { %13133 = shalt.err (!%p13130_p4)
}
 0xc1e   :  { %10520 = dma.vmem_to_hbm [thread:$0]  %s10518_s24, 32, %s18211_s12, [#allocation4]  }
 0xc1f   :  { %13142 = dma.done.wait [#allocation4], 32  }
 0xc20   :  { %13143 = vsyncadd [#allocation4], 4294967264 }
 0xc21   :  { %10524 = vsyncpa [#allocation4], 1 }

</bundles_post_ra>
